<compile_context>
chip_gen: v5e
topology: v5e:2x2
jax: 0.10.0
libtpu: 0.0.40
codegen_flags: <defaults>
</compile_context>

<pallas_src>
import functools

import jax
import jax.numpy as jnp
import numpy as np
from jax.experimental import pallas as pl
from jax.experimental.pallas import tpu as pltpu


def _align8(n):
    return ((n + 7) // 8) * 8


# ----------------------------------------------------------------------------
# The single fused kernel.
# ----------------------------------------------------------------------------
def _mtb_fused_kernel(x_ref, pk_ref, w1_ref, aux_ref, o_ref, h_scr, *,
                      L, B, BP, F, CinP, WP, offs):
    o_w1, o_b1, o_w2, o_b2, o_w3, o_b3 = offs

    # ---- branch stack: 3 x (1x1 conv + BN(eval) + ReLU), all branches fused ----
    x = x_ref[...]                                      # (L*BP, CinP) f32
    w1 = pk_ref[o_w1:o_w1 + CinP, :]                    # (CinP, WP)
    b1 = pk_ref[o_b1:o_b1 + 1, :]                       # (1, WP)
    w2 = pk_ref[o_w2:o_w2 + WP, :]                      # (WP, WP) block-diagonal
    b2 = pk_ref[o_b2:o_b2 + 1, :]
    w3 = pk_ref[o_w3:o_w3 + WP, :]                      # (WP, WP) block-diagonal
    b3 = pk_ref[o_b3:o_b3 + 1, :]
    h = jnp.maximum(jnp.dot(x, w1, preferred_element_type=jnp.float32) + b1, 0.0)
    h = jnp.maximum(jnp.dot(h, w2, preferred_element_type=jnp.float32) + b2, 0.0)
    h = jnp.maximum(jnp.dot(h, w3, preferred_element_type=jnp.float32) + b3, 0.0)
    h_scr[...] = h                                      # stays in VMEM, never hits HBM

    # ---- regressor: fc1 (bf16 weight stream) + ReLU + fc2 epilogue ----
    N = w1_ref.shape[1]
    acc = jnp.zeros((BP, N), jnp.float32)
    for l in range(L):                                  # static unroll, aligned loads
        hb = h_scr[l * BP:(l + 1) * BP, 0:F].astype(jnp.bfloat16)     # (BP, F)
        wb = w1_ref[l * F:(l + 1) * F, :]                              # (F, N) bf16
        acc = acc + jnp.dot(hb, wb, preferred_element_type=jnp.float32)

    b1_fc = aux_ref[0:1, :]                             # (1, N) fc1 bias
    w2_fc = aux_ref[1:2, :]                             # (1, N) fc2 weight as a row
    b2_fc = aux_ref[2:3, 0:1]                           # (1, 1) fc2 bias
    a = jnp.maximum(acc + b1_fc, 0.0)
    # TODO(synk): Dropout(p=0.1) is eval-mode identity here.
    out = jnp.sum(a * w2_fc, axis=1, keepdims=True) + b2_fc           # (BP, 1)
    o_ref[...] = out[0:B, :].astype(o_ref.dtype)        # drop padded batch rows


# ----------------------------------------------------------------------------
# Forward pass wrapper (one pallas_call).
# ----------------------------------------------------------------------------
def mtb_forward(kparams, x):
    """x: (B, in_channel, L) float32 (PyTorch NCL layout). Returns (B, 1)."""
    meta = kparams["meta"]
    B, Cin, L = x.shape
    BP = _align8(B)
    CinP = meta["CinP"]
    # Tokens in (l, b) order with batch padded to a full 8-row sublane tile.
    x_t = jnp.transpose(x, (2, 0, 1)).astype(jnp.float32)       # (L, B, Cin)
    x_t = jnp.pad(x_t, ((0, 0), (0, BP - B), (0, CinP - Cin)))  # (L, BP, CinP)
    x_tok = x_t.reshape(L * BP, CinP)

    kernel = functools.partial(
        _mtb_fused_kernel, L=L, B=B, BP=BP, F=meta["F"], CinP=CinP,
        WP=meta["WP"], offs=meta["offs"])
    return pl.pallas_call(
        kernel,
        out_shape=jax.ShapeDtypeStruct((B, 1), jnp.float32),
        grid=(1,),
        in_specs=[
            pl.BlockSpec((L * BP, CinP), lambda i: (0, 0)),              # tokens
            pl.BlockSpec(kparams["branch_pack"].shape, lambda i: (0, 0)),  # branch slab
            pl.BlockSpec(kparams["fc1_w"].shape, lambda i: (0, 0)),      # fc1 weight (bf16)
            pl.BlockSpec(kparams["fc_aux"].shape, lambda i: (0, 0)),     # fc aux slab
        ],
        out_specs=pl.BlockSpec((B, 1), lambda i: (0, 0)),
        scratch_shapes=[pltpu.VMEM((L * BP, meta["WP"]), jnp.float32)],
        compiler_params=pltpu.CompilerParams(dimension_semantics=("arbitrary",)),
    )(x_tok, kparams["branch_pack"], kparams["fc1_w"], kparams["fc_aux"])


# ----------------------------------------------------------------------------
# Parameter construction (deterministic, synthetic) + offline kernel prep.
# ----------------------------------------------------------------------------
def _fold_conv_bn(key, c_in, c_out, eps=1e-5):
    """Conv1d(k=1) + BatchNorm1d (eval) folded into (W, b); W is (c_in, c_out)."""
    k_w, k_b, k_g, k_be, k_m, k_v = jax.random.split(key, 6)
    conv_w = jax.random.normal(k_w, (c_out, c_in), jnp.float32) * 0.1
    conv_b = jax.random.normal(k_b, (c_out,), jnp.float32) * 0.1
    gamma = 1.0 + 0.1 * jax.random.normal(k_g, (c_out,), jnp.float32)
    beta = 0.1 * jax.random.normal(k_be, (c_out,), jnp.float32)
    mean = 0.1 * jax.random.normal(k_m, (c_out,), jnp.float32)
    var = jnp.abs(1.0 + 0.1 * jax.random.normal(k_v, (c_out,), jnp.float32))
    scale = gamma / jnp.sqrt(var + eps)
    w_fold = conv_w * scale[:, None]
    b_fold = scale * (conv_b - mean) + beta
    return w_fold.T, b_fold


def make_params(key, in_channel, input_channels, attention_channels, outchannels, seq_len):
    """Torch-semantics params (fc1 rows in the torch cat/view order)."""
    keys = jax.random.split(key, 3 * len(input_channels) + 2)
    params = {"branches": []}
    ki = 0
    for ic in input_channels:
        w1, b1 = _fold_conv_bn(keys[ki], in_channel, ic); ki += 1
        w2, b2 = _fold_conv_bn(keys[ki], ic, attention_channels); ki += 1
        w3, b3 = _fold_conv_bn(keys[ki], attention_channels, outchannels); ki += 1
        params["branches"].append(((w1, b1), (w2, b2), (w3, b3)))
    feat = outchannels * len(input_channels) * seq_len
    k1, k2 = keys[ki], keys[ki + 1]
    params["fc1_w"] = jax.random.normal(k1, (feat, 2048), jnp.float32) * (1.0 / np.sqrt(feat))
    params["fc1_b"] = jnp.zeros((2048,), jnp.float32)
    params["fc2_w"] = jax.random.normal(k2, (2048, 1), jnp.float32) * (1.0 / np.sqrt(2048))
    params["fc2_b"] = jnp.zeros((1,), jnp.float32)
    return params


def prepare_kernel_params(params, in_channel, input_channels, attention_channels,
                          outchannels, seq_len):
    """One-time offline prep (zero per-forward cost)."""
    nb = len(input_channels)
    O, A, L = outchannels, attention_channels, seq_len
    C1, C2, C3 = sum(input_channels), A * nb, O * nb
    CinP = _align8(in_channel)
    WP = _align8(max(C1, C2, C3))
    F = C3

    # Fold the per-branch layers into block-concat / block-diagonal matrices.
    w1cat = np.zeros((CinP, WP), np.float32); b1cat = np.zeros((WP,), np.float32)
    w2bd = np.zeros((WP, WP), np.float32);   b2cat = np.zeros((WP,), np.float32)
    w3bd = np.zeros((WP, WP), np.float32);   b3cat = np.zeros((WP,), np.float32)
    r = 0
    for bi, ((w1, b1), (w2, b2), (w3, b3)) in enumerate(params["branches"]):
        ic = input_channels[bi]
        w1cat[:in_channel, r:r + ic] = np.asarray(w1)
        b1cat[r:r + ic] = np.asarray(b1)
        w2bd[r:r + ic, bi * A:(bi + 1) * A] = np.asarray(w2)
        b2cat[bi * A:(bi + 1) * A] = np.asarray(b2)
        w3bd[bi * A:(bi + 1) * A, bi * O:(bi + 1) * O] = np.asarray(w3)
        b3cat[bi * O:(bi + 1) * O] = np.asarray(b3)
        r += ic

    # Pack all branch params into one slab (single DMA, 8-aligned row offsets).
    o_w1 = 0
    o_b1 = o_w1 + CinP
    o_w2 = o_b1 + 8
    o_b2 = o_w2 + WP
    o_w3 = o_b2 + 8
    o_b3 = o_w3 + WP
    rows = o_b3 + 8
    pack = np.zeros((rows, WP), np.float32)
    pack[o_w1:o_w1 + CinP, :] = w1cat
    pack[o_b1, :] = b1cat
    pack[o_w2:o_w2 + WP, :] = w2bd
    pack[o_b2, :] = b2cat
    pack[o_w3:o_w3 + WP, :] = w3bd
    pack[o_b3, :] = b3cat

    # Fold torch transpose/cat/view into a fc1 row permutation:
    # torch row for (branch bi, channel o, position l) is (bi*O+o)*L + l = f*L + l;
    # the kernel consumes rows in (l, f) order.
    idx = np.arange(F * L).reshape(F, L)
    perm = idx.T.reshape(-1)                               # perm[l*F + f] = f*L + l
    fc1_w_k = jnp.asarray(np.asarray(params["fc1_w"])[perm, :], jnp.bfloat16)

    # Pack fc1 bias, fc2 weight (as a row) and fc2 bias into one slab.
    N = int(params["fc1_w"].shape[1])
    aux = np.zeros((8, N), np.float32)
    aux[0, :] = np.asarray(params["fc1_b"])
    aux[1, :] = np.asarray(params["fc2_w"]).reshape(-1)
    aux[2, 0] = float(np.asarray(params["fc2_b"]).reshape(-1)[0])

    return {
        "branch_pack": jnp.asarray(pack),
        "fc1_w": fc1_w_k,
        "fc_aux": jnp.asarray(aux),
        "meta": {"F": F, "WP": WP, "CinP": CinP,
                 "offs": (o_w1, o_b1, o_w2, o_b2, o_w3, o_b3)},
    }


# ----------------------------------------------------------------------------
# Plain-JAX reference (torch layout/order; fc1 weight at deployed bf16 precision).
# ----------------------------------------------------------------------------
def mtb_reference(params, x):
    B, C, L = x.shape
    x_tok = jnp.transpose(x, (0, 2, 1)).reshape(B * L, C)
    branch_outs = []
    for (w1, b1), (w2, b2), (w3, b3) in params["branches"]:
        h = jnp.maximum(x_tok @ w1 + b1, 0.0)
        h = jnp.maximum(h @ w2 + b2, 0.0)
        h = jnp.maximum(h @ w3 + b3, 0.0)
        O = h.shape[1]
        branch_outs.append(jnp.transpose(h.reshape(B, L, O), (0, 2, 1)))   # (B, O, L)
    feat = jnp.concatenate(branch_outs, axis=1).reshape(B, -1)             # torch order
    w1q = params["fc1_w"].astype(jnp.bfloat16).astype(jnp.float32)
    h = jnp.maximum(feat @ w1q + params["fc1_b"], 0.0)
    return h @ params["fc2_w"] + params["fc2_b"]


if __name__ == "__main__":
    # Sequence length must be 30: the regressor expects outchannels * nb * 30 features.
    B = 2
    in_channel = 4
    input_channels = [8, 16]
    attention_channels = 32
    outchannels = 16
    L = 30

    key = jax.random.PRNGKey(0)
    k_params, k_x = jax.random.split(key)
    params = make_params(k_params, in_channel, input_channels,
                         attention_channels, outchannels, L)
    kparams = prepare_kernel_params(params, in_channel, input_channels,
                                    attention_channels, outchannels, L)
    x = jax.random.normal(k_x, (B, in_channel, L), jnp.float32)

    out = jax.block_until_ready(mtb_forward(kparams, x))
    ref = jax.block_until_ready(mtb_reference(params, x))

    assert out.shape == (B, 1)
    # Tolerance covers bf16 rounding of fc1 weights/activations on the MXU path.
    np.testing.assert_allclose(np.asarray(out), np.asarray(ref), rtol=2e-2, atol=2e-2)

    print("KERNEL_OK")
</pallas_src>

<mosaic_0001>
module attributes {stable_mosaic.version = 11 : i64} {
  func.func @_mtb_fused_kernel(%arg0: i32, %arg1: memref<240x8xf32, #tpu.memory_space<vmem>>, %arg2: memref<160x64xf32, #tpu.memory_space<vmem>>, %arg3: memref<960x2048xbf16, #tpu.memory_space<vmem>>, %arg4: memref<8x2048xf32, #tpu.memory_space<vmem>>, %arg5: memref<2x1xf32, #tpu.memory_space<vmem>>, %arg6: memref<240x64xf32, #tpu.memory_space<vmem>>) attributes {dimension_semantics = [#tpu.dimension_semantics<arbitrary>], iteration_bounds = array<i64: 1>, scalar_prefetch = 0 : i64, scratch_operands = 1 : i64, tpu.core_type = #tpu.core_type<tc>, window_params = [{pipeline_mode = #tpu.pipeline_mode<synchronous>, transform_indices = @transform_0, window_bounds = array<i64: 240, 8>}, {pipeline_mode = #tpu.pipeline_mode<synchronous>, transform_indices = @transform_1, window_bounds = array<i64: 160, 64>}, {pipeline_mode = #tpu.pipeline_mode<synchronous>, transform_indices = @transform_2, window_bounds = array<i64: 960, 2048>}, {pipeline_mode = #tpu.pipeline_mode<synchronous>, transform_indices = @transform_3, window_bounds = array<i64: 8, 2048>}, {pipeline_mode = #tpu.pipeline_mode<synchronous>, transform_indices = @transform_4, window_bounds = array<i64: 2, 1>}]} {
    %c0 = arith.constant 0 : index
    %c0_0 = arith.constant 0 : index
    %0 = vector.load %arg1[%c0, %c0_0] : memref<240x8xf32, #tpu.memory_space<vmem>>, vector<240x8xf32>
    %c0_1 = arith.constant 0 : index
    %c0_2 = arith.constant 0 : index
    %1 = vector.load %arg2[%c0_1, %c0_2] : memref<160x64xf32, #tpu.memory_space<vmem>>, vector<8x64xf32>
    %c8 = arith.constant 8 : index
    %c0_3 = arith.constant 0 : index
    %2 = vector.load %arg2[%c8, %c0_3] : memref<160x64xf32, #tpu.memory_space<vmem>>, vector<1x64xf32>
    %c16 = arith.constant 16 : index
    %c0_4 = arith.constant 0 : index
    %3 = vector.load %arg2[%c16, %c0_4] : memref<160x64xf32, #tpu.memory_space<vmem>>, vector<64x64xf32>
    %c80 = arith.constant 80 : index
    %c0_5 = arith.constant 0 : index
    %4 = vector.load %arg2[%c80, %c0_5] : memref<160x64xf32, #tpu.memory_space<vmem>>, vector<1x64xf32>
    %c88 = arith.constant 88 : index
    %c0_6 = arith.constant 0 : index
    %5 = vector.load %arg2[%c88, %c0_6] : memref<160x64xf32, #tpu.memory_space<vmem>>, vector<64x64xf32>
    %c152 = arith.constant 152 : index
    %c0_7 = arith.constant 0 : index
    %6 = vector.load %arg2[%c152, %c0_7] : memref<160x64xf32, #tpu.memory_space<vmem>>, vector<1x64xf32>
    %cst = arith.constant dense<0.000000e+00> : vector<240x64xf32>
    %7 = tpu.matmul %0, %1, %cst {dimension_numbers = #tpu.dot_dimension_numbers<[1], [0], [0], [1], [0, 0, 1, 1], [], []>} : vector<240x8xf32>, vector<8x64xf32>, vector<240x64xf32> -> vector<240x64xf32>
    %8 = vector.broadcast %2 : vector<1x64xf32> to vector<240x64xf32>
    %9 = arith.addf %7, %8 : vector<240x64xf32>
    %cst_8 = arith.constant 0.000000e+00 : f32
    %10 = vector.broadcast %cst_8 : f32 to vector<240x64xf32>
    %11 = arith.maximumf %9, %10 : vector<240x64xf32>
    %cst_9 = arith.constant dense<0.000000e+00> : vector<240x64xf32>
    %12 = tpu.matmul %11, %3, %cst_9 {dimension_numbers = #tpu.dot_dimension_numbers<[1], [0], [0], [1], [0, 0, 1, 1], [], []>} : vector<240x64xf32>, vector<64x64xf32>, vector<240x64xf32> -> vector<240x64xf32>
    %13 = vector.broadcast %4 : vector<1x64xf32> to vector<240x64xf32>
    %14 = arith.addf %12, %13 : vector<240x64xf32>
    %cst_10 = arith.constant 0.000000e+00 : f32
    %15 = vector.broadcast %cst_10 : f32 to vector<240x64xf32>
    %16 = arith.maximumf %14, %15 : vector<240x64xf32>
    %cst_11 = arith.constant dense<0.000000e+00> : vector<240x64xf32>
    %17 = tpu.matmul %16, %5, %cst_11 {dimension_numbers = #tpu.dot_dimension_numbers<[1], [0], [0], [1], [0, 0, 1, 1], [], []>} : vector<240x64xf32>, vector<64x64xf32>, vector<240x64xf32> -> vector<240x64xf32>
    %18 = vector.broadcast %6 : vector<1x64xf32> to vector<240x64xf32>
    %19 = arith.addf %17, %18 : vector<240x64xf32>
    %cst_12 = arith.constant 0.000000e+00 : f32
    %20 = vector.broadcast %cst_12 : f32 to vector<240x64xf32>
    %21 = arith.maximumf %19, %20 : vector<240x64xf32>
    %c0_13 = arith.constant 0 : index
    %c0_14 = arith.constant 0 : index
    %22 = vector.load %arg6[%c0_13, %c0_14] : memref<240x64xf32, #tpu.memory_space<vmem>>, vector<240x64xf32>
    tpu.vector_store %arg6[%c0_13, %c0_14], %21 {strides = array<i32>} : memref<240x64xf32, #tpu.memory_space<vmem>>, vector<240x64xf32>,
    %cst_15 = arith.constant 0.000000e+00 : f32
    %23 = vector.broadcast %cst_15 : f32 to vector<8x2048xf32>
    %c0_16 = arith.constant 0 : index
    %c0_17 = arith.constant 0 : index
    %24 = vector.load %arg6[%c0_16, %c0_17] : memref<240x64xf32, #tpu.memory_space<vmem>>, vector<8x32xf32>
    %25 = arith.truncf %24 : vector<8x32xf32> to vector<8x32xbf16>
    %c0_18 = arith.constant 0 : index
    %c0_19 = arith.constant 0 : index
    %26 = vector.load %arg3[%c0_18, %c0_19] : memref<960x2048xbf16, #tpu.memory_space<vmem>>, vector<32x2048xbf16>
    %cst_20 = arith.constant dense<0.000000e+00> : vector<8x2048xf32>
    %27 = tpu.matmul %25, %26, %cst_20 {dimension_numbers = #tpu.dot_dimension_numbers<[1], [0], [0], [1], [0, 0, 1, 1], [], []>} : vector<8x32xbf16>, vector<32x2048xbf16>, vector<8x2048xf32> -> vector<8x2048xf32>
    %28 = arith.addf %23, %27 : vector<8x2048xf32>
    %c8_21 = arith.constant 8 : index
    %c0_22 = arith.constant 0 : index
    %29 = vector.load %arg6[%c8_21, %c0_22] : memref<240x64xf32, #tpu.memory_space<vmem>>, vector<8x32xf32>
    %30 = arith.truncf %29 : vector<8x32xf32> to vector<8x32xbf16>
    %c32 = arith.constant 32 : index
    %c0_23 = arith.constant 0 : index
    %31 = vector.load %arg3[%c32, %c0_23] : memref<960x2048xbf16, #tpu.memory_space<vmem>>, vector<32x2048xbf16>
    %cst_24 = arith.constant dense<0.000000e+00> : vector<8x2048xf32>
    %32 = tpu.matmul %30, %31, %cst_24 {dimension_numbers = #tpu.dot_dimension_numbers<[1], [0], [0], [1], [0, 0, 1, 1], [], []>} : vector<8x32xbf16>, vector<32x2048xbf16>, vector<8x2048xf32> -> vector<8x2048xf32>
    %33 = arith.addf %28, %32 : vector<8x2048xf32>
    %c16_25 = arith.constant 16 : index
    %c0_26 = arith.constant 0 : index
    %34 = vector.load %arg6[%c16_25, %c0_26] : memref<240x64xf32, #tpu.memory_space<vmem>>, vector<8x32xf32>
    %35 = arith.truncf %34 : vector<8x32xf32> to vector<8x32xbf16>
    %c64 = arith.constant 64 : index
    %c0_27 = arith.constant 0 : index
    %36 = vector.load %arg3[%c64, %c0_27] : memref<960x2048xbf16, #tpu.memory_space<vmem>>, vector<32x2048xbf16>
    %cst_28 = arith.constant dense<0.000000e+00> : vector<8x2048xf32>
    %37 = tpu.matmul %35, %36, %cst_28 {dimension_numbers = #tpu.dot_dimension_numbers<[1], [0], [0], [1], [0, 0, 1, 1], [], []>} : vector<8x32xbf16>, vector<32x2048xbf16>, vector<8x2048xf32> -> vector<8x2048xf32>
    %38 = arith.addf %33, %37 : vector<8x2048xf32>
    %c24 = arith.constant 24 : index
    %c0_29 = arith.constant 0 : index
    %39 = vector.load %arg6[%c24, %c0_29] : memref<240x64xf32, #tpu.memory_space<vmem>>, vector<8x32xf32>
    %40 = arith.truncf %39 : vector<8x32xf32> to vector<8x32xbf16>
    %c96 = arith.constant 96 : index
    %c0_30 = arith.constant 0 : index
    %41 = vector.load %arg3[%c96, %c0_30] : memref<960x2048xbf16, #tpu.memory_space<vmem>>, vector<32x2048xbf16>
    %cst_31 = arith.constant dense<0.000000e+00> : vector<8x2048xf32>
    %42 = tpu.matmul %40, %41, %cst_31 {dimension_numbers = #tpu.dot_dimension_numbers<[1], [0], [0], [1], [0, 0, 1, 1], [], []>} : vector<8x32xbf16>, vector<32x2048xbf16>, vector<8x2048xf32> -> vector<8x2048xf32>
    %43 = arith.addf %38, %42 : vector<8x2048xf32>
    %c32_32 = arith.constant 32 : index
    %c0_33 = arith.constant 0 : index
    %44 = vector.load %arg6[%c32_32, %c0_33] : memref<240x64xf32, #tpu.memory_space<vmem>>, vector<8x32xf32>
    %45 = arith.truncf %44 : vector<8x32xf32> to vector<8x32xbf16>
    %c128 = arith.constant 128 : index
    %c0_34 = arith.constant 0 : index
    %46 = vector.load %arg3[%c128, %c0_34] : memref<960x2048xbf16, #tpu.memory_space<vmem>>, vector<32x2048xbf16>
    %cst_35 = arith.constant dense<0.000000e+00> : vector<8x2048xf32>
    %47 = tpu.matmul %45, %46, %cst_35 {dimension_numbers = #tpu.dot_dimension_numbers<[1], [0], [0], [1], [0, 0, 1, 1], [], []>} : vector<8x32xbf16>, vector<32x2048xbf16>, vector<8x2048xf32> -> vector<8x2048xf32>
    %48 = arith.addf %43, %47 : vector<8x2048xf32>
    %c40 = arith.constant 40 : index
    %c0_36 = arith.constant 0 : index
    %49 = vector.load %arg6[%c40, %c0_36] : memref<240x64xf32, #tpu.memory_space<vmem>>, vector<8x32xf32>
    %50 = arith.truncf %49 : vector<8x32xf32> to vector<8x32xbf16>
    %c160 = arith.constant 160 : index
    %c0_37 = arith.constant 0 : index
    %51 = vector.load %arg3[%c160, %c0_37] : memref<960x2048xbf16, #tpu.memory_space<vmem>>, vector<32x2048xbf16>
    %cst_38 = arith.constant dense<0.000000e+00> : vector<8x2048xf32>
    %52 = tpu.matmul %50, %51, %cst_38 {dimension_numbers = #tpu.dot_dimension_numbers<[1], [0], [0], [1], [0, 0, 1, 1], [], []>} : vector<8x32xbf16>, vector<32x2048xbf16>, vector<8x2048xf32> -> vector<8x2048xf32>
    %53 = arith.addf %48, %52 : vector<8x2048xf32>
    %c48 = arith.constant 48 : index
    %c0_39 = arith.constant 0 : index
    %54 = vector.load %arg6[%c48, %c0_39] : memref<240x64xf32, #tpu.memory_space<vmem>>, vector<8x32xf32>
    %55 = arith.truncf %54 : vector<8x32xf32> to vector<8x32xbf16>
    %c192 = arith.constant 192 : index
    %c0_40 = arith.constant 0 : index
    %56 = vector.load %arg3[%c192, %c0_40] : memref<960x2048xbf16, #tpu.memory_space<vmem>>, vector<32x2048xbf16>
    %cst_41 = arith.constant dense<0.000000e+00> : vector<8x2048xf32>
    %57 = tpu.matmul %55, %56, %cst_41 {dimension_numbers = #tpu.dot_dimension_numbers<[1], [0], [0], [1], [0, 0, 1, 1], [], []>} : vector<8x32xbf16>, vector<32x2048xbf16>, vector<8x2048xf32> -> vector<8x2048xf32>
    %58 = arith.addf %53, %57 : vector<8x2048xf32>
    %c56 = arith.constant 56 : index
    %c0_42 = arith.constant 0 : index
    %59 = vector.load %arg6[%c56, %c0_42] : memref<240x64xf32, #tpu.memory_space<vmem>>, vector<8x32xf32>
    %60 = arith.truncf %59 : vector<8x32xf32> to vector<8x32xbf16>
    %c224 = arith.constant 224 : index
    %c0_43 = arith.constant 0 : index
    %61 = vector.load %arg3[%c224, %c0_43] : memref<960x2048xbf16, #tpu.memory_space<vmem>>, vector<32x2048xbf16>
    %cst_44 = arith.constant dense<0.000000e+00> : vector<8x2048xf32>
    %62 = tpu.matmul %60, %61, %cst_44 {dimension_numbers = #tpu.dot_dimension_numbers<[1], [0], [0], [1], [0, 0, 1, 1], [], []>} : vector<8x32xbf16>, vector<32x2048xbf16>, vector<8x2048xf32> -> vector<8x2048xf32>
    %63 = arith.addf %58, %62 : vector<8x2048xf32>
    %c64_45 = arith.constant 64 : index
    %c0_46 = arith.constant 0 : index
    %64 = vector.load %arg6[%c64_45, %c0_46] : memref<240x64xf32, #tpu.memory_space<vmem>>, vector<8x32xf32>
    %65 = arith.truncf %64 : vector<8x32xf32> to vector<8x32xbf16>
    %c256 = arith.constant 256 : index
    %c0_47 = arith.constant 0 : index
    %66 = vector.load %arg3[%c256, %c0_47] : memref<960x2048xbf16, #tpu.memory_space<vmem>>, vector<32x2048xbf16>
    %cst_48 = arith.constant dense<0.000000e+00> : vector<8x2048xf32>
    %67 = tpu.matmul %65, %66, %cst_48 {dimension_numbers = #tpu.dot_dimension_numbers<[1], [0], [0], [1], [0, 0, 1, 1], [], []>} : vector<8x32xbf16>, vector<32x2048xbf16>, vector<8x2048xf32> -> vector<8x2048xf32>
    %68 = arith.addf %63, %67 : vector<8x2048xf32>
    %c72 = arith.constant 72 : index
    %c0_49 = arith.constant 0 : index
    %69 = vector.load %arg6[%c72, %c0_49] : memref<240x64xf32, #tpu.memory_space<vmem>>, vector<8x32xf32>
    %70 = arith.truncf %69 : vector<8x32xf32> to vector<8x32xbf16>
    %c288 = arith.constant 288 : index
    %c0_50 = arith.constant 0 : index
    %71 = vector.load %arg3[%c288, %c0_50] : memref<960x2048xbf16, #tpu.memory_space<vmem>>, vector<32x2048xbf16>
    %cst_51 = arith.constant dense<0.000000e+00> : vector<8x2048xf32>
    %72 = tpu.matmul %70, %71, %cst_51 {dimension_numbers = #tpu.dot_dimension_numbers<[1], [0], [0], [1], [0, 0, 1, 1], [], []>} : vector<8x32xbf16>, vector<32x2048xbf16>, vector<8x2048xf32> -> vector<8x2048xf32>
    %73 = arith.addf %68, %72 : vector<8x2048xf32>
    %c80_52 = arith.constant 80 : index
    %c0_53 = arith.constant 0 : index
    %74 = vector.load %arg6[%c80_52, %c0_53] : memref<240x64xf32, #tpu.memory_space<vmem>>, vector<8x32xf32>
    %75 = arith.truncf %74 : vector<8x32xf32> to vector<8x32xbf16>
    %c320 = arith.constant 320 : index
    %c0_54 = arith.constant 0 : index
    %76 = vector.load %arg3[%c320, %c0_54] : memref<960x2048xbf16, #tpu.memory_space<vmem>>, vector<32x2048xbf16>
    %cst_55 = arith.constant dense<0.000000e+00> : vector<8x2048xf32>
    %77 = tpu.matmul %75, %76, %cst_55 {dimension_numbers = #tpu.dot_dimension_numbers<[1], [0], [0], [1], [0, 0, 1, 1], [], []>} : vector<8x32xbf16>, vector<32x2048xbf16>, vector<8x2048xf32> -> vector<8x2048xf32>
    %78 = arith.addf %73, %77 : vector<8x2048xf32>
    %c88_56 = arith.constant 88 : index
    %c0_57 = arith.constant 0 : index
    %79 = vector.load %arg6[%c88_56, %c0_57] : memref<240x64xf32, #tpu.memory_space<vmem>>, vector<8x32xf32>
    %80 = arith.truncf %79 : vector<8x32xf32> to vector<8x32xbf16>
    %c352 = arith.constant 352 : index
    %c0_58 = arith.constant 0 : index
    %81 = vector.load %arg3[%c352, %c0_58] : memref<960x2048xbf16, #tpu.memory_space<vmem>>, vector<32x2048xbf16>
    %cst_59 = arith.constant dense<0.000000e+00> : vector<8x2048xf32>
    %82 = tpu.matmul %80, %81, %cst_59 {dimension_numbers = #tpu.dot_dimension_numbers<[1], [0], [0], [1], [0, 0, 1, 1], [], []>} : vector<8x32xbf16>, vector<32x2048xbf16>, vector<8x2048xf32> -> vector<8x2048xf32>
    %83 = arith.addf %78, %82 : vector<8x2048xf32>
    %c96_60 = arith.constant 96 : index
    %c0_61 = arith.constant 0 : index
    %84 = vector.load %arg6[%c96_60, %c0_61] : memref<240x64xf32, #tpu.memory_space<vmem>>, vector<8x32xf32>
    %85 = arith.truncf %84 : vector<8x32xf32> to vector<8x32xbf16>
    %c384 = arith.constant 384 : index
    %c0_62 = arith.constant 0 : index
    %86 = vector.load %arg3[%c384, %c0_62] : memref<960x2048xbf16, #tpu.memory_space<vmem>>, vector<32x2048xbf16>
    %cst_63 = arith.constant dense<0.000000e+00> : vector<8x2048xf32>
    %87 = tpu.matmul %85, %86, %cst_63 {dimension_numbers = #tpu.dot_dimension_numbers<[1], [0], [0], [1], [0, 0, 1, 1], [], []>} : vector<8x32xbf16>, vector<32x2048xbf16>, vector<8x2048xf32> -> vector<8x2048xf32>
    %88 = arith.addf %83, %87 : vector<8x2048xf32>
    %c104 = arith.constant 104 : index
    %c0_64 = arith.constant 0 : index
    %89 = vector.load %arg6[%c104, %c0_64] : memref<240x64xf32, #tpu.memory_space<vmem>>, vector<8x32xf32>
    %90 = arith.truncf %89 : vector<8x32xf32> to vector<8x32xbf16>
    %c416 = arith.constant 416 : index
    %c0_65 = arith.constant 0 : index
    %91 = vector.load %arg3[%c416, %c0_65] : memref<960x2048xbf16, #tpu.memory_space<vmem>>, vector<32x2048xbf16>
    %cst_66 = arith.constant dense<0.000000e+00> : vector<8x2048xf32>
    %92 = tpu.matmul %90, %91, %cst_66 {dimension_numbers = #tpu.dot_dimension_numbers<[1], [0], [0], [1], [0, 0, 1, 1], [], []>} : vector<8x32xbf16>, vector<32x2048xbf16>, vector<8x2048xf32> -> vector<8x2048xf32>
    %93 = arith.addf %88, %92 : vector<8x2048xf32>
    %c112 = arith.constant 112 : index
    %c0_67 = arith.constant 0 : index
    %94 = vector.load %arg6[%c112, %c0_67] : memref<240x64xf32, #tpu.memory_space<vmem>>, vector<8x32xf32>
    %95 = arith.truncf %94 : vector<8x32xf32> to vector<8x32xbf16>
    %c448 = arith.constant 448 : index
    %c0_68 = arith.constant 0 : index
    %96 = vector.load %arg3[%c448, %c0_68] : memref<960x2048xbf16, #tpu.memory_space<vmem>>, vector<32x2048xbf16>
    %cst_69 = arith.constant dense<0.000000e+00> : vector<8x2048xf32>
    %97 = tpu.matmul %95, %96, %cst_69 {dimension_numbers = #tpu.dot_dimension_numbers<[1], [0], [0], [1], [0, 0, 1, 1], [], []>} : vector<8x32xbf16>, vector<32x2048xbf16>, vector<8x2048xf32> -> vector<8x2048xf32>
    %98 = arith.addf %93, %97 : vector<8x2048xf32>
    %c120 = arith.constant 120 : index
    %c0_70 = arith.constant 0 : index
    %99 = vector.load %arg6[%c120, %c0_70] : memref<240x64xf32, #tpu.memory_space<vmem>>, vector<8x32xf32>
    %100 = arith.truncf %99 : vector<8x32xf32> to vector<8x32xbf16>
    %c480 = arith.constant 480 : index
    %c0_71 = arith.constant 0 : index
    %101 = vector.load %arg3[%c480, %c0_71] : memref<960x2048xbf16, #tpu.memory_space<vmem>>, vector<32x2048xbf16>
    %cst_72 = arith.constant dense<0.000000e+00> : vector<8x2048xf32>
    %102 = tpu.matmul %100, %101, %cst_72 {dimension_numbers = #tpu.dot_dimension_numbers<[1], [0], [0], [1], [0, 0, 1, 1], [], []>} : vector<8x32xbf16>, vector<32x2048xbf16>, vector<8x2048xf32> -> vector<8x2048xf32>
    %103 = arith.addf %98, %102 : vector<8x2048xf32>
    %c128_73 = arith.constant 128 : index
    %c0_74 = arith.constant 0 : index
    %104 = vector.load %arg6[%c128_73, %c0_74] : memref<240x64xf32, #tpu.memory_space<vmem>>, vector<8x32xf32>
    %105 = arith.truncf %104 : vector<8x32xf32> to vector<8x32xbf16>
    %c512 = arith.constant 512 : index
    %c0_75 = arith.constant 0 : index
    %106 = vector.load %arg3[%c512, %c0_75] : memref<960x2048xbf16, #tpu.memory_space<vmem>>, vector<32x2048xbf16>
    %cst_76 = arith.constant dense<0.000000e+00> : vector<8x2048xf32>
    %107 = tpu.matmul %105, %106, %cst_76 {dimension_numbers = #tpu.dot_dimension_numbers<[1], [0], [0], [1], [0, 0, 1, 1], [], []>} : vector<8x32xbf16>, vector<32x2048xbf16>, vector<8x2048xf32> -> vector<8x2048xf32>
    %108 = arith.addf %103, %107 : vector<8x2048xf32>
    %c136 = arith.constant 136 : index
    %c0_77 = arith.constant 0 : index
    %109 = vector.load %arg6[%c136, %c0_77] : memref<240x64xf32, #tpu.memory_space<vmem>>, vector<8x32xf32>
    %110 = arith.truncf %109 : vector<8x32xf32> to vector<8x32xbf16>
    %c544 = arith.constant 544 : index
    %c0_78 = arith.constant 0 : index
    %111 = vector.load %arg3[%c544, %c0_78] : memref<960x2048xbf16, #tpu.memory_space<vmem>>, vector<32x2048xbf16>
    %cst_79 = arith.constant dense<0.000000e+00> : vector<8x2048xf32>
    %112 = tpu.matmul %110, %111, %cst_79 {dimension_numbers = #tpu.dot_dimension_numbers<[1], [0], [0], [1], [0, 0, 1, 1], [], []>} : vector<8x32xbf16>, vector<32x2048xbf16>, vector<8x2048xf32> -> vector<8x2048xf32>
    %113 = arith.addf %108, %112 : vector<8x2048xf32>
    %c144 = arith.constant 144 : index
    %c0_80 = arith.constant 0 : index
    %114 = vector.load %arg6[%c144, %c0_80] : memref<240x64xf32, #tpu.memory_space<vmem>>, vector<8x32xf32>
    %115 = arith.truncf %114 : vector<8x32xf32> to vector<8x32xbf16>
    %c576 = arith.constant 576 : index
    %c0_81 = arith.constant 0 : index
    %116 = vector.load %arg3[%c576, %c0_81] : memref<960x2048xbf16, #tpu.memory_space<vmem>>, vector<32x2048xbf16>
    %cst_82 = arith.constant dense<0.000000e+00> : vector<8x2048xf32>
    %117 = tpu.matmul %115, %116, %cst_82 {dimension_numbers = #tpu.dot_dimension_numbers<[1], [0], [0], [1], [0, 0, 1, 1], [], []>} : vector<8x32xbf16>, vector<32x2048xbf16>, vector<8x2048xf32> -> vector<8x2048xf32>
    %118 = arith.addf %113, %117 : vector<8x2048xf32>
    %c152_83 = arith.constant 152 : index
    %c0_84 = arith.constant 0 : index
    %119 = vector.load %arg6[%c152_83, %c0_84] : memref<240x64xf32, #tpu.memory_space<vmem>>, vector<8x32xf32>
    %120 = arith.truncf %119 : vector<8x32xf32> to vector<8x32xbf16>
    %c608 = arith.constant 608 : index
    %c0_85 = arith.constant 0 : index
    %121 = vector.load %arg3[%c608, %c0_85] : memref<960x2048xbf16, #tpu.memory_space<vmem>>, vector<32x2048xbf16>
    %cst_86 = arith.constant dense<0.000000e+00> : vector<8x2048xf32>
    %122 = tpu.matmul %120, %121, %cst_86 {dimension_numbers = #tpu.dot_dimension_numbers<[1], [0], [0], [1], [0, 0, 1, 1], [], []>} : vector<8x32xbf16>, vector<32x2048xbf16>, vector<8x2048xf32> -> vector<8x2048xf32>
    %123 = arith.addf %118, %122 : vector<8x2048xf32>
    %c160_87 = arith.constant 160 : index
    %c0_88 = arith.constant 0 : index
    %124 = vector.load %arg6[%c160_87, %c0_88] : memref<240x64xf32, #tpu.memory_space<vmem>>, vector<8x32xf32>
    %125 = arith.truncf %124 : vector<8x32xf32> to vector<8x32xbf16>
    %c640 = arith.constant 640 : index
    %c0_89 = arith.constant 0 : index
    %126 = vector.load %arg3[%c640, %c0_89] : memref<960x2048xbf16, #tpu.memory_space<vmem>>, vector<32x2048xbf16>
    %cst_90 = arith.constant dense<0.000000e+00> : vector<8x2048xf32>
    %127 = tpu.matmul %125, %126, %cst_90 {dimension_numbers = #tpu.dot_dimension_numbers<[1], [0], [0], [1], [0, 0, 1, 1], [], []>} : vector<8x32xbf16>, vector<32x2048xbf16>, vector<8x2048xf32> -> vector<8x2048xf32>
    %128 = arith.addf %123, %127 : vector<8x2048xf32>
    %c168 = arith.constant 168 : index
    %c0_91 = arith.constant 0 : index
    %129 = vector.load %arg6[%c168, %c0_91] : memref<240x64xf32, #tpu.memory_space<vmem>>, vector<8x32xf32>
    %130 = arith.truncf %129 : vector<8x32xf32> to vector<8x32xbf16>
    %c672 = arith.constant 672 : index
    %c0_92 = arith.constant 0 : index
    %131 = vector.load %arg3[%c672, %c0_92] : memref<960x2048xbf16, #tpu.memory_space<vmem>>, vector<32x2048xbf16>
    %cst_93 = arith.constant dense<0.000000e+00> : vector<8x2048xf32>
    %132 = tpu.matmul %130, %131, %cst_93 {dimension_numbers = #tpu.dot_dimension_numbers<[1], [0], [0], [1], [0, 0, 1, 1], [], []>} : vector<8x32xbf16>, vector<32x2048xbf16>, vector<8x2048xf32> -> vector<8x2048xf32>
    %133 = arith.addf %128, %132 : vector<8x2048xf32>
    %c176 = arith.constant 176 : index
    %c0_94 = arith.constant 0 : index
    %134 = vector.load %arg6[%c176, %c0_94] : memref<240x64xf32, #tpu.memory_space<vmem>>, vector<8x32xf32>
    %135 = arith.truncf %134 : vector<8x32xf32> to vector<8x32xbf16>
    %c704 = arith.constant 704 : index
    %c0_95 = arith.constant 0 : index
    %136 = vector.load %arg3[%c704, %c0_95] : memref<960x2048xbf16, #tpu.memory_space<vmem>>, vector<32x2048xbf16>
    %cst_96 = arith.constant dense<0.000000e+00> : vector<8x2048xf32>
    %137 = tpu.matmul %135, %136, %cst_96 {dimension_numbers = #tpu.dot_dimension_numbers<[1], [0], [0], [1], [0, 0, 1, 1], [], []>} : vector<8x32xbf16>, vector<32x2048xbf16>, vector<8x2048xf32> -> vector<8x2048xf32>
    %138 = arith.addf %133, %137 : vector<8x2048xf32>
    %c184 = arith.constant 184 : index
    %c0_97 = arith.constant 0 : index
    %139 = vector.load %arg6[%c184, %c0_97] : memref<240x64xf32, #tpu.memory_space<vmem>>, vector<8x32xf32>
    %140 = arith.truncf %139 : vector<8x32xf32> to vector<8x32xbf16>
    %c736 = arith.constant 736 : index
    %c0_98 = arith.constant 0 : index
    %141 = vector.load %arg3[%c736, %c0_98] : memref<960x2048xbf16, #tpu.memory_space<vmem>>, vector<32x2048xbf16>
    %cst_99 = arith.constant dense<0.000000e+00> : vector<8x2048xf32>
    %142 = tpu.matmul %140, %141, %cst_99 {dimension_numbers = #tpu.dot_dimension_numbers<[1], [0], [0], [1], [0, 0, 1, 1], [], []>} : vector<8x32xbf16>, vector<32x2048xbf16>, vector<8x2048xf32> -> vector<8x2048xf32>
    %143 = arith.addf %138, %142 : vector<8x2048xf32>
    %c192_100 = arith.constant 192 : index
    %c0_101 = arith.constant 0 : index
    %144 = vector.load %arg6[%c192_100, %c0_101] : memref<240x64xf32, #tpu.memory_space<vmem>>, vector<8x32xf32>
    %145 = arith.truncf %144 : vector<8x32xf32> to vector<8x32xbf16>
    %c768 = arith.constant 768 : index
    %c0_102 = arith.constant 0 : index
    %146 = vector.load %arg3[%c768, %c0_102] : memref<960x2048xbf16, #tpu.memory_space<vmem>>, vector<32x2048xbf16>
    %cst_103 = arith.constant dense<0.000000e+00> : vector<8x2048xf32>
    %147 = tpu.matmul %145, %146, %cst_103 {dimension_numbers = #tpu.dot_dimension_numbers<[1], [0], [0], [1], [0, 0, 1, 1], [], []>} : vector<8x32xbf16>, vector<32x2048xbf16>, vector<8x2048xf32> -> vector<8x2048xf32>
    %148 = arith.addf %143, %147 : vector<8x2048xf32>
    %c200 = arith.constant 200 : index
    %c0_104 = arith.constant 0 : index
    %149 = vector.load %arg6[%c200, %c0_104] : memref<240x64xf32, #tpu.memory_space<vmem>>, vector<8x32xf32>
    %150 = arith.truncf %149 : vector<8x32xf32> to vector<8x32xbf16>
    %c800 = arith.constant 800 : index
    %c0_105 = arith.constant 0 : index
    %151 = vector.load %arg3[%c800, %c0_105] : memref<960x2048xbf16, #tpu.memory_space<vmem>>, vector<32x2048xbf16>
    %cst_106 = arith.constant dense<0.000000e+00> : vector<8x2048xf32>
    %152 = tpu.matmul %150, %151, %cst_106 {dimension_numbers = #tpu.dot_dimension_numbers<[1], [0], [0], [1], [0, 0, 1, 1], [], []>} : vector<8x32xbf16>, vector<32x2048xbf16>, vector<8x2048xf32> -> vector<8x2048xf32>
    %153 = arith.addf %148, %152 : vector<8x2048xf32>
    %c208 = arith.constant 208 : index
    %c0_107 = arith.constant 0 : index
    %154 = vector.load %arg6[%c208, %c0_107] : memref<240x64xf32, #tpu.memory_space<vmem>>, vector<8x32xf32>
    %155 = arith.truncf %154 : vector<8x32xf32> to vector<8x32xbf16>
    %c832 = arith.constant 832 : index
    %c0_108 = arith.constant 0 : index
    %156 = vector.load %arg3[%c832, %c0_108] : memref<960x2048xbf16, #tpu.memory_space<vmem>>, vector<32x2048xbf16>
    %cst_109 = arith.constant dense<0.000000e+00> : vector<8x2048xf32>
    %157 = tpu.matmul %155, %156, %cst_109 {dimension_numbers = #tpu.dot_dimension_numbers<[1], [0], [0], [1], [0, 0, 1, 1], [], []>} : vector<8x32xbf16>, vector<32x2048xbf16>, vector<8x2048xf32> -> vector<8x2048xf32>
    %158 = arith.addf %153, %157 : vector<8x2048xf32>
    %c216 = arith.constant 216 : index
    %c0_110 = arith.constant 0 : index
    %159 = vector.load %arg6[%c216, %c0_110] : memref<240x64xf32, #tpu.memory_space<vmem>>, vector<8x32xf32>
    %160 = arith.truncf %159 : vector<8x32xf32> to vector<8x32xbf16>
    %c864 = arith.constant 864 : index
    %c0_111 = arith.constant 0 : index
    %161 = vector.load %arg3[%c864, %c0_111] : memref<960x2048xbf16, #tpu.memory_space<vmem>>, vector<32x2048xbf16>
    %cst_112 = arith.constant dense<0.000000e+00> : vector<8x2048xf32>
    %162 = tpu.matmul %160, %161, %cst_112 {dimension_numbers = #tpu.dot_dimension_numbers<[1], [0], [0], [1], [0, 0, 1, 1], [], []>} : vector<8x32xbf16>, vector<32x2048xbf16>, vector<8x2048xf32> -> vector<8x2048xf32>
    %163 = arith.addf %158, %162 : vector<8x2048xf32>
    %c224_113 = arith.constant 224 : index
    %c0_114 = arith.constant 0 : index
    %164 = vector.load %arg6[%c224_113, %c0_114] : memref<240x64xf32, #tpu.memory_space<vmem>>, vector<8x32xf32>
    %165 = arith.truncf %164 : vector<8x32xf32> to vector<8x32xbf16>
    %c896 = arith.constant 896 : index
    %c0_115 = arith.constant 0 : index
    %166 = vector.load %arg3[%c896, %c0_115] : memref<960x2048xbf16, #tpu.memory_space<vmem>>, vector<32x2048xbf16>
    %cst_116 = arith.constant dense<0.000000e+00> : vector<8x2048xf32>
    %167 = tpu.matmul %165, %166, %cst_116 {dimension_numbers = #tpu.dot_dimension_numbers<[1], [0], [0], [1], [0, 0, 1, 1], [], []>} : vector<8x32xbf16>, vector<32x2048xbf16>, vector<8x2048xf32> -> vector<8x2048xf32>
    %168 = arith.addf %163, %167 : vector<8x2048xf32>
    %c232 = arith.constant 232 : index
    %c0_117 = arith.constant 0 : index
    %169 = vector.load %arg6[%c232, %c0_117] : memref<240x64xf32, #tpu.memory_space<vmem>>, vector<8x32xf32>
    %170 = arith.truncf %169 : vector<8x32xf32> to vector<8x32xbf16>
    %c928 = arith.constant 928 : index
    %c0_118 = arith.constant 0 : index
    %171 = vector.load %arg3[%c928, %c0_118] : memref<960x2048xbf16, #tpu.memory_space<vmem>>, vector<32x2048xbf16>
    %cst_119 = arith.constant dense<0.000000e+00> : vector<8x2048xf32>
    %172 = tpu.matmul %170, %171, %cst_119 {dimension_numbers = #tpu.dot_dimension_numbers<[1], [0], [0], [1], [0, 0, 1, 1], [], []>} : vector<8x32xbf16>, vector<32x2048xbf16>, vector<8x2048xf32> -> vector<8x2048xf32>
    %173 = arith.addf %168, %172 : vector<8x2048xf32>
    %c0_120 = arith.constant 0 : index
    %c0_121 = arith.constant 0 : index
    %174 = vector.load %arg4[%c0_120, %c0_121] : memref<8x2048xf32, #tpu.memory_space<vmem>>, vector<1x2048xf32>
    %c1 = arith.constant 1 : index
    %c0_122 = arith.constant 0 : index
    %175 = vector.load %arg4[%c1, %c0_122] : memref<8x2048xf32, #tpu.memory_space<vmem>>, vector<1x2048xf32>
    %c2 = arith.constant 2 : index
    %c0_123 = arith.constant 0 : index
    %176 = vector.load %arg4[%c2, %c0_123] : memref<8x2048xf32, #tpu.memory_space<vmem>>, vector<1x1xf32>
    %177 = vector.broadcast %174 : vector<1x2048xf32> to vector<8x2048xf32>
    %178 = arith.addf %173, %177 : vector<8x2048xf32>
    %cst_124 = arith.constant 0.000000e+00 : f32
    %179 = vector.broadcast %cst_124 : f32 to vector<8x2048xf32>
    %180 = arith.maximumf %178, %179 : vector<8x2048xf32>
    %181 = vector.broadcast %175 : vector<1x2048xf32> to vector<8x2048xf32>
    %182 = arith.mulf %180, %181 : vector<8x2048xf32>
    %cst_125 = arith.constant dense<0.000000e+00> : vector<8xf32>
    %183 = vector.multi_reduction <add>, %182, %cst_125 [1] : vector<8x2048xf32> to vector<8xf32>
    %184 = vector.shape_cast %183 : vector<8xf32> to vector<8x1xf32>
    %185 = vector.broadcast %176 : vector<1x1xf32> to vector<8x1xf32>
    %186 = arith.addf %184, %185 : vector<8x1xf32>
    %187 = vector.extract_strided_slice %186 {offsets = [0, 0], sizes = [2, 1], strides = [1, 1]} : vector<8x1xf32> to vector<2x1xf32>
    %c0_126 = arith.constant 0 : index
    %c0_127 = arith.constant 0 : index
    %188 = vector.load %arg5[%c0_126, %c0_127] : memref<2x1xf32, #tpu.memory_space<vmem>>, vector<2x1xf32>
    tpu.vector_store %arg5[%c0_126, %c0_127], %187 {strides = array<i32>} : memref<2x1xf32, #tpu.memory_space<vmem>>, vector<2x1xf32>,
    return
  }
  func.func @transform_0(%arg0: i32) -> (i32, i32) {
    %c0_i32 = arith.constant 0 : i32
    %c0_i32_0 = arith.constant 0 : i32
    %c0_i32_1 = arith.constant 0 : i32
    return %c0_i32, %c0_i32_0 : i32, i32
  }
  func.func @transform_1(%arg0: i32) -> (i32, i32) {
    %c0_i32 = arith.constant 0 : i32
    %c0_i32_0 = arith.constant 0 : i32
    %c0_i32_1 = arith.constant 0 : i32
    return %c0_i32, %c0_i32_0 : i32, i32
  }
  func.func @transform_2(%arg0: i32) -> (i32, i32) {
    %c0_i32 = arith.constant 0 : i32
    %c0_i32_0 = arith.constant 0 : i32
    %c0_i32_1 = arith.constant 0 : i32
    return %c0_i32, %c0_i32_0 : i32, i32
  }
  func.func @transform_3(%arg0: i32) -> (i32, i32) {
    %c0_i32 = arith.constant 0 : i32
    %c0_i32_0 = arith.constant 0 : i32
    %c0_i32_1 = arith.constant 0 : i32
    return %c0_i32, %c0_i32_0 : i32, i32
  }
  func.func @transform_4(%arg0: i32) -> (i32, i32) {
    %c0_i32 = arith.constant 0 : i32
    %c0_i32_0 = arith.constant 0 : i32
    %c0_i32_1 = arith.constant 0 : i32
    return %c0_i32, %c0_i32_0 : i32, i32
  }
}

</mosaic_0001>

<bundles_post_ra>
// kernel: tpu_custom_call.1
= control target key start
LH: loop header
LB: loop body
LE: loop exit
PB: predicated region body
PF: predicated region fallthrough
CT: control target
= control target key end

     0   :  { %9 = vsyncpa [#allocation4], 0  ;;  %s21816_s0 = inlined_call_operand.vmem [shape: f32[240,8], index: 0, kind: input, shape index: {}]   ;;  %s21817_s1 = inlined_call_operand.vmem [shape: f32[160,64], index: 1, kind: input, shape index: {}]   ;;  %s21818_s2 = inlined_call_operand.hbm [shape: bf16[960,2048], index: 2, kind: input, shape index: {}]   ;;  %s21819_s3 = inlined_call_operand.hbm [shape: f32[8,2048], index: 3, kind: input, shape index: {}]   ;;  %s21820_s4 = inlined_call_operand.vmem [shape: f32[2,1], index: 4, kind: output, shape index: {}]  }
   0x1   :  { %s19_s17 = sshll.u32 %s21818_s2, 4  ;;  %s20_s17 = int_to_ptr.hbm [resolvable:$true] %s19_s17 }
   0x2   :  { %10 = vsyncpa [#allocation6], 0  ;;  %s19001_s18 = smov [#allocation3]   ;;  %s33_s22 = sshll.u32 %s21819_s3, 4  ;;  %s34_s22 = int_to_ptr.hbm [resolvable:$true] %s33_s22 }
   0x3   :  { %s21_s19 = sshll.u32 %s19001_s18, 4  ;;  %s19002_s23 = smov 1024   ;;  %s22_s19 = int_to_ptr.vmem [resolvable:$true] %s21_s19 }
   0x4   :  { %s19003_s24 = smov 64   ;;  %s19004_s25 = smov [#allocation5]  }
   0x5   :  { %27 = dma.hbm_to_vmem [thread:$0]  %s20_s17, 122880, %s22_s19, [#allocation4], %s19002_s23, %s19002_s23, %s19003_s24  }
   0x6   :  { %s35_s26 = sshll.u32 %s19004_s25, 4  ;;  %s36_s26 = int_to_ptr.vmem [resolvable:$true] %s35_s26 }
   0x7   :  { %38 = dma.hbm_to_vmem [thread:$0]  %s34_s22, 2048, %s36_s26, [#allocation6]  }
   0x8   :  { %18997 = dma.done.wait [#allocation4], 122880  }
   0x9   :  { %18998 = vsyncadd [#allocation4], 4294844416 }
   0xa   :  { %18999 = dma.done.wait [#allocation6], 2048  }
   0xb   :  { %19000 = vsyncadd [#allocation6], 4294965248  ;;  %vm99_vm0 = vcmask 64512   ;;  %v78_v0 = vld [vmem:[%s21817_s1] sm:$0xff]  ;;  %v49_v2 = vld [vmem:[%s21816_s0 + $0x8] sm:$0xff]  ;;  %vm328_vm1 = vcmask 523264  }
   0xc   :  { %v48_v1 = vld [vmem:[%s21816_s0] sm:$0xff]  ;;  %205 = vmatpush.msra.mxu0 %v78_v0  ;;  %v50_v3 = vld [vmem:[%s21816_s0 + $0x10] sm:$0xff]  ;;  %v51_v4 = vld [vmem:[%s21816_s0 + $0x18] sm:$0xff]  ;;  %vm1042_vm2 = vcmask 261120   ;;  %vm13563_vm3 = vcmask 1024  }
   0xd   :  { %13571 = vmatmul.msk.f32.vlgmr.msra.gmra.mxu0 %vm99_vm0, %v48_v1  ;;  %v52_v5 = vld [vmem:[%s21816_s0 + $0x20] sm:$0xff]  ;;  %v53_v6 = vld [vmem:[%s21816_s0 + $0x28] sm:$0xff]  ;;  %v54_v7 = vld [vmem:[%s21816_s0 + $0x30] sm:$0xff] }
   0xe   :  { %v55_v8 = vld [vmem:[%s21816_s0 + $0x38] sm:$0xff]  ;;  %v56_v9 = vld [vmem:[%s21816_s0 + $0x40] sm:$0xff]  ;;  %v57_v10 = vld [vmem:[%s21816_s0 + $0x48] sm:$0xff] }
   0xf   :  { %v58_v11 = vld [vmem:[%s21816_s0 + $0x50] sm:$0xff]  ;;  %v87_v12 = vld [vmem:[%s21817_s1 + $0x48] sm:$0xff]  ;;  %v86_v13 = vld [vmem:[%s21817_s1 + $0x40] sm:$0xff] }
  0x10   :  { %427 = vmatpush.msra.mxu1 %v87_v12  ;;  %v85_v14 = vld [vmem:[%s21817_s1 + $0x38] sm:$0xff]  ;;  %v84_v16 = vld [vmem:[%s21817_s1 + $0x30] sm:$0xff]  ;;  %v83_v17 = vld [vmem:[%s21817_s1 + $0x28] sm:$0xff] }
  0x11   :  { %v59_v15 = vld [vmem:[%s21816_s0 + $0x58] sm:$0xff]  ;;  %v82_v18 = vld [vmem:[%s21817_s1 + $0x20] sm:$0xff]  ;;  %v80_v21 = vld [vmem:[%s21817_s1 + $0x10] sm:$0xff] }
  0x12   :  { %428 = vmatpush.msra.mxu1 %v86_v13  ;;  %v60_v19 = vld [vmem:[%s21816_s0 + $0x60] sm:$0xff]  ;;  %v81_v20 = vld [vmem:[%s21817_s1 + $0x18] sm:$0xff]  ;;  %v61_v22 = vld [vmem:[%s21816_s0 + $0x68] sm:$0xff] }
  0x13   :  { %v62_v23 = vld [vmem:[%s21816_s0 + $0x70] sm:$0xff]  ;;  %v63_v24 = vld [vmem:[%s21816_s0 + $0x78] sm:$0xff]  ;;  %v19130_v25 = vld [vmem:[%s21817_s1 + $0x8] ss:$0 sm:$0xff] }
  0x14   :  { %429 = vmatpush.msra.mxu1 %v85_v14  ;;  %v64_v27 = vld [vmem:[%s21816_s0 + $0x80] sm:$0xff]  ;;  %v65_v31 = vld [vmem:[%s21816_s0 + $0x88] sm:$0xff]  ;;  %v66_v35 = vld [vmem:[%s21816_s0 + $0x90] sm:$0xff] }
  0x15   :  { %13572 = vmatmul.msk.f32.gmra.mxu0 %vm99_vm0, %v49_v2  ;;  %v67_v39 = vld [vmem:[%s21816_s0 + $0x98] sm:$0xff]  ;;  %v68_v43 = vld [vmem:[%s21816_s0 + $0xa0] sm:$0xff]  ;;  %v69_v47 = vld [vmem:[%s21816_s0 + $0xa8] sm:$0xff] }
  0x16   :  { %430 = vmatpush.msra.mxu1 %v84_v16  ;;  %v70_v51 = vld [vmem:[%s21816_s0 + $0xb0] sm:$0xff]  ;;  %v71_v55 = vld [vmem:[%s21816_s0 + $0xb8] sm:$0xff]  ;;  %v72_v59 = vld [vmem:[%s21816_s0 + $0xc0] sm:$0xff] }
  0x17   :  { %v73_v63 = vld [vmem:[%s21816_s0 + $0xc8] sm:$0xff]  ;;  %v94_v12 = vld [vmem:[%s21817_s1 + $0x80] sm:$0xff]  ;;  %v93_v13 = vld [vmem:[%s21817_s1 + $0x78] sm:$0xff] }
  0x18   :  { %431 = vmatpush.msra.mxu1 %v83_v17  ;;  %v92_v14 = vld [vmem:[%s21817_s1 + $0x70] sm:$0xff]  ;;  %v76_v16 = vld [vmem:[%s21816_s0 + $0xe0] sm:$0xff] }
  0x1a   :  { %432 = vmatpush.msra.mxu1 %v82_v18  ;;  %v91_v18 = vld [vmem:[%s21817_s1 + $0x68] sm:$0xff] }
  0x1c   :  { %433 = vmatpush.msra.mxu1 %v81_v20  ;;  %v90_v20 = vld [vmem:[%s21817_s1 + $0x60] sm:$0xff] }
  0x1d   :  { %13573 = vmatmul.msk.f32.gmra.mxu0 %vm99_vm0, %v50_v3  ;;  %v74_v3 = vld [vmem:[%s21816_s0 + $0xd0] sm:$0xff] }
  0x1e   :  { %434 = vmatpush.msra.mxu1 %v80_v21  ;;  %v89_v21 = vld [vmem:[%s21817_s1 + $0x58] sm:$0xff] }
  0x25   :  { %13574 = vmatmul.msk.f32.gmra.mxu0 %vm99_vm0, %v51_v4 }
  0x2d   :  { %13575 = vmatmul.msk.f32.gmra.mxu0 %vm99_vm0, %v52_v5 }
  0x35   :  { %13576 = vmatmul.msk.f32.gmra.mxu0 %vm99_vm0, %v53_v6  ;;  %v96_v6 = vld [vmem:[%s21817_s1 + $0x90] sm:$0xff] }
  0x36   :  { %655 = vmatpush.msra.mxu2 %v96_v6 }
  0x3d   :  { %13577 = vmatmul.msk.f32.gmra.mxu0 %vm99_vm0, %v54_v7 }
  0x45   :  { %13578 = vmatmul.msk.f32.gmra.mxu0 %vm99_vm0, %v55_v8  ;;  %v75_v8 = vld [vmem:[%s21816_s0 + $0xd8] sm:$0xff] }
  0x4d   :  { %13579 = vmatmul.msk.f32.gmra.mxu0 %vm99_vm0, %v56_v9 }
  0x55   :  { %13580 = vmatmul.msk.f32.gmra.mxu0 %vm99_vm0, %v57_v10  ;;  %v95_v10 = vld [vmem:[%s21817_s1 + $0x88] sm:$0xff] }
  0x56   :  { %656 = vmatpush.msra.mxu2 %v95_v10 }
  0x58   :  { %657 = vmatpush.msra.mxu2 %v94_v12 }
  0x5a   :  { %658 = vmatpush.msra.mxu2 %v93_v13 }
  0x5c   :  { %659 = vmatpush.msra.mxu2 %v92_v14 }
  0x5d   :  { %13581 = vmatmul.msk.f32.gmra.mxu0 %vm99_vm0, %v58_v11 }
  0x5e   :  { %660 = vmatpush.msra.mxu2 %v91_v18 }
  0x60   :  { %661 = vmatpush.msra.mxu2 %v90_v20 }
  0x62   :  { %662 = vmatpush.msra.mxu2 %v89_v21 }
  0x65   :  { %13582 = vmatmul.msk.f32.gmra.mxu0 %vm99_vm0, %v59_v15 }
  0x6d   :  { %13583 = vmatmul.msk.f32.gmra.mxu0 %vm99_vm0, %v60_v19 }
  0x75   :  { %13584 = vmatmul.msk.f32.gmra.mxu0 %vm99_vm0, %v61_v22 }
  0x7d   :  { %13585 = vmatmul.msk.f32.gmra.mxu0 %vm99_vm0, %v62_v23  ;;  %v77_v23 = vld [vmem:[%s21816_s0 + $0xe8] sm:$0xff] }
  0x85   :  { %13586 = vmatmul.msk.f32.gmra.mxu0 %vm99_vm0, %v63_v24 }
  0x8a   :  { %v207_v26 = vpop.f32.mrf.mxu0 }
  0x8b   :  { %v208_v28 = vadd.f32 %v19130_v25, %v207_v26 }
  0x8d   :  { %v297_v29 = vmax.f32 %v208_v28, 0.0  ;;  %13587 = vmatmul.msk.f32.gmra.mxu0 %vm99_vm0, %v64_v27 }
  0x8f   :  { %13601 = vmatmul.msk.f32.vlgmr.msra.gmra.mxu1 %vm328_vm1, %v297_v29 }
  0x92   :  { %v210_v30 = vpop.f32.mrf.mxu0 }
  0x93   :  { %v211_v32 = vadd.f32 %v19130_v25, %v210_v30 }
  0x95   :  { %v298_v33 = vmax.f32 %v211_v32, 0.0  ;;  %13588 = vmatmul.msk.f32.gmra.mxu0 %vm99_vm0, %v65_v31 }
  0x97   :  { %13602 = vmatmul.msk.f32.gmra.mxu1 %vm328_vm1, %v298_v33  ;;  %v19247_v33 = vld [vmem:[%s21817_s1 + $0x50] ss:$0 sm:$0xff] }
  0x9a   :  { %v213_v34 = vpop.f32.mrf.mxu0 }
  0x9b   :  { %v214_v36 = vadd.f32 %v19130_v25, %v213_v34 }
  0x9d   :  { %v299_v37 = vmax.f32 %v214_v36, 0.0  ;;  %13589 = vmatmul.msk.f32.gmra.mxu0 %vm99_vm0, %v66_v35 }
  0x9f   :  { %13603 = vmatmul.msk.f32.gmra.mxu1 %vm328_vm1, %v299_v37 }
  0xa2   :  { %v216_v38 = vpop.f32.mrf.mxu0 }
  0xa3   :  { %v217_v40 = vadd.f32 %v19130_v25, %v216_v38 }
  0xa5   :  { %v300_v41 = vmax.f32 %v217_v40, 0.0  ;;  %13590 = vmatmul.msk.f32.gmra.mxu0 %vm99_vm0, %v67_v39 }
  0xa7   :  { %13604 = vmatmul.msk.f32.gmra.mxu1 %vm328_vm1, %v300_v41 }
  0xaa   :  { %v219_v42 = vpop.f32.mrf.mxu0 }
  0xab   :  { %v220_v44 = vadd.f32 %v19130_v25, %v219_v42 }
  0xad   :  { %v301_v45 = vmax.f32 %v220_v44, 0.0  ;;  %13591 = vmatmul.msk.f32.gmra.mxu0 %vm99_vm0, %v68_v43 }
  0xaf   :  { %13605 = vmatmul.msk.f32.gmra.mxu1 %vm328_vm1, %v301_v45 }
  0xb2   :  { %v222_v46 = vpop.f32.mrf.mxu0 }
  0xb3   :  { %v223_v48 = vadd.f32 %v19130_v25, %v222_v46 }
  0xb5   :  { %v302_v49 = vmax.f32 %v223_v48, 0.0  ;;  %13592 = vmatmul.msk.f32.gmra.mxu0 %vm99_vm0, %v69_v47 }
  0xb7   :  { %13606 = vmatmul.msk.f32.gmra.mxu1 %vm328_vm1, %v302_v49 }
  0xba   :  { %v225_v50 = vpop.f32.mrf.mxu0 }
  0xbb   :  { %v226_v52 = vadd.f32 %v19130_v25, %v225_v50 }
  0xbd   :  { %v303_v53 = vmax.f32 %v226_v52, 0.0  ;;  %13593 = vmatmul.msk.f32.gmra.mxu0 %vm99_vm0, %v70_v51 }
  0xbf   :  { %13607 = vmatmul.msk.f32.gmra.mxu1 %vm328_vm1, %v303_v53 }
  0xc2   :  { %v228_v54 = vpop.f32.mrf.mxu0 }
  0xc3   :  { %v229_v56 = vadd.f32 %v19130_v25, %v228_v54 }
  0xc5   :  { %v304_v57 = vmax.f32 %v229_v56, 0.0  ;;  %13594 = vmatmul.msk.f32.gmra.mxu0 %vm99_vm0, %v71_v55 }
  0xc7   :  { %13608 = vmatmul.msk.f32.gmra.mxu1 %vm328_vm1, %v304_v57 }
  0xca   :  { %v231_v58 = vpop.f32.mrf.mxu0 }
  0xcb   :  { %v232_v60 = vadd.f32 %v19130_v25, %v231_v58 }
  0xcd   :  { %v305_v61 = vmax.f32 %v232_v60, 0.0  ;;  %13595 = vmatmul.msk.f32.gmra.mxu0 %vm99_vm0, %v72_v59 }
  0xcf   :  { %13609 = vmatmul.msk.f32.gmra.mxu1 %vm328_vm1, %v305_v61 }
  0xd2   :  { %v234_v62 = vpop.f32.mrf.mxu0 }
  0xd3   :  { %v235_v0 = vadd.f32 %v19130_v25, %v234_v62 }
  0xd5   :  { %v306_v1 = vmax.f32 %v235_v0, 0.0  ;;  %13596 = vmatmul.msk.f32.gmra.mxu0 %vm99_vm0, %v73_v63 }
  0xd7   :  { %13610 = vmatmul.msk.f32.gmra.mxu1 %vm328_vm1, %v306_v1 }
  0xda   :  { %v237_v2 = vpop.f32.mrf.mxu0 }
  0xdb   :  { %v238_v4 = vadd.f32 %v19130_v25, %v237_v2 }
  0xdd   :  { %v307_v5 = vmax.f32 %v238_v4, 0.0  ;;  %13597 = vmatmul.msk.f32.gmra.mxu0 %vm99_vm0, %v74_v3 }
  0xdf   :  { %13611 = vmatmul.msk.f32.gmra.mxu1 %vm328_vm1, %v307_v5 }
  0xe2   :  { %v240_v7 = vpop.f32.mrf.mxu0 }
  0xe3   :  { %v241_v9 = vadd.f32 %v19130_v25, %v240_v7 }
  0xe5   :  { %v308_v11 = vmax.f32 %v241_v9, 0.0  ;;  %13598 = vmatmul.msk.f32.gmra.mxu0 %vm99_vm0, %v75_v8 }
  0xe7   :  { %13612 = vmatmul.msk.f32.gmra.mxu1 %vm328_vm1, %v308_v11 }
  0xea   :  { %v243_v15 = vpop.f32.mrf.mxu0 }
  0xeb   :  { %v244_v17 = vadd.f32 %v19130_v25, %v243_v15 }
  0xed   :  { %v309_v19 = vmax.f32 %v244_v17, 0.0  ;;  %13599 = vmatmul.msk.f32.gmra.mxu0 %vm99_vm0, %v76_v16 }
  0xef   :  { %13613 = vmatmul.msk.f32.gmra.mxu1 %vm328_vm1, %v309_v19 }
  0xf2   :  { %v246_v22 = vpop.f32.mrf.mxu0 }
  0xf3   :  { %v247_v24 = vadd.f32 %v19130_v25, %v246_v22 }
  0xf5   :  { %v310_v26 = vmax.f32 %v247_v24, 0.0  ;;  %13600 = vmatmul.msk.f32.gmra.mxu0 %vm99_vm0, %v77_v23 }
  0xf7   :  { %13614 = vmatmul.msk.f32.gmra.mxu1 %vm328_vm1, %v310_v26 }
  0xfa   :  { %v249_v27 = vpop.f32.mrf.mxu0 }
  0xfb   :  { %v250_v28 = vadd.f32 %v19130_v25, %v249_v27 }
  0xfd   :  { %v311_v29 = vmax.f32 %v250_v28, 0.0 }
  0xff   :  { %13615 = vmatmul.msk.f32.gmra.mxu1 %vm328_vm1, %v311_v29 }
 0x102   :  { %v252_v30 = vpop.f32.mrf.mxu0 }
 0x103   :  { %v253_v31 = vadd.f32 %v19130_v25, %v252_v30 }
 0x105   :  { %v312_v32 = vmax.f32 %v253_v31, 0.0 }
 0x107   :  { %13616 = vmatmul.msk.f32.gmra.mxu1 %vm328_vm1, %v312_v32 }
 0x10a   :  { %v255_v34 = vpop.f32.mrf.mxu0 }
 0x10b   :  { %v256_v35 = vadd.f32 %v19130_v25, %v255_v34 }
 0x10c   :  { %v436_v36 = vpop.f32.mrf.mxu1 }
 0x10d   :  { %v313_v37 = vmax.f32 %v256_v35, 0.0  ;;  %v437_v38 = vadd.f32 %v19247_v33, %v436_v36 }
 0x10f   :  { %v526_v39 = vmax.f32 %v437_v38, 0.0  ;;  %13617 = vmatmul.msk.f32.gmra.mxu1 %vm328_vm1, %v313_v37 }
 0x111   :  { %13631 = vmatmul.msk.f32.vlgmr.msra.gmra.mxu2 %vm328_vm1, %v526_v39 }
 0x112   :  { %v258_v40 = vpop.f32.mrf.mxu0 }
 0x113   :  { %v259_v41 = vadd.f32 %v19130_v25, %v258_v40 }
 0x114   :  { %v439_v42 = vpop.f32.mrf.mxu1 }
 0x115   :  { %v314_v43 = vmax.f32 %v259_v41, 0.0  ;;  %v440_v44 = vadd.f32 %v19247_v33, %v439_v42 }
 0x117   :  { %v527_v45 = vmax.f32 %v440_v44, 0.0  ;;  %13618 = vmatmul.msk.f32.gmra.mxu1 %vm328_vm1, %v314_v43 }
 0x119   :  { %13632 = vmatmul.msk.f32.gmra.mxu2 %vm328_vm1, %v527_v45 }
 0x11a   :  { %v261_v46 = vpop.f32.mrf.mxu0 }
 0x11b   :  { %v262_v47 = vadd.f32 %v19130_v25, %v261_v46 }
 0x11c   :  { %v442_v48 = vpop.f32.mrf.mxu1 }
 0x11d   :  { %v315_v49 = vmax.f32 %v262_v47, 0.0  ;;  %v443_v50 = vadd.f32 %v19247_v33, %v442_v48 }
 0x11f   :  { %v528_v51 = vmax.f32 %v443_v50, 0.0  ;;  %13619 = vmatmul.msk.f32.gmra.mxu1 %vm328_vm1, %v315_v49 }
 0x121   :  { %13633 = vmatmul.msk.f32.gmra.mxu2 %vm328_vm1, %v528_v51 }
 0x122   :  { %v264_v52 = vpop.f32.mrf.mxu0 }
 0x123   :  { %v265_v53 = vadd.f32 %v19130_v25, %v264_v52 }
 0x124   :  { %v445_v54 = vpop.f32.mrf.mxu1 }
 0x125   :  { %v316_v55 = vmax.f32 %v265_v53, 0.0  ;;  %v446_v56 = vadd.f32 %v19247_v33, %v445_v54 }
 0x127   :  { %v529_v57 = vmax.f32 %v446_v56, 0.0  ;;  %13620 = vmatmul.msk.f32.gmra.mxu1 %vm328_vm1, %v316_v55  ;;  %v17997_v56 = vld [vmem:[#allocation3 + $0x84] sm:$0xf] }
 0x129   :  { %13634 = vmatmul.msk.f32.gmra.mxu2 %vm328_vm1, %v529_v57  ;;  %v13873_v57 = vld [vmem:[#allocation3 + $0xc0] sm:$0xf0] }
 0x12a   :  { %v267_v58 = vpop.f32.mrf.mxu0 }
 0x12b   :  { %v268_v59 = vadd.f32 %v19130_v25, %v267_v58  ;;  %v13876_v58 = vor.u32 %v17997_v56, %v13873_v57 }
 0x12c   :  { %v448_v60 = vpop.f32.mrf.mxu1 }
 0x12d   :  { %v317_v61 = vmax.f32 %v268_v59, 0.0  ;;  %v449_v62 = vadd.f32 %v19247_v33, %v448_v60  ;;  %1436 = vmatpush.bf16.msrb.mxu1 %v13876_v58 }
 0x12f   :  { %v530_v63 = vmax.f32 %v449_v62, 0.0  ;;  %13621 = vmatmul.msk.f32.gmra.mxu1 %vm328_vm1, %v317_v61  ;;  %v17981_v61 = vld [vmem:[#allocation3 + $0x4] sm:$0xf] }
 0x130   :  { %v13809_v62 = vld [vmem:[#allocation3 + $0x40] sm:$0xf0] }
 0x131   :  { %13635 = vmatmul.msk.f32.gmra.mxu2 %vm328_vm1, %v530_v63  ;;  %v13812_v63 = vor.u32 %v17981_v61, %v13809_v62 }
 0x132   :  { %v270_v0 = vpop.f32.mrf.mxu0 }
 0x133   :  { %v271_v1 = vadd.f32 %v19130_v25, %v270_v0  ;;  %1437 = vmatpush.bf16.msrb.mxu1 %v13812_v63  ;;  %v13727_v0 = vld [vmem:[#allocation3 + $0x180] sm:$0xf]  ;;  %v13735_v63 = vld [vmem:[#allocation3 + $0x188] sm:$0xf] }
 0x134   :  { %v451_v2 = vpop.f32.mrf.mxu1 }
 0x135   :  { %v318_v3 = vmax.f32 %v271_v1, 0.0  ;;  %v452_v4 = vadd.f32 %v19247_v33, %v451_v2  ;;  %v18037_v1 = vld [vmem:[#allocation3 + $0x1bc] sm:$0xf0]  ;;  %v18036_v2 = vld [vmem:[#allocation3 + $0x1bc] sm:$0xf] }
 0x137   :  { %v531_v5 = vmax.f32 %v452_v4, 0.0  ;;  %13622 = vmatmul.msk.f32.gmra.mxu1 %vm328_vm1, %v318_v3  ;;  %v13728_v3 = vor.u32 %v18037_v1, %v13727_v0  ;;  %v13785_v4 = vld [vmem:[#allocation3 + $0x1f8] sm:$0xf0] }
 0x139   :  { %13636 = vmatmul.msk.f32.gmra.mxu2 %vm328_vm1, %v531_v5  ;;  %v13788_v5 = vor.u32 %v18036_v2, %v13785_v4  ;;  %1052 = vmatpush.bf16.msra.mxu3 %v13728_v3  ;;  %v18038_v2 = vld [vmem:[#allocation3 + $0x1c4] sm:$0xf0]  ;;  %v18000_v3 = vld [vmem:[#allocation3 + $0x9c] sm:$0xf] }
 0x13a   :  { %v273_v6 = vpop.f32.mrf.mxu0  ;;  %v13897_v4 = vld [vmem:[#allocation3 + $0xd8] sm:$0xf0] }
 0x13b   :  { %v274_v7 = vadd.f32 %v19130_v25, %v273_v6  ;;  %1247 = vmatpush.bf16.msrb.mxu0 %v13788_v5 }
 0x13c   :  { %v454_v8 = vpop.f32.mrf.mxu1 }
 0x13d   :  { %v319_v9 = vmax.f32 %v274_v7, 0.0  ;;  %v455_v10 = vadd.f32 %v19247_v33, %v454_v8  ;;  %v13663_v8 = vld [vmem:[#allocation3 + $0x100] sm:$0xf] }
 0x13f   :  { %v532_v11 = vmax.f32 %v455_v10, 0.0  ;;  %13623 = vmatmul.msk.f32.gmra.mxu1 %vm328_vm1, %v319_v9  ;;  %v18021_v9 = vld [vmem:[#allocation3 + $0x13c] sm:$0xf0]  ;;  %v18020_v10 = vld [vmem:[#allocation3 + $0x13c] sm:$0xf] }
 0x141   :  { %13637 = vmatmul.msk.f32.gmra.mxu2 %vm328_vm1, %v532_v11  ;;  %v13664_v11 = vor.u32 %v18021_v9, %v13663_v8  ;;  %v13736_v8 = vor.u32 %v18038_v2, %v13735_v63  ;;  %v13671_v9 = vld [vmem:[#allocation3 + $0x108] sm:$0xf] }
 0x142   :  { %v276_v12 = vpop.f32.mrf.mxu0 }
 0x143   :  { %v277_v13 = vadd.f32 %v19130_v25, %v276_v12  ;;  %v13721_v12 = vld [vmem:[#allocation3 + $0x178] sm:$0xf0]  ;;  %1053 = vmatpush.bf16.msra.mxu3 %v13664_v11  ;;  %v13900_v11 = vor.u32 %v18000_v3, %v13897_v4  ;;  %v18039_v3 = vld [vmem:[#allocation3 + $0x1cc] sm:$0xf0] }
 0x144   :  { %v457_v14 = vpop.f32.mrf.mxu1  ;;  %v18004_v4 = vld [vmem:[#allocation3 + $0xbc] sm:$0xf] }
 0x145   :  { %v320_v15 = vmax.f32 %v277_v13, 0.0  ;;  %v458_v16 = vadd.f32 %v19247_v33, %v457_v14  ;;  %v13724_v14 = vor.u32 %v18020_v10, %v13721_v12  ;;  %v18022_v10 = vld [vmem:[#allocation3 + $0x144] sm:$0xf0] }
 0x147   :  { %v533_v17 = vmax.f32 %v458_v16, 0.0  ;;  %13624 = vmatmul.msk.f32.gmra.mxu1 %vm328_vm1, %v320_v15  ;;  %1248 = vmatpush.bf16.msrb.mxu0 %v13724_v14  ;;  %v17999_v15 = vld [vmem:[#allocation3 + $0x94] sm:$0xf]  ;;  %v13833_v14 = vld [vmem:[#allocation3 + $0x58] sm:$0xf0] }
 0x148   :  { %v13889_v16 = vld [vmem:[#allocation3 + $0xd0] sm:$0xf0] }
 0x149   :  { %13638 = vmatmul.msk.f32.gmra.mxu2 %vm328_vm1, %v533_v17  ;;  %v13892_v17 = vor.u32 %v17999_v15, %v13889_v16 }
 0x14a   :  { %v279_v18 = vpop.f32.mrf.mxu0 }
 0x14b   :  { %v280_v19 = vadd.f32 %v19130_v25, %v279_v18  ;;  %1488 = vmatpush.bf16.msra.mxu1 %v13892_v17  ;;  %v13672_v17 = vor.u32 %v18022_v10, %v13671_v9  ;;  %v13679_v9 = vld [vmem:[#allocation3 + $0x110] sm:$0xf] }
 0x14c   :  { %v460_v20 = vpop.f32.mrf.mxu1  ;;  %v18023_v10 = vld [vmem:[#allocation3 + $0x14c] sm:$0xf0] }
 0x14d   :  { %v321_v21 = vmax.f32 %v280_v19, 0.0  ;;  %v461_v22 = vadd.f32 %v19247_v33, %v460_v20  ;;  %v17983_v20 = vld [vmem:[#allocation3 + $0x14] sm:$0xf] }
 0x14f   :  { %v534_v23 = vmax.f32 %v461_v22, 0.0  ;;  %13625 = vmatmul.msk.f32.gmra.mxu1 %vm328_vm1, %v321_v21  ;;  %v13825_v21 = vld [vmem:[#allocation3 + $0x50] sm:$0xf0] }
 0x150   :  { %v13828_v22 = vor.u32 %v17983_v20, %v13825_v21  ;;  %v18003_v21 = vld [vmem:[#allocation3 + $0xb4] sm:$0xf] }
 0x151   :  { %13639 = vmatmul.msk.f32.gmra.mxu2 %vm328_vm1, %v534_v23 }
 0x152   :  { %v282_v24 = vpop.f32.mrf.mxu0  ;;  %1489 = vmatpush.bf16.msra.mxu1 %v13828_v22  ;;  %v13921_v22 = vld [vmem:[#allocation3 + $0xf0] sm:$0xf0] }
 0x153   :  { %v283_v26 = vadd.f32 %v19130_v25, %v282_v24  ;;  %v19313_v24 = vld [vmem:[%s21817_s1 + $0x98] ss:$0 sm:$0xff] }
 0x154   :  { %v463_v27 = vpop.f32.mrf.mxu1 }
 0x155   :  { %v322_v28 = vmax.f32 %v283_v26, 0.0  ;;  %v464_v29 = vadd.f32 %v19247_v33, %v463_v27  ;;  %v18029_v26 = vld [vmem:[#allocation3 + $0x184] sm:$0xf] }
 0x156   :  { %v13729_v27 = vld [vmem:[#allocation3 + $0x1c0] sm:$0xf0] }
 0x157   :  { %v535_v30 = vmax.f32 %v464_v29, 0.0  ;;  %13626 = vmatmul.msk.f32.gmra.mxu1 %vm328_vm1, %v322_v28  ;;  %v17998_v28 = vld [vmem:[#allocation3 + $0x8c] sm:$0xf]  ;;  %v13732_v29 = vor.u32 %v18029_v26, %v13729_v27  ;;  %v13924_v27 = vor.u32 %v18003_v21, %v13921_v22  ;;  %v18063_v21 = vld [vmem:[#allocation3 + $0x294] sm:$0xf] }
 0x158   :  { %v14033_v22 = vld [vmem:[#allocation3 + $0x2d0] sm:$0xf0] }
 0x159   :  { %13640 = vmatmul.msk.f32.gmra.mxu2 %vm328_vm1, %v535_v30  ;;  %v13881_v30 = vld [vmem:[#allocation3 + $0xc8] sm:$0xf0]  ;;  %1065 = vmatpush.bf16.msrb.mxu3 %v13732_v29  ;;  %v13857_v29 = vld [vmem:[#allocation3 + $0x70] sm:$0xf0] }
 0x15a   :  { %v285_v31 = vpop.f32.mrf.mxu0 }
 0x15b   :  { %v286_v32 = vadd.f32 %v19130_v25, %v285_v31  ;;  %v13884_v31 = vor.u32 %v17998_v28, %v13881_v30  ;;  %v17987_v28 = vld [vmem:[#allocation3 + $0x34] sm:$0xf] }
 0x15c   :  { %v466_v34 = vpop.f32.mrf.mxu1 }
 0x15d   :  { %v323_v35 = vmax.f32 %v286_v32, 0.0  ;;  %v467_v36 = vadd.f32 %v19247_v33, %v466_v34  ;;  %1462 = vmatpush.bf16.msra.mxu0 %v13884_v31 }
 0x15f   :  { %v536_v37 = vmax.f32 %v467_v36, 0.0  ;;  %13627 = vmatmul.msk.f32.gmra.mxu1 %vm328_vm1, %v323_v35 }
 0x161   :  { %13641 = vmatmul.msk.f32.gmra.mxu2 %vm328_vm1, %v536_v37  ;;  %v18013_v37 = vld [vmem:[#allocation3 + $0x104] sm:$0xf] }
 0x162   :  { %v288_v38 = vpop.f32.mrf.mxu0 }
 0x163   :  { %v289_v39 = vadd.f32 %v19130_v25, %v288_v38  ;;  %v13665_v38 = vld [vmem:[#allocation3 + $0x140] sm:$0xf0] }
 0x164   :  { %v469_v40 = vpop.f32.mrf.mxu1 }
 0x165   :  { %v324_v41 = vmax.f32 %v289_v39, 0.0  ;;  %v470_v42 = vadd.f32 %v19247_v33, %v469_v40  ;;  %v17982_v39 = vld [vmem:[#allocation3 + $0xc] sm:$0xf]  ;;  %v13668_v40 = vor.u32 %v18013_v37, %v13665_v38 }
 0x166   :  { %v13737_v37 = vld [vmem:[#allocation3 + $0x1c8] sm:$0xf0] }
 0x167   :  { %v537_v43 = vmax.f32 %v470_v42, 0.0  ;;  %13628 = vmatmul.msk.f32.gmra.mxu1 %vm328_vm1, %v324_v41  ;;  %v13817_v41 = vld [vmem:[#allocation3 + $0x48] sm:$0xf0]  ;;  %1066 = vmatpush.bf16.msrb.mxu3 %v13668_v40 }
 0x168   :  { %v18002_v38 = vld [vmem:[#allocation3 + $0xac] sm:$0xf] }
 0x169   :  { %13642 = vmatmul.msk.f32.gmra.mxu2 %vm328_vm1, %v537_v43 }
 0x16a   :  { %v291_v44 = vpop.f32.mrf.mxu0 }
 0x16b   :  { %v292_v45 = vadd.f32 %v19130_v25, %v291_v44  ;;  %v13820_v44 = vor.u32 %v17982_v39, %v13817_v41  ;;  %v13913_v39 = vld [vmem:[#allocation3 + $0xe8] sm:$0xf0] }
 0x16c   :  { %v472_v46 = vpop.f32.mrf.mxu1 }
 0x16d   :  { %v325_v47 = vmax.f32 %v292_v45, 0.0  ;;  %v473_v48 = vadd.f32 %v19247_v33, %v472_v46  ;;  %v13879_v45 = vld [vmem:[#allocation3 + $0x88] sm:$0xf]  ;;  %1463 = vmatpush.bf16.msra.mxu0 %v13820_v44  ;;  %v13673_v44 = vld [vmem:[#allocation3 + $0x148] sm:$0xf0] }
 0x16e   :  { %v18006_v46 = vld [vmem:[#allocation3 + $0xc4] sm:$0xf0] }
 0x16f   :  { %v538_v49 = vmax.f32 %v473_v48, 0.0  ;;  %13629 = vmatmul.msk.f32.gmra.mxu1 %vm328_vm1, %v325_v47  ;;  %v13880_v47 = vor.u32 %v18006_v46, %v13879_v45  ;;  %v13916_v45 = vor.u32 %v18002_v38, %v13913_v39  ;;  %v17986_v46 = vld [vmem:[#allocation3 + $0x2c] sm:$0xf] }
 0x170   :  { %v18062_v38 = vld [vmem:[#allocation3 + $0x28c] sm:$0xf] }
 0x171   :  { %13643 = vmatmul.msk.f32.gmra.mxu2 %vm328_vm1, %v538_v49  ;;  %v14025_v39 = vld [vmem:[#allocation3 + $0x2c8] sm:$0xf0] }
 0x172   :  { %v294_v50 = vpop.f32.mrf.mxu0  ;;  %1449 = vmatpush.bf16.msrb.mxu2 %v13880_v47  ;;  %v13849_v47 = vld [vmem:[#allocation3 + $0x68] sm:$0xf0] }
 0x173   :  { %v295_v51 = vadd.f32 %v19130_v25, %v294_v50 }
 0x174   :  { %v475_v52 = vpop.f32.mrf.mxu1 }
 0x175   :  { %v326_v53 = vmax.f32 %v295_v51, 0.0  ;;  %v476_v54 = vadd.f32 %v19247_v33, %v475_v52  ;;  %v18001_v52 = vld [vmem:[#allocation3 + $0xa4] sm:$0xf] }
 0x177   :  { %v539_v55 = vmax.f32 %v476_v54, 0.0  ;;  %13630 = vmatmul.msk.f32.gmra.mxu1 %vm328_vm1, %v326_v53  ;;  %v13905_v53 = vld [vmem:[#allocation3 + $0xe0] sm:$0xf0] }
 0x178   :  { %v13908_v57 = vor.u32 %v18001_v52, %v13905_v53 }
 0x179   :  { %13644 = vmatmul.msk.f32.gmra.mxu2 %vm328_vm1, %v539_v55 }
 0x17c   :  { %v478_v59 = vpop.f32.mrf.mxu1 }
 0x17d   :  { %v479_v60 = vadd.f32 %v19247_v33, %v478_v59  ;;  %v17985_v59 = vld [vmem:[#allocation3 + $0x24] sm:$0xf] }
 0x17f   :  { %v540_v25 = vmax.f32 %v479_v60, 0.0  ;;  %v13841_v60 = vld [vmem:[#allocation3 + $0x60] sm:$0xf0] }
 0x181   :  { %13645 = vmatmul.msk.f32.gmra.mxu2 %vm328_vm1, %v540_v25  ;;  %v13844_v25 = vor.u32 %v17985_v59, %v13841_v60  ;;  %v18045_v60 = vld [vmem:[#allocation3 + $0x204] sm:$0xf] }
 0x184   :  { %v481_v6 = vpop.f32.mrf.mxu1 }
 0x185   :  { %v482_v7 = vadd.f32 %v19247_v33, %v481_v6 }
 0x187   :  { %v541_v13 = vmax.f32 %v482_v7, 0.0 }
 0x189   :  { %13646 = vmatmul.msk.f32.gmra.mxu2 %vm328_vm1, %v541_v13  ;;  %v17984_v13 = vld [vmem:[#allocation3 + $0x1c] sm:$0xf] }
 0x18c   :  { %v484_v18 = vpop.f32.mrf.mxu1 }
 0x18d   :  { %v485_v19 = vadd.f32 %v19247_v33, %v484_v18  ;;  %v13836_v18 = vor.u32 %v17984_v13, %v13833_v14  ;;  %v17988_v13 = vld [vmem:[#allocation3 + $0x3c] sm:$0xf] }
 0x18e   :  { %v13865_v14 = vld [vmem:[#allocation3 + $0x78] sm:$0xf0] }
 0x18f   :  { %v542_v23 = vmax.f32 %v485_v19, 0.0 }
 0x191   :  { %13647 = vmatmul.msk.f32.gmra.mxu2 %vm328_vm1, %v542_v23 }
 0x194   :  { %v487_v32 = vpop.f32.mrf.mxu1  ;;  %v664_v34 = vpop.f32.mrf.mxu2 }
 0x195   :  { %v488_v35 = vadd.f32 %v19247_v33, %v487_v32  ;;  %v665_v36 = vadd.f32 %v19313_v24, %v664_v34  ;;  %v18030_v32 = vld [vmem:[#allocation3 + $0x18c] sm:$0xf]  ;;  %v13860_v34 = vor.u32 %v17987_v28, %v13857_v29  ;;  %v18047_v28 = vld [vmem:[#allocation3 + $0x214] sm:$0xf] }
 0x196   :  { %v13969_v29 = vld [vmem:[#allocation3 + $0x250] sm:$0xf0] }
 0x197   :  { %v543_v42 = vmax.f32 %v488_v35, 0.0  ;;  %v754_v43 = vmax.f32 %v665_v36, 0.0 }
 0x199   :  { %784 = vst.msk [vmem:[#allocation2] sm:$0xff] %vm328_vm1, %v754_v43  ;;  %13648 = vmatmul.msk.f32.gmra.mxu2 %vm328_vm1, %v543_v42  ;;  %v13740_v42 = vor.u32 %v18030_v32, %v13737_v37  ;;  %v18014_v43 = vld [vmem:[#allocation3 + $0x10c] sm:$0xf]  ;;  %v18031_v32 = vld [vmem:[#allocation3 + $0x194] sm:$0xf] }
 0x19a   :  { %v13745_v37 = vld [vmem:[#allocation3 + $0x1d0] sm:$0xf0] }
 0x19c   :  { %v490_v48 = vpop.f32.mrf.mxu1  ;;  %v667_v49 = vpop.f32.mrf.mxu2 }
 0x19d   :  { %v491_v50 = vadd.f32 %v19247_v33, %v490_v48  ;;  %v668_v51 = vadd.f32 %v19313_v24, %v667_v49 }
 0x19f   :  { %v544_v54 = vmax.f32 %v491_v50, 0.0  ;;  %v755_v55 = vmax.f32 %v668_v51, 0.0  ;;  %v13676_v50 = vor.u32 %v18014_v43, %v13673_v44  ;;  %v13852_v51 = vor.u32 %v17986_v46, %v13849_v47  ;;  %v18015_v43 = vld [vmem:[#allocation3 + $0x114] sm:$0xf]  ;;  %v18046_v46 = vld [vmem:[#allocation3 + $0x20c] sm:$0xf] }
 0x1a0   :  { %v814_v56 = vld [vmem:[#allocation2] sm:$0xff]  ;;  %v13961_v47 = vld [vmem:[#allocation3 + $0x248] sm:$0xf0] }
 0x1a1   :  { %v19322_v58 = vpack.c.bf16 %v814_v56, %v814_v56  ;;  %785 = vst.msk [vmem:[#allocation2 + $0x8] sm:$0xff] %vm328_vm1, %v755_v55  ;;  %13649 = vmatmul.msk.f32.gmra.mxu2 %vm328_vm1, %v544_v54  ;;  %v18061_v54 = vld [vmem:[#allocation3 + $0x284] sm:$0xf]  ;;  %v13681_v44 = vld [vmem:[#allocation3 + $0x150] sm:$0xf0] }
 0x1a2   :  { %v14017_v55 = vld [vmem:[#allocation3 + $0x2c0] sm:$0xf0] }
 0x1a3   :  { %13934 = vmatmul.msk.bf16.vlgmr.msrb.gmra.mxu1 %vm1042_vm2, %v19322_v58  ;;  %v14020_v59 = vor.u32 %v18061_v54, %v14017_v55  ;;  %v13964_v54 = vor.u32 %v18046_v46, %v13961_v47 }
 0x1a4   :  { %v493_v61 = vpop.f32.mrf.mxu1  ;;  %v670_v62 = vpop.f32.mrf.mxu2  ;;  %1540 = vmatpush.bf16.msrb.mxu1 %v13908_v57 }
 0x1a5   :  { %v494_v0 = vadd.f32 %v19247_v33, %v493_v61  ;;  %v671_v1 = vadd.f32 %v19313_v24, %v670_v62  ;;  %v13953_v61 = vld [vmem:[#allocation3 + $0x240] sm:$0xf0] }
 0x1a7   :  { %v545_v5 = vmax.f32 %v494_v0, 0.0  ;;  %v756_v6 = vmax.f32 %v671_v1, 0.0  ;;  %v13956_v0 = vor.u32 %v18045_v60, %v13953_v61  ;;  %v14049_v60 = vld [vmem:[#allocation3 + $0x2e0] sm:$0xf0] }
 0x1a8   :  { %v848_v7 = vld [vmem:[#allocation2 + $0x8] sm:$0xff]  ;;  %1541 = vmatpush.bf16.msrb.mxu1 %v13844_v25  ;;  %v13743_v25 = vld [vmem:[#allocation3 + $0x190] sm:$0xf] }
 0x1a9   :  { %v19330_v12 = vpack.c.bf16 %v848_v7, %v848_v7  ;;  %786 = vst.msk [vmem:[#allocation2 + $0x10] sm:$0xff] %vm328_vm1, %v756_v6  ;;  %13650 = vmatmul.msk.f32.gmra.mxu2 %vm328_vm1, %v545_v5  ;;  %v13929_v5 = vld [vmem:[#allocation3 + $0xf8] sm:$0xf0] }
 0x1ab   :  { %13789 = vmatmul.msk.bf16.vlgmr.msra.gmra.mxu3 %vm1042_vm2, %v19330_v12  ;;  %13804 = vmatmul.msk.bf16.vlgmr.msrb.gmra.mxu0 %vm1042_vm2, %v19330_v12 }
 0x1ac   :  { %v496_v15 = vpop.f32.mrf.mxu1  ;;  %v673_v16 = vpop.f32.mrf.mxu2  ;;  %1078 = vmatpush.bf16.msra.mxu3 %v13736_v8  ;;  %1514 = vmatpush.bf16.msrb.mxu0 %v13900_v11  ;;  %v13744_v8 = vor.u32 %v18039_v3, %v13743_v25  ;;  %v13932_v11 = vor.u32 %v18004_v4, %v13929_v5  ;;  %v13751_v4 = vld [vmem:[#allocation3 + $0x198] sm:$0xf] }
 0x1ad   :  { %v497_v19 = vadd.f32 %v19247_v33, %v496_v15  ;;  %v674_v20 = vadd.f32 %v19313_v24, %v673_v16 }
 0x1af   :  { %v546_v23 = vmax.f32 %v497_v19, 0.0  ;;  %v757_v26 = vmax.f32 %v674_v20, 0.0 }
 0x1b0   :  { %1079 = vmatpush.bf16.msra.mxu3 %v13672_v17  ;;  %1515 = vmatpush.bf16.msrb.mxu0 %v13836_v18  ;;  %v13680_v17 = vor.u32 %v18023_v10, %v13679_v9  ;;  %v13868_v18 = vor.u32 %v17988_v13, %v13865_v14  ;;  %v18064_v9 = vld [vmem:[#allocation3 + $0x29c] sm:$0xf]  ;;  %v13895_v14 = vld [vmem:[#allocation3 + $0x98] sm:$0xf] }
 0x1b1   :  { %787 = vst.msk [vmem:[#allocation2 + $0x18] sm:$0xff] %vm328_vm1, %v757_v26  ;;  %13651 = vmatmul.msk.f32.gmra.mxu2 %vm328_vm1, %v546_v23  ;;  %v14041_v10 = vld [vmem:[#allocation3 + $0x2d8] sm:$0xf0] }
 0x1b3   :  { %13938 = vmatmul.msk.bf16.vlgmr.msra.gmra.mxu1 %vm1042_vm2, %v19322_v58 }
 0x1b4   :  { %v499_v30 = vpop.f32.mrf.mxu1  ;;  %v676_v31 = vpop.f32.mrf.mxu2  ;;  %1592 = vmatpush.bf16.msra.mxu1 %v13924_v27  ;;  %v14036_v27 = vor.u32 %v18063_v21, %v14033_v22  ;;  %v18048_v21 = vld [vmem:[#allocation3 + $0x21c] sm:$0xf] }
 0x1b5   :  { %v500_v35 = vadd.f32 %v19247_v33, %v499_v30  ;;  %v677_v36 = vadd.f32 %v19313_v24, %v676_v31  ;;  %v13977_v22 = vld [vmem:[#allocation3 + $0x258] sm:$0xf0] }
 0x1b7   :  { %v547_v40 = vmax.f32 %v500_v35, 0.0  ;;  %v758_v41 = vmax.f32 %v677_v36, 0.0 }
 0x1b8   :  { %1593 = vmatpush.bf16.msra.mxu1 %v13860_v34  ;;  %v13972_v34 = vor.u32 %v18047_v28, %v13969_v29 }
 0x1b9   :  { %788 = vst.msk [vmem:[#allocation2 + $0x20] sm:$0xff] %vm328_vm1, %v758_v41  ;;  %13652 = vmatmul.msk.f32.gmra.mxu2 %vm328_vm1, %v547_v40 }
 0x1bb   :  { %13790 = vmatmul.msk.bf16.vlgmr.msrb.gmra.mxu3 %vm1042_vm2, %v19330_v12  ;;  %13936 = vmatmul.msk.bf16.vlgmr.msra.gmra.mxu0 %vm1042_vm2, %v19322_v58 }
 0x1bc   :  { %v502_v48 = vpop.f32.mrf.mxu1  ;;  %v679_v49 = vpop.f32.mrf.mxu2  ;;  %1091 = vmatpush.bf16.msrb.mxu3 %v13740_v42  ;;  %1566 = vmatpush.bf16.msra.mxu0 %v13916_v45  ;;  %v13748_v42 = vor.u32 %v18031_v32, %v13745_v37  ;;  %v14028_v45 = vor.u32 %v18062_v38, %v14025_v39 }
 0x1bd   :  { %v503_v52 = vadd.f32 %v19247_v33, %v502_v48  ;;  %v680_v53 = vadd.f32 %v19313_v24, %v679_v49  ;;  %v13815_v48 = vld [vmem:[#allocation3 + $0x8] sm:$0xf] }
 0x1be   :  { %v17990_v49 = vld [vmem:[#allocation3 + $0x44] sm:$0xf0] }
 0x1bf   :  { %v548_v56 = vmax.f32 %v503_v52, 0.0  ;;  %v759_v57 = vmax.f32 %v680_v53, 0.0  ;;  %v13684_v53 = vor.u32 %v18015_v43, %v13681_v44  ;;  %v13816_v55 = vor.u32 %v17990_v49, %v13815_v48  ;;  %v18032_v44 = vld [vmem:[#allocation3 + $0x19c] sm:$0xf]  ;;  %v18066_v49 = vld [vmem:[#allocation3 + $0x2ac] sm:$0xf] }
 0x1c0   :  { %1092 = vmatpush.bf16.msrb.mxu3 %v13676_v50  ;;  %1567 = vmatpush.bf16.msra.mxu0 %v13852_v51  ;;  %v1625_v50 = vld [vmem:[#allocation2 + $0x10] sm:$0xff]  ;;  %v13753_v48 = vld [vmem:[#allocation3 + $0x1d8] sm:$0xf0] }
 0x1c1   :  { %789 = vst.msk [vmem:[#allocation2 + $0x28] sm:$0xff] %vm328_vm1, %v759_v57  ;;  %13653 = vmatmul.msk.f32.gmra.mxu2 %vm328_vm1, %v548_v56  ;;  %v19382_v61 = vpack.c.bf16 %v1625_v50, %v1625_v50  ;;  %v14057_v50 = vld [vmem:[#allocation3 + $0x2e8] sm:$0xf0] }
 0x1c2   :  { %1450 = vmatpush.bf16.msrb.mxu2 %v13816_v55  ;;  %v13689_v55 = vld [vmem:[#allocation3 + $0x158] sm:$0xf0] }
 0x1c3   :  { %13942 = vmatmul.msk.bf16.vlgmr.msrb.gmra.mxu1 %vm1042_vm2, %v19322_v58 }
 0x1c4   :  { %v505_v62 = vpop.f32.mrf.mxu1  ;;  %v682_v63 = vpop.f32.mrf.mxu2  ;;  %1841 = vmatpush.bf16.msrb.mxu1 %v14020_v59  ;;  %v18065_v59 = vld [vmem:[#allocation3 + $0x2a4] sm:$0xf] }
 0x1c5   :  { %v506_v1 = vadd.f32 %v19247_v33, %v505_v62  ;;  %v683_v2 = vadd.f32 %v19313_v24, %v682_v63  ;;  %v14052_v25 = vor.u32 %v18065_v59, %v14049_v60  ;;  %v13993_v59 = vld [vmem:[#allocation3 + $0x268] sm:$0xf0]  ;;  %v18010_v60 = vld [vmem:[#allocation3 + $0xe4] sm:$0xf0] }
 0x1c7   :  { %v549_v6 = vmax.f32 %v506_v1, 0.0  ;;  %v760_v7 = vmax.f32 %v683_v2, 0.0  ;;  %v13985_v1 = vld [vmem:[#allocation3 + $0x260] sm:$0xf0] }
 0x1c8   :  { %1842 = vmatpush.bf16.msrb.mxu1 %v13956_v0  ;;  %v18049_v0 = vld [vmem:[#allocation3 + $0x224] sm:$0xf] }
 0x1c9   :  { %790 = vst.msk [vmem:[#allocation2 + $0x30] sm:$0xff] %vm328_vm1, %v760_v7  ;;  %13654 = vmatmul.msk.f32.gmra.mxu2 %vm328_vm1, %v549_v6  ;;  %v13988_v5 = vor.u32 %v18049_v0, %v13985_v1  ;;  %v18093_v1 = vld [vmem:[#allocation3 + $0x384] sm:$0xf] }
 0x1cb   :  { %13791 = vmatmul.msk.bf16.vlgmr.msra.gmra.mxu3 %vm1042_vm2, %v19330_v12  ;;  %13940 = vmatmul.msk.bf16.vlgmr.msrb.gmra.mxu0 %vm1042_vm2, %v19322_v58 }
 0x1cc   :  { %v508_v15 = vpop.f32.mrf.mxu1  ;;  %v685_v16 = vpop.f32.mrf.mxu2  ;;  %1104 = vmatpush.bf16.msra.mxu3 %v13744_v8  ;;  %1618 = vmatpush.bf16.msrb.mxu0 %v13932_v11  ;;  %v18040_v8 = vld [vmem:[#allocation3 + $0x1d4] sm:$0xf0] }
 0x1cd   :  { %v509_v19 = vadd.f32 %v19247_v33, %v508_v15  ;;  %v686_v20 = vadd.f32 %v19313_v24, %v685_v16  ;;  %v18008_v15 = vld [vmem:[#allocation3 + $0xd4] sm:$0xf0]  ;;  %v13752_v16 = vor.u32 %v18040_v8, %v13751_v4  ;;  %v18077_v8 = vld [vmem:[#allocation3 + $0x304] sm:$0xf] }
 0x1cf   :  { %v550_v23 = vmax.f32 %v509_v19, 0.0  ;;  %v761_v26 = vmax.f32 %v686_v20, 0.0  ;;  %v14044_v19 = vor.u32 %v18064_v9, %v14041_v10  ;;  %v13896_v20 = vor.u32 %v18008_v15, %v13895_v14  ;;  %v14097_v9 = vld [vmem:[#allocation3 + $0x340] sm:$0xf0] }
 0x1d0   :  { %1105 = vmatpush.bf16.msra.mxu3 %v13680_v17  ;;  %1619 = vmatpush.bf16.msrb.mxu0 %v13868_v18  ;;  %v13687_v17 = vld [vmem:[#allocation3 + $0x118] sm:$0xf]  ;;  %v14100_v14 = vor.u32 %v18077_v8, %v14097_v9  ;;  %v18054_v8 = vld [vmem:[#allocation3 + $0x244] sm:$0xf0] }
 0x1d1   :  { %791 = vst.msk [vmem:[#allocation2 + $0x38] sm:$0xff] %vm328_vm1, %v761_v26  ;;  %13655 = vmatmul.msk.f32.gmra.mxu2 %vm328_vm1, %v550_v23  ;;  %v18024_v18 = vld [vmem:[#allocation3 + $0x154] sm:$0xf0] }
 0x1d2   :  { %1501 = vmatpush.bf16.msra.mxu2 %v13896_v20  ;;  %v13831_v23 = vld [vmem:[#allocation3 + $0x18] sm:$0xf]  ;;  %v13688_v29 = vor.u32 %v18024_v18, %v13687_v17  ;;  %v18068_v17 = vld [vmem:[#allocation3 + $0x2bc] sm:$0xf] }
 0x1d3   :  { %13946 = vmatmul.msk.bf16.vlgmr.msra.gmra.mxu1 %vm1042_vm2, %v19322_v58  ;;  %v17992_v26 = vld [vmem:[#allocation3 + $0x54] sm:$0xf0]  ;;  %v14073_v18 = vld [vmem:[#allocation3 + $0x2f8] sm:$0xf0] }
 0x1d4   :  { %v511_v30 = vpop.f32.mrf.mxu1  ;;  %v688_v31 = vpop.f32.mrf.mxu2  ;;  %1893 = vmatpush.bf16.msra.mxu1 %v14036_v27 }
 0x1d5   :  { %v512_v35 = vadd.f32 %v19247_v33, %v511_v30  ;;  %v689_v36 = vadd.f32 %v19313_v24, %v688_v31  ;;  %v13980_v30 = vor.u32 %v18048_v21, %v13977_v22  ;;  %v13832_v31 = vor.u32 %v17992_v26, %v13831_v23  ;;  %v13695_v21 = vld [vmem:[#allocation3 + $0x120] sm:$0xf]  ;;  %v18052_v26 = vld [vmem:[#allocation3 + $0x23c] sm:$0xf] }
 0x1d6   :  { %v18025_v22 = vld [vmem:[#allocation3 + $0x15c] sm:$0xf0]  ;;  %v14076_v23 = vor.u32 %v18068_v17, %v14073_v18 }
 0x1d7   :  { %v551_v40 = vmax.f32 %v512_v35, 0.0  ;;  %v762_v41 = vmax.f32 %v689_v36, 0.0  ;;  %v18067_v35 = vld [vmem:[#allocation3 + $0x2b4] sm:$0xf]  ;;  %1502 = vmatpush.bf16.msra.mxu2 %v13832_v31  ;;  %v13696_v31 = vor.u32 %v18025_v22, %v13695_v21  ;;  %v14185_v21 = vld [vmem:[#allocation3 + $0x3d8] sm:$0xf0] }
 0x1d8   :  { %1894 = vmatpush.bf16.msra.mxu1 %v13972_v34  ;;  %v14065_v36 = vld [vmem:[#allocation3 + $0x2f0] sm:$0xf0] }
 0x1d9   :  { %792 = vst.msk [vmem:[#allocation2 + $0x40] sm:$0xff] %vm328_vm1, %v762_v41  ;;  %13656 = vmatmul.msk.f32.gmra.mxu2 %vm328_vm1, %v551_v40  ;;  %v14068_v39 = vor.u32 %v18067_v35, %v14065_v36  ;;  %v18051_v40 = vld [vmem:[#allocation3 + $0x234] sm:$0xf] }
 0x1da   :  { %v14001_v41 = vld [vmem:[#allocation3 + $0x270] sm:$0xf0] }
 0x1db   :  { %13792 = vmatmul.msk.bf16.vlgmr.msrb.gmra.mxu3 %vm1042_vm2, %v19330_v12  ;;  %13944 = vmatmul.msk.bf16.vlgmr.msra.gmra.mxu0 %vm1042_vm2, %v19322_v58  ;;  %v18095_v35 = vld [vmem:[#allocation3 + $0x394] sm:$0xf] }
 0x1dc   :  { %v514_v51 = vpop.f32.mrf.mxu1  ;;  %v691_v52 = vpop.f32.mrf.mxu2  ;;  %1117 = vmatpush.bf16.msrb.mxu3 %v13748_v42  ;;  %1867 = vmatpush.bf16.msra.mxu0 %v14028_v45  ;;  %v14004_v45 = vor.u32 %v18051_v40, %v14001_v41  ;;  %v14177_v36 = vld [vmem:[#allocation3 + $0x3d0] sm:$0xf0]  ;;  %v17996_v40 = vld [vmem:[#allocation3 + $0x74] sm:$0xf0] }
 0x1dd   :  { %v515_v56 = vadd.f32 %v19247_v33, %v514_v51  ;;  %v692_v57 = vadd.f32 %v19313_v24, %v691_v52  ;;  %v14180_v41 = vor.u32 %v18095_v35, %v14177_v36  ;;  %v18072_v35 = vld [vmem:[#allocation3 + $0x2d4] sm:$0xf0] }
 0x1df   :  { %v552_v62 = vmax.f32 %v515_v56, 0.0  ;;  %v763_v63 = vmax.f32 %v692_v57, 0.0  ;;  %v14060_v56 = vor.u32 %v18066_v49, %v14057_v50  ;;  %v18050_v57 = vld [vmem:[#allocation3 + $0x22c] sm:$0xf]  ;;  %v13761_v49 = vld [vmem:[#allocation3 + $0x1e0] sm:$0xf0] }
 0x1e0   :  { %1118 = vmatpush.bf16.msrb.mxu3 %v13684_v53  ;;  %1868 = vmatpush.bf16.msra.mxu0 %v13964_v54  ;;  %v13756_v53 = vor.u32 %v18032_v44, %v13753_v48  ;;  %v18016_v54 = vld [vmem:[#allocation3 + $0x11c] sm:$0xf]  ;;  %v18094_v50 = vld [vmem:[#allocation3 + $0x38c] sm:$0xf] }
 0x1e1   :  { %793 = vst.msk [vmem:[#allocation2 + $0x48] sm:$0xff] %vm328_vm1, %v763_v63  ;;  %13657 = vmatmul.msk.f32.gmra.mxu2 %vm328_vm1, %v552_v62  ;;  %v13692_v63 = vor.u32 %v18016_v54, %v13689_v55  ;;  %v18017_v54 = vld [vmem:[#allocation3 + $0x124] sm:$0xf] }
 0x1e2   :  { %v13697_v55 = vld [vmem:[#allocation3 + $0x160] sm:$0xf0] }
 0x1e3   :  { %14078 = vmatmul.msk.bf16.vlgmr.msrb.gmra.mxu1 %vm1042_vm2, %v19382_v61 }
 0x1e4   :  { %v517_v2 = vpop.f32.mrf.mxu1  ;;  %v694_v3 = vpop.f32.mrf.mxu2  ;;  %1945 = vmatpush.bf16.msrb.mxu1 %v14052_v25  ;;  %v13996_v25 = vor.u32 %v18050_v57, %v13993_v59  ;;  %v18078_v57 = vld [vmem:[#allocation3 + $0x30c] sm:$0xf] }
 0x1e5   :  { %v518_v6 = vadd.f32 %v19247_v33, %v517_v2  ;;  %v695_v7 = vadd.f32 %v19313_v24, %v694_v3  ;;  %v14161_v2 = vld [vmem:[#allocation3 + $0x3c0] sm:$0xf0]  ;;  %v14105_v59 = vld [vmem:[#allocation3 + $0x348] sm:$0xf0] }
 0x1e7   :  { %v553_v11 = vmax.f32 %v518_v6, 0.0  ;;  %v764_v13 = vmax.f32 %v695_v7, 0.0  ;;  %v17994_v6 = vld [vmem:[#allocation3 + $0x64] sm:$0xf0]  ;;  %v14164_v7 = vor.u32 %v18093_v1, %v14161_v2  ;;  %v18097_v2 = vld [vmem:[#allocation3 + $0x3a4] sm:$0xf] }
 0x1e8   :  { %1946 = vmatpush.bf16.msrb.mxu1 %v13988_v5  ;;  %v13847_v5 = vld [vmem:[#allocation3 + $0x28] sm:$0xf] }
 0x1e9   :  { %794 = vst.msk [vmem:[#allocation2 + $0x50] sm:$0xff] %vm328_vm1, %v764_v13  ;;  %13658 = vmatmul.msk.f32.gmra.mxu2 %vm328_vm1, %v553_v11  ;;  %v13848_v10 = vor.u32 %v17994_v6, %v13847_v5  ;;  %v13759_v13 = vld [vmem:[#allocation3 + $0x1a0] sm:$0xf] }
 0x1eb   :  { %13793 = vmatmul.msk.bf16.vlgmr.msra.gmra.mxu3 %vm1042_vm2, %v19330_v12  ;;  %13948 = vmatmul.msk.bf16.vlgmr.msrb.gmra.mxu0 %vm1042_vm2, %v19322_v58 }
 0x1ec   :  { %v520_v27 = vpop.f32.mrf.mxu1  ;;  %v697_v28 = vpop.f32.mrf.mxu2  ;;  %1130 = vmatpush.bf16.msra.mxu3 %v13752_v16  ;;  %1919 = vmatpush.bf16.msrb.mxu0 %v14044_v19  ;;  %v18041_v16 = vld [vmem:[#allocation3 + $0x1dc] sm:$0xf0] }
 0x1ed   :  { %v521_v32 = vadd.f32 %v19247_v33, %v520_v27  ;;  %v698_v34 = vadd.f32 %v19313_v24, %v697_v28  ;;  %v13760_v20 = vor.u32 %v18041_v16, %v13759_v13  ;;  %v14009_v27 = vld [vmem:[#allocation3 + $0x278] sm:$0xf0]  ;;  %v13927_v28 = vld [vmem:[#allocation3 + $0xb8] sm:$0xf]  ;;  %v14129_v13 = vld [vmem:[#allocation3 + $0x360] sm:$0xf0] }
 0x1ee   :  { %v13767_v16 = vld [vmem:[#allocation3 + $0x1a8] sm:$0xf] }
 0x1ef   :  { %v554_v37 = vmax.f32 %v521_v32, 0.0  ;;  %v765_v38 = vmax.f32 %v698_v34, 0.0  ;;  %v14012_v32 = vor.u32 %v18052_v26, %v14009_v27 }
 0x1f0   :  { %1131 = vmatpush.bf16.msra.mxu3 %v13688_v29  ;;  %1920 = vmatpush.bf16.msrb.mxu0 %v13980_v30  ;;  %v18012_v29 = vld [vmem:[#allocation3 + $0xf4] sm:$0xf0] }
 0x1f1   :  { %795 = vst.msk [vmem:[#allocation2 + $0x58] sm:$0xff] %vm328_vm1, %v765_v38  ;;  %13659 = vmatmul.msk.f32.gmra.mxu2 %vm328_vm1, %v554_v37  ;;  %v13928_v37 = vor.u32 %v18012_v29, %v13927_v28  ;;  %v13703_v28 = vld [vmem:[#allocation3 + $0x128] sm:$0xf] }
 0x1f2   :  { %v18026_v29 = vld [vmem:[#allocation3 + $0x164] sm:$0xf0] }
 0x1f3   :  { %14082 = vmatmul.msk.bf16.vlgmr.msra.gmra.mxu1 %vm1042_vm2, %v19382_v61 }
 0x1f4   :  { %v523_v42 = vpop.f32.mrf.mxu1  ;;  %v700_v43 = vpop.f32.mrf.mxu2  ;;  %1997 = vmatpush.bf16.msra.mxu1 %v14068_v39  ;;  %v13863_v39 = vld [vmem:[#allocation3 + $0x38] sm:$0xf] }
 0x1f5   :  { %v524_v46 = vadd.f32 %v19247_v33, %v523_v42  ;;  %v701_v47 = vadd.f32 %v19313_v24, %v700_v43  ;;  %v13911_v33 = vld [vmem:[#allocation3 + $0xa8] sm:$0xf]  ;;  %v18079_v42 = vld [vmem:[#allocation3 + $0x314] sm:$0xf]  ;;  %v13864_v44 = vor.u32 %v17996_v40, %v13863_v39 }
 0x1f6   :  { %v13912_v3 = vor.u32 %v18010_v60, %v13911_v33  ;;  %v14113_v43 = vld [vmem:[#allocation3 + $0x350] sm:$0xf0]  ;;  %v14023_v33 = vld [vmem:[#allocation3 + $0x288] sm:$0xf] }
 0x1f7   :  { %v555_v51 = vmax.f32 %v524_v46, 0.0  ;;  %v766_v52 = vmax.f32 %v701_v47, 0.0  ;;  %v18033_v46 = vld [vmem:[#allocation3 + $0x1a4] sm:$0xf]  ;;  %v14116_v47 = vor.u32 %v18079_v42, %v14113_v43  ;;  %v18070_v60 = vld [vmem:[#allocation3 + $0x2c4] sm:$0xf0] }
 0x1f8   :  { %1998 = vmatpush.bf16.msra.mxu1 %v14004_v45  ;;  %v18099_v40 = vld [vmem:[#allocation3 + $0x3b4] sm:$0xf] }
 0x1f9   :  { %796 = vst.msk [vmem:[#allocation2 + $0x60] sm:$0xff] %vm328_vm1, %v766_v52  ;;  %13660 = vmatmul.msk.f32.gmra.mxu2 %vm328_vm1, %v555_v51  ;;  %v14169_v51 = vld [vmem:[#allocation3 + $0x3c8] sm:$0xf0] }
 0x1fb   :  { %13794 = vmatmul.msk.bf16.vlgmr.msrb.gmra.mxu3 %vm1042_vm2, %v19330_v12  ;;  %14080 = vmatmul.msk.bf16.vlgmr.msra.gmra.mxu0 %vm1042_vm2, %v19382_v61 }
 0x1fc   :  { %v703_v62 = vpop.f32.mrf.mxu2  ;;  %1143 = vmatpush.bf16.msrb.mxu3 %v13756_v53  ;;  %1971 = vmatpush.bf16.msra.mxu0 %v14060_v56  ;;  %v13764_v53 = vor.u32 %v18033_v46, %v13761_v49  ;;  %v14172_v56 = vor.u32 %v18094_v50, %v14169_v51  ;;  %v18056_v46 = vld [vmem:[#allocation3 + $0x254] sm:$0xf0]  ;;  %v18083_v50 = vld [vmem:[#allocation3 + $0x334] sm:$0xf] }
 0x1fd   :  { %v704_v0 = vadd.f32 %v19313_v24, %v703_v62  ;;  %v2046_v62 = vld [vmem:[#allocation2 + $0x18] sm:$0xff]  ;;  %v14145_v51 = vld [vmem:[#allocation3 + $0x370] sm:$0xf0] }
 0x1fe   :  { %v19435_v5 = vpack.c.bf16 %v2046_v62, %v2046_v62 }
 0x1ff   :  { %v767_v4 = vmax.f32 %v704_v0, 0.0  ;;  %v14108_v0 = vor.u32 %v18078_v57, %v14105_v59  ;;  %v13769_v57 = vld [vmem:[#allocation3 + $0x1e8] sm:$0xf0] }
 0x200   :  { %1144 = vmatpush.bf16.msrb.mxu3 %v13692_v63  ;;  %1972 = vmatpush.bf16.msra.mxu0 %v13996_v25  ;;  %v13700_v25 = vor.u32 %v18017_v54, %v13697_v55  ;;  %v18034_v54 = vld [vmem:[#allocation3 + $0x1ac] sm:$0xf]  ;;  %v14148_v55 = vor.u32 %v18083_v50, %v14145_v51  ;;  %v14153_v50 = vld [vmem:[#allocation3 + $0x378] sm:$0xf0]  ;;  %v14071_v51 = vld [vmem:[#allocation3 + $0x2b8] sm:$0xf] }
 0x201   :  { %797 = vst.msk [vmem:[#allocation2 + $0x68] sm:$0xff] %vm328_vm1, %v767_v4  ;;  %13935 = vmatmul.msk.bf16.vlgmr.msrb.gmra.mxu2 %vm1042_vm2, %v19322_v58  ;;  %v14024_v4 = vor.u32 %v18070_v60, %v14023_v33  ;;  %v18098_v59 = vld [vmem:[#allocation3 + $0x3ac] sm:$0xf] }
 0x202   :  { %1553 = vmatpush.bf16.msrb.mxu2 %v13912_v3  ;;  %v14193_v3 = vld [vmem:[#allocation3 + $0x3e0] sm:$0xf0]  ;;  %v14201_v33 = vld [vmem:[#allocation3 + $0x3e8] sm:$0xf0] }
 0x203   :  { %14086 = vmatmul.msk.bf16.vlgmr.msrb.gmra.mxu1 %vm1042_vm2, %v19382_v61 }
 0x204   :  { %v706_v11 = vpop.f32.mrf.mxu2  ;;  %2262 = vmatpush.bf16.msrb.mxu1 %v14164_v7  ;;  %v13959_v7 = vld [vmem:[#allocation3 + $0x208] sm:$0xf] }
 0x205   :  { %v707_v15 = vadd.f32 %v19313_v24, %v706_v11  ;;  %v18081_v11 = vld [vmem:[#allocation3 + $0x324] sm:$0xf] }
 0x206   :  { %1554 = vmatpush.bf16.msrb.mxu2 %v13848_v10  ;;  %v14196_v10 = vor.u32 %v18097_v2, %v14193_v3  ;;  %v14132_v17 = vor.u32 %v18081_v11, %v14129_v13  ;;  %v13705_v2 = vld [vmem:[#allocation3 + $0x168] sm:$0xf0]  ;;  %v14204_v3 = vor.u32 %v18098_v59, %v14201_v33  ;;  %v14321_v59 = vld [vmem:[#allocation3 + $0x4d0] sm:$0xf0] }
 0x207   :  { %v768_v19 = vmax.f32 %v707_v15, 0.0 }
 0x208   :  { %2263 = vmatpush.bf16.msrb.mxu1 %v14100_v14  ;;  %v13960_v14 = vor.u32 %v18054_v8, %v13959_v7  ;;  %v14055_v7 = vld [vmem:[#allocation3 + $0x2a8] sm:$0xf] }
 0x209   :  { %798 = vst.msk [vmem:[#allocation2 + $0x70] sm:$0xff] %vm328_vm1, %v768_v19  ;;  %v18042_v19 = vld [vmem:[#allocation3 + $0x1e4] sm:$0xf0] }
 0x20a   :  { %v13768_v27 = vor.u32 %v18042_v19, %v13767_v16  ;;  %v18074_v8 = vld [vmem:[#allocation3 + $0x2e4] sm:$0xf0]  ;;  %v14305_v16 = vld [vmem:[#allocation3 + $0x4c0] sm:$0xf0] }
 0x20b   :  { %13795 = vmatmul.msk.bf16.vlgmr.msra.gmra.mxu3 %vm1042_vm2, %v19330_v12  ;;  %14084 = vmatmul.msk.bf16.vlgmr.msrb.gmra.mxu0 %vm1042_vm2, %v19382_v61 }
 0x20c   :  { %v709_v30 = vpop.f32.mrf.mxu2  ;;  %1156 = vmatpush.bf16.msra.mxu3 %v13760_v20  ;;  %2023 = vmatpush.bf16.msrb.mxu0 %v14076_v23  ;;  %v18096_v20 = vld [vmem:[#allocation3 + $0x39c] sm:$0xf] }
 0x20d   :  { %v710_v34 = vadd.f32 %v19313_v24, %v709_v30  ;;  %v14188_v30 = vor.u32 %v18096_v20, %v14185_v21  ;;  %v13991_v21 = vld [vmem:[#allocation3 + $0x228] sm:$0xf] }
 0x20f   :  { %v769_v38 = vmax.f32 %v710_v34, 0.0  ;;  %v14039_v34 = vld [vmem:[#allocation3 + $0x298] sm:$0xf] }
 0x210   :  { %1157 = vmatpush.bf16.msra.mxu3 %v13696_v31  ;;  %2024 = vmatpush.bf16.msrb.mxu0 %v14012_v32  ;;  %v18080_v31 = vld [vmem:[#allocation3 + $0x31c] sm:$0xf]  ;;  %v14040_v43 = vor.u32 %v18072_v35, %v14039_v34  ;;  %v19484_v34 = vld [vmem:[%s21817_s1 + $0x98] ss:$0 sm:$0xff] }
 0x211   :  { %799 = vst.msk [vmem:[#allocation2 + $0x78] sm:$0xff] %vm328_vm1, %v769_v38  ;;  %13939 = vmatmul.msk.bf16.vlgmr.msra.gmra.mxu2 %vm1042_vm2, %v19322_v58  ;;  %v14121_v32 = vld [vmem:[#allocation3 + $0x358] sm:$0xf0] }
 0x212   :  { %1605 = vmatpush.bf16.msra.mxu2 %v13928_v37  ;;  %v13704_v37 = vor.u32 %v18026_v29, %v13703_v28  ;;  %v14124_v38 = vor.u32 %v18080_v31, %v14121_v32  ;;  %v14241_v29 = vld [vmem:[#allocation3 + $0x440] sm:$0xf0]  ;;  %v13775_v31 = vld [vmem:[#allocation3 + $0x1b0] sm:$0xf] }
 0x213   :  { %14090 = vmatmul.msk.bf16.vlgmr.msra.gmra.mxu1 %vm1042_vm2, %v19382_v61 }
 0x214   :  { %v712_v45 = vpop.f32.mrf.mxu2  ;;  %2314 = vmatpush.bf16.msra.mxu1 %v14180_v41  ;;  %v14209_v41 = vld [vmem:[#allocation3 + $0x3f0] sm:$0xf0] }
 0x215   :  { %v713_v48 = vadd.f32 %v19313_v24, %v712_v45  ;;  %v13975_v45 = vld [vmem:[#allocation3 + $0x218] sm:$0xf]  ;;  %v14212_v49 = vor.u32 %v18099_v40, %v14209_v41 }
 0x216   :  { %1606 = vmatpush.bf16.msra.mxu2 %v13864_v44 }
 0x217   :  { %v770_v52 = vmax.f32 %v713_v48, 0.0 }
 0x218   :  { %2315 = vmatpush.bf16.msra.mxu1 %v14116_v47 }
 0x219   :  { %800 = vst.msk [vmem:[#allocation2 + $0x80] sm:$0xff] %vm328_vm1, %v770_v52  ;;  %v13976_v52 = vor.u32 %v18056_v46, %v13975_v45  ;;  %v13711_v45 = vld [vmem:[#allocation3 + $0x130] sm:$0xf] }
 0x21a   :  { %v18027_v46 = vld [vmem:[#allocation3 + $0x16c] sm:$0xf0] }
 0x21b   :  { %13796 = vmatmul.msk.bf16.vlgmr.msrb.gmra.mxu3 %vm1042_vm2, %v19330_v12  ;;  %14088 = vmatmul.msk.bf16.vlgmr.msra.gmra.mxu0 %vm1042_vm2, %v19382_v61 }
 0x21c   :  { %v715_v63 = vpop.f32.mrf.mxu2  ;;  %1169 = vmatpush.bf16.msrb.mxu3 %v13764_v53  ;;  %2288 = vmatpush.bf16.msra.mxu0 %v14172_v56 }
 0x21d   :  { %v716_v1 = vadd.f32 %v19313_v24, %v715_v63 }
 0x21f   :  { %v771_v6 = vmax.f32 %v716_v1, 0.0  ;;  %v18018_v1 = vld [vmem:[#allocation3 + $0x12c] sm:$0xf] }
 0x220   :  { %v19437_v9 = vpop.f32.mrf.mxu1  ;;  %1170 = vmatpush.bf16.msrb.mxu3 %v13700_v25  ;;  %2289 = vmatpush.bf16.msra.mxu0 %v14108_v0  ;;  %v13772_v0 = vor.u32 %v18034_v54, %v13769_v57  ;;  %v13708_v11 = vor.u32 %v18018_v1, %v13705_v2  ;;  %v13712_v54 = vor.u32 %v18027_v46, %v13711_v45  ;;  %v18127_v57 = vld [vmem:[#allocation3 + $0x494] sm:$0xf] }
 0x221   :  { %801 = vst.msk [vmem:[#allocation2 + $0x88] sm:$0xff] %vm328_vm1, %v771_v6  ;;  %13943 = vmatmul.msk.bf16.vlgmr.msrb.gmra.mxu2 %vm1042_vm2, %v19322_v58  ;;  %v14137_v6 = vld [vmem:[#allocation3 + $0x368] sm:$0xf0] }
 0x222   :  { %1854 = vmatpush.bf16.msrb.mxu2 %v14024_v4  ;;  %v18082_v4 = vld [vmem:[#allocation3 + $0x32c] sm:$0xf] }
 0x223   :  { %14222 = vmatmul.msk.bf16.vlgmr.msrb.gmra.mxu1 %vm1042_vm2, %v19435_v5  ;;  %v14140_v13 = vor.u32 %v18082_v4, %v14137_v6  ;;  %v18111_v4 = vld [vmem:[#allocation3 + $0x414] sm:$0xf] }
 0x224   :  { %v718_v15 = vpop.f32.mrf.mxu2  ;;  %2366 = vmatpush.bf16.msrb.mxu1 %v14196_v10  ;;  %v14257_v6 = vld [vmem:[#allocation3 + $0x450] sm:$0xf0] }
 0x225   :  { %v719_v18 = vadd.f32 %v19313_v24, %v718_v15  ;;  %v18125_v15 = vld [vmem:[#allocation3 + $0x484] sm:$0xf] }
 0x226   :  { %1855 = vmatpush.bf16.msrb.mxu2 %v13960_v14  ;;  %v14308_v28 = vor.u32 %v18125_v15, %v14305_v16  ;;  %v18126_v15 = vld [vmem:[#allocation3 + $0x48c] sm:$0xf] }
 0x227   :  { %v772_v22 = vmax.f32 %v719_v18, 0.0  ;;  %v14056_v18 = vor.u32 %v18074_v8, %v14055_v7  ;;  %v14313_v16 = vld [vmem:[#allocation3 + $0x4c8] sm:$0xf0] }
 0x228   :  { %v19445_v23 = vpop.f32.mrf.mxu0  ;;  %v1441_v26 = vpop.f32.mrf.mxu1  ;;  %2367 = vmatpush.bf16.msrb.mxu1 %v14132_v17 }
 0x229   :  { %802 = vst.msk [vmem:[#allocation2 + $0x90] sm:$0xff] %vm328_vm1, %v772_v22  ;;  %v18058_v22 = vld [vmem:[#allocation3 + $0x264] sm:$0xf0] }
 0x22b   :  { %13797 = vmatmul.msk.bf16.vlgmr.msra.gmra.mxu3 %vm1042_vm2, %v19330_v12  ;;  %14092 = vmatmul.msk.bf16.vlgmr.msrb.gmra.mxu0 %vm1042_vm2, %v19382_v61 }
 0x22c   :  { %v721_v36 = vpop.f32.mrf.mxu2  ;;  %1182 = vmatpush.bf16.msra.mxu3 %v13768_v27  ;;  %2340 = vmatpush.bf16.msrb.mxu0 %v14188_v30  ;;  %v13992_v30 = vor.u32 %v18058_v22, %v13991_v21 }
 0x22d   :  { %v722_v39 = vadd.f32 %v19313_v24, %v721_v36  ;;  %v18043_v36 = vld [vmem:[#allocation3 + $0x1ec] sm:$0xf0] }
 0x22e   :  { %v19453_v42 = vpop.f32.mrf.mxu3 }
 0x22f   :  { %v773_v44 = vmax.f32 %v722_v39, 0.0 }
 0x230   :  { %v1252_v47 = vpop.f32.mrf.mxu0  ;;  %v19455_v48 = vpop.f32.mrf.mxu1  ;;  %1183 = vmatpush.bf16.msra.mxu3 %v13704_v37  ;;  %2341 = vmatpush.bf16.msrb.mxu0 %v14124_v38  ;;  %v18100_v37 = vld [vmem:[#allocation3 + $0x3bc] sm:$0xf] }
 0x231   :  { %803 = vst.msk [vmem:[#allocation2 + $0x98] sm:$0xff] %vm328_vm1, %v773_v44  ;;  %13947 = vmatmul.msk.bf16.vlgmr.msra.gmra.mxu2 %vm1042_vm2, %v19322_v58  ;;  %v14217_v38 = vld [vmem:[#allocation3 + $0x3f8] sm:$0xf0]  ;;  %v13776_v44 = vor.u32 %v18043_v36, %v13775_v31  ;;  %v18102_v31 = vld [vmem:[#allocation3 + $0x3c4] sm:$0xf0] }
 0x232   :  { %1906 = vmatpush.bf16.msra.mxu2 %v14040_v43  ;;  %v14220_v47 = vor.u32 %v18100_v37, %v14217_v38  ;;  %v18129_v38 = vld [vmem:[#allocation3 + $0x4a4] sm:$0xf] }
 0x233   :  { %14226 = vmatmul.msk.bf16.vlgmr.msra.gmra.mxu1 %vm1042_vm2, %v19435_v5 }
 0x234   :  { %v724_v53 = vpop.f32.mrf.mxu2  ;;  %2418 = vmatpush.bf16.msra.mxu1 %v14212_v49  ;;  %v18084_v49 = vld [vmem:[#allocation3 + $0x33c] sm:$0xf] }
 0x235   :  { %v725_v56 = vadd.f32 %v19313_v24, %v724_v53 }
 0x236   :  { %v1057_v60 = vpop.f32.mrf.mxu3  ;;  %1907 = vmatpush.bf16.msra.mxu2 %v13976_v52  ;;  %v18076_v52 = vld [vmem:[#allocation3 + $0x2f4] sm:$0xf0] }
 0x237   :  { %v774_v62 = vmax.f32 %v725_v56, 0.0  ;;  %v14072_v60 = vor.u32 %v18076_v52, %v14071_v51 }
 0x238   :  { %v19463_v63 = vpop.f32.mrf.mxu0  ;;  %v1493_v25 = vpop.f32.mrf.mxu1  ;;  %2419 = vmatpush.bf16.msra.mxu1 %v14148_v55  ;;  %v14156_v55 = vor.u32 %v18084_v49, %v14153_v50  ;;  %v18086_v49 = vld [vmem:[#allocation3 + $0x344] sm:$0xf0] }
 0x239   :  { %804 = vst.msk [vmem:[#allocation2 + $0xa0] sm:$0xff] %vm328_vm1, %v774_v62  ;;  %v14007_v25 = vld [vmem:[#allocation3 + $0x238] sm:$0xf] }
 0x23b   :  { %13798 = vmatmul.msk.bf16.vlgmr.msrb.gmra.mxu3 %vm1042_vm2, %v19330_v12  ;;  %14224 = vmatmul.msk.bf16.vlgmr.msra.gmra.mxu0 %vm1042_vm2, %v19435_v5 }
 0x23c   :  { %v727_v10 = vpop.f32.mrf.mxu2  ;;  %1195 = vmatpush.bf16.msrb.mxu3 %v13772_v0  ;;  %2392 = vmatpush.bf16.msra.mxu0 %v14204_v3  ;;  %v18060_v0 = vld [vmem:[#allocation3 + $0x274] sm:$0xf0]  ;;  %v14324_v3 = vor.u32 %v18127_v57, %v14321_v59 }
 0x23d   :  { %v728_v14 = vadd.f32 %v19313_v24, %v727_v10  ;;  %v18109_v24 = vld [vmem:[#allocation3 + $0x404] sm:$0xf]  ;;  %v14008_v7 = vor.u32 %v18060_v0, %v14007_v25  ;;  %v18035_v10 = vld [vmem:[#allocation3 + $0x1b4] sm:$0xf]  ;;  %v13783_v59 = vld [vmem:[#allocation3 + $0x1b8] sm:$0xf] }
 0x23e   :  { %v1068_v17 = vpop.f32.mrf.mxu3  ;;  %v14244_v32 = vor.u32 %v18109_v24, %v14241_v29  ;;  %v14316_v24 = vor.u32 %v18126_v15, %v14313_v16  ;;  %v18110_v29 = vld [vmem:[#allocation3 + $0x40c] sm:$0xf]  ;;  %v18044_v25 = vld [vmem:[#allocation3 + $0x1f4] sm:$0xf0]  ;;  %v18128_v0 = vld [vmem:[#allocation3 + $0x49c] sm:$0xf] }
 0x23f   :  { %v775_v19 = vmax.f32 %v728_v14, 0.0  ;;  %v19472_v20 = vadd.f32 %v19437_v9, %v1068_v17  ;;  %v13777_v14 = vld [vmem:[#allocation3 + $0x1f0] sm:$0xf0]  ;;  %v14265_v15 = vld [vmem:[#allocation3 + $0x458] sm:$0xf0] }
 0x240   :  { %v1467_v26 = vpop.f32.mrf.mxu0  ;;  %v19474_v27 = vpop.f32.mrf.mxu1  ;;  %1196 = vmatpush.bf16.msrb.mxu3 %v13708_v11  ;;  %2393 = vmatpush.bf16.msra.mxu0 %v14140_v13  ;;  %v14260_v11 = vor.u32 %v18111_v4, %v14257_v6  ;;  %v13780_v22 = vor.u32 %v18035_v10, %v13777_v14  ;;  %v18028_v10 = vld [vmem:[#allocation3 + $0x174] sm:$0xf0]  ;;  %v18112_v14 = vld [vmem:[#allocation3 + $0x41c] sm:$0xf] }
 0x241   :  { %805 = vst.msk [vmem:[#allocation2 + $0xa8] sm:$0xff] %vm328_vm1, %v775_v19  ;;  %14079 = vmatmul.msk.bf16.vlgmr.msrb.gmra.mxu2 %vm1042_vm2, %v19382_v61  ;;  %v18019_v26 = vld [vmem:[#allocation3 + $0x134] sm:$0xf]  ;;  %v14183_v16 = vld [vmem:[#allocation3 + $0x398] sm:$0xf] }
 0x242   :  { %1958 = vmatpush.bf16.msrb.mxu2 %v14056_v18 }
 0x243   :  { %14230 = vmatmul.msk.bf16.vlgmr.msrb.gmra.mxu1 %vm1042_vm2, %v19435_v5 }
 0x244   :  { %v730_v9 = vpop.f32.mrf.mxu2  ;;  %2683 = vmatpush.bf16.msrb.mxu1 %v14308_v28  ;;  %v13713_v28 = vld [vmem:[#allocation3 + $0x170] sm:$0xf0] }
 0x245   :  { %v731_v35 = vadd.f32 %v19484_v34, %v730_v9  ;;  %v14167_v9 = vld [vmem:[#allocation3 + $0x388] sm:$0xf] }
 0x246   :  { %v1070_v39 = vpop.f32.mrf.mxu3  ;;  %1959 = vmatpush.bf16.msrb.mxu2 %v13992_v30  ;;  %v14249_v30 = vld [vmem:[#allocation3 + $0x448] sm:$0xf0] }
 0x247   :  { %v776_v40 = vmax.f32 %v731_v35, 0.0  ;;  %v13716_v35 = vor.u32 %v18019_v26, %v13713_v28  ;;  %v14252_v36 = vor.u32 %v18110_v29, %v14249_v30  ;;  %v14337_v39 = vld [vmem:[#allocation3 + $0x4e0] sm:$0xf0]  ;;  %v18131_v28 = vld [vmem:[#allocation3 + $0x4b4] sm:$0xf] }
 0x248   :  { %v19487_v41 = vpop.f32.mrf.mxu0  ;;  %v1545_v43 = vpop.f32.mrf.mxu1  ;;  %2684 = vmatpush.bf16.msrb.mxu1 %v14244_v32  ;;  %v14340_v52 = vor.u32 %v18129_v38, %v14337_v39  ;;  %v14289_v38 = vld [vmem:[#allocation3 + $0x470] sm:$0xf0] }
 0x249   :  { %806 = vst.msk [vmem:[#allocation2 + $0xb0] sm:$0xff] %vm328_vm1, %v776_v40  ;;  %v2467_v40 = vld [vmem:[#allocation2 + $0x20] sm:$0xff] }
 0x24b   :  { %13799 = vmatmul.msk.bf16.vlgmr.msra.gmra.mxu3 %vm1042_vm2, %v19330_v12  ;;  %14228 = vmatmul.msk.bf16.vlgmr.msrb.gmra.mxu0 %vm1042_vm2, %v19435_v5 }
 0x24c   :  { %v733_v53 = vpop.f32.mrf.mxu2  ;;  %1208 = vmatpush.bf16.msra.mxu3 %v13776_v44  ;;  %2444 = vmatpush.bf16.msrb.mxu0 %v14220_v47  ;;  %v14168_v44 = vor.u32 %v18102_v31, %v14167_v9  ;;  %v14103_v47 = vld [vmem:[#allocation3 + $0x308] sm:$0xf]  ;;  %v14119_v9 = vld [vmem:[#allocation3 + $0x318] sm:$0xf] }
 0x24d   :  { %v734_v56 = vadd.f32 %v19484_v34, %v733_v53  ;;  %v19516_v53 = vpack.c.bf16 %v2467_v40, %v2467_v40  ;;  %v18088_v31 = vld [vmem:[#allocation3 + $0x354] sm:$0xf0] }
 0x24e   :  { %v19495_v33 = vpop.f32.mrf.mxu3  ;;  %v14120_v39 = vor.u32 %v18088_v31, %v14119_v9  ;;  %v18007_v31 = vld [vmem:[#allocation3 + $0xcc] sm:$0xf0] }
 0x24f   :  { %v777_v62 = vmax.f32 %v734_v56, 0.0  ;;  %v14104_v56 = vor.u32 %v18086_v49, %v14103_v47  ;;  %v18005_v47 = vld [vmem:[#allocation3 + $0xbc] sm:$0xf0]  ;;  %v18130_v49 = vld [vmem:[#allocation3 + $0x4ac] sm:$0xf] }
 0x250   :  { %v1519_v1 = vpop.f32.mrf.mxu0  ;;  %v19497_v2 = vpop.f32.mrf.mxu1  ;;  %1209 = vmatpush.bf16.msra.mxu3 %v13712_v54  ;;  %2445 = vmatpush.bf16.msrb.mxu0 %v14156_v55  ;;  %v18113_v55 = vld [vmem:[#allocation3 + $0x424] sm:$0xf] }
 0x251   :  { %807 = vst.msk [vmem:[#allocation2 + $0xb8] sm:$0xff] %vm328_vm1, %v777_v62  ;;  %14083 = vmatmul.msk.bf16.vlgmr.msra.gmra.mxu2 %vm1042_vm2, %v19382_v61 }
 0x252   :  { %2010 = vmatpush.bf16.msra.mxu2 %v14072_v60 }
 0x253   :  { %14234 = vmatmul.msk.bf16.vlgmr.msra.gmra.mxu1 %vm1042_vm2, %v19435_v5 }
 0x254   :  { %v736_v8 = vpop.f32.mrf.mxu2  ;;  %2735 = vmatpush.bf16.msra.mxu1 %v14324_v3 }
 0x255   :  { %v737_v13 = vadd.f32 %v19484_v34, %v736_v8  ;;  %v13719_v8 = vld [vmem:[#allocation3 + $0x138] sm:$0xf] }
 0x256   :  { %v1083_v17 = vpop.f32.mrf.mxu3  ;;  %2011 = vmatpush.bf16.msra.mxu2 %v14008_v7  ;;  %v13784_v7 = vor.u32 %v18044_v25, %v13783_v59  ;;  %v17989_v59 = vld [vmem:[#allocation3 + $0x3c] sm:$0xf0]  ;;  %v18114_v25 = vld [vmem:[#allocation3 + $0x42c] sm:$0xf] }
 0x257   :  { %v778_v18 = vmax.f32 %v737_v13, 0.0  ;;  %v18104_v17 = vld [vmem:[#allocation3 + $0x3d4] sm:$0xf0] }
 0x258   :  { %v19505_v19 = vpop.f32.mrf.mxu0  ;;  %v1597_v21 = vpop.f32.mrf.mxu1  ;;  %2736 = vmatpush.bf16.msra.mxu1 %v14260_v11  ;;  %v14184_v29 = vor.u32 %v18104_v17, %v14183_v16  ;;  %v14135_v16 = vld [vmem:[#allocation3 + $0x328] sm:$0xf] }
 0x259   :  { %808 = vst.msk [vmem:[#allocation2 + $0xc0] sm:$0xff] %vm328_vm1, %v778_v18  ;;  %v13720_v21 = vor.u32 %v18028_v10, %v13719_v8  ;;  %v18157_v8 = vld [vmem:[#allocation3 + $0x584] sm:$0xf]  ;;  %v18090_v17 = vld [vmem:[#allocation3 + $0x364] sm:$0xf0] }
 0x25b   :  { %13800 = vmatmul.msk.bf16.vlgmr.msrb.gmra.mxu3 %vm1042_vm2, %v19330_v12  ;;  %14232 = vmatmul.msk.bf16.vlgmr.msra.gmra.mxu0 %vm1042_vm2, %v19435_v5 }
 0x25c   :  { %v739_v32 = vpop.f32.mrf.mxu2  ;;  %1221 = vmatpush.bf16.msrb.mxu3 %v13780_v22  ;;  %2709 = vmatpush.bf16.msra.mxu0 %v14316_v24  ;;  %v14268_v22 = vor.u32 %v18112_v14, %v14265_v15 }
 0x25d   :  { %v740_v37 = vadd.f32 %v19484_v34, %v739_v32 }
 0x25e   :  { %v1094_v43 = vpop.f32.mrf.mxu3 }
 0x25f   :  { %v779_v45 = vmax.f32 %v740_v37, 0.0  ;;  %v19514_v46 = vadd.f32 %v19463_v63, %v1094_v43  ;;  %v14273_v63 = vld [vmem:[#allocation3 + $0x460] sm:$0xf0]  ;;  %v18115_v37 = vld [vmem:[#allocation3 + $0x434] sm:$0xf] }
 0x260   :  { %v1571_v50 = vpop.f32.mrf.mxu0  ;;  %v1844_v51 = vpop.f32.mrf.mxu1  ;;  %1222 = vmatpush.bf16.msrb.mxu3 %v13716_v35  ;;  %2710 = vmatpush.bf16.msra.mxu0 %v14252_v36  ;;  %v14276_v60 = vor.u32 %v18113_v55, %v14273_v63  ;;  %v13871_v43 = vld [vmem:[#allocation3 + $0x80] sm:$0xf] }
 0x261   :  { %809 = vst.msk [vmem:[#allocation2 + $0xc8] sm:$0xff] %vm328_vm1, %v779_v45  ;;  %v19520_v54 = vadd.f32 %v1844_v51, %v19472_v20  ;;  %14087 = vmatmul.msk.bf16.vlgmr.msrb.gmra.mxu2 %vm1042_vm2, %v19382_v61  ;;  %v14329_v20 = vld [vmem:[#allocation3 + $0x4d8] sm:$0xf0]  ;;  %v14345_v50 = vld [vmem:[#allocation3 + $0x4e8] sm:$0xf0] }
 0x262   :  { %2275 = vmatpush.bf16.msrb.mxu2 %v14168_v44  ;;  %v14332_v11 = vor.u32 %v18128_v0, %v14329_v20  ;;  %v14292_v44 = vor.u32 %v18115_v37, %v14289_v38  ;;  %v14281_v0 = vld [vmem:[#allocation3 + $0x468] sm:$0xf0]  ;;  %v14199_v20 = vld [vmem:[#allocation3 + $0x3a8] sm:$0xf] }
 0x263   :  { %14366 = vmatmul.msk.bf16.vlgmr.msrb.gmra.mxu1 %vm1042_vm2, %v19516_v53 }
 0x264   :  { %v742_v57 = vpop.f32.mrf.mxu2  ;;  %2787 = vmatpush.bf16.msrb.mxu1 %v14340_v52 }
 0x265   :  { %v743_v62 = vadd.f32 %v19484_v34, %v742_v57  ;;  %v13807_v57 = vld [vmem:[#allocation3] sm:$0xf] }
 0x266   :  { %v1096_v1 = vpop.f32.mrf.mxu3  ;;  %2276 = vmatpush.bf16.msrb.mxu2 %v14104_v56  ;;  %v13872_v56 = vor.u32 %v18005_v47, %v13871_v43  ;;  %v14297_v47 = vld [vmem:[#allocation3 + $0x478] sm:$0xf0] }
 0x267   :  { %v780_v3 = vmax.f32 %v743_v62, 0.0  ;;  %v18106_v1 = vld [vmem:[#allocation3 + $0x3e4] sm:$0xf0] }
 0x268   :  { %v1621_v4 = vpop.f32.mrf.mxu0  ;;  %v1846_v6 = vpop.f32.mrf.mxu1  ;;  %2788 = vmatpush.bf16.msrb.mxu1 %v14276_v60  ;;  %v14348_v60 = vor.u32 %v18130_v49, %v14345_v50  ;;  %v18108_v49 = vld [vmem:[#allocation3 + $0x3f4] sm:$0xf0] }
 0x269   :  { %810 = vst.msk [vmem:[#allocation2 + $0xd0] sm:$0xff] %vm328_vm1, %v780_v3  ;;  %v19529_v13 = vadd.f32 %v1621_v4, %v19445_v23  ;;  %v14353_v23 = vld [vmem:[#allocation3 + $0x4f0] sm:$0xf0]  ;;  %v13808_v4 = vor.u32 %v17989_v59, %v13807_v57  ;;  %v14284_v6 = vor.u32 %v18114_v25, %v14281_v0  ;;  %v14151_v59 = vld [vmem:[#allocation3 + $0x338] sm:$0xf] }
 0x26a   :  { %v14356_v36 = vor.u32 %v18131_v28, %v14353_v23  ;;  %v14136_v23 = vor.u32 %v18090_v17, %v14135_v16 }
 0x26b   :  { %13801 = vmatmul.msk.bf16.vlgmr.msra.gmra.mxu3 %vm1042_vm2, %v19330_v12  ;;  %14236 = vmatmul.msk.bf16.vlgmr.msrb.gmra.mxu0 %vm1042_vm2, %v19435_v5 }
 0x26c   :  { %v745_v18 = vpop.f32.mrf.mxu2  ;;  %1234 = vmatpush.bf16.msra.mxu3 %v13784_v7  ;;  %2761 = vmatpush.bf16.msrb.mxu0 %v14332_v11  ;;  %v14200_v11 = vor.u32 %v18106_v1, %v14199_v20  ;;  %v18143_v20 = vld [vmem:[#allocation3 + $0x514] sm:$0xf] }
 0x26d   :  { %v746_v26 = vadd.f32 %v19484_v34, %v745_v18  ;;  %v14401_v1 = vld [vmem:[#allocation3 + $0x550] sm:$0xf0] }
 0x26e   :  { %v19536_v24 = vpop.f32.mrf.mxu3 }
 0x26f   :  { %v781_v30 = vmax.f32 %v746_v26, 0.0  ;;  %v14385_v26 = vld [vmem:[#allocation3 + $0x540] sm:$0xf0] }
 0x270   :  { %v1623_v32 = vpop.f32.mrf.mxu0  ;;  %v1896_v35 = vpop.f32.mrf.mxu1  ;;  %1235 = vmatpush.bf16.msra.mxu3 %v13720_v21  ;;  %2762 = vmatpush.bf16.msrb.mxu0 %v14268_v22 }
 0x271   :  { %811 = vst.msk [vmem:[#allocation2 + $0xd8] sm:$0xff] %vm328_vm1, %v781_v30  ;;  %14091 = vmatmul.msk.bf16.vlgmr.msra.gmra.mxu2 %vm1042_vm2, %v19382_v61  ;;  %v18132_v32 = vld [vmem:[#allocation3 + $0x4bc] sm:$0xf] }
 0x272   :  { %2327 = vmatpush.bf16.msra.mxu2 %v14184_v29  ;;  %v13887_v29 = vld [vmem:[#allocation3 + $0x90] sm:$0xf] }
 0x273   :  { %14370 = vmatmul.msk.bf16.vlgmr.msra.gmra.mxu1 %vm1042_vm2, %v19516_v53 }
 0x274   :  { %v748_v40 = vpop.f32.mrf.mxu2  ;;  %2839 = vmatpush.bf16.msra.mxu1 %v14356_v36  ;;  %v14361_v36 = vld [vmem:[#allocation3 + $0x4f8] sm:$0xf0] }
 0x275   :  { %v749_v45 = vadd.f32 %v19484_v34, %v748_v40  ;;  %v13823_v40 = vld [vmem:[#allocation3 + $0x10] sm:$0xf]  ;;  %v14364_v43 = vor.u32 %v18132_v32, %v14361_v36  ;;  %v18161_v36 = vld [vmem:[#allocation3 + $0x5a4] sm:$0xf] }
 0x276   :  { %v1109_v51 = vpop.f32.mrf.mxu3  ;;  %2328 = vmatpush.bf16.msra.mxu2 %v14120_v39  ;;  %v13888_v39 = vor.u32 %v18007_v31, %v13887_v29  ;;  %v18134_v29 = vld [vmem:[#allocation3 + $0x4c4] sm:$0xf0] }
 0x277   :  { %v782_v52 = vmax.f32 %v749_v45, 0.0  ;;  %v18116_v45 = vld [vmem:[#allocation3 + $0x43c] sm:$0xf] }
 0x278   :  { %v1870_v55 = vpop.f32.mrf.mxu0  ;;  %v1898_v63 = vpop.f32.mrf.mxu1  ;;  %2840 = vmatpush.bf16.msra.mxu1 %v14292_v44  ;;  %v17991_v44 = vld [vmem:[#allocation3 + $0x4c] sm:$0xf0] }
 0x279   :  { %812 = vst.msk [vmem:[#allocation2 + $0xe0] sm:$0xff] %vm328_vm1, %v782_v52  ;;  %v19546_v62 = vadd.f32 %v1870_v55, %v19514_v46  ;;  %v14449_v46 = vld [vmem:[#allocation3 + $0x5c0] sm:$0xf0]  ;;  %v13824_v51 = vor.u32 %v17991_v44, %v13823_v40  ;;  %v14300_v52 = vor.u32 %v18116_v45, %v14297_v47  ;;  %v18159_v55 = vld [vmem:[#allocation3 + $0x594] sm:$0xf] }
 0x27a   :  { %v14452_v22 = vor.u32 %v18157_v8, %v14449_v46  ;;  %v14465_v63 = vld [vmem:[#allocation3 + $0x5d0] sm:$0xf0]  ;;  %v18009_v46 = vld [vmem:[#allocation3 + $0xdc] sm:$0xf0]  ;;  %v14247_v44 = vld [vmem:[#allocation3 + $0x408] sm:$0xf] }
 0x27b   :  { %13802 = vmatmul.msk.bf16.vlgmr.msrb.gmra.mxu3 %vm1042_vm2, %v19330_v12  ;;  %14368 = vmatmul.msk.bf16.vlgmr.msra.gmra.mxu0 %vm1042_vm2, %v19516_v53  ;;  %v18118_v45 = vld [vmem:[#allocation3 + $0x444] sm:$0xf0] }
 0x27c   :  { %v751_v3 = vpop.f32.mrf.mxu2  ;;  %1423 = vmatpush.bf16.msrb.mxu3 %v13872_v56  ;;  %2813 = vmatpush.bf16.msra.mxu0 %v14348_v60  ;;  %v18092_v60 = vld [vmem:[#allocation3 + $0x374] sm:$0xf0] }
 0x27d   :  { %v752_v7 = vadd.f32 %v19484_v34, %v751_v3  ;;  %v18141_v34 = vld [vmem:[#allocation3 + $0x504] sm:$0xf]  ;;  %v14152_v3 = vor.u32 %v18092_v60, %v14151_v59  ;;  %v18160_v60 = vld [vmem:[#allocation3 + $0x59c] sm:$0xf] }
 0x27e   :  { %v1120_v10 = vpop.f32.mrf.mxu3  ;;  %v14388_v30 = vor.u32 %v18141_v34, %v14385_v26  ;;  %v17993_v34 = vld [vmem:[#allocation3 + $0x5c] sm:$0xf0]  ;;  %v18142_v26 = vld [vmem:[#allocation3 + $0x50c] sm:$0xf] }
 0x27f   :  { %v783_v14 = vmax.f32 %v752_v7, 0.0  ;;  %v1492_v15 = vadd.f32 %v19455_v48, %v1120_v10  ;;  %v14404_v7 = vor.u32 %v18143_v20, %v14401_v1  ;;  %v18158_v10 = vld [vmem:[#allocation3 + $0x58c] sm:$0xf] }
 0x280   :  { %v1872_v18 = vpop.f32.mrf.mxu0  ;;  %v19554_v21 = vpop.f32.mrf.mxu1  ;;  %1424 = vmatpush.bf16.msrb.mxu3 %v13808_v4  ;;  %2814 = vmatpush.bf16.msra.mxu0 %v14284_v6  ;;  %v13903_v6 = vld [vmem:[#allocation3 + $0xa0] sm:$0xf] }
 0x281   :  { %813 = vst.msk [vmem:[#allocation2 + $0xe8] sm:$0xff] %vm328_vm1, %v783_v14  ;;  %14223 = vmatmul.msk.bf16.vlgmr.msrb.gmra.mxu2 %vm1042_vm2, %v19435_v5  ;;  %v19559_v28 = vadd.f32 %v1896_v35, %v1492_v15  ;;  %v13904_v17 = vor.u32 %v18009_v46, %v13903_v6  ;;  %v13839_v18 = vld [vmem:[#allocation3 + $0x20] sm:$0xf]  ;;  %v18144_v46 = vld [vmem:[#allocation3 + $0x51c] sm:$0xf] }
 0x282   :  { %2379 = vmatpush.bf16.msrb.mxu2 %v14200_v11  ;;  %v14457_v11 = vld [vmem:[#allocation3 + $0x5c8] sm:$0xf0]  ;;  %v13840_v31 = vor.u32 %v17993_v34, %v13839_v18  ;;  %v14497_v34 = vld [vmem:[#allocation3 + $0x5f0] sm:$0xf0] }
 0x283   :  { %14374 = vmatmul.msk.bf16.vlgmr.msrb.gmra.mxu1 %vm1042_vm2, %v19516_v53 }
 0x284   :  { %v1452_v48 = vpop.f32.mrf.mxu2  ;;  %3104 = vmatpush.bf16.msrb.mxu1 %v14452_v22  ;;  %v14460_v22 = vor.u32 %v18158_v10, %v14457_v11  ;;  %v14409_v10 = vld [vmem:[#allocation3 + $0x558] sm:$0xf0]  ;;  %v14327_v11 = vld [vmem:[#allocation3 + $0x498] sm:$0xf] }
 0x285   :  { %v19564_v9 = vadd.f32 %v1452_v48, %v19495_v33  ;;  %v14215_v33 = vld [vmem:[#allocation3 + $0x3b8] sm:$0xf]  ;;  %v14311_v48 = vld [vmem:[#allocation3 + $0x488] sm:$0xf]  ;;  %v14412_v18 = vor.u32 %v18144_v46, %v14409_v10 }
 0x286   :  { %v1122_v37 = vpop.f32.mrf.mxu3  ;;  %2380 = vmatpush.bf16.msrb.mxu2 %v14136_v23  ;;  %v14216_v57 = vor.u32 %v18108_v49, %v14215_v33  ;;  %v14393_v23 = vld [vmem:[#allocation3 + $0x548] sm:$0xf0]  ;;  %v14312_v40 = vor.u32 %v18134_v29, %v14311_v48  ;;  %v18120_v48 = vld [vmem:[#allocation3 + $0x454] sm:$0xf0]  ;;  %v14279_v10 = vld [vmem:[#allocation3 + $0x428] sm:$0xf] }
 0x287   :  { %v14396_v32 = vor.u32 %v18142_v26, %v14393_v23  ;;  %v14481_v37 = vld [vmem:[#allocation3 + $0x5e0] sm:$0xf0]  ;;  %v14263_v23 = vld [vmem:[#allocation3 + $0x418] sm:$0xf] }
 0x288   :  { %v19566_v38 = vpop.f32.mrf.mxu0  ;;  %v1950_v35 = vpop.f32.mrf.mxu1  ;;  %3105 = vmatpush.bf16.msrb.mxu1 %v14388_v30  ;;  %v14484_v49 = vor.u32 %v18161_v36, %v14481_v37  ;;  %v18147_v36 = vld [vmem:[#allocation3 + $0x534] sm:$0xf] }
 0x289   :  { %v2888_v35 = vld [vmem:[#allocation2 + $0x28] sm:$0xff]  ;;  %v14433_v37 = vld [vmem:[#allocation3 + $0x570] sm:$0xf0] }
 0x28b   :  { %13803 = vmatmul.msk.bf16.vlgmr.msra.gmra.mxu3 %vm1042_vm2, %v19330_v12  ;;  %14372 = vmatmul.msk.bf16.vlgmr.msrb.gmra.mxu0 %vm1042_vm2, %v19516_v53  ;;  %v14468_v12 = vor.u32 %v18159_v55, %v14465_v63  ;;  %v14417_v55 = vld [vmem:[#allocation3 + $0x560] sm:$0xf0] }
 0x28c   :  { %v1454_v50 = vpop.f32.mrf.mxu2  ;;  %1475 = vmatpush.bf16.msra.mxu3 %v13888_v39  ;;  %2865 = vmatpush.bf16.msrb.mxu0 %v14364_v43 }
 0x28d   :  { %v19587_v50 = vpack.c.bf16 %v2888_v35, %v2888_v35  ;;  %v14264_v35 = vor.u32 %v18120_v48, %v14263_v23  ;;  %v14031_v48 = vld [vmem:[#allocation3 + $0x290] sm:$0xf] }
 0x28e   :  { %v1133_v56 = vpop.f32.mrf.mxu3 }
 0x290   :  { %v1924_v25 = vpop.f32.mrf.mxu0  ;;  %v19572_v0 = vpop.f32.mrf.mxu1  ;;  %1476 = vmatpush.bf16.msra.mxu3 %v13824_v51  ;;  %2866 = vmatpush.bf16.msrb.mxu0 %v14300_v52  ;;  %v18145_v52 = vld [vmem:[#allocation3 + $0x524] sm:$0xf] }
 0x291   :  { %14227 = vmatmul.msk.bf16.vlgmr.msra.gmra.mxu2 %vm1042_vm2, %v19435_v5  ;;  %v14420_v59 = vor.u32 %v18145_v52, %v14417_v55  ;;  %v14473_v25 = vld [vmem:[#allocation3 + $0x5d8] sm:$0xf0]  ;;  %v13951_v55 = vld [vmem:[#allocation3 + $0x200] sm:$0xf] }
 0x292   :  { %2431 = vmatpush.bf16.msra.mxu2 %v14216_v57  ;;  %v13919_v57 = vld [vmem:[#allocation3 + $0xb0] sm:$0xf] }
 0x293   :  { %14378 = vmatmul.msk.bf16.vlgmr.msra.gmra.mxu1 %vm1042_vm2, %v19516_v53 }
 0x294   :  { %v1504_v4 = vpop.f32.mrf.mxu2  ;;  %3156 = vmatpush.bf16.msra.mxu1 %v14468_v12 }
 0x295   :  { %v19578_v8 = vadd.f32 %v1504_v4, %v1133_v56  ;;  %v14476_v4 = vor.u32 %v18160_v60, %v14473_v25  ;;  %v14425_v60 = vld [vmem:[#allocation3 + $0x568] sm:$0xf0]  ;;  %v14343_v25 = vld [vmem:[#allocation3 + $0x4a8] sm:$0xf] }
 0x296   :  { %v1135_v14 = vpop.f32.mrf.mxu3  ;;  %2432 = vmatpush.bf16.msra.mxu2 %v14152_v3 }
 0x297   :  { %v18136_v14 = vld [vmem:[#allocation3 + $0x4d4] sm:$0xf0] }
 0x298   :  { %v19580_v15 = vpop.f32.mrf.mxu0  ;;  %v2002_v16 = vpop.f32.mrf.mxu1  ;;  %3157 = vmatpush.bf16.msra.mxu1 %v14404_v7  ;;  %v17995_v7 = vld [vmem:[#allocation3 + $0x6c] sm:$0xf0]  ;;  %v14328_v26 = vor.u32 %v18136_v14, %v14327_v11  ;;  %v18122_v11 = vld [vmem:[#allocation3 + $0x464] sm:$0xf0] }
 0x29b   :  { %13933 = vmatmul.msk.bf16.vlgmr.msrb.gmra.mxu3 %vm1042_vm2, %v19322_v58  ;;  %14376 = vmatmul.msk.bf16.vlgmr.msra.gmra.mxu0 %vm1042_vm2, %v19516_v53 }
 0x29c   :  { %v1506_v30 = vpop.f32.mrf.mxu2  ;;  %1527 = vmatpush.bf16.msrb.mxu3 %v13904_v17  ;;  %3130 = vmatpush.bf16.msra.mxu0 %v14460_v22  ;;  %v18163_v22 = vld [vmem:[#allocation3 + $0x5b4] sm:$0xf] }
 0x29e   :  { %v1146_v39 = vpop.f32.mrf.mxu3 }
 0x29f   :  { %v1518_v43 = vadd.f32 %v19487_v41, %v1146_v39  ;;  %v14248_v41 = vor.u32 %v18118_v45, %v14247_v44  ;;  %v18069_v44 = vld [vmem:[#allocation3 + $0x2bc] sm:$0xf0]  ;;  %v18162_v45 = vld [vmem:[#allocation3 + $0x5ac] sm:$0xf] }
 0x2a0   :  { %v1976_v47 = vpop.f32.mrf.mxu0  ;;  %v2265_v33 = vpop.f32.mrf.mxu1  ;;  %1528 = vmatpush.bf16.msrb.mxu3 %v13840_v31  ;;  %3131 = vmatpush.bf16.msra.mxu0 %v14396_v32  ;;  %v14500_v31 = vor.u32 %v18163_v22, %v14497_v34  ;;  %v18173_v22 = vld [vmem:[#allocation3 + $0x604] sm:$0xf] }
 0x2a1   :  { %v19590_v51 = vadd.f32 %v2265_v33, %v19520_v54  ;;  %14231 = vmatmul.msk.bf16.vlgmr.msrb.gmra.mxu2 %vm1042_vm2, %v19435_v5  ;;  %v19595_v63 = vadd.f32 %v19566_v38, %v1518_v43  ;;  %v18011_v54 = vld [vmem:[#allocation3 + $0xec] sm:$0xf0]  ;;  %v14436_v43 = vor.u32 %v18147_v36, %v14433_v37  ;;  %v14489_v47 = vld [vmem:[#allocation3 + $0x5e8] sm:$0xf0]  ;;  %v14529_v34 = vld [vmem:[#allocation3 + $0x640] sm:$0xf0] }
 0x2a2   :  { %2696 = vmatpush.bf16.msrb.mxu2 %v14312_v40  ;;  %v13920_v3 = vor.u32 %v18011_v54, %v13919_v57  ;;  %v13855_v38 = vld [vmem:[#allocation3 + $0x30] sm:$0xf]  ;;  %v14015_v40 = vld [vmem:[#allocation3 + $0x280] sm:$0xf]  ;;  %v18146_v54 = vld [vmem:[#allocation3 + $0x52c] sm:$0xf] }
 0x2a3   :  { %14510 = vmatmul.msk.bf16.vlgmr.msrb.gmra.mxu1 %vm1042_vm2, %v19587_v50  ;;  %v13856_v17 = vor.u32 %v17995_v7, %v13855_v38  ;;  %v14016_v52 = vor.u32 %v18069_v44, %v14015_v40  ;;  %v18189_v38 = vld [vmem:[#allocation3 + $0x684] sm:$0xf]  ;;  %v14505_v36 = vld [vmem:[#allocation3 + $0x5f8] sm:$0xf0]  ;;  %v13967_v44 = vld [vmem:[#allocation3 + $0x210] sm:$0xf] }
 0x2a4   :  { %v19599_v56 = vpop.f32.mrf.mxu2  ;;  %3208 = vmatpush.bf16.msrb.mxu1 %v14484_v49 }
 0x2a6   :  { %v1148_v12 = vpop.f32.mrf.mxu3  ;;  %2697 = vmatpush.bf16.msrb.mxu2 %v14248_v41  ;;  %v14492_v41 = vor.u32 %v18162_v45, %v14489_v47 }
 0x2a7   :  { %v18138_v12 = vld [vmem:[#allocation3 + $0x4e4] sm:$0xf0] }
 0x2a8   :  { %v2026_v20 = vpop.f32.mrf.mxu0  ;;  %v2267_v1 = vpop.f32.mrf.mxu1  ;;  %3209 = vmatpush.bf16.msrb.mxu1 %v14420_v59  ;;  %v18053_v59 = vld [vmem:[#allocation3 + $0x23c] sm:$0xf0]  ;;  %v14344_v7 = vor.u32 %v18138_v12, %v14343_v25 }
 0x2a9   :  { %v19602_v6 = vadd.f32 %v2026_v20, %v19529_v13  ;;  %v13952_v1 = vor.u32 %v18053_v59, %v13951_v55 }
 0x2ab   :  { %13937 = vmatmul.msk.bf16.vlgmr.msra.gmra.mxu3 %vm1042_vm2, %v19322_v58  ;;  %14380 = vmatmul.msk.bf16.vlgmr.msrb.gmra.mxu0 %vm1042_vm2, %v19516_v53 }
 0x2ac   :  { %v1558_v16 = vpop.f32.mrf.mxu2  ;;  %1579 = vmatpush.bf16.msra.mxu3 %v13920_v3  ;;  %3182 = vmatpush.bf16.msrb.mxu0 %v14476_v4  ;;  %v14428_v3 = vor.u32 %v18146_v54, %v14425_v60  ;;  %v14593_v4 = vld [vmem:[#allocation3 + $0x6c0] sm:$0xf0]  ;;  %v18191_v54 = vld [vmem:[#allocation3 + $0x694] sm:$0xf] }
 0x2ad   :  { %v14609_v60 = vld [vmem:[#allocation3 + $0x6d0] sm:$0xf0] }
 0x2ae   :  { %v19608_v13 = vpop.f32.mrf.mxu3 }
 0x2b0   :  { %v2028_v29 = vpop.f32.mrf.mxu0  ;;  %v2317_v30 = vpop.f32.mrf.mxu1  ;;  %1580 = vmatpush.bf16.msra.mxu3 %v13856_v17  ;;  %3183 = vmatpush.bf16.msrb.mxu0 %v14412_v18  ;;  %v14596_v17 = vor.u32 %v18189_v38, %v14593_v4  ;;  %v14612_v38 = vor.u32 %v18191_v54, %v14609_v60  ;;  %v18175_v4 = vld [vmem:[#allocation3 + $0x614] sm:$0xf] }
 0x2b1   :  { %v19611_v32 = vadd.f32 %v2317_v30, %v19559_v28  ;;  %14235 = vmatmul.msk.bf16.vlgmr.msra.gmra.mxu2 %vm1042_vm2, %v19435_v5  ;;  %v14532_v29 = vor.u32 %v18173_v22, %v14529_v34 }
 0x2b2   :  { %2748 = vmatpush.bf16.msra.mxu2 %v14328_v26  ;;  %v14280_v26 = vor.u32 %v18122_v11, %v14279_v10 }
 0x2b3   :  { %14514 = vmatmul.msk.bf16.vlgmr.msra.gmra.mxu1 %vm1042_vm2, %v19587_v50 }
 0x2b4   :  { %v19617_v39 = vpop.f32.mrf.mxu2  ;;  %3260 = vmatpush.bf16.msra.mxu1 %v14500_v31  ;;  %v18164_v31 = vld [vmem:[#allocation3 + $0x5bc] sm:$0xf] }
 0x2b5   :  { %v14508_v45 = vor.u32 %v18164_v31, %v14505_v36  ;;  %v14537_v31 = vld [vmem:[#allocation3 + $0x648] sm:$0xf0]  ;;  %v18166_v36 = vld [vmem:[#allocation3 + $0x5c4] sm:$0xf0] }
 0x2b6   :  { %v1161_v28 = vpop.f32.mrf.mxu3  ;;  %2749 = vmatpush.bf16.msra.mxu2 %v14264_v35 }
 0x2b7   :  { %v18055_v28 = vld [vmem:[#allocation3 + $0x24c] sm:$0xf0] }
 0x2b8   :  { %v2291_v33 = vpop.f32.mrf.mxu0  ;;  %v2319_v49 = vpop.f32.mrf.mxu1  ;;  %3261 = vmatpush.bf16.msra.mxu1 %v14436_v43 }
 0x2b9   :  { %v19620_v57 = vadd.f32 %v2291_v33, %v19546_v62  ;;  %v18148_v33 = vld [vmem:[#allocation3 + $0x53c] sm:$0xf] }
 0x2ba   :  { %v14441_v49 = vld [vmem:[#allocation3 + $0x578] sm:$0xf0] }
 0x2bb   :  { %13941 = vmatmul.msk.bf16.vlgmr.msrb.gmra.mxu3 %vm1042_vm2, %v19322_v58  ;;  %14512 = vmatmul.msk.bf16.vlgmr.msra.gmra.mxu0 %vm1042_vm2, %v19587_v50  ;;  %v14444_v59 = vor.u32 %v18148_v33, %v14441_v49 }
 0x2bc   :  { %v1610_v20 = vpop.f32.mrf.mxu2  ;;  %1828 = vmatpush.bf16.msrb.mxu3 %v14016_v52  ;;  %3234 = vmatpush.bf16.msra.mxu0 %v14492_v41  ;;  %v18140_v52 = vld [vmem:[#allocation3 + $0x4f4] sm:$0xf0]  ;;  %v13968_v41 = vor.u32 %v18055_v28, %v13967_v44  ;;  %v14625_v44 = vld [vmem:[#allocation3 + $0x6e0] sm:$0xf0] }
 0x2bd   :  { %v14295_v20 = vld [vmem:[#allocation3 + $0x438] sm:$0xf] }
 0x2be   :  { %v1172_v62 = vpop.f32.mrf.mxu3 }
 0x2bf   :  { %v1544_v46 = vadd.f32 %v19474_v27, %v1172_v62  ;;  %v14545_v62 = vld [vmem:[#allocation3 + $0x650] sm:$0xf0] }
 0x2c0   :  { %v2293_v14 = vpop.f32.mrf.mxu0  ;;  %v2369_v16 = vpop.f32.mrf.mxu1  ;;  %1829 = vmatpush.bf16.msrb.mxu3 %v13952_v1  ;;  %3235 = vmatpush.bf16.msra.mxu0 %v14428_v3  ;;  %v18124_v1 = vld [vmem:[#allocation3 + $0x474] sm:$0xf0]  ;;  %v14548_v10 = vor.u32 %v18175_v4, %v14545_v62  ;;  %v18192_v62 = vld [vmem:[#allocation3 + $0x69c] sm:$0xf] }
 0x2c1   :  { %v2039_v18 = vadd.f32 %v19554_v21, %v1544_v46  ;;  %14367 = vmatmul.msk.bf16.vlgmr.msrb.gmra.mxu2 %vm1042_vm2, %v19516_v53  ;;  %v18071_v21 = vld [vmem:[#allocation3 + $0x2cc] sm:$0xf0]  ;;  %v14047_v46 = vld [vmem:[#allocation3 + $0x2a0] sm:$0xf] }
 0x2c2   :  { %2800 = vmatpush.bf16.msrb.mxu2 %v14344_v7  ;;  %v14032_v43 = vor.u32 %v18071_v21, %v14031_v48  ;;  %v14296_v7 = vor.u32 %v18124_v1, %v14295_v20  ;;  %v18073_v14 = vld [vmem:[#allocation3 + $0x2dc] sm:$0xf0]  ;;  %v18174_v21 = vld [vmem:[#allocation3 + $0x60c] sm:$0xf]  ;;  %v14561_v20 = vld [vmem:[#allocation3 + $0x660] sm:$0xf0] }
 0x2c3   :  { %v19630_v23 = vadd.f32 %v2369_v16, %v2039_v18  ;;  %14518 = vmatmul.msk.bf16.vlgmr.msrb.gmra.mxu1 %vm1042_vm2, %v19587_v50  ;;  %v18190_v16 = vld [vmem:[#allocation3 + $0x68c] sm:$0xf] }
 0x2c4   :  { %v1857_v27 = vpop.f32.mrf.mxu2  ;;  %3525 = vmatpush.bf16.msrb.mxu1 %v14596_v17  ;;  %v14601_v17 = vld [vmem:[#allocation3 + $0x6c8] sm:$0xf0] }
 0x2c5   :  { %v19635_v30 = vadd.f32 %v1857_v27, %v19564_v9  ;;  %v14359_v9 = vld [vmem:[#allocation3 + $0x4b8] sm:$0xf]  ;;  %v13983_v27 = vld [vmem:[#allocation3 + $0x220] sm:$0xf]  ;;  %v14604_v48 = vor.u32 %v18190_v16, %v14601_v17  ;;  %v13999_v16 = vld [vmem:[#allocation3 + $0x230] sm:$0xf] }
 0x2c6   :  { %v1174_v37 = vpop.f32.mrf.mxu3  ;;  %2801 = vmatpush.bf16.msrb.mxu2 %v14280_v26  ;;  %v14360_v25 = vor.u32 %v18140_v52, %v14359_v9  ;;  %v14048_v26 = vor.u32 %v18073_v14, %v14047_v46  ;;  %v14391_v9 = vld [vmem:[#allocation3 + $0x508] sm:$0xf] }
 0x2c7   :  { %v18150_v52 = vld [vmem:[#allocation3 + $0x544] sm:$0xf0] }
 0x2c8   :  { %v2343_v35 = vpop.f32.mrf.mxu0  ;;  %v2371_v40 = vpop.f32.mrf.mxu1  ;;  %3526 = vmatpush.bf16.msrb.mxu1 %v14532_v29  ;;  %v18057_v29 = vld [vmem:[#allocation3 + $0x25c] sm:$0xf0] }
 0x2c9   :  { %v19638_v47 = vadd.f32 %v2343_v35, %v19595_v63  ;;  %v13984_v35 = vor.u32 %v18057_v29, %v13983_v27  ;;  %v14540_v40 = vor.u32 %v18174_v21, %v14537_v31  ;;  %v18168_v27 = vld [vmem:[#allocation3 + $0x5d4] sm:$0xf0]  ;;  %v18195_v31 = vld [vmem:[#allocation3 + $0x6b4] sm:$0xf] }
 0x2cb   :  { %13945 = vmatmul.msk.bf16.vlgmr.msra.gmra.mxu3 %vm1042_vm2, %v19322_v58  ;;  %14516 = vmatmul.msk.bf16.vlgmr.msrb.gmra.mxu0 %vm1042_vm2, %v19587_v50 }
 0x2cc   :  { %v1859_v55 = vpop.f32.mrf.mxu2  ;;  %1880 = vmatpush.bf16.msra.mxu3 %v14032_v43  ;;  %3286 = vmatpush.bf16.msrb.mxu0 %v14508_v45  ;;  %v18193_v43 = vld [vmem:[#allocation3 + $0x6a4] sm:$0xf] }
 0x2cd   :  { %v3309_v45 = vld [vmem:[#allocation2 + $0x30] sm:$0xff] }
 0x2ce   :  { %v1185_v63 = vpop.f32.mrf.mxu3  ;;  %v19661_v54 = vpack.c.bf16 %v3309_v45, %v3309_v45 }
 0x2cf   :  { %v19645_v12 = vadd.f32 %v19599_v56, %v1185_v63 }
 0x2d0   :  { %v2345_v58 = vpop.f32.mrf.mxu0  ;;  %v19647_v3 = vpop.f32.mrf.mxu1  ;;  %1881 = vmatpush.bf16.msra.mxu3 %v13968_v41  ;;  %3287 = vmatpush.bf16.msrb.mxu0 %v14444_v59  ;;  %v14628_v59 = vor.u32 %v18193_v43, %v14625_v44 }
 0x2d1   :  { %14371 = vmatmul.msk.bf16.vlgmr.msra.gmra.mxu2 %vm1042_vm2, %v19516_v53 }
 0x2d2   :  { %2852 = vmatpush.bf16.msra.mxu2 %v14360_v25  ;;  %v18177_v25 = vld [vmem:[#allocation3 + $0x624] sm:$0xf] }
 0x2d3   :  { %14522 = vmatmul.msk.bf16.vlgmr.msra.gmra.mxu1 %vm1042_vm2, %v19587_v50  ;;  %v14564_v4 = vor.u32 %v18177_v25, %v14561_v20 }
 0x2d4   :  { %v1909_v56 = vpop.f32.mrf.mxu2  ;;  %3577 = vmatpush.bf16.msra.mxu1 %v14612_v38  ;;  %v14063_v38 = vld [vmem:[#allocation3 + $0x2b0] sm:$0xf] }
 0x2d5   :  { %v19654_v11 = vadd.f32 %v1909_v56, %v19578_v8  ;;  %v14455_v8 = vld [vmem:[#allocation3 + $0x588] sm:$0xf] }
 0x2d6   :  { %v1187_v18 = vpop.f32.mrf.mxu3  ;;  %2853 = vmatpush.bf16.msra.mxu2 %v14296_v7  ;;  %v14456_v33 = vor.u32 %v18166_v36, %v14455_v8  ;;  %v14617_v7 = vld [vmem:[#allocation3 + $0x6d8] sm:$0xf0]  ;;  %v14641_v8 = vld [vmem:[#allocation3 + $0x6f0] sm:$0xf0] }
 0x2d7   :  { %v14620_v17 = vor.u32 %v18192_v62, %v14617_v7  ;;  %v14644_v44 = vor.u32 %v18195_v31, %v14641_v8  ;;  %v18178_v62 = vld [vmem:[#allocation3 + $0x62c] sm:$0xf] }
 0x2d8   :  { %v2395_v22 = vpop.f32.mrf.mxu0  ;;  %v2423_v34 = vpop.f32.mrf.mxu1  ;;  %3578 = vmatpush.bf16.msra.mxu1 %v14548_v10  ;;  %v14569_v7 = vld [vmem:[#allocation3 + $0x668] sm:$0xf0] }
 0x2d9   :  { %v18176_v34 = vld [vmem:[#allocation3 + $0x61c] sm:$0xf] }
 0x2db   :  { %14077 = vmatmul.msk.bf16.vlgmr.msrb.gmra.mxu3 %vm1042_vm2, %v19382_v61  ;;  %14520 = vmatmul.msk.bf16.vlgmr.msra.gmra.mxu0 %vm1042_vm2, %v19587_v50 }
 0x2dc   :  { %v1911_v37 = vpop.f32.mrf.mxu2  ;;  %1932 = vmatpush.bf16.msrb.mxu3 %v14048_v26  ;;  %3551 = vmatpush.bf16.msra.mxu0 %v14604_v48  ;;  %v14553_v26 = vld [vmem:[#allocation3 + $0x658] sm:$0xf0] }
 0x2dd   :  { %v14556_v21 = vor.u32 %v18176_v34, %v14553_v26  ;;  %v14407_v37 = vld [vmem:[#allocation3 + $0x518] sm:$0xf] }
 0x2de   :  { %v1198_v28 = vpop.f32.mrf.mxu3 }
 0x2df   :  { %v1570_v49 = vadd.f32 %v19505_v19, %v1198_v28  ;;  %v14392_v19 = vor.u32 %v18150_v52, %v14391_v9  ;;  %v18179_v28 = vld [vmem:[#allocation3 + $0x634] sm:$0xf]  ;;  %v14159_v52 = vld [vmem:[#allocation3 + $0x380] sm:$0xf] }
 0x2e0   :  { %v2397_v55 = vpop.f32.mrf.mxu0  ;;  %v2686_v41 = vpop.f32.mrf.mxu1  ;;  %1933 = vmatpush.bf16.msrb.mxu3 %v13984_v35  ;;  %3552 = vmatpush.bf16.msra.mxu0 %v14540_v40  ;;  %v18152_v35 = vld [vmem:[#allocation3 + $0x554] sm:$0xf0] }
 0x2e1   :  { %v2041_v60 = vadd.f32 %v19580_v15, %v1570_v49  ;;  %v19665_v63 = vadd.f32 %v2686_v41, %v19590_v51  ;;  %14375 = vmatmul.msk.bf16.vlgmr.msrb.gmra.mxu2 %vm1042_vm2, %v19516_v53  ;;  %v18075_v51 = vld [vmem:[#allocation3 + $0x2ec] sm:$0xf0]  ;;  %v14408_v49 = vor.u32 %v18152_v35, %v14407_v37  ;;  %v18101_v41 = vld [vmem:[#allocation3 + $0x3bc] sm:$0xf0]  ;;  %v14673_v37 = vld [vmem:[#allocation3 + $0x740] sm:$0xf0] }
 0x2e2   :  { %3117 = vmatpush.bf16.msrb.mxu2 %v14456_v33  ;;  %v14064_v14 = vor.u32 %v18075_v51, %v14063_v38  ;;  %v14577_v33 = vld [vmem:[#allocation3 + $0x670] sm:$0xf0]  ;;  %v18085_v51 = vld [vmem:[#allocation3 + $0x33c] sm:$0xf0] }
 0x2e3   :  { %14654 = vmatmul.msk.bf16.vlgmr.msrb.gmra.mxu1 %vm1042_vm2, %v19661_v54  ;;  %v19671_v1 = vadd.f32 %v2395_v22, %v2041_v60  ;;  %v18059_v22 = vld [vmem:[#allocation3 + $0x26c] sm:$0xf0]  ;;  %v14580_v55 = vor.u32 %v18179_v28, %v14577_v33  ;;  %v14633_v60 = vld [vmem:[#allocation3 + $0x6e8] sm:$0xf0]  ;;  %v18196_v28 = vld [vmem:[#allocation3 + $0x6bc] sm:$0xf] }
 0x2e4   :  { %v1961_v58 = vpop.f32.mrf.mxu2  ;;  %3629 = vmatpush.bf16.msrb.mxu1 %v14628_v59  ;;  %v14000_v29 = vor.u32 %v18059_v22, %v13999_v16  ;;  %v18194_v59 = vld [vmem:[#allocation3 + $0x6ac] sm:$0xf]  ;;  %v14572_v16 = vor.u32 %v18178_v62, %v14569_v7  ;;  %v14737_v22 = vld [vmem:[#allocation3 + $0x7c0] sm:$0xf0]  ;;  %v14649_v33 = vld [vmem:[#allocation3 + $0x6f8] sm:$0xf0] }
 0x2e5   :  { %v19674_v15 = vadd.f32 %v1961_v58, %v19645_v12  ;;  %v14471_v12 = vld [vmem:[#allocation3 + $0x598] sm:$0xf]  ;;  %v14095_v58 = vld [vmem:[#allocation3 + $0x300] sm:$0xf]  ;;  %v14636_v38 = vor.u32 %v18194_v59, %v14633_v60  ;;  %v14111_v59 = vld [vmem:[#allocation3 + $0x310] sm:$0xf]  ;;  %v14652_v60 = vor.u32 %v18196_v28, %v14649_v33 }
 0x2e6   :  { %v1200_v56 = vpop.f32.mrf.mxu3  ;;  %3118 = vmatpush.bf16.msrb.mxu2 %v14392_v19  ;;  %v14472_v36 = vor.u32 %v18168_v27, %v14471_v12  ;;  %v14160_v19 = vor.u32 %v18101_v41, %v14159_v52  ;;  %v14423_v12 = vld [vmem:[#allocation3 + $0x528] sm:$0xf]  ;;  %v18223_v62 = vld [vmem:[#allocation3 + $0x794] sm:$0xf]  ;;  %v18206_v28 = vld [vmem:[#allocation3 + $0x70c] sm:$0xf] }
 0x2e7   :  { %v14487_v56 = vld [vmem:[#allocation3 + $0x5a8] sm:$0xf]  ;;  %v14753_v7 = vld [vmem:[#allocation3 + $0x7d0] sm:$0xf0]  ;;  %v14681_v33 = vld [vmem:[#allocation3 + $0x748] sm:$0xf0] }
 0x2e8   :  { %v2447_v46 = vpop.f32.mrf.mxu0  ;;  %v2688_v10 = vpop.f32.mrf.mxu1  ;;  %3630 = vmatpush.bf16.msrb.mxu1 %v14564_v4  ;;  %v18154_v27 = vld [vmem:[#allocation3 + $0x564] sm:$0xf0] }
 0x2e9   :  { %v19677_v18 = vadd.f32 %v2447_v46, %v19602_v6  ;;  %v18170_v46 = vld [vmem:[#allocation3 + $0x5e4] sm:$0xf0]  ;;  %v14424_v35 = vor.u32 %v18154_v27, %v14423_v12  ;;  %v14191_v27 = vld [vmem:[#allocation3 + $0x3a0] sm:$0xf] }
 0x2ea   :  { %v14488_v34 = vor.u32 %v18170_v46, %v14487_v56 }
 0x2eb   :  { %14081 = vmatmul.msk.bf16.vlgmr.msra.gmra.mxu3 %vm1042_vm2, %v19382_v61  ;;  %14524 = vmatmul.msk.bf16.vlgmr.msrb.gmra.mxu0 %vm1042_vm2, %v19587_v50 }
 0x2ec   :  { %v1963_v48 = vpop.f32.mrf.mxu2  ;;  %1984 = vmatpush.bf16.msra.mxu3 %v14064_v14  ;;  %3603 = vmatpush.bf16.msrb.mxu0 %v14620_v17  ;;  %v14096_v14 = vor.u32 %v18085_v51, %v14095_v58  ;;  %v18221_v17 = vld [vmem:[#allocation3 + $0x784] sm:$0xf] }
 0x2ee   :  { %v19683_v6 = vpop.f32.mrf.mxu3 }
 0x2f0   :  { %v2449_v40 = vpop.f32.mrf.mxu0  ;;  %v2738_v43 = vpop.f32.mrf.mxu1  ;;  %1985 = vmatpush.bf16.msra.mxu3 %v14000_v29  ;;  %3604 = vmatpush.bf16.msrb.mxu0 %v14556_v21  ;;  %v14740_v21 = vor.u32 %v18221_v17, %v14737_v22  ;;  %v14756_v17 = vor.u32 %v18223_v62, %v14753_v7  ;;  %v18209_v7 = vld [vmem:[#allocation3 + $0x724] sm:$0xf] }
 0x2f1   :  { %v19686_v45 = vadd.f32 %v2738_v43, %v19611_v32  ;;  %14379 = vmatmul.msk.bf16.vlgmr.msra.gmra.mxu2 %vm1042_vm2, %v19516_v53  ;;  %v14175_v43 = vld [vmem:[#allocation3 + $0x390] sm:$0xf] }
 0x2f2   :  { %3169 = vmatpush.bf16.msra.mxu2 %v14472_v36  ;;  %v18205_v36 = vld [vmem:[#allocation3 + $0x704] sm:$0xf] }
 0x2f3   :  { %14658 = vmatmul.msk.bf16.vlgmr.msra.gmra.mxu1 %vm1042_vm2, %v19661_v54 }
 0x2f4   :  { %v19692_v9 = vpop.f32.mrf.mxu2  ;;  %3681 = vmatpush.bf16.msra.mxu1 %v14644_v44  ;;  %v14676_v44 = vor.u32 %v18205_v36, %v14673_v37  ;;  %v14745_v36 = vld [vmem:[#allocation3 + $0x7c8] sm:$0xf0] }
 0x2f6   :  { %v1213_v32 = vpop.f32.mrf.mxu3  ;;  %3170 = vmatpush.bf16.msra.mxu2 %v14408_v49 }
 0x2f7   :  { %v18087_v32 = vld [vmem:[#allocation3 + $0x34c] sm:$0xf0] }
 0x2f8   :  { %v2712_v25 = vpop.f32.mrf.mxu0  ;;  %v2740_v20 = vpop.f32.mrf.mxu1  ;;  %3682 = vmatpush.bf16.msra.mxu1 %v14580_v55 }
 0x2f9   :  { %v19695_v4 = vadd.f32 %v2712_v25, %v19620_v57  ;;  %v18180_v25 = vld [vmem:[#allocation3 + $0x63c] sm:$0xf] }
 0x2fa   :  { %v14585_v20 = vld [vmem:[#allocation3 + $0x678] sm:$0xf0] }
 0x2fb   :  { %14085 = vmatmul.msk.bf16.vlgmr.msrb.gmra.mxu3 %vm1042_vm2, %v19382_v61  ;;  %14656 = vmatmul.msk.bf16.vlgmr.msra.gmra.mxu0 %vm1042_vm2, %v19661_v54  ;;  %v14588_v51 = vor.u32 %v18180_v25, %v14585_v20  ;;  %v14535_v20 = vld [vmem:[#allocation3 + $0x608] sm:$0xf] }
 0x2fc   :  { %v2015_v10 = vpop.f32.mrf.mxu2  ;;  %2249 = vmatpush.bf16.msrb.mxu3 %v14160_v19  ;;  %3655 = vmatpush.bf16.msra.mxu0 %v14636_v38  ;;  %v18172_v19 = vld [vmem:[#allocation3 + $0x5f4] sm:$0xf0]  ;;  %v14112_v38 = vor.u32 %v18087_v32, %v14111_v59  ;;  %v18225_v59 = vld [vmem:[#allocation3 + $0x7a4] sm:$0xf] }
 0x2fd   :  { %v14439_v10 = vld [vmem:[#allocation3 + $0x538] sm:$0xf] }
 0x2fe   :  { %v1224_v57 = vpop.f32.mrf.mxu3 }
 0x2ff   :  { %v1596_v26 = vadd.f32 %v19497_v2, %v1224_v57  ;;  %v18207_v57 = vld [vmem:[#allocation3 + $0x714] sm:$0xf] }
 0x300   :  { %v2714_v48 = vpop.f32.mrf.mxu0  ;;  %v2790_v29 = vpop.f32.mrf.mxu1  ;;  %2250 = vmatpush.bf16.msrb.mxu3 %v14096_v14  ;;  %3656 = vmatpush.bf16.msra.mxu0 %v14572_v16  ;;  %v18156_v14 = vld [vmem:[#allocation3 + $0x574] sm:$0xf0] }
 0x301   :  { %v2043_v31 = vadd.f32 %v19572_v0, %v1596_v26  ;;  %v19704_v8 = vadd.f32 %v2790_v29, %v19630_v23  ;;  %14511 = vmatmul.msk.bf16.vlgmr.msrb.gmra.mxu2 %vm1042_vm2, %v19587_v50  ;;  %v18103_v23 = vld [vmem:[#allocation3 + $0x3cc] sm:$0xf0]  ;;  %v14440_v12 = vor.u32 %v18156_v14, %v14439_v10 }
 0x302   :  { %3221 = vmatpush.bf16.msrb.mxu2 %v14488_v34  ;;  %v14176_v41 = vor.u32 %v18103_v23, %v14175_v43  ;;  %v14689_v34 = vld [vmem:[#allocation3 + $0x750] sm:$0xf0]  ;;  %v18089_v23 = vld [vmem:[#allocation3 + $0x35c] sm:$0xf0]  ;;  %v14207_v10 = vld [vmem:[#allocation3 + $0x3b0] sm:$0xf] }
 0x303   :  { %14662 = vmatmul.msk.bf16.vlgmr.msrb.gmra.mxu1 %vm1042_vm2, %v19661_v54  ;;  %v2464_v2 = vadd.f32 %v19647_v3, %v2043_v31  ;;  %v14692_v48 = vor.u32 %v18207_v57, %v14689_v34  ;;  %v18222_v31 = vld [vmem:[#allocation3 + $0x78c] sm:$0xf] }
 0x304   :  { %v2278_v40 = vpop.f32.mrf.mxu2  ;;  %3946 = vmatpush.bf16.msrb.mxu1 %v14740_v21  ;;  %v18105_v21 = vld [vmem:[#allocation3 + $0x3dc] sm:$0xf0]  ;;  %v14748_v43 = vor.u32 %v18222_v31, %v14745_v36  ;;  %v18091_v31 = vld [vmem:[#allocation3 + $0x36c] sm:$0xf0]  ;;  %v18208_v36 = vld [vmem:[#allocation3 + $0x71c] sm:$0xf] }
 0x305   :  { %v19712_v0 = vadd.f32 %v2278_v40, %v19635_v30  ;;  %v14503_v30 = vld [vmem:[#allocation3 + $0x5b8] sm:$0xf]  ;;  %v14127_v40 = vld [vmem:[#allocation3 + $0x320] sm:$0xf] }
 0x306   :  { %v1226_v49 = vpop.f32.mrf.mxu3  ;;  %3222 = vmatpush.bf16.msrb.mxu2 %v14424_v35  ;;  %v14504_v56 = vor.u32 %v18172_v19, %v14503_v30  ;;  %v18182_v30 = vld [vmem:[#allocation3 + $0x644] sm:$0xf0] }
 0x307   :  { %v18198_v49 = vld [vmem:[#allocation3 + $0x6c4] sm:$0xf0] }
 0x308   :  { %v2764_v52 = vpop.f32.mrf.mxu0  ;;  %v2792_v55 = vpop.f32.mrf.mxu1  ;;  %3947 = vmatpush.bf16.msrb.mxu1 %v14676_v44 }
 0x309   :  { %v19715_v3 = vadd.f32 %v2764_v52, %v19638_v47  ;;  %v14128_v55 = vor.u32 %v18089_v23, %v14127_v40  ;;  %v14785_v23 = vld [vmem:[#allocation3 + $0x7f0] sm:$0xf0] }
 0x30b   :  { %14089 = vmatmul.msk.bf16.vlgmr.msra.gmra.mxu3 %vm1042_vm2, %v19382_v61  ;;  %14660 = vmatmul.msk.bf16.vlgmr.msrb.gmra.mxu0 %vm1042_vm2, %v19661_v54 }
 0x30c   :  { %v2280_v58 = vpop.f32.mrf.mxu2  ;;  %2301 = vmatpush.bf16.msra.mxu3 %v14176_v41  ;;  %3707 = vmatpush.bf16.msrb.mxu0 %v14652_v60  ;;  %v14684_v41 = vor.u32 %v18206_v28, %v14681_v33  ;;  %v14769_v60 = vld [vmem:[#allocation3 + $0x7e0] sm:$0xf0]  ;;  %v14551_v33 = vld [vmem:[#allocation3 + $0x618] sm:$0xf] }
 0x30e   :  { %v1237_v47 = vpop.f32.mrf.mxu3 }
 0x30f   :  { %v1609_v46 = vadd.f32 %v19617_v39, %v1237_v47  ;;  %v14705_v47 = vld [vmem:[#allocation3 + $0x760] sm:$0xf0] }
 0x310   :  { %v2766_v16 = vpop.f32.mrf.mxu0  ;;  %v2842_v61 = vpop.f32.mrf.mxu1  ;;  %2302 = vmatpush.bf16.msra.mxu3 %v14112_v38  ;;  %3708 = vmatpush.bf16.msrb.mxu0 %v14588_v51  ;;  %v14772_v38 = vor.u32 %v18225_v59, %v14769_v60  ;;  %v14708_v14 = vor.u32 %v18209_v7, %v14705_v47  ;;  %v18211_v59 = vld [vmem:[#allocation3 + $0x734] sm:$0xf] }
 0x311   :  { %v19722_v22 = vadd.f32 %v2842_v61, %v2464_v2  ;;  %14515 = vmatmul.msk.bf16.vlgmr.msra.gmra.mxu2 %vm1042_vm2, %v19587_v50  ;;  %v19727_v26 = vadd.f32 %v19692_v9, %v1609_v46  ;;  %v14192_v2 = vor.u32 %v18105_v21, %v14191_v27  ;;  %v18107_v61 = vld [vmem:[#allocation3 + $0x3ec] sm:$0xf0]  ;;  %v14721_v60 = vld [vmem:[#allocation3 + $0x770] sm:$0xf0] }
 0x312   :  { %3273 = vmatpush.bf16.msra.mxu2 %v14504_v56  ;;  %v14536_v56 = vor.u32 %v18182_v30, %v14535_v20  ;;  %v14143_v27 = vld [vmem:[#allocation3 + $0x330] sm:$0xf]  ;;  %v14303_v20 = vld [vmem:[#allocation3 + $0x480] sm:$0xf]  ;;  %v14724_v30 = vor.u32 %v18211_v59, %v14721_v60  ;;  %v14793_v59 = vld [vmem:[#allocation3 + $0x7f8] sm:$0xf0] }
 0x313   :  { %14666 = vmatmul.msk.bf16.vlgmr.msra.gmra.mxu1 %vm1042_vm2, %v19661_v54 }
 0x314   :  { %v2330_v39 = vpop.f32.mrf.mxu2  ;;  %3998 = vmatpush.bf16.msra.mxu1 %v14756_v17  ;;  %v14761_v17 = vld [vmem:[#allocation3 + $0x7d8] sm:$0xf0] }
 0x315   :  { %v19732_v29 = vadd.f32 %v2330_v39, %v19654_v11  ;;  %v14599_v11 = vld [vmem:[#allocation3 + $0x688] sm:$0xf]  ;;  %v14208_v39 = vor.u32 %v18107_v61, %v14207_v10  ;;  %v14239_v10 = vld [vmem:[#allocation3 + $0x400] sm:$0xf] }
 0x316   :  { %v1239_v37 = vpop.f32.mrf.mxu3  ;;  %3274 = vmatpush.bf16.msra.mxu2 %v14440_v12  ;;  %v14600_v25 = vor.u32 %v18198_v49, %v14599_v11  ;;  %v18184_v11 = vld [vmem:[#allocation3 + $0x654] sm:$0xf0] }
 0x317   :  { %v14697_v37 = vld [vmem:[#allocation3 + $0x758] sm:$0xf0] }
 0x318   :  { %v2816_v35 = vpop.f32.mrf.mxu0  ;;  %v2844_v9 = vpop.f32.mrf.mxu1  ;;  %3999 = vmatpush.bf16.msra.mxu1 %v14692_v48  ;;  %v14700_v40 = vor.u32 %v18208_v36, %v14697_v37  ;;  %v14567_v37 = vld [vmem:[#allocation3 + $0x628] sm:$0xf] }
 0x319   :  { %v19735_v44 = vadd.f32 %v2816_v35, %v19671_v1  ;;  %v3730_v1 = vld [vmem:[#allocation2 + $0x38] sm:$0xff]  ;;  %v18200_v35 = vld [vmem:[#allocation3 + $0x6d4] sm:$0xf0] }
 0x31a   :  { %v19743_v51 = vpack.c.bf16 %v3730_v1, %v3730_v1  ;;  %v14552_v1 = vor.u32 %v18184_v11, %v14551_v33  ;;  %v14319_v11 = vld [vmem:[#allocation3 + $0x490] sm:$0xf] }
 0x31b   :  { %14221 = vmatmul.msk.bf16.vlgmr.msrb.gmra.mxu3 %vm1042_vm2, %v19435_v5  ;;  %14664 = vmatmul.msk.bf16.vlgmr.msra.gmra.mxu0 %vm1042_vm2, %v19661_v54 }
 0x31c   :  { %v2332_v52 = vpop.f32.mrf.mxu2  ;;  %2353 = vmatpush.bf16.msrb.mxu3 %v14192_v2  ;;  %3972 = vmatpush.bf16.msra.mxu0 %v14748_v43  ;;  %v14144_v2 = vor.u32 %v18091_v31, %v14143_v27  ;;  %v18227_v43 = vld [vmem:[#allocation3 + $0x7b4] sm:$0xf]  ;;  %v14881_v31 = vld [vmem:[#allocation3 + $0x8c0] sm:$0xf0] }
 0x31e   :  { %v19741_v32 = vpop.f32.mrf.mxu3 }
 0x320   :  { %v2818_v19 = vpop.f32.mrf.mxu0  ;;  %v3107_v58 = vpop.f32.mrf.mxu1  ;;  %2354 = vmatpush.bf16.msrb.mxu3 %v14128_v55  ;;  %3973 = vmatpush.bf16.msra.mxu0 %v14684_v41  ;;  %v14788_v55 = vor.u32 %v18227_v43, %v14785_v23  ;;  %v18237_v43 = vld [vmem:[#allocation3 + $0x804] sm:$0xf] }
 0x321   :  { %v19746_v62 = vadd.f32 %v3107_v58, %v19665_v63  ;;  %14519 = vmatmul.msk.bf16.vlgmr.msrb.gmra.mxu2 %vm1042_vm2, %v19587_v50  ;;  %v18224_v63 = vld [vmem:[#allocation3 + $0x79c] sm:$0xf]  ;;  %v18133_v58 = vld [vmem:[#allocation3 + $0x4bc] sm:$0xf0]  ;;  %v14817_v23 = vld [vmem:[#allocation3 + $0x840] sm:$0xf0] }
 0x322   :  { %3538 = vmatpush.bf16.msrb.mxu2 %v14600_v25  ;;  %v14764_v48 = vor.u32 %v18224_v63, %v14761_v17  ;;  %v18117_v63 = vld [vmem:[#allocation3 + $0x43c] sm:$0xf0]  ;;  %v18210_v17 = vld [vmem:[#allocation3 + $0x72c] sm:$0xf] }
 0x323   :  { %14798 = vmatmul.msk.bf16.vlgmr.msrb.gmra.mxu1 %vm1042_vm2, %v19743_v51 }
 0x324   :  { %v2382_v46 = vpop.f32.mrf.mxu2  ;;  %4050 = vmatpush.bf16.msrb.mxu1 %v14772_v38  ;;  %v14777_v38 = vld [vmem:[#allocation3 + $0x7e8] sm:$0xf0] }
 0x325   :  { %v19753_v16 = vadd.f32 %v2382_v46, %v19674_v15  ;;  %v14615_v15 = vld [vmem:[#allocation3 + $0x698] sm:$0xf]  ;;  %v14304_v46 = vor.u32 %v18133_v58, %v14303_v20 }
 0x326   :  { %v1428_v57 = vpop.f32.mrf.mxu3  ;;  %3539 = vmatpush.bf16.msrb.mxu2 %v14536_v56  ;;  %v14616_v28 = vor.u32 %v18200_v35, %v14615_v15  ;;  %v18186_v15 = vld [vmem:[#allocation3 + $0x664] sm:$0xf0] }
 0x327   :  { %v14713_v57 = vld [vmem:[#allocation3 + $0x768] sm:$0xf0] }
 0x328   :  { %v2868_v34 = vpop.f32.mrf.mxu0  ;;  %v3109_v12 = vpop.f32.mrf.mxu1  ;;  %4051 = vmatpush.bf16.msrb.mxu1 %v14708_v14  ;;  %v14716_v27 = vor.u32 %v18210_v17, %v14713_v57  ;;  %v14897_v17 = vld [vmem:[#allocation3 + $0x8d0] sm:$0xf0] }
 0x329   :  { %v19756_v21 = vadd.f32 %v2868_v34, %v19677_v18  ;;  %v18202_v34 = vld [vmem:[#allocation3 + $0x6e4] sm:$0xf0] }
 0x32b   :  { %14225 = vmatmul.msk.bf16.vlgmr.msra.gmra.mxu3 %vm1042_vm2, %v19435_v5  ;;  %14668 = vmatmul.msk.bf16.vlgmr.msrb.gmra.mxu0 %vm1042_vm2, %v19661_v54 }
 0x32c   :  { %v2384_v9 = vpop.f32.mrf.mxu2  ;;  %2405 = vmatpush.bf16.msra.mxu3 %v14208_v39  ;;  %4024 = vmatpush.bf16.msrb.mxu0 %v14764_v48  ;;  %v14240_v39 = vor.u32 %v18117_v63, %v14239_v10  ;;  %v18253_v48 = vld [vmem:[#allocation3 + $0x884] sm:$0xf]  ;;  %v18255_v63 = vld [vmem:[#allocation3 + $0x894] sm:$0xf] }
 0x32e   :  { %v19762_v18 = vpop.f32.mrf.mxu3 }
 0x330   :  { %v2870_v49 = vpop.f32.mrf.mxu0  ;;  %v3159_v52 = vpop.f32.mrf.mxu1  ;;  %2406 = vmatpush.bf16.msra.mxu3 %v14144_v2  ;;  %4025 = vmatpush.bf16.msrb.mxu0 %v14700_v40  ;;  %v14884_v2 = vor.u32 %v18253_v48, %v14881_v31  ;;  %v18239_v48 = vld [vmem:[#allocation3 + $0x814] sm:$0xf] }
 0x331   :  { %v19765_v41 = vadd.f32 %v3159_v52, %v19686_v45  ;;  %14523 = vmatmul.msk.bf16.vlgmr.msra.gmra.mxu2 %vm1042_vm2, %v19587_v50  ;;  %v18226_v45 = vld [vmem:[#allocation3 + $0x7ac] sm:$0xf]  ;;  %v14820_v49 = vor.u32 %v18237_v43, %v14817_v23  ;;  %v14833_v31 = vld [vmem:[#allocation3 + $0x850] sm:$0xf0] }
 0x332   :  { %3590 = vmatpush.bf16.msra.mxu2 %v14616_v28  ;;  %v14780_v14 = vor.u32 %v18226_v45, %v14777_v38  ;;  %v14568_v28 = vor.u32 %v18186_v15, %v14567_v37  ;;  %v18119_v38 = vld [vmem:[#allocation3 + $0x44c] sm:$0xf0]  ;;  %v14335_v15 = vld [vmem:[#allocation3 + $0x4a0] sm:$0xf]  ;;  %v14889_v43 = vld [vmem:[#allocation3 + $0x8c8] sm:$0xf0] }
 0x333   :  { %14802 = vmatmul.msk.bf16.vlgmr.msra.gmra.mxu1 %vm1042_vm2, %v19743_v51 }
 0x334   :  { %v2434_v25 = vpop.f32.mrf.mxu2  ;;  %4102 = vmatpush.bf16.msra.mxu1 %v14788_v55  ;;  %v18135_v55 = vld [vmem:[#allocation3 + $0x4cc] sm:$0xf0] }
 0x335   :  { %v19772_v19 = vadd.f32 %v2434_v25, %v19727_v26  ;;  %v14631_v26 = vld [vmem:[#allocation3 + $0x6a8] sm:$0xf]  ;;  %v14320_v20 = vor.u32 %v18135_v55, %v14319_v11 }
 0x336   :  { %v1480_v7 = vpop.f32.mrf.mxu3  ;;  %3591 = vmatpush.bf16.msra.mxu2 %v14552_v1  ;;  %v14632_v36 = vor.u32 %v18202_v34, %v14631_v26  ;;  %v14583_v26 = vld [vmem:[#allocation3 + $0x638] sm:$0xf] }
 0x337   :  { %v18212_v7 = vld [vmem:[#allocation3 + $0x73c] sm:$0xf]  ;;  %v18188_v34 = vld [vmem:[#allocation3 + $0x674] sm:$0xf0] }
 0x338   :  { %v3133_v47 = vpop.f32.mrf.mxu0  ;;  %v3161_v56 = vpop.f32.mrf.mxu1  ;;  %4103 = vmatpush.bf16.msra.mxu1 %v14724_v30  ;;  %v14255_v30 = vld [vmem:[#allocation3 + $0x410] sm:$0xf] }
 0x339   :  { %v19775_v61 = vadd.f32 %v3133_v47, %v19695_v4  ;;  %v14729_v47 = vld [vmem:[#allocation3 + $0x778] sm:$0xf0]  ;;  %v18204_v56 = vld [vmem:[#allocation3 + $0x6f4] sm:$0xf0]  ;;  %v14256_v10 = vor.u32 %v18119_v38, %v14255_v30  ;;  %v18257_v38 = vld [vmem:[#allocation3 + $0x8a4] sm:$0xf] }
 0x33b   :  { %14229 = vmatmul.msk.bf16.vlgmr.msrb.gmra.mxu3 %vm1042_vm2, %v19435_v5  ;;  %14800 = vmatmul.msk.bf16.vlgmr.msra.gmra.mxu0 %vm1042_vm2, %v19743_v51 }
 0x33c   :  { %v2436_v12 = vpop.f32.mrf.mxu2  ;;  %2670 = vmatpush.bf16.msrb.mxu3 %v14304_v46  ;;  %4076 = vmatpush.bf16.msra.mxu0 %v14780_v14  ;;  %v14732_v14 = vor.u32 %v18212_v7, %v14729_v47  ;;  %v14913_v7 = vld [vmem:[#allocation3 + $0x8e0] sm:$0xf0]  ;;  %v4151_v47 = vld [vmem:[#allocation2 + $0x40] sm:$0xff] }
 0x33e   :  { %v19781_v4 = vpop.f32.mrf.mxu3 }
 0x340   :  { %v3135_v35 = vpop.f32.mrf.mxu0  ;;  %v3211_v9 = vpop.f32.mrf.mxu1  ;;  %2671 = vmatpush.bf16.msrb.mxu3 %v14240_v39  ;;  %4077 = vmatpush.bf16.msra.mxu0 %v14716_v27 }
 0x341   :  { %v19784_v40 = vadd.f32 %v3211_v9, %v19704_v8  ;;  %14655 = vmatmul.msk.bf16.vlgmr.msrb.gmra.mxu2 %vm1042_vm2, %v19661_v54  ;;  %v18228_v8 = vld [vmem:[#allocation3 + $0x7bc] sm:$0xf]  ;;  %v14836_v35 = vor.u32 %v18239_v48, %v14833_v31 }
 0x342   :  { %3642 = vmatpush.bf16.msrb.mxu2 %v14632_v36  ;;  %v14796_v58 = vor.u32 %v18228_v8, %v14793_v59  ;;  %v14584_v36 = vor.u32 %v18188_v34, %v14583_v26  ;;  %v18121_v59 = vld [vmem:[#allocation3 + $0x45c] sm:$0xf0]  ;;  %v19823_v26 = vpack.c.bf16 %v4151_v47, %v4151_v47 }
 0x343   :  { %14806 = vmatmul.msk.bf16.vlgmr.msrb.gmra.mxu1 %vm1042_vm2, %v19743_v51 }
 0x344   :  { %v2699_v33 = vpop.f32.mrf.mxu2  ;;  %4367 = vmatpush.bf16.msrb.mxu1 %v14884_v2  ;;  %v18137_v2 = vld [vmem:[#allocation3 + $0x4dc] sm:$0xf0] }
 0x345   :  { %v19791_v52 = vadd.f32 %v2699_v33, %v19712_v0  ;;  %v14647_v0 = vld [vmem:[#allocation3 + $0x6b8] sm:$0xf]  ;;  %v14336_v11 = vor.u32 %v18137_v2, %v14335_v15 }
 0x346   :  { %v1532_v60 = vpop.f32.mrf.mxu3  ;;  %3643 = vmatpush.bf16.msrb.mxu2 %v14568_v28  ;;  %v14648_v57 = vor.u32 %v18204_v56, %v14647_v0 }
 0x347   :  { %v18238_v60 = vld [vmem:[#allocation3 + $0x80c] sm:$0xf] }
 0x348   :  { %v3185_v1 = vpop.f32.mrf.mxu0  ;;  %v3213_v25 = vpop.f32.mrf.mxu1  ;;  %4368 = vmatpush.bf16.msrb.mxu1 %v14820_v49  ;;  %v14271_v49 = vld [vmem:[#allocation3 + $0x420] sm:$0xf] }
 0x349   :  { %v19794_v45 = vadd.f32 %v3185_v1, %v19715_v3  ;;  %v14825_v1 = vld [vmem:[#allocation3 + $0x848] sm:$0xf0]  ;;  %v18230_v25 = vld [vmem:[#allocation3 + $0x7c4] sm:$0xf0]  ;;  %v14272_v30 = vor.u32 %v18121_v59, %v14271_v49  ;;  %v14841_v49 = vld [vmem:[#allocation3 + $0x858] sm:$0xf0] }
 0x34b   :  { %14233 = vmatmul.msk.bf16.vlgmr.msra.gmra.mxu3 %vm1042_vm2, %v19435_v5  ;;  %14804 = vmatmul.msk.bf16.vlgmr.msrb.gmra.mxu0 %vm1042_vm2, %v19743_v51  ;;  %v14900_v5 = vor.u32 %v18255_v63, %v14897_v17 }
 0x34c   :  { %v2701_v46 = vpop.f32.mrf.mxu2  ;;  %2722 = vmatpush.bf16.msra.mxu3 %v14320_v20  ;;  %4128 = vmatpush.bf16.msrb.mxu0 %v14796_v58  ;;  %v14828_v58 = vor.u32 %v18238_v60, %v14825_v1 }
 0x34e   :  { %v19800_v3 = vpop.f32.mrf.mxu3 }
 0x350   :  { %v3187_v12 = vpop.f32.mrf.mxu0  ;;  %v3263_v39 = vpop.f32.mrf.mxu1  ;;  %2723 = vmatpush.bf16.msra.mxu3 %v14256_v10  ;;  %4129 = vmatpush.bf16.msrb.mxu0 %v14732_v14  ;;  %v14679_v10 = vld [vmem:[#allocation3 + $0x708] sm:$0xf] }
 0x351   :  { %v19803_v27 = vadd.f32 %v3263_v39, %v19722_v22  ;;  %14659 = vmatmul.msk.bf16.vlgmr.msra.gmra.mxu2 %vm1042_vm2, %v19661_v54  ;;  %v18254_v22 = vld [vmem:[#allocation3 + $0x88c] sm:$0xf]  ;;  %v18214_v14 = vld [vmem:[#allocation3 + $0x744] sm:$0xf0] }
 0x352   :  { %3694 = vmatpush.bf16.msra.mxu2 %v14648_v57  ;;  %v14892_v55 = vor.u32 %v18254_v22, %v14889_v43  ;;  %v14916_v57 = vor.u32 %v18257_v38, %v14913_v7  ;;  %v14680_v12 = vor.u32 %v18214_v14, %v14679_v10  ;;  %v14287_v43 = vld [vmem:[#allocation3 + $0x430] sm:$0xf]  ;;  %v18216_v38 = vld [vmem:[#allocation3 + $0x754] sm:$0xf0] }
 0x353   :  { %14810 = vmatmul.msk.bf16.vlgmr.msra.gmra.mxu1 %vm1042_vm2, %v19743_v51 }
 0x354   :  { %v2751_v37 = vpop.f32.mrf.mxu2  ;;  %4419 = vmatpush.bf16.msra.mxu1 %v14900_v5  ;;  %v14351_v5 = vld [vmem:[#allocation3 + $0x4b0] sm:$0xf] }
 0x355   :  { %v19810_v9 = vadd.f32 %v2751_v37, %v19732_v29  ;;  %v14743_v29 = vld [vmem:[#allocation3 + $0x788] sm:$0xf]  ;;  %v14905_v37 = vld [vmem:[#allocation3 + $0x8d8] sm:$0xf0] }
 0x356   :  { %v1584_v23 = vpop.f32.mrf.mxu3  ;;  %3695 = vmatpush.bf16.msra.mxu2 %v14584_v36  ;;  %v14744_v56 = vor.u32 %v18230_v25, %v14743_v29  ;;  %v18139_v36 = vld [vmem:[#allocation3 + $0x4ec] sm:$0xf0]  ;;  %v18259_v29 = vld [vmem:[#allocation3 + $0x8b4] sm:$0xf] }
 0x357   :  { %v14352_v22 = vor.u32 %v18139_v36, %v14351_v5  ;;  %v14929_v25 = vld [vmem:[#allocation3 + $0x8f0] sm:$0xf0]  ;;  %v14383_v36 = vld [vmem:[#allocation3 + $0x500] sm:$0xf] }
 0x358   :  { %v3237_v28 = vpop.f32.mrf.mxu0  ;;  %v3265_v33 = vpop.f32.mrf.mxu1  ;;  %4420 = vmatpush.bf16.msra.mxu1 %v14836_v35 }
 0x359   :  { %v19813_v8 = vadd.f32 %v3237_v28, %v19735_v44  ;;  %v1427_v44 = vadd.f32 %v19741_v32, %v19453_v42  ;;  %v18241_v42 = vld [vmem:[#allocation3 + $0x824] sm:$0xf]  ;;  %v18123_v33 = vld [vmem:[#allocation3 + $0x46c] sm:$0xf0] }
 0x35a   :  { %v14849_v32 = vld [vmem:[#allocation3 + $0x860] sm:$0xf0]  ;;  %v14288_v60 = vor.u32 %v18123_v33, %v14287_v43 }
 0x35b   :  { %14365 = vmatmul.msk.bf16.vlgmr.msrb.gmra.mxu3 %vm1042_vm2, %v19516_v53  ;;  %14808 = vmatmul.msk.bf16.vlgmr.msra.gmra.mxu0 %vm1042_vm2, %v19743_v51  ;;  %v14852_v48 = vor.u32 %v18241_v42, %v14849_v32  ;;  %v18165_v42 = vld [vmem:[#allocation3 + $0x5bc] sm:$0xf0]  ;;  %v14921_v32 = vld [vmem:[#allocation3 + $0x8e8] sm:$0xf0] }
 0x35c   :  { %v2753_v20 = vpop.f32.mrf.mxu2  ;;  %2774 = vmatpush.bf16.msrb.mxu3 %v14336_v11  ;;  %4393 = vmatpush.bf16.msra.mxu0 %v14892_v55  ;;  %v18240_v11 = vld [vmem:[#allocation3 + $0x81c] sm:$0xf]  ;;  %v18232_v55 = vld [vmem:[#allocation3 + $0x7d4] sm:$0xf0] }
 0x35d   :  { %v14844_v1 = vor.u32 %v18240_v11, %v14841_v49  ;;  %v18285_v11 = vld [vmem:[#allocation3 + $0x984] sm:$0xf] }
 0x35e   :  { %v1831_v0 = vpop.f32.mrf.mxu3  ;;  %v15025_v49 = vld [vmem:[#allocation3 + $0x9c0] sm:$0xf0] }
 0x35f   :  { %v19821_v46 = vadd.f32 %v1831_v0, %v1427_v44  ;;  %v14695_v44 = vld [vmem:[#allocation3 + $0x718] sm:$0xf]  ;;  %v14932_v0 = vor.u32 %v18259_v29, %v14929_v25  ;;  %v15028_v25 = vor.u32 %v18285_v11, %v15025_v49 }
 0x360   :  { %v3239_v63 = vpop.f32.mrf.mxu0  ;;  %v3528_v17 = vpop.f32.mrf.mxu1  ;;  %2775 = vmatpush.bf16.msrb.mxu3 %v14272_v30  ;;  %4394 = vmatpush.bf16.msra.mxu0 %v14828_v58  ;;  %v14696_v10 = vor.u32 %v18216_v38, %v14695_v44  ;;  %v14463_v38 = vld [vmem:[#allocation3 + $0x590] sm:$0xf] }
 0x361   :  { %v19826_v34 = vadd.f32 %v3528_v17, %v19746_v62  ;;  %14663 = vmatmul.msk.bf16.vlgmr.msrb.gmra.mxu2 %vm1042_vm2, %v19661_v54  ;;  %v18256_v62 = vld [vmem:[#allocation3 + $0x89c] sm:$0xf]  ;;  %v14447_v63 = vld [vmem:[#allocation3 + $0x580] sm:$0xf] }
 0x362   :  { %3959 = vmatpush.bf16.msrb.mxu2 %v14744_v56  ;;  %v14908_v23 = vor.u32 %v18256_v62, %v14905_v37 }
 0x363   :  { %14942 = vmatmul.msk.bf16.vlgmr.msrb.gmra.mxu1 %vm1042_vm2, %v19823_v26 }
 0x364   :  { %v2803_v39 = vpop.f32.mrf.mxu2  ;;  %4471 = vmatpush.bf16.msrb.mxu1 %v14916_v57 }
 0x365   :  { %v19833_v31 = vadd.f32 %v2803_v39, %v19753_v16  ;;  %v14759_v16 = vld [vmem:[#allocation3 + $0x798] sm:$0xf] }
 0x366   :  { %v1833_v15 = vpop.f32.mrf.mxu3  ;;  %3960 = vmatpush.bf16.msrb.mxu2 %v14680_v12  ;;  %v14760_v30 = vor.u32 %v18232_v55, %v14759_v16 }
 0x367   :  { %v18149_v15 = vld [vmem:[#allocation3 + $0x53c] sm:$0xf0] }
 0x368   :  { %v3289_v35 = vpop.f32.mrf.mxu0  ;;  %v3530_v2 = vpop.f32.mrf.mxu1  ;;  %4472 = vmatpush.bf16.msrb.mxu1 %v14852_v48  ;;  %v14448_v48 = vor.u32 %v18165_v42, %v14447_v63 }
 0x369   :  { %v19836_v28 = vadd.f32 %v3289_v35, %v19756_v21  ;;  %v1479_v21 = vadd.f32 %v19762_v18, %v19536_v24  ;;  %v18243_v24 = vld [vmem:[#allocation3 + $0x834] sm:$0xf]  ;;  %v18242_v35 = vld [vmem:[#allocation3 + $0x82c] sm:$0xf] }
 0x36a   :  { %v14865_v18 = vld [vmem:[#allocation3 + $0x870] sm:$0xf0]  ;;  %v14857_v2 = vld [vmem:[#allocation3 + $0x868] sm:$0xf0] }
 0x36b   :  { %14369 = vmatmul.msk.bf16.vlgmr.msra.gmra.mxu3 %vm1042_vm2, %v19516_v53  ;;  %14812 = vmatmul.msk.bf16.vlgmr.msrb.gmra.mxu0 %vm1042_vm2, %v19743_v51  ;;  %v14868_v17 = vor.u32 %v18243_v24, %v14865_v18  ;;  %v14860_v33 = vor.u32 %v18242_v35, %v14857_v2  ;;  %v14937_v24 = vld [vmem:[#allocation3 + $0x8f8] sm:$0xf0]  ;;  %v15041_v35 = vld [vmem:[#allocation3 + $0x9d0] sm:$0xf0] }
 0x36c   :  { %v2805_v59 = vpop.f32.mrf.mxu2  ;;  %2826 = vmatpush.bf16.msra.mxu3 %v14352_v22  ;;  %4445 = vmatpush.bf16.msrb.mxu0 %v14908_v23  ;;  %v18234_v22 = vld [vmem:[#allocation3 + $0x7e4] sm:$0xf0]  ;;  %v14384_v23 = vor.u32 %v18149_v15, %v14383_v36  ;;  %v18287_v15 = vld [vmem:[#allocation3 + $0x994] sm:$0xf] }
 0x36e   :  { %v1883_v20 = vpop.f32.mrf.mxu3 }
 0x36f   :  { %v19844_v58 = vadd.f32 %v1883_v20, %v1479_v21 }
 0x370   :  { %v3291_v7 = vpop.f32.mrf.mxu0  ;;  %v3580_v47 = vpop.f32.mrf.mxu1  ;;  %2827 = vmatpush.bf16.msra.mxu3 %v14288_v60  ;;  %4446 = vmatpush.bf16.msrb.mxu0 %v14844_v1  ;;  %v14711_v60 = vld [vmem:[#allocation3 + $0x728] sm:$0xf] }
 0x371   :  { %v19847_v56 = vadd.f32 %v3580_v47, %v19765_v41  ;;  %14667 = vmatmul.msk.bf16.vlgmr.msra.gmra.mxu2 %vm1042_vm2, %v19661_v54  ;;  %v18258_v41 = vld [vmem:[#allocation3 + $0x8ac] sm:$0xf]  ;;  %v18218_v1 = vld [vmem:[#allocation3 + $0x764] sm:$0xf0] }
 0x372   :  { %4011 = vmatpush.bf16.msra.mxu2 %v14760_v30  ;;  %v14924_v62 = vor.u32 %v18258_v41, %v14921_v32  ;;  %v14712_v30 = vor.u32 %v18218_v1, %v14711_v60  ;;  %v18151_v32 = vld [vmem:[#allocation3 + $0x54c] sm:$0xf0] }
 0x373   :  { %14946 = vmatmul.msk.bf16.vlgmr.msra.gmra.mxu1 %vm1042_vm2, %v19823_v26 }
 0x374   :  { %v2855_v14 = vpop.f32.mrf.mxu2  ;;  %4523 = vmatpush.bf16.msra.mxu1 %v14932_v0  ;;  %v18167_v0 = vld [vmem:[#allocation3 + $0x5cc] sm:$0xf0] }
 0x375   :  { %v19854_v57 = vadd.f32 %v2855_v14, %v19772_v19  ;;  %v14775_v19 = vld [vmem:[#allocation3 + $0x7a8] sm:$0xf]  ;;  %v14464_v63 = vor.u32 %v18167_v0, %v14463_v38  ;;  %v18153_v0 = vld [vmem:[#allocation3 + $0x55c] sm:$0xf0] }
 0x376   :  { %v1885_v12 = vpop.f32.mrf.mxu3  ;;  %4012 = vmatpush.bf16.msra.mxu2 %v14696_v10  ;;  %v14776_v55 = vor.u32 %v18234_v22, %v14775_v19 }
 0x377   :  { %v18244_v12 = vld [vmem:[#allocation3 + $0x83c] sm:$0xf] }
 0x378   :  { %v3554_v39 = vpop.f32.mrf.mxu0  ;;  %v3582_v5 = vpop.f32.mrf.mxu1  ;;  %4524 = vmatpush.bf16.msra.mxu1 %v14868_v17  ;;  %v14399_v17 = vld [vmem:[#allocation3 + $0x510] sm:$0xf] }
 0x379   :  { %v19857_v37 = vadd.f32 %v3554_v39, %v19775_v61  ;;  %v1531_v61 = vadd.f32 %v19781_v4, %v19608_v13  ;;  %v18269_v13 = vld [vmem:[#allocation3 + $0x904] sm:$0xf]  ;;  %v14873_v39 = vld [vmem:[#allocation3 + $0x878] sm:$0xf0]  ;;  %v18236_v5 = vld [vmem:[#allocation3 + $0x7f4] sm:$0xf0]  ;;  %v14400_v36 = vor.u32 %v18151_v32, %v14399_v17 }
 0x37a   :  { %v14961_v4 = vld [vmem:[#allocation3 + $0x940] sm:$0xf0] }
 0x37b   :  { %14373 = vmatmul.msk.bf16.vlgmr.msrb.gmra.mxu3 %vm1042_vm2, %v19516_v53  ;;  %14944 = vmatmul.msk.bf16.vlgmr.msra.gmra.mxu0 %vm1042_vm2, %v19823_v26  ;;  %v14964_v7 = vor.u32 %v18269_v13, %v14961_v4  ;;  %v18289_v17 = vld [vmem:[#allocation3 + $0x9a4] sm:$0xf] }
 0x37c   :  { %v2857_v43 = vpop.f32.mrf.mxu2  ;;  %3091 = vmatpush.bf16.msrb.mxu3 %v14448_v48  ;;  %4497 = vmatpush.bf16.msra.mxu0 %v14924_v62  ;;  %v14876_v62 = vor.u32 %v18244_v12, %v14873_v39 }
 0x37d   :  { %v18220_v43 = vld [vmem:[#allocation3 + $0x774] sm:$0xf0] }
 0x37e   :  { %v1935_v16 = vpop.f32.mrf.mxu3 }
 0x37f   :  { %v19865_v59 = vadd.f32 %v1935_v16, %v1531_v61  ;;  %v15044_v61 = vor.u32 %v18287_v15, %v15041_v35  ;;  %v18273_v35 = vld [vmem:[#allocation3 + $0x924] sm:$0xf] }
 0x380   :  { %v3556_v21 = vpop.f32.mrf.mxu0  ;;  %v3632_v29 = vpop.f32.mrf.mxu1  ;;  %3092 = vmatpush.bf16.msrb.mxu3 %v14384_v23  ;;  %4498 = vmatpush.bf16.msra.mxu0 %v14860_v33 }
 0x381   :  { %v19868_v20 = vadd.f32 %v3632_v29, %v19784_v40  ;;  %14799 = vmatmul.msk.bf16.vlgmr.msrb.gmra.mxu2 %vm1042_vm2, %v19743_v51  ;;  %v18260_v40 = vld [vmem:[#allocation3 + $0x8bc] sm:$0xf]  ;;  %v18169_v21 = vld [vmem:[#allocation3 + $0x5dc] sm:$0xf0]  ;;  %v15033_v29 = vld [vmem:[#allocation3 + $0x9c8] sm:$0xf0] }
 0x382   :  { %4063 = vmatpush.bf16.msrb.mxu2 %v14776_v55  ;;  %v14940_v42 = vor.u32 %v18260_v40, %v14937_v24  ;;  %v14479_v55 = vld [vmem:[#allocation3 + $0x5a0] sm:$0xf]  ;;  %v18270_v40 = vld [vmem:[#allocation3 + $0x90c] sm:$0xf] }
 0x383   :  { %14950 = vmatmul.msk.bf16.vlgmr.msrb.gmra.mxu1 %vm1042_vm2, %v19823_v26  ;;  %v14969_v24 = vld [vmem:[#allocation3 + $0x948] sm:$0xf0] }
 0x384   :  { %v3120_v44 = vpop.f32.mrf.mxu2  ;;  %4788 = vmatpush.bf16.msrb.mxu1 %v15028_v25 }
 0x385   :  { %v19875_v47 = vadd.f32 %v3120_v44, %v19791_v52  ;;  %v14791_v52 = vld [vmem:[#allocation3 + $0x7b8] sm:$0xf]  ;;  %v14415_v44 = vld [vmem:[#allocation3 + $0x520] sm:$0xf] }
 0x386   :  { %v1937_v18 = vpop.f32.mrf.mxu3  ;;  %4064 = vmatpush.bf16.msrb.mxu2 %v14712_v30  ;;  %v14792_v19 = vor.u32 %v18236_v5, %v14791_v52  ;;  %v14480_v30 = vor.u32 %v18169_v21, %v14479_v55  ;;  %v14823_v52 = vld [vmem:[#allocation3 + $0x808] sm:$0xf]  ;;  %v14431_v55 = vld [vmem:[#allocation3 + $0x530] sm:$0xf] }
 0x387   :  { %v18262_v18 = vld [vmem:[#allocation3 + $0x8c4] sm:$0xf0] }
 0x388   :  { %v3606_v10 = vpop.f32.mrf.mxu0  ;;  %v3634_v14 = vpop.f32.mrf.mxu1  ;;  %4789 = vmatpush.bf16.msrb.mxu1 %v14964_v7  ;;  %v18246_v5 = vld [vmem:[#allocation3 + $0x844] sm:$0xf0] }
 0x389   :  { %v19878_v41 = vadd.f32 %v3606_v10, %v19794_v45  ;;  %v1583_v45 = vadd.f32 %v19800_v3, %v19683_v6  ;;  %v18271_v6 = vld [vmem:[#allocation3 + $0x914] sm:$0xf]  ;;  %v14416_v14 = vor.u32 %v18153_v0, %v14415_v44 }
 0x38a   :  { %v14977_v3 = vld [vmem:[#allocation3 + $0x950] sm:$0xf0] }
 0x38b   :  { %14377 = vmatmul.msk.bf16.vlgmr.msra.gmra.mxu3 %vm1042_vm2, %v19516_v53  ;;  %14948 = vmatmul.msk.bf16.vlgmr.msrb.gmra.mxu0 %vm1042_vm2, %v19823_v26  ;;  %v14727_v53 = vld [vmem:[#allocation3 + $0x738] sm:$0xf]  ;;  %v14980_v60 = vor.u32 %v18271_v6, %v14977_v3  ;;  %v15073_v0 = vld [vmem:[#allocation3 + $0x9f0] sm:$0xf0] }
 0x38c   :  { %v3122_v48 = vpop.f32.mrf.mxu2  ;;  %3143 = vmatpush.bf16.msra.mxu3 %v14464_v63  ;;  %4549 = vmatpush.bf16.msrb.mxu0 %v14940_v42  ;;  %v14728_v49 = vor.u32 %v18220_v43, %v14727_v53  ;;  %v14972_v63 = vor.u32 %v18270_v40, %v14969_v24  ;;  %v15057_v42 = vld [vmem:[#allocation3 + $0x9e0] sm:$0xf0]  ;;  %v14495_v53 = vld [vmem:[#allocation3 + $0x5b0] sm:$0xf] }
 0x38e   :  { %v1987_v2 = vpop.f32.mrf.mxu3 }
 0x38f   :  { %v19886_v22 = vadd.f32 %v1987_v2, %v1583_v45  ;;  %v14993_v2 = vld [vmem:[#allocation3 + $0x960] sm:$0xf0] }
 0x390   :  { %v3608_v23 = vpop.f32.mrf.mxu0  ;;  %v3684_v33 = vpop.f32.mrf.mxu1  ;;  %3144 = vmatpush.bf16.msra.mxu3 %v14400_v36  ;;  %4550 = vmatpush.bf16.msrb.mxu0 %v14876_v62  ;;  %v15060_v62 = vor.u32 %v18289_v17, %v15057_v42  ;;  %v14996_v43 = vor.u32 %v18273_v35, %v14993_v2  ;;  %v18275_v42 = vld [vmem:[#allocation3 + $0x934] sm:$0xf] }
 0x391   :  { %v19889_v11 = vadd.f32 %v3684_v33, %v19803_v27  ;;  %14803 = vmatmul.msk.bf16.vlgmr.msra.gmra.mxu2 %vm1042_vm2, %v19743_v51  ;;  %v18286_v27 = vld [vmem:[#allocation3 + $0x98c] sm:$0xf]  ;;  %v18171_v33 = vld [vmem:[#allocation3 + $0x5ec] sm:$0xf0] }
 0x392   :  { %4115 = vmatpush.bf16.msra.mxu2 %v14792_v19  ;;  %v15036_v38 = vor.u32 %v18286_v27, %v15033_v29  ;;  %v18155_v27 = vld [vmem:[#allocation3 + $0x56c] sm:$0xf0]  ;;  %v18272_v29 = vld [vmem:[#allocation3 + $0x91c] sm:$0xf] }
 0x393   :  { %14954 = vmatmul.msk.bf16.vlgmr.msra.gmra.mxu1 %vm1042_vm2, %v19823_v26 }
 0x394   :  { %v3172_v16 = vpop.f32.mrf.mxu2  ;;  %4840 = vmatpush.bf16.msra.mxu1 %v15044_v61  ;;  %v15049_v61 = vld [vmem:[#allocation3 + $0x9d8] sm:$0xf0] }
 0x395   :  { %v19896_v1 = vadd.f32 %v3172_v16, %v19810_v9  ;;  %v14887_v9 = vld [vmem:[#allocation3 + $0x888] sm:$0xf]  ;;  %v14496_v16 = vor.u32 %v18171_v33, %v14495_v53  ;;  %v18181_v33 = vld [vmem:[#allocation3 + $0x63c] sm:$0xf0] }
 0x396   :  { %v1989_v25 = vpop.f32.mrf.mxu3  ;;  %4116 = vmatpush.bf16.msra.mxu2 %v14728_v49  ;;  %v14888_v12 = vor.u32 %v18262_v18, %v14887_v9  ;;  %v14839_v9 = vld [vmem:[#allocation3 + $0x818] sm:$0xf] }
 0x397   :  { %v14985_v25 = vld [vmem:[#allocation3 + $0x958] sm:$0xf0]  ;;  %v18248_v18 = vld [vmem:[#allocation3 + $0x854] sm:$0xf0] }
 0x398   :  { %v3658_v13 = vpop.f32.mrf.mxu0  ;;  %v3686_v4 = vpop.f32.mrf.mxu1  ;;  %4841 = vmatpush.bf16.msra.mxu1 %v14980_v60  ;;  %v14988_v44 = vor.u32 %v18272_v29, %v14985_v25  ;;  %v14855_v25 = vld [vmem:[#allocation3 + $0x828] sm:$0xf] }
 0x399   :  { %v19899_v7 = vadd.f32 %v3658_v13, %v19813_v8  ;;  %v4572_v8 = vld [vmem:[#allocation2 + $0x48] sm:$0xff] }
 0x39a   :  { %v19908_v45 = vpack.c.bf16 %v4572_v8, %v4572_v8  ;;  %v18264_v13 = vld [vmem:[#allocation3 + $0x8d4] sm:$0xf0]  ;;  %v15009_v8 = vld [vmem:[#allocation3 + $0x970] sm:$0xf0] }
 0x39b   :  { %14509 = vmatmul.msk.bf16.vlgmr.msrb.gmra.mxu3 %vm1042_vm2, %v19587_v50  ;;  %14952 = vmatmul.msk.bf16.vlgmr.msra.gmra.mxu0 %vm1042_vm2, %v19823_v26 }
 0x39c   :  { %v3174_v10 = vpop.f32.mrf.mxu2  ;;  %3195 = vmatpush.bf16.msrb.mxu3 %v14480_v30  ;;  %4814 = vmatpush.bf16.msra.mxu0 %v15036_v38  ;;  %v14432_v30 = vor.u32 %v18155_v27, %v14431_v55  ;;  %v18291_v38 = vld [vmem:[#allocation3 + $0x9b4] sm:$0xf]  ;;  %v18317_v55 = vld [vmem:[#allocation3 + $0xa84] sm:$0xf] }
 0x39e   :  { %v2252_v32 = vpop.f32.mrf.mxu3 }
 0x39f   :  { %v19906_v39 = vadd.f32 %v2252_v32, %v19821_v46  ;;  %v14824_v46 = vor.u32 %v18246_v5, %v14823_v52  ;;  %v14840_v32 = vor.u32 %v18248_v18, %v14839_v9  ;;  %v15012_v52 = vor.u32 %v18275_v42, %v15009_v8 }
 0x3a0   :  { %v3660_v48 = vpop.f32.mrf.mxu0  ;;  %v3949_v36 = vpop.f32.mrf.mxu1  ;;  %3196 = vmatpush.bf16.msrb.mxu3 %v14416_v14  ;;  %4815 = vmatpush.bf16.msra.mxu0 %v14972_v63  ;;  %v15076_v63 = vor.u32 %v18291_v38, %v15073_v0  ;;  %v18301_v38 = vld [vmem:[#allocation3 + $0xa04] sm:$0xf] }
 0x3a1   :  { %v19911_v15 = vadd.f32 %v3949_v36, %v19826_v34  ;;  %14807 = vmatmul.msk.bf16.vlgmr.msrb.gmra.mxu2 %vm1042_vm2, %v19743_v51  ;;  %v18288_v34 = vld [vmem:[#allocation3 + $0x99c] sm:$0xf]  ;;  %v18197_v48 = vld [vmem:[#allocation3 + $0x6bc] sm:$0xf0]  ;;  %v15065_v36 = vld [vmem:[#allocation3 + $0x9e8] sm:$0xf0] }
 0x3a2   :  { %4380 = vmatpush.bf16.msrb.mxu2 %v14888_v12  ;;  %v15052_v60 = vor.u32 %v18288_v34, %v15049_v61  ;;  %v14591_v12 = vld [vmem:[#allocation3 + $0x680] sm:$0xf]  ;;  %v18274_v34 = vld [vmem:[#allocation3 + $0x92c] sm:$0xf]  ;;  %v15105_v0 = vld [vmem:[#allocation3 + $0xa40] sm:$0xf0] }
 0x3a3   :  { %15086 = vmatmul.msk.bf16.vlgmr.msrb.gmra.mxu1 %vm1042_vm2, %v19908_v45  ;;  %v15001_v61 = vld [vmem:[#allocation3 + $0x968] sm:$0xf0]  ;;  %v15108_v9 = vor.u32 %v18301_v38, %v15105_v0 }
 0x3a4   :  { %v3224_v19 = vpop.f32.mrf.mxu2  ;;  %4892 = vmatpush.bf16.msrb.mxu1 %v15060_v62 }
 0x3a5   :  { %v19918_v23 = vadd.f32 %v3224_v19, %v19833_v31  ;;  %v14903_v31 = vld [vmem:[#allocation3 + $0x898] sm:$0xf]  ;;  %v14527_v19 = vld [vmem:[#allocation3 + $0x600] sm:$0xf] }
 0x3a6   :  { %v2254_v6 = vpop.f32.mrf.mxu3  ;;  %4381 = vmatpush.bf16.msrb.mxu2 %v14824_v46  ;;  %v14904_v40 = vor.u32 %v18264_v13, %v14903_v31  ;;  %v14592_v46 = vor.u32 %v18197_v48, %v14591_v12  ;;  %v18250_v31 = vld [vmem:[#allocation3 + $0x864] sm:$0xf0]  ;;  %v18183_v48 = vld [vmem:[#allocation3 + $0x64c] sm:$0xf0] }
 0x3a7   :  { %v18266_v6 = vld [vmem:[#allocation3 + $0x8e4] sm:$0xf0] }
 0x3a8   :  { %v3710_v3 = vpop.f32.mrf.mxu0  ;;  %v3951_v49 = vpop.f32.mrf.mxu1  ;;  %4893 = vmatpush.bf16.msrb.mxu1 %v14996_v43 }
 0x3a9   :  { %v19921_v21 = vadd.f32 %v3710_v3, %v19836_v28  ;;  %v14528_v49 = vor.u32 %v18181_v33, %v14527_v19  ;;  %v18319_v19 = vld [vmem:[#allocation3 + $0xa94] sm:$0xf] }
 0x3ab   :  { %14513 = vmatmul.msk.bf16.vlgmr.msra.gmra.mxu3 %vm1042_vm2, %v19587_v50  ;;  %14956 = vmatmul.msk.bf16.vlgmr.msrb.gmra.mxu0 %vm1042_vm2, %v19823_v26 }
 0x3ac   :  { %v3226_v4 = vpop.f32.mrf.mxu2  ;;  %3247 = vmatpush.bf16.msra.mxu3 %v14496_v16  ;;  %4866 = vmatpush.bf16.msrb.mxu0 %v15052_v60  ;;  %v15004_v16 = vor.u32 %v18274_v34, %v15001_v61  ;;  %v15169_v60 = vld [vmem:[#allocation3 + $0xac0] sm:$0xf0]  ;;  %v14871_v61 = vld [vmem:[#allocation3 + $0x838] sm:$0xf] }
 0x3ae   :  { %v2304_v28 = vpop.f32.mrf.mxu3 }
 0x3af   :  { %v19928_v24 = vadd.f32 %v2304_v28, %v19844_v58  ;;  %v14856_v28 = vor.u32 %v18250_v31, %v14855_v25  ;;  %v18201_v31 = vld [vmem:[#allocation3 + $0x6dc] sm:$0xf0] }
 0x3b0   :  { %v3712_v10 = vpop.f32.mrf.mxu0  ;;  %v4001_v14 = vpop.f32.mrf.mxu1  ;;  %3248 = vmatpush.bf16.msra.mxu3 %v14432_v30  ;;  %4867 = vmatpush.bf16.msrb.mxu0 %v14988_v44  ;;  %v15172_v30 = vor.u32 %v18317_v55, %v15169_v60  ;;  %v15121_v55 = vld [vmem:[#allocation3 + $0xa50] sm:$0xf0] }
 0x3b1   :  { %v19931_v17 = vadd.f32 %v4001_v14, %v19847_v56  ;;  %14811 = vmatmul.msk.bf16.vlgmr.msra.gmra.mxu2 %vm1042_vm2, %v19743_v51  ;;  %v18290_v56 = vld [vmem:[#allocation3 + $0x9ac] sm:$0xf]  ;;  %v18199_v10 = vld [vmem:[#allocation3 + $0x6cc] sm:$0xf0]  ;;  %v15081_v14 = vld [vmem:[#allocation3 + $0x9f8] sm:$0xf0] }
 0x3b2   :  { %4432 = vmatpush.bf16.msra.mxu2 %v14904_v40  ;;  %v15068_v53 = vor.u32 %v18290_v56, %v15065_v36  ;;  %v14607_v40 = vld [vmem:[#allocation3 + $0x690] sm:$0xf]  ;;  %v18276_v56 = vld [vmem:[#allocation3 + $0x93c] sm:$0xf] }
 0x3b3   :  { %15090 = vmatmul.msk.bf16.vlgmr.msra.gmra.mxu1 %vm1042_vm2, %v19908_v45  ;;  %v15017_v36 = vld [vmem:[#allocation3 + $0x978] sm:$0xf0] }
 0x3b4   :  { %v3276_v58 = vpop.f32.mrf.mxu2  ;;  %4944 = vmatpush.bf16.msra.mxu1 %v15076_v63 }
 0x3b5   :  { %v19938_v5 = vadd.f32 %v3276_v58, %v19854_v57  ;;  %v14919_v57 = vld [vmem:[#allocation3 + $0x8a8] sm:$0xf]  ;;  %v14543_v58 = vld [vmem:[#allocation3 + $0x610] sm:$0xf] }
 0x3b6   :  { %v2306_v62 = vpop.f32.mrf.mxu3  ;;  %4433 = vmatpush.bf16.msra.mxu2 %v14840_v32  ;;  %v14920_v27 = vor.u32 %v18266_v6, %v14919_v57  ;;  %v14608_v32 = vor.u32 %v18199_v10, %v14607_v40  ;;  %v18252_v57 = vld [vmem:[#allocation3 + $0x874] sm:$0xf0]  ;;  %v18302_v10 = vld [vmem:[#allocation3 + $0xa0c] sm:$0xf] }
 0x3b7   :  { %v18268_v62 = vld [vmem:[#allocation3 + $0x8f4] sm:$0xf0]  ;;  %v14872_v60 = vor.u32 %v18252_v57, %v14871_v61  ;;  %v14639_v61 = vld [vmem:[#allocation3 + $0x6b0] sm:$0xf] }
 0x3b8   :  { %v3975_v35 = vpop.f32.mrf.mxu0  ;;  %v4003_v2 = vpop.f32.mrf.mxu1  ;;  %4945 = vmatpush.bf16.msra.mxu1 %v15012_v52 }
 0x3b9   :  { %v19941_v43 = vadd.f32 %v3975_v35, %v19857_v37  ;;  %v14544_v2 = vor.u32 %v18183_v48, %v14543_v58  ;;  %v15201_v58 = vld [vmem:[#allocation3 + $0xae0] sm:$0xf0] }
 0x3bb   :  { %14517 = vmatmul.msk.bf16.vlgmr.msrb.gmra.mxu3 %vm1042_vm2, %v19587_v50  ;;  %15088 = vmatmul.msk.bf16.vlgmr.msra.gmra.mxu0 %vm1042_vm2, %v19908_v45 }
 0x3bc   :  { %v3278_v3 = vpop.f32.mrf.mxu2  ;;  %3512 = vmatpush.bf16.msrb.mxu3 %v14592_v46  ;;  %4918 = vmatpush.bf16.msra.mxu0 %v15068_v53  ;;  %v15020_v46 = vor.u32 %v18276_v56, %v15017_v36  ;;  %v15185_v53 = vld [vmem:[#allocation3 + $0xad0] sm:$0xf0]  ;;  %v14967_v36 = vld [vmem:[#allocation3 + $0x908] sm:$0xf] }
 0x3bd   :  { %v15188_v3 = vor.u32 %v18319_v19, %v15185_v53  ;;  %v18305_v53 = vld [vmem:[#allocation3 + $0xa24] sm:$0xf] }
 0x3be   :  { %v2356_v37 = vpop.f32.mrf.mxu3 }
 0x3bf   :  { %v19948_v29 = vadd.f32 %v2356_v37, %v19865_v59  ;;  %v14623_v37 = vld [vmem:[#allocation3 + $0x6a0] sm:$0xf] }
 0x3c0   :  { %v3977_v13 = vpop.f32.mrf.mxu0  ;;  %v4053_v4 = vpop.f32.mrf.mxu1  ;;  %3513 = vmatpush.bf16.msrb.mxu3 %v14528_v49  ;;  %4919 = vmatpush.bf16.msra.mxu0 %v15004_v16  ;;  %v18303_v16 = vld [vmem:[#allocation3 + $0xa14] sm:$0xf]  ;;  %v14624_v0 = vor.u32 %v18201_v31, %v14623_v37  ;;  %v14575_v37 = vld [vmem:[#allocation3 + $0x630] sm:$0xf] }
 0x3c1   :  { %v19951_v44 = vadd.f32 %v4053_v4, %v19868_v20  ;;  %14943 = vmatmul.msk.bf16.vlgmr.msrb.gmra.mxu2 %vm1042_vm2, %v19823_v26  ;;  %v18292_v20 = vld [vmem:[#allocation3 + $0x9bc] sm:$0xf]  ;;  %v15177_v13 = vld [vmem:[#allocation3 + $0xac8] sm:$0xf0] }
 0x3c2   :  { %4484 = vmatpush.bf16.msrb.mxu2 %v14920_v27  ;;  %v15084_v12 = vor.u32 %v18292_v20, %v15081_v14  ;;  %v15124_v27 = vor.u32 %v18303_v16, %v15121_v55  ;;  %v15113_v20 = vld [vmem:[#allocation3 + $0xa48] sm:$0xf0]  ;;  %v18294_v14 = vld [vmem:[#allocation3 + $0x9c4] sm:$0xf0] }
 0x3c3   :  { %15094 = vmatmul.msk.bf16.vlgmr.msrb.gmra.mxu1 %vm1042_vm2, %v19908_v45 }
 0x3c4   :  { %v3541_v59 = vpop.f32.mrf.mxu2  ;;  %5209 = vmatpush.bf16.msrb.mxu1 %v15172_v30 }
 0x3c5   :  { %v19958_v18 = vadd.f32 %v3541_v59, %v19875_v47  ;;  %v14935_v47 = vld [vmem:[#allocation3 + $0x8b8] sm:$0xf] }
 0x3c6   :  { %v2358_v63 = vpop.f32.mrf.mxu3  ;;  %4485 = vmatpush.bf16.msrb.mxu2 %v14856_v28  ;;  %v14936_v33 = vor.u32 %v18268_v62, %v14935_v47  ;;  %v14559_v28 = vld [vmem:[#allocation3 + $0x620] sm:$0xf]  ;;  %v18278_v47 = vld [vmem:[#allocation3 + $0x944] sm:$0xf0] }
 0x3c8   :  { %v4027_v42 = vpop.f32.mrf.mxu0  ;;  %v4055_v8 = vpop.f32.mrf.mxu1  ;;  %5210 = vmatpush.bf16.msrb.mxu1 %v15108_v9  ;;  %v18185_v9 = vld [vmem:[#allocation3 + $0x65c] sm:$0xf0] }
 0x3c9   :  { %v19961_v52 = vadd.f32 %v4027_v42, %v19878_v41  ;;  %v14560_v42 = vor.u32 %v18185_v9, %v14559_v28  ;;  %v15116_v8 = vor.u32 %v18302_v10, %v15113_v20  ;;  %v15217_v9 = vld [vmem:[#allocation3 + $0xaf0] sm:$0xf0] }
 0x3cb   :  { %14521 = vmatmul.msk.bf16.vlgmr.msra.gmra.mxu3 %vm1042_vm2, %v19587_v50  ;;  %15092 = vmatmul.msk.bf16.vlgmr.msrb.gmra.mxu0 %vm1042_vm2, %v19908_v45 }
 0x3cc   :  { %v3543_v35 = vpop.f32.mrf.mxu2  ;;  %3564 = vmatpush.bf16.msra.mxu3 %v14608_v32  ;;  %4970 = vmatpush.bf16.msrb.mxu0 %v15084_v12  ;;  %v18321_v32 = vld [vmem:[#allocation3 + $0xaa4] sm:$0xf] }
 0x3ce   :  { %v2408_v41 = vpop.f32.mrf.mxu3 }
 0x3cf   :  { %v19968_v34 = vadd.f32 %v2408_v41, %v19886_v22  ;;  %v15137_v41 = vld [vmem:[#allocation3 + $0xa60] sm:$0xf0] }
 0x3d0   :  { %v4029_v50 = vpop.f32.mrf.mxu0  ;;  %v4105_v6 = vpop.f32.mrf.mxu1  ;;  %3565 = vmatpush.bf16.msra.mxu3 %v14544_v2  ;;  %4971 = vmatpush.bf16.msrb.mxu0 %v15020_v46  ;;  %v15204_v2 = vor.u32 %v18321_v32, %v15201_v58  ;;  %v15140_v57 = vor.u32 %v18305_v53, %v15137_v41  ;;  %v18307_v58 = vld [vmem:[#allocation3 + $0xa34] sm:$0xf] }
 0x3d1   :  { %v19971_v49 = vadd.f32 %v4105_v6, %v19889_v11  ;;  %14947 = vmatmul.msk.bf16.vlgmr.msra.gmra.mxu2 %vm1042_vm2, %v19823_v26  ;;  %v18318_v11 = vld [vmem:[#allocation3 + $0xa8c] sm:$0xf]  ;;  %v18203_v6 = vld [vmem:[#allocation3 + $0x6ec] sm:$0xf0] }
 0x3d2   :  { %4536 = vmatpush.bf16.msra.mxu2 %v14936_v33  ;;  %v15180_v59 = vor.u32 %v18318_v11, %v15177_v13  ;;  %v18187_v11 = vld [vmem:[#allocation3 + $0x66c] sm:$0xf0]  ;;  %v18304_v13 = vld [vmem:[#allocation3 + $0xa1c] sm:$0xf] }
 0x3d3   :  { %15098 = vmatmul.msk.bf16.vlgmr.msra.gmra.mxu1 %vm1042_vm2, %v19908_v45 }
 0x3d4   :  { %v3593_v22 = vpop.f32.mrf.mxu2  ;;  %5261 = vmatpush.bf16.msra.mxu1 %v15188_v3  ;;  %v15193_v3 = vld [vmem:[#allocation3 + $0xad8] sm:$0xf0] }
 0x3d5   :  { %v19978_v25 = vadd.f32 %v3593_v22, %v19896_v1  ;;  %v15031_v1 = vld [vmem:[#allocation3 + $0x988] sm:$0xf]  ;;  %v14640_v22 = vor.u32 %v18203_v6, %v14639_v61  ;;  %v18213_v6 = vld [vmem:[#allocation3 + $0x73c] sm:$0xf0] }
 0x3d6   :  { %v2410_v4 = vpop.f32.mrf.mxu3  ;;  %4537 = vmatpush.bf16.msra.mxu2 %v14872_v60  ;;  %v15032_v48 = vor.u32 %v18294_v14, %v15031_v1  ;;  %v14983_v1 = vld [vmem:[#allocation3 + $0x918] sm:$0xf] }
 0x3d7   :  { %v15129_v4 = vld [vmem:[#allocation3 + $0xa58] sm:$0xf0]  ;;  %v18280_v14 = vld [vmem:[#allocation3 + $0x954] sm:$0xf0] }
 0x3d8   :  { %v4079_v30 = vpop.f32.mrf.mxu0  ;;  %v4107_v38 = vpop.f32.mrf.mxu1  ;;  %5262 = vmatpush.bf16.msra.mxu1 %v15124_v27  ;;  %v15132_v28 = vor.u32 %v18304_v13, %v15129_v4  ;;  %v14999_v4 = vld [vmem:[#allocation3 + $0x928] sm:$0xf] }
 0x3d9   :  { %v19981_v40 = vadd.f32 %v4079_v30, %v19899_v7  ;;  %v4993_v7 = vld [vmem:[#allocation2 + $0x50] sm:$0xff]  ;;  %v18296_v30 = vld [vmem:[#allocation3 + $0x9d4] sm:$0xf0] }
 0x3da   :  { %v19990_v46 = vpack.c.bf16 %v4993_v7, %v4993_v7  ;;  %v15153_v7 = vld [vmem:[#allocation3 + $0xa70] sm:$0xf0] }
 0x3db   :  { %14653 = vmatmul.msk.bf16.vlgmr.msrb.gmra.mxu3 %vm1042_vm2, %v19661_v54  ;;  %15096 = vmatmul.msk.bf16.vlgmr.msra.gmra.mxu0 %vm1042_vm2, %v19908_v45 }
 0x3dc   :  { %v3595_v63 = vpop.f32.mrf.mxu2  ;;  %3616 = vmatpush.bf16.msrb.mxu3 %v14624_v0  ;;  %5235 = vmatpush.bf16.msra.mxu0 %v15180_v59  ;;  %v14576_v0 = vor.u32 %v18187_v11, %v14575_v37  ;;  %v18323_v59 = vld [vmem:[#allocation3 + $0xab4] sm:$0xf]  ;;  %v18349_v37 = vld [vmem:[#allocation3 + $0xb84] sm:$0xf] }
 0x3de   :  { %v2673_v12 = vpop.f32.mrf.mxu3 }
 0x3df   :  { %v19988_v56 = vadd.f32 %v2673_v12, %v19906_v39  ;;  %v14968_v39 = vor.u32 %v18278_v47, %v14967_v36  ;;  %v14984_v12 = vor.u32 %v18280_v14, %v14983_v1  ;;  %v15156_v36 = vor.u32 %v18307_v58, %v15153_v7 }
 0x3e0   :  { %v4081_v62 = vpop.f32.mrf.mxu0  ;;  %v4370_v35 = vpop.f32.mrf.mxu1  ;;  %3617 = vmatpush.bf16.msrb.mxu3 %v14560_v42  ;;  %5236 = vmatpush.bf16.msra.mxu0 %v15116_v8  ;;  %v15220_v8 = vor.u32 %v18323_v59, %v15217_v9  ;;  %v18333_v59 = vld [vmem:[#allocation3 + $0xb04] sm:$0xf] }
 0x3e1   :  { %v19993_v19 = vadd.f32 %v4370_v35, %v19911_v15  ;;  %14951 = vmatmul.msk.bf16.vlgmr.msrb.gmra.mxu2 %vm1042_vm2, %v19823_v26  ;;  %v18320_v15 = vld [vmem:[#allocation3 + $0xa9c] sm:$0xf]  ;;  %v18229_v62 = vld [vmem:[#allocation3 + $0x7bc] sm:$0xf0]  ;;  %v15209_v35 = vld [vmem:[#allocation3 + $0xae8] sm:$0xf0] }
 0x3e2   :  { %4801 = vmatpush.bf16.msrb.mxu2 %v15032_v48  ;;  %v15196_v27 = vor.u32 %v18320_v15, %v15193_v3  ;;  %v14735_v48 = vld [vmem:[#allocation3 + $0x780] sm:$0xf]  ;;  %v18306_v15 = vld [vmem:[#allocation3 + $0xa2c] sm:$0xf]  ;;  %v15249_v9 = vld [vmem:[#allocation3 + $0xb40] sm:$0xf0] }
 0x3e3   :  { %15230 = vmatmul.msk.bf16.vlgmr.msrb.gmra.mxu1 %vm1042_vm2, %v19990_v46  ;;  %v15145_v3 = vld [vmem:[#allocation3 + $0xa68] sm:$0xf0]  ;;  %v15252_v1 = vor.u32 %v18333_v59, %v15249_v9 }
 0x3e4   :  { %v3645_v33 = vpop.f32.mrf.mxu2  ;;  %5313 = vmatpush.bf16.msrb.mxu1 %v15204_v2 }
 0x3e5   :  { %v20000_v50 = vadd.f32 %v3645_v33, %v19918_v23  ;;  %v15047_v23 = vld [vmem:[#allocation3 + $0x998] sm:$0xf]  ;;  %v14671_v33 = vld [vmem:[#allocation3 + $0x700] sm:$0xf] }
 0x3e6   :  { %v2675_v16 = vpop.f32.mrf.mxu3  ;;  %4802 = vmatpush.bf16.msrb.mxu2 %v14968_v39  ;;  %v15048_v10 = vor.u32 %v18296_v30, %v15047_v23  ;;  %v14736_v39 = vor.u32 %v18229_v62, %v14735_v48  ;;  %v18282_v23 = vld [vmem:[#allocation3 + $0x964] sm:$0xf0]  ;;  %v18215_v62 = vld [vmem:[#allocation3 + $0x74c] sm:$0xf0] }
 0x3e7   :  { %v18298_v16 = vld [vmem:[#allocation3 + $0x9e4] sm:$0xf0] }
 0x3e8   :  { %v4131_v55 = vpop.f32.mrf.mxu0  ;;  %v4372_v60 = vpop.f32.mrf.mxu1  ;;  %5314 = vmatpush.bf16.msrb.mxu1 %v15140_v57 }
 0x3e9   :  { %v20003_v31 = vadd.f32 %v4131_v55, %v19921_v21  ;;  %v14672_v60 = vor.u32 %v18213_v6, %v14671_v33  ;;  %v18351_v33 = vld [vmem:[#allocation3 + $0xb94] sm:$0xf] }
 0x3eb   :  { %14657 = vmatmul.msk.bf16.vlgmr.msra.gmra.mxu3 %vm1042_vm2, %v19661_v54  ;;  %15100 = vmatmul.msk.bf16.vlgmr.msrb.gmra.mxu0 %vm1042_vm2, %v19908_v45 }
 0x3ec   :  { %v3647_v38 = vpop.f32.mrf.mxu2  ;;  %3668 = vmatpush.bf16.msra.mxu3 %v14640_v22  ;;  %5287 = vmatpush.bf16.msrb.mxu0 %v15196_v27  ;;  %v15148_v22 = vor.u32 %v18306_v15, %v15145_v3  ;;  %v15313_v27 = vld [vmem:[#allocation3 + $0xbc0] sm:$0xf0]  ;;  %v15015_v3 = vld [vmem:[#allocation3 + $0x938] sm:$0xf] }
 0x3ee   :  { %v2725_v21 = vpop.f32.mrf.mxu3 }
 0x3ef   :  { %v20010_v20 = vadd.f32 %v2725_v21, %v19928_v24  ;;  %v15000_v21 = vor.u32 %v18282_v23, %v14999_v4  ;;  %v18233_v23 = vld [vmem:[#allocation3 + $0x7dc] sm:$0xf0] }
 0x3f0   :  { %v4133_v63 = vpop.f32.mrf.mxu0  ;;  %v4422_v42 = vpop.f32.mrf.mxu1  ;;  %3669 = vmatpush.bf16.msra.mxu3 %v14576_v0  ;;  %5288 = vmatpush.bf16.msrb.mxu0 %v15132_v28  ;;  %v15316_v0 = vor.u32 %v18349_v37, %v15313_v27  ;;  %v15265_v37 = vld [vmem:[#allocation3 + $0xb50] sm:$0xf0] }
 0x3f1   :  { %v20013_v32 = vadd.f32 %v4422_v42, %v19931_v17  ;;  %14955 = vmatmul.msk.bf16.vlgmr.msra.gmra.mxu2 %vm1042_vm2, %v19823_v26  ;;  %v18322_v17 = vld [vmem:[#allocation3 + $0xaac] sm:$0xf]  ;;  %v18231_v63 = vld [vmem:[#allocation3 + $0x7cc] sm:$0xf0]  ;;  %v15225_v42 = vld [vmem:[#allocation3 + $0xaf8] sm:$0xf0] }
 0x3f2   :  { %4853 = vmatpush.bf16.msra.mxu2 %v15048_v10  ;;  %v15212_v61 = vor.u32 %v18322_v17, %v15209_v35  ;;  %v14751_v10 = vld [vmem:[#allocation3 + $0x790] sm:$0xf]  ;;  %v18308_v17 = vld [vmem:[#allocation3 + $0xa3c] sm:$0xf] }
 0x3f3   :  { %15234 = vmatmul.msk.bf16.vlgmr.msra.gmra.mxu1 %vm1042_vm2, %v19990_v46  ;;  %v15161_v35 = vld [vmem:[#allocation3 + $0xa78] sm:$0xf0] }
 0x3f4   :  { %v3697_v24 = vpop.f32.mrf.mxu2  ;;  %5365 = vmatpush.bf16.msra.mxu1 %v15220_v8 }
 0x3f5   :  { %v20020_v47 = vadd.f32 %v3697_v24, %v19938_v5  ;;  %v15063_v5 = vld [vmem:[#allocation3 + $0x9a8] sm:$0xf]  ;;  %v14687_v24 = vld [vmem:[#allocation3 + $0x710] sm:$0xf] }
 0x3f6   :  { %v2727_v2 = vpop.f32.mrf.mxu3  ;;  %4854 = vmatpush.bf16.msra.mxu2 %v14984_v12  ;;  %v15064_v11 = vor.u32 %v18298_v16, %v15063_v5  ;;  %v14752_v12 = vor.u32 %v18231_v63, %v14751_v10  ;;  %v18284_v5 = vld [vmem:[#allocation3 + $0x974] sm:$0xf0]  ;;  %v18334_v63 = vld [vmem:[#allocation3 + $0xb0c] sm:$0xf] }
 0x3f7   :  { %v18300_v2 = vld [vmem:[#allocation3 + $0x9f4] sm:$0xf0]  ;;  %v15016_v27 = vor.u32 %v18284_v5, %v15015_v3  ;;  %v14783_v3 = vld [vmem:[#allocation3 + $0x7b0] sm:$0xf] }
 0x3f8   :  { %v4396_v53 = vpop.f32.mrf.mxu0  ;;  %v4424_v41 = vpop.f32.mrf.mxu1  ;;  %5366 = vmatpush.bf16.msra.mxu1 %v15156_v36 }
 0x3f9   :  { %v20023_v57 = vadd.f32 %v4396_v53, %v19941_v43  ;;  %v14688_v41 = vor.u32 %v18215_v62, %v14687_v24  ;;  %v15345_v24 = vld [vmem:[#allocation3 + $0xbe0] sm:$0xf0] }
 0x3fb   :  { %14661 = vmatmul.msk.bf16.vlgmr.msrb.gmra.mxu3 %vm1042_vm2, %v19661_v54  ;;  %15232 = vmatmul.msk.bf16.vlgmr.msra.gmra.mxu0 %vm1042_vm2, %v19990_v46 }
 0x3fc   :  { %v3699_v55 = vpop.f32.mrf.mxu2  ;;  %3933 = vmatpush.bf16.msrb.mxu3 %v14736_v39  ;;  %5339 = vmatpush.bf16.msra.mxu0 %v15212_v61  ;;  %v15164_v39 = vor.u32 %v18308_v17, %v15161_v35  ;;  %v15329_v61 = vld [vmem:[#allocation3 + $0xbd0] sm:$0xf0]  ;;  %v15111_v35 = vld [vmem:[#allocation3 + $0xa08] sm:$0xf] }
 0x3fd   :  { %v15332_v55 = vor.u32 %v18351_v33, %v15329_v61  ;;  %v18337_v61 = vld [vmem:[#allocation3 + $0xb24] sm:$0xf] }
 0x3fe   :  { %v2777_v43 = vpop.f32.mrf.mxu3 }
 0x3ff   :  { %v20030_v13 = vadd.f32 %v2777_v43, %v19948_v29  ;;  %v14767_v43 = vld [vmem:[#allocation3 + $0x7a0] sm:$0xf] }
 0x400   :  { %v4398_v30 = vpop.f32.mrf.mxu0  ;;  %v4474_v38 = vpop.f32.mrf.mxu1  ;;  %3934 = vmatpush.bf16.msrb.mxu3 %v14672_v60  ;;  %5340 = vmatpush.bf16.msra.mxu0 %v15148_v22  ;;  %v18335_v22 = vld [vmem:[#allocation3 + $0xb14] sm:$0xf]  ;;  %v14768_v9 = vor.u32 %v18233_v23, %v14767_v43  ;;  %v14719_v43 = vld [vmem:[#allocation3 + $0x730] sm:$0xf] }
 0x401   :  { %v20033_v28 = vadd.f32 %v4474_v38, %v19951_v44  ;;  %15087 = vmatmul.msk.bf16.vlgmr.msrb.gmra.mxu2 %vm1042_vm2, %v19908_v45  ;;  %v18324_v44 = vld [vmem:[#allocation3 + $0xabc] sm:$0xf]  ;;  %v15321_v30 = vld [vmem:[#allocation3 + $0xbc8] sm:$0xf0] }
 0x402   :  { %4905 = vmatpush.bf16.msrb.mxu2 %v15064_v11  ;;  %v15228_v48 = vor.u32 %v18324_v44, %v15225_v42  ;;  %v15268_v11 = vor.u32 %v18335_v22, %v15265_v37  ;;  %v15257_v44 = vld [vmem:[#allocation3 + $0xb48] sm:$0xf0]  ;;  %v18326_v42 = vld [vmem:[#allocation3 + $0xac4] sm:$0xf0] }
 0x403   :  { %15238 = vmatmul.msk.bf16.vlgmr.msrb.gmra.mxu1 %vm1042_vm2, %v19990_v46 }
 0x404   :  { %v3962_v29 = vpop.f32.mrf.mxu2  ;;  %5630 = vmatpush.bf16.msrb.mxu1 %v15316_v0 }
 0x405   :  { %v20040_v14 = vadd.f32 %v3962_v29, %v19958_v18  ;;  %v15079_v18 = vld [vmem:[#allocation3 + $0x9b8] sm:$0xf] }
 0x406   :  { %v2779_v8 = vpop.f32.mrf.mxu3  ;;  %4906 = vmatpush.bf16.msrb.mxu2 %v15000_v21  ;;  %v15080_v6 = vor.u32 %v18300_v2, %v15079_v18  ;;  %v14703_v21 = vld [vmem:[#allocation3 + $0x720] sm:$0xf]  ;;  %v18310_v18 = vld [vmem:[#allocation3 + $0xa44] sm:$0xf0] }
 0x408   :  { %v4448_v58 = vpop.f32.mrf.mxu0  ;;  %v4476_v7 = vpop.f32.mrf.mxu1  ;;  %5631 = vmatpush.bf16.msrb.mxu1 %v15252_v1  ;;  %v18217_v1 = vld [vmem:[#allocation3 + $0x75c] sm:$0xf0] }
 0x409   :  { %v20043_v36 = vadd.f32 %v4448_v58, %v19961_v52  ;;  %v14704_v58 = vor.u32 %v18217_v1, %v14703_v21  ;;  %v15260_v7 = vor.u32 %v18334_v63, %v15257_v44  ;;  %v15361_v1 = vld [vmem:[#allocation3 + $0xbf0] sm:$0xf0] }
 0x40b   :  { %14665 = vmatmul.msk.bf16.vlgmr.msra.gmra.mxu3 %vm1042_vm2, %v19661_v54  ;;  %15236 = vmatmul.msk.bf16.vlgmr.msrb.gmra.mxu0 %vm1042_vm2, %v19990_v46 }
 0x40c   :  { %v3964_v53 = vpop.f32.mrf.mxu2  ;;  %3985 = vmatpush.bf16.msra.mxu3 %v14752_v12  ;;  %5391 = vmatpush.bf16.msrb.mxu0 %v15228_v48  ;;  %v18353_v12 = vld [vmem:[#allocation3 + $0xba4] sm:$0xf] }
 0x40e   :  { %v2829_v52 = vpop.f32.mrf.mxu3 }
 0x40f   :  { %v20050_v15 = vadd.f32 %v2829_v52, %v19968_v34  ;;  %v15281_v52 = vld [vmem:[#allocation3 + $0xb60] sm:$0xf0] }
 0x410   :  { %v4450_v54 = vpop.f32.mrf.mxu0  ;;  %v4526_v16 = vpop.f32.mrf.mxu1  ;;  %3986 = vmatpush.bf16.msra.mxu3 %v14688_v41  ;;  %5392 = vmatpush.bf16.msrb.mxu0 %v15164_v39  ;;  %v15348_v41 = vor.u32 %v18353_v12, %v15345_v24  ;;  %v15284_v5 = vor.u32 %v18337_v61, %v15281_v52  ;;  %v18339_v24 = vld [vmem:[#allocation3 + $0xb34] sm:$0xf] }
 0x411   :  { %v20053_v60 = vadd.f32 %v4526_v16, %v19971_v49  ;;  %15091 = vmatmul.msk.bf16.vlgmr.msra.gmra.mxu2 %vm1042_vm2, %v19908_v45  ;;  %v18350_v49 = vld [vmem:[#allocation3 + $0xb8c] sm:$0xf]  ;;  %v18235_v16 = vld [vmem:[#allocation3 + $0x7ec] sm:$0xf0] }
 0x412   :  { %4957 = vmatpush.bf16.msra.mxu2 %v15080_v6  ;;  %v15324_v29 = vor.u32 %v18350_v49, %v15321_v30  ;;  %v18219_v49 = vld [vmem:[#allocation3 + $0x76c] sm:$0xf0]  ;;  %v18336_v30 = vld [vmem:[#allocation3 + $0xb1c] sm:$0xf] }
 0x413   :  { %15242 = vmatmul.msk.bf16.vlgmr.msra.gmra.mxu1 %vm1042_vm2, %v19990_v46 }
 0x414   :  { %v4014_v34 = vpop.f32.mrf.mxu2  ;;  %5682 = vmatpush.bf16.msra.mxu1 %v15332_v55  ;;  %v15337_v55 = vld [vmem:[#allocation3 + $0xbd8] sm:$0xf0] }
 0x415   :  { %v20060_v4 = vadd.f32 %v4014_v34, %v19978_v25  ;;  %v15175_v25 = vld [vmem:[#allocation3 + $0xa88] sm:$0xf]  ;;  %v14784_v34 = vor.u32 %v18235_v16, %v14783_v3  ;;  %v18245_v16 = vld [vmem:[#allocation3 + $0x83c] sm:$0xf0] }
 0x416   :  { %v2831_v38 = vpop.f32.mrf.mxu3  ;;  %4958 = vmatpush.bf16.msra.mxu2 %v15016_v27  ;;  %v15176_v62 = vor.u32 %v18326_v42, %v15175_v25  ;;  %v15127_v25 = vld [vmem:[#allocation3 + $0xa18] sm:$0xf] }
 0x417   :  { %v15273_v38 = vld [vmem:[#allocation3 + $0xb58] sm:$0xf0]  ;;  %v18312_v42 = vld [vmem:[#allocation3 + $0xa54] sm:$0xf0] }
 0x418   :  { %v4500_v0 = vpop.f32.mrf.mxu0  ;;  %v4528_v59 = vpop.f32.mrf.mxu1  ;;  %5683 = vmatpush.bf16.msra.mxu1 %v15268_v11  ;;  %v15276_v21 = vor.u32 %v18336_v30, %v15273_v38  ;;  %v15143_v38 = vld [vmem:[#allocation3 + $0xa28] sm:$0xf] }
 0x419   :  { %v20063_v10 = vadd.f32 %v4500_v0, %v19981_v40  ;;  %v5414_v40 = vld [vmem:[#allocation2 + $0x58] sm:$0xff]  ;;  %v18328_v0 = vld [vmem:[#allocation3 + $0xad4] sm:$0xf0] }
 0x41a   :  { %v20072_v39 = vpack.c.bf16 %v5414_v40, %v5414_v40  ;;  %v15297_v40 = vld [vmem:[#allocation3 + $0xb70] sm:$0xf0] }
 0x41b   :  { %14797 = vmatmul.msk.bf16.vlgmr.msrb.gmra.mxu3 %vm1042_vm2, %v19743_v51  ;;  %15240 = vmatmul.msk.bf16.vlgmr.msra.gmra.mxu0 %vm1042_vm2, %v19990_v46 }
 0x41c   :  { %v4016_v8 = vpop.f32.mrf.mxu2  ;;  %4037 = vmatpush.bf16.msrb.mxu3 %v14768_v9  ;;  %5656 = vmatpush.bf16.msra.mxu0 %v15324_v29  ;;  %v14720_v9 = vor.u32 %v18219_v49, %v14719_v43  ;;  %v18355_v29 = vld [vmem:[#allocation3 + $0xbb4] sm:$0xf]  ;;  %v18381_v43 = vld [vmem:[#allocation3 + $0xc84] sm:$0xf] }
 0x41e   :  { %v3094_v48 = vpop.f32.mrf.mxu3 }
 0x41f   :  { %v20070_v17 = vadd.f32 %v3094_v48, %v19988_v56  ;;  %v15112_v56 = vor.u32 %v18310_v18, %v15111_v35  ;;  %v15128_v48 = vor.u32 %v18312_v42, %v15127_v25  ;;  %v15300_v35 = vor.u32 %v18339_v24, %v15297_v40 }
 0x420   :  { %v4502_v2 = vpop.f32.mrf.mxu0  ;;  %v4791_v53 = vpop.f32.mrf.mxu1  ;;  %4038 = vmatpush.bf16.msrb.mxu3 %v14704_v58  ;;  %5657 = vmatpush.bf16.msra.mxu0 %v15260_v7  ;;  %v15364_v7 = vor.u32 %v18355_v29, %v15361_v1  ;;  %v18365_v29 = vld [vmem:[#allocation3 + $0xc04] sm:$0xf] }
 0x421   :  { %v20075_v33 = vadd.f32 %v4791_v53, %v19993_v19  ;;  %15095 = vmatmul.msk.bf16.vlgmr.msrb.gmra.mxu2 %vm1042_vm2, %v19908_v45  ;;  %v18352_v19 = vld [vmem:[#allocation3 + $0xb9c] sm:$0xf]  ;;  %v18261_v2 = vld [vmem:[#allocation3 + $0x8bc] sm:$0xf0]  ;;  %v15353_v53 = vld [vmem:[#allocation3 + $0xbe8] sm:$0xf0] }
 0x422   :  { %5222 = vmatpush.bf16.msrb.mxu2 %v15176_v62  ;;  %v15340_v11 = vor.u32 %v18352_v19, %v15337_v55  ;;  %v14879_v62 = vld [vmem:[#allocation3 + $0x880] sm:$0xf]  ;;  %v18338_v19 = vld [vmem:[#allocation3 + $0xb2c] sm:$0xf]  ;;  %v15393_v1 = vld [vmem:[#allocation3 + $0xc40] sm:$0xf0] }
 0x423   :  { %15374 = vmatmul.msk.bf16.vlgmr.msrb.gmra.mxu1 %vm1042_vm2, %v20072_v39  ;;  %v15289_v55 = vld [vmem:[#allocation3 + $0xb68] sm:$0xf0]  ;;  %v15396_v25 = vor.u32 %v18365_v29, %v15393_v1 }
 0x424   :  { %v4066_v6 = vpop.f32.mrf.mxu2  ;;  %5734 = vmatpush.bf16.msrb.mxu1 %v15348_v41 }
 0x425   :  { %v20082_v54 = vadd.f32 %v4066_v6, %v20000_v50  ;;  %v15191_v50 = vld [vmem:[#allocation3 + $0xa98] sm:$0xf]  ;;  %v14815_v6 = vld [vmem:[#allocation3 + $0x800] sm:$0xf] }
 0x426   :  { %v3096_v22 = vpop.f32.mrf.mxu3  ;;  %5223 = vmatpush.bf16.msrb.mxu2 %v15112_v56  ;;  %v15192_v63 = vor.u32 %v18328_v0, %v15191_v50  ;;  %v14880_v56 = vor.u32 %v18261_v2, %v14879_v62  ;;  %v18314_v50 = vld [vmem:[#allocation3 + $0xa64] sm:$0xf0]  ;;  %v18247_v2 = vld [vmem:[#allocation3 + $0x84c] sm:$0xf0] }
 0x427   :  { %v18330_v22 = vld [vmem:[#allocation3 + $0xae4] sm:$0xf0] }
 0x428   :  { %v4552_v37 = vpop.f32.mrf.mxu0  ;;  %v4793_v27 = vpop.f32.mrf.mxu1  ;;  %5735 = vmatpush.bf16.msrb.mxu1 %v15284_v5 }
 0x429   :  { %v20085_v23 = vadd.f32 %v4552_v37, %v20003_v31  ;;  %v14816_v27 = vor.u32 %v18245_v16, %v14815_v6  ;;  %v18383_v6 = vld [vmem:[#allocation3 + $0xc94] sm:$0xf] }
 0x42b   :  { %14801 = vmatmul.msk.bf16.vlgmr.msra.gmra.mxu3 %vm1042_vm2, %v19743_v51  ;;  %15244 = vmatmul.msk.bf16.vlgmr.msrb.gmra.mxu0 %vm1042_vm2, %v19990_v46 }
 0x42c   :  { %v4068_v59 = vpop.f32.mrf.mxu2  ;;  %4089 = vmatpush.bf16.msra.mxu3 %v14784_v34  ;;  %5708 = vmatpush.bf16.msrb.mxu0 %v15340_v11  ;;  %v15292_v34 = vor.u32 %v18338_v19, %v15289_v55  ;;  %v15457_v11 = vld [vmem:[#allocation3 + $0xcc0] sm:$0xf0]  ;;  %v15159_v55 = vld [vmem:[#allocation3 + $0xa38] sm:$0xf] }
 0x42e   :  { %v3146_v31 = vpop.f32.mrf.mxu3 }
 0x42f   :  { %v20092_v44 = vadd.f32 %v3146_v31, %v20010_v20  ;;  %v15144_v31 = vor.u32 %v18314_v50, %v15143_v38  ;;  %v18265_v50 = vld [vmem:[#allocation3 + $0x8dc] sm:$0xf0] }
 0x430   :  { %v4554_v8 = vpop.f32.mrf.mxu0  ;;  %v4843_v58 = vpop.f32.mrf.mxu1  ;;  %4090 = vmatpush.bf16.msra.mxu3 %v14720_v9  ;;  %5709 = vmatpush.bf16.msrb.mxu0 %v15276_v21  ;;  %v15460_v9 = vor.u32 %v18381_v43, %v15457_v11  ;;  %v15409_v43 = vld [vmem:[#allocation3 + $0xc50] sm:$0xf0] }
 0x431   :  { %v20095_v12 = vadd.f32 %v4843_v58, %v20013_v32  ;;  %15099 = vmatmul.msk.bf16.vlgmr.msra.gmra.mxu2 %vm1042_vm2, %v19908_v45  ;;  %v18354_v32 = vld [vmem:[#allocation3 + $0xbac] sm:$0xf]  ;;  %v18263_v8 = vld [vmem:[#allocation3 + $0x8cc] sm:$0xf0]  ;;  %v15369_v58 = vld [vmem:[#allocation3 + $0xbf8] sm:$0xf0] }
 0x432   :  { %5274 = vmatpush.bf16.msra.mxu2 %v15192_v63  ;;  %v15356_v3 = vor.u32 %v18354_v32, %v15353_v53  ;;  %v14895_v63 = vld [vmem:[#allocation3 + $0x890] sm:$0xf]  ;;  %v18340_v32 = vld [vmem:[#allocation3 + $0xb3c] sm:$0xf] }
 0x433   :  { %15378 = vmatmul.msk.bf16.vlgmr.msra.gmra.mxu1 %vm1042_vm2, %v20072_v39  ;;  %v15305_v53 = vld [vmem:[#allocation3 + $0xb78] sm:$0xf0] }
 0x434   :  { %v4118_v20 = vpop.f32.mrf.mxu2  ;;  %5786 = vmatpush.bf16.msra.mxu1 %v15364_v7 }
 0x435   :  { %v20102_v18 = vadd.f32 %v4118_v20, %v20020_v47  ;;  %v15207_v47 = vld [vmem:[#allocation3 + $0xaa8] sm:$0xf]  ;;  %v14831_v20 = vld [vmem:[#allocation3 + $0x810] sm:$0xf] }
 0x436   :  { %v3148_v41 = vpop.f32.mrf.mxu3  ;;  %5275 = vmatpush.bf16.msra.mxu2 %v15128_v48  ;;  %v15208_v49 = vor.u32 %v18330_v22, %v15207_v47  ;;  %v14896_v48 = vor.u32 %v18263_v8, %v14895_v63  ;;  %v18316_v47 = vld [vmem:[#allocation3 + $0xa74] sm:$0xf0]  ;;  %v18366_v8 = vld [vmem:[#allocation3 + $0xc0c] sm:$0xf] }
 0x437   :  { %v18332_v41 = vld [vmem:[#allocation3 + $0xaf4] sm:$0xf0]  ;;  %v15160_v11 = vor.u32 %v18316_v47, %v15159_v55  ;;  %v14927_v55 = vld [vmem:[#allocation3 + $0x8b0] sm:$0xf] }
 0x438   :  { %v4817_v61 = vpop.f32.mrf.mxu0  ;;  %v4845_v52 = vpop.f32.mrf.mxu1  ;;  %5787 = vmatpush.bf16.msra.mxu1 %v15300_v35 }
 0x439   :  { %v20105_v5 = vadd.f32 %v4817_v61, %v20023_v57  ;;  %v14832_v52 = vor.u32 %v18247_v2, %v14831_v20  ;;  %v15489_v20 = vld [vmem:[#allocation3 + $0xce0] sm:$0xf0] }
 0x43b   :  { %14805 = vmatmul.msk.bf16.vlgmr.msrb.gmra.mxu3 %vm1042_vm2, %v19743_v51  ;;  %15376 = vmatmul.msk.bf16.vlgmr.msra.gmra.mxu0 %vm1042_vm2, %v20072_v39 }
 0x43c   :  { %v4120_v37 = vpop.f32.mrf.mxu2  ;;  %4354 = vmatpush.bf16.msrb.mxu3 %v14880_v56  ;;  %5760 = vmatpush.bf16.msra.mxu0 %v15356_v3  ;;  %v15308_v56 = vor.u32 %v18340_v32, %v15305_v53  ;;  %v15473_v3 = vld [vmem:[#allocation3 + $0xcd0] sm:$0xf0]  ;;  %v15255_v53 = vld [vmem:[#allocation3 + $0xb08] sm:$0xf] }
 0x43d   :  { %v15476_v37 = vor.u32 %v18383_v6, %v15473_v3  ;;  %v18369_v3 = vld [vmem:[#allocation3 + $0xc24] sm:$0xf] }
 0x43e   :  { %v3198_v57 = vpop.f32.mrf.mxu3 }
 0x43f   :  { %v20112_v30 = vadd.f32 %v3198_v57, %v20030_v13  ;;  %v14911_v57 = vld [vmem:[#allocation3 + $0x8a0] sm:$0xf] }
 0x440   :  { %v4819_v0 = vpop.f32.mrf.mxu0  ;;  %v4895_v59 = vpop.f32.mrf.mxu1  ;;  %4355 = vmatpush.bf16.msrb.mxu3 %v14816_v27  ;;  %5761 = vmatpush.bf16.msra.mxu0 %v15292_v34  ;;  %v18367_v34 = vld [vmem:[#allocation3 + $0xc14] sm:$0xf]  ;;  %v14912_v1 = vor.u32 %v18265_v50, %v14911_v57  ;;  %v14863_v57 = vld [vmem:[#allocation3 + $0x830] sm:$0xf] }
 0x441   :  { %v20115_v21 = vadd.f32 %v4895_v59, %v20033_v28  ;;  %15231 = vmatmul.msk.bf16.vlgmr.msrb.gmra.mxu2 %vm1042_vm2, %v19990_v46  ;;  %v18356_v28 = vld [vmem:[#allocation3 + $0xbbc] sm:$0xf]  ;;  %v15465_v0 = vld [vmem:[#allocation3 + $0xcc8] sm:$0xf0] }
 0x442   :  { %5326 = vmatpush.bf16.msrb.mxu2 %v15208_v49  ;;  %v15372_v62 = vor.u32 %v18356_v28, %v15369_v58  ;;  %v15412_v49 = vor.u32 %v18367_v34, %v15409_v43  ;;  %v15401_v28 = vld [vmem:[#allocation3 + $0xc48] sm:$0xf0]  ;;  %v18358_v58 = vld [vmem:[#allocation3 + $0xbc4] sm:$0xf0] }
 0x443   :  { %15382 = vmatmul.msk.bf16.vlgmr.msrb.gmra.mxu1 %vm1042_vm2, %v20072_v39 }
 0x444   :  { %v4383_v13 = vpop.f32.mrf.mxu2  ;;  %6051 = vmatpush.bf16.msrb.mxu1 %v15460_v9 }
 0x445   :  { %v20122_v42 = vadd.f32 %v4383_v13, %v20040_v14  ;;  %v15223_v14 = vld [vmem:[#allocation3 + $0xab8] sm:$0xf] }
 0x446   :  { %v3200_v7 = vpop.f32.mrf.mxu3  ;;  %5327 = vmatpush.bf16.msrb.mxu2 %v15144_v31  ;;  %v15224_v16 = vor.u32 %v18332_v41, %v15223_v14  ;;  %v14847_v31 = vld [vmem:[#allocation3 + $0x820] sm:$0xf]  ;;  %v18342_v14 = vld [vmem:[#allocation3 + $0xb44] sm:$0xf0] }
 0x448   :  { %v4869_v24 = vpop.f32.mrf.mxu0  ;;  %v4897_v40 = vpop.f32.mrf.mxu1  ;;  %6052 = vmatpush.bf16.msrb.mxu1 %v15396_v25  ;;  %v18249_v25 = vld [vmem:[#allocation3 + $0x85c] sm:$0xf0] }
 0x449   :  { %v20125_v35 = vadd.f32 %v4869_v24, %v20043_v36  ;;  %v14848_v24 = vor.u32 %v18249_v25, %v14847_v31  ;;  %v15404_v40 = vor.u32 %v18366_v8, %v15401_v28  ;;  %v15505_v25 = vld [vmem:[#allocation3 + $0xcf0] sm:$0xf0] }
 0x44b   :  { %14809 = vmatmul.msk.bf16.vlgmr.msra.gmra.mxu3 %vm1042_vm2, %v19743_v51  ;;  %15380 = vmatmul.msk.bf16.vlgmr.msrb.gmra.mxu0 %vm1042_vm2, %v20072_v39 }
 0x44c   :  { %v4385_v61 = vpop.f32.mrf.mxu2  ;;  %4406 = vmatpush.bf16.msra.mxu3 %v14896_v48  ;;  %5812 = vmatpush.bf16.msrb.mxu0 %v15372_v62  ;;  %v18385_v48 = vld [vmem:[#allocation3 + $0xca4] sm:$0xf] }
 0x44e   :  { %v3250_v36 = vpop.f32.mrf.mxu3 }
 0x44f   :  { %v20132_v19 = vadd.f32 %v3250_v36, %v20050_v15  ;;  %v15425_v36 = vld [vmem:[#allocation3 + $0xc60] sm:$0xf0] }
 0x450   :  { %v4871_v51 = vpop.f32.mrf.mxu0  ;;  %v4947_v22 = vpop.f32.mrf.mxu1  ;;  %4407 = vmatpush.bf16.msra.mxu3 %v14832_v52  ;;  %5813 = vmatpush.bf16.msrb.mxu0 %v15308_v56  ;;  %v15492_v52 = vor.u32 %v18385_v48, %v15489_v20  ;;  %v15428_v47 = vor.u32 %v18369_v3, %v15425_v36  ;;  %v18371_v20 = vld [vmem:[#allocation3 + $0xc34] sm:$0xf] }
 0x451   :  { %v20135_v27 = vadd.f32 %v4947_v22, %v20053_v60  ;;  %15235 = vmatmul.msk.bf16.vlgmr.msra.gmra.mxu2 %vm1042_vm2, %v19990_v46  ;;  %v18382_v60 = vld [vmem:[#allocation3 + $0xc8c] sm:$0xf]  ;;  %v18267_v22 = vld [vmem:[#allocation3 + $0x8ec] sm:$0xf0] }
 0x452   :  { %5378 = vmatpush.bf16.msra.mxu2 %v15224_v16  ;;  %v15468_v13 = vor.u32 %v18382_v60, %v15465_v0  ;;  %v18251_v60 = vld [vmem:[#allocation3 + $0x86c] sm:$0xf0]  ;;  %v18368_v0 = vld [vmem:[#allocation3 + $0xc1c] sm:$0xf] }
 0x453   :  { %15386 = vmatmul.msk.bf16.vlgmr.msra.gmra.mxu1 %vm1042_vm2, %v20072_v39 }
 0x454   :  { %v4435_v15 = vpop.f32.mrf.mxu2  ;;  %6103 = vmatpush.bf16.msra.mxu1 %v15476_v37  ;;  %v15481_v37 = vld [vmem:[#allocation3 + $0xcd8] sm:$0xf0] }
 0x455   :  { %v20142_v38 = vadd.f32 %v4435_v15, %v20060_v4  ;;  %v15319_v4 = vld [vmem:[#allocation3 + $0xb88] sm:$0xf]  ;;  %v14928_v15 = vor.u32 %v18267_v22, %v14927_v55  ;;  %v18277_v22 = vld [vmem:[#allocation3 + $0x93c] sm:$0xf0] }
 0x456   :  { %v3252_v59 = vpop.f32.mrf.mxu3  ;;  %5379 = vmatpush.bf16.msra.mxu2 %v15160_v11  ;;  %v15320_v2 = vor.u32 %v18358_v58, %v15319_v4  ;;  %v15271_v4 = vld [vmem:[#allocation3 + $0xb18] sm:$0xf] }
 0x457   :  { %v15417_v59 = vld [vmem:[#allocation3 + $0xc58] sm:$0xf0]  ;;  %v18344_v58 = vld [vmem:[#allocation3 + $0xb54] sm:$0xf0] }
 0x458   :  { %v4921_v9 = vpop.f32.mrf.mxu0  ;;  %v4949_v29 = vpop.f32.mrf.mxu1  ;;  %6104 = vmatpush.bf16.msra.mxu1 %v15412_v49  ;;  %v15420_v31 = vor.u32 %v18368_v0, %v15417_v59  ;;  %v15287_v59 = vld [vmem:[#allocation3 + $0xb28] sm:$0xf] }
 0x459   :  { %v20145_v63 = vadd.f32 %v4921_v9, %v20063_v10  ;;  %v5835_v10 = vld [vmem:[#allocation2 + $0x60] sm:$0xff]  ;;  %v18360_v9 = vld [vmem:[#allocation3 + $0xbd4] sm:$0xf0] }
 0x45a   :  { %v20154_v56 = vpack.c.bf16 %v5835_v10, %v5835_v10  ;;  %v15441_v10 = vld [vmem:[#allocation3 + $0xc70] sm:$0xf0] }
 0x45b   :  { %14941 = vmatmul.msk.bf16.vlgmr.msrb.gmra.mxu3 %vm1042_vm2, %v19823_v26  ;;  %15384 = vmatmul.msk.bf16.vlgmr.msra.gmra.mxu0 %vm1042_vm2, %v20072_v39 }
 0x45c   :  { %v4437_v7 = vpop.f32.mrf.mxu2  ;;  %4458 = vmatpush.bf16.msrb.mxu3 %v14912_v1  ;;  %6077 = vmatpush.bf16.msra.mxu0 %v15468_v13  ;;  %v14864_v1 = vor.u32 %v18251_v60, %v14863_v57  ;;  %v18387_v13 = vld [vmem:[#allocation3 + $0xcb4] sm:$0xf]  ;;  %v18413_v57 = vld [vmem:[#allocation3 + $0xd84] sm:$0xf] }
 0x45e   :  { %v3515_v62 = vpop.f32.mrf.mxu3 }
 0x45f   :  { %v20152_v32 = vadd.f32 %v3515_v62, %v20070_v17  ;;  %v15256_v17 = vor.u32 %v18342_v14, %v15255_v53  ;;  %v15272_v62 = vor.u32 %v18344_v58, %v15271_v4  ;;  %v15444_v53 = vor.u32 %v18371_v20, %v15441_v10 }
 0x460   :  { %v4923_v41 = vpop.f32.mrf.mxu0  ;;  %v5212_v61 = vpop.f32.mrf.mxu1  ;;  %4459 = vmatpush.bf16.msrb.mxu3 %v14848_v24  ;;  %6078 = vmatpush.bf16.msra.mxu0 %v15404_v40  ;;  %v15508_v40 = vor.u32 %v18387_v13, %v15505_v25  ;;  %v18397_v13 = vld [vmem:[#allocation3 + $0xd04] sm:$0xf] }
 0x461   :  { %v20157_v6 = vadd.f32 %v5212_v61, %v20075_v33  ;;  %15239 = vmatmul.msk.bf16.vlgmr.msrb.gmra.mxu2 %vm1042_vm2, %v19990_v46  ;;  %v18384_v33 = vld [vmem:[#allocation3 + $0xc9c] sm:$0xf]  ;;  %v18293_v41 = vld [vmem:[#allocation3 + $0x9bc] sm:$0xf0]  ;;  %v15497_v61 = vld [vmem:[#allocation3 + $0xce8] sm:$0xf0] }
 0x462   :  { %5643 = vmatpush.bf16.msrb.mxu2 %v15320_v2  ;;  %v15484_v49 = vor.u32 %v18384_v33, %v15481_v37  ;;  %v15023_v2 = vld [vmem:[#allocation3 + $0x980] sm:$0xf]  ;;  %v18370_v33 = vld [vmem:[#allocation3 + $0xc2c] sm:$0xf]  ;;  %v15537_v25 = vld [vmem:[#allocation3 + $0xd40] sm:$0xf0] }
 0x463   :  { %15518 = vmatmul.msk.bf16.vlgmr.msrb.gmra.mxu1 %vm1042_vm2, %v20154_v56  ;;  %v15433_v37 = vld [vmem:[#allocation3 + $0xc68] sm:$0xf0]  ;;  %v15540_v4 = vor.u32 %v18397_v13, %v15537_v25 }
 0x464   :  { %v4487_v16 = vpop.f32.mrf.mxu2  ;;  %6155 = vmatpush.bf16.msrb.mxu1 %v15492_v52 }
 0x465   :  { %v20164_v51 = vadd.f32 %v4487_v16, %v20082_v54  ;;  %v15335_v54 = vld [vmem:[#allocation3 + $0xb98] sm:$0xf]  ;;  %v14959_v16 = vld [vmem:[#allocation3 + $0x900] sm:$0xf] }
 0x466   :  { %v3517_v34 = vpop.f32.mrf.mxu3  ;;  %5644 = vmatpush.bf16.msrb.mxu2 %v15256_v17  ;;  %v15336_v8 = vor.u32 %v18360_v9, %v15335_v54  ;;  %v15024_v17 = vor.u32 %v18293_v41, %v15023_v2  ;;  %v18346_v54 = vld [vmem:[#allocation3 + $0xb64] sm:$0xf0]  ;;  %v18279_v41 = vld [vmem:[#allocation3 + $0x94c] sm:$0xf0] }
 0x467   :  { %v18362_v34 = vld [vmem:[#allocation3 + $0xbe4] sm:$0xf0] }
 0x468   :  { %v4973_v43 = vpop.f32.mrf.mxu0  ;;  %v5214_v11 = vpop.f32.mrf.mxu1  ;;  %6156 = vmatpush.bf16.msrb.mxu1 %v15428_v47 }
 0x469   :  { %v20167_v50 = vadd.f32 %v4973_v43, %v20085_v23  ;;  %v14960_v11 = vor.u32 %v18277_v22, %v14959_v16  ;;  %v18415_v16 = vld [vmem:[#allocation3 + $0xd94] sm:$0xf] }
 0x46b   :  { %14945 = vmatmul.msk.bf16.vlgmr.msra.gmra.mxu3 %vm1042_vm2, %v19823_v26  ;;  %15388 = vmatmul.msk.bf16.vlgmr.msrb.gmra.mxu0 %vm1042_vm2, %v20072_v39 }
 0x46c   :  { %v4489_v29 = vpop.f32.mrf.mxu2  ;;  %4510 = vmatpush.bf16.msra.mxu3 %v14928_v15  ;;  %6129 = vmatpush.bf16.msrb.mxu0 %v15484_v49  ;;  %v15436_v15 = vor.u32 %v18370_v33, %v15433_v37  ;;  %v15601_v49 = vld [vmem:[#allocation3 + $0xdc0] sm:$0xf0]  ;;  %v15303_v37 = vld [vmem:[#allocation3 + $0xb38] sm:$0xf] }
 0x46e   :  { %v3567_v23 = vpop.f32.mrf.mxu3 }
 0x46f   :  { %v20174_v28 = vadd.f32 %v3567_v23, %v20092_v44  ;;  %v15288_v23 = vor.u32 %v18346_v54, %v15287_v59  ;;  %v18297_v54 = vld [vmem:[#allocation3 + $0x9dc] sm:$0xf0] }
 0x470   :  { %v4975_v7 = vpop.f32.mrf.mxu0  ;;  %v5264_v24 = vpop.f32.mrf.mxu1  ;;  %4511 = vmatpush.bf16.msra.mxu3 %v14864_v1  ;;  %6130 = vmatpush.bf16.msrb.mxu0 %v15420_v31  ;;  %v15604_v1 = vor.u32 %v18413_v57, %v15601_v49  ;;  %v15553_v57 = vld [vmem:[#allocation3 + $0xd50] sm:$0xf0] }
 0x471   :  { %v20177_v48 = vadd.f32 %v5264_v24, %v20095_v12  ;;  %15243 = vmatmul.msk.bf16.vlgmr.msra.gmra.mxu2 %vm1042_vm2, %v19990_v46  ;;  %v18386_v12 = vld [vmem:[#allocation3 + $0xcac] sm:$0xf]  ;;  %v18295_v7 = vld [vmem:[#allocation3 + $0x9cc] sm:$0xf0]  ;;  %v15513_v24 = vld [vmem:[#allocation3 + $0xcf8] sm:$0xf0] }
 0x472   :  { %5695 = vmatpush.bf16.msra.mxu2 %v15336_v8  ;;  %v15500_v55 = vor.u32 %v18386_v12, %v15497_v61  ;;  %v15039_v8 = vld [vmem:[#allocation3 + $0x990] sm:$0xf]  ;;  %v18372_v12 = vld [vmem:[#allocation3 + $0xc3c] sm:$0xf] }
 0x473   :  { %15522 = vmatmul.msk.bf16.vlgmr.msra.gmra.mxu1 %vm1042_vm2, %v20154_v56  ;;  %v15449_v61 = vld [vmem:[#allocation3 + $0xc78] sm:$0xf0] }
 0x474   :  { %v4539_v44 = vpop.f32.mrf.mxu2  ;;  %6207 = vmatpush.bf16.msra.mxu1 %v15508_v40 }
 0x475   :  { %v20184_v14 = vadd.f32 %v4539_v44, %v20102_v18  ;;  %v15351_v18 = vld [vmem:[#allocation3 + $0xba8] sm:$0xf]  ;;  %v14975_v44 = vld [vmem:[#allocation3 + $0x910] sm:$0xf] }
 0x476   :  { %v3569_v52 = vpop.f32.mrf.mxu3  ;;  %5696 = vmatpush.bf16.msra.mxu2 %v15272_v62  ;;  %v15352_v60 = vor.u32 %v18362_v34, %v15351_v18  ;;  %v15040_v62 = vor.u32 %v18295_v7, %v15039_v8  ;;  %v18348_v18 = vld [vmem:[#allocation3 + $0xb74] sm:$0xf0]  ;;  %v18398_v7 = vld [vmem:[#allocation3 + $0xd0c] sm:$0xf] }
 0x477   :  { %v18364_v52 = vld [vmem:[#allocation3 + $0xbf4] sm:$0xf0]  ;;  %v15304_v49 = vor.u32 %v18348_v18, %v15303_v37  ;;  %v15071_v37 = vld [vmem:[#allocation3 + $0x9b0] sm:$0xf] }
 0x478   :  { %v5238_v3 = vpop.f32.mrf.mxu0  ;;  %v5266_v36 = vpop.f32.mrf.mxu1  ;;  %6208 = vmatpush.bf16.msra.mxu1 %v15444_v53 }
 0x479   :  { %v20187_v47 = vadd.f32 %v5238_v3, %v20105_v5  ;;  %v14976_v36 = vor.u32 %v18279_v41, %v14975_v44  ;;  %v15633_v44 = vld [vmem:[#allocation3 + $0xde0] sm:$0xf0] }
 0x47b   :  { %14949 = vmatmul.msk.bf16.vlgmr.msrb.gmra.mxu3 %vm1042_vm2, %v19823_v26  ;;  %15520 = vmatmul.msk.bf16.vlgmr.msra.gmra.mxu0 %vm1042_vm2, %v20154_v56 }
 0x47c   :  { %v4541_v43 = vpop.f32.mrf.mxu2  ;;  %4775 = vmatpush.bf16.msrb.mxu3 %v15024_v17  ;;  %6181 = vmatpush.bf16.msra.mxu0 %v15500_v55  ;;  %v15452_v17 = vor.u32 %v18372_v12, %v15449_v61  ;;  %v15617_v55 = vld [vmem:[#allocation3 + $0xdd0] sm:$0xf0]  ;;  %v15399_v61 = vld [vmem:[#allocation3 + $0xc08] sm:$0xf] }
 0x47d   :  { %v15620_v43 = vor.u32 %v18415_v16, %v15617_v55  ;;  %v18401_v55 = vld [vmem:[#allocation3 + $0xd24] sm:$0xf] }
 0x47e   :  { %v3619_v5 = vpop.f32.mrf.mxu3 }
 0x47f   :  { %v20194_v0 = vadd.f32 %v3619_v5, %v20112_v30  ;;  %v15055_v5 = vld [vmem:[#allocation3 + $0x9a0] sm:$0xf] }
 0x480   :  { %v5240_v9 = vpop.f32.mrf.mxu0  ;;  %v5316_v29 = vpop.f32.mrf.mxu1  ;;  %4776 = vmatpush.bf16.msrb.mxu3 %v14960_v11  ;;  %6182 = vmatpush.bf16.msra.mxu0 %v15436_v15  ;;  %v18399_v15 = vld [vmem:[#allocation3 + $0xd14] sm:$0xf]  ;;  %v15056_v25 = vor.u32 %v18297_v54, %v15055_v5  ;;  %v15007_v5 = vld [vmem:[#allocation3 + $0x930] sm:$0xf] }
 0x481   :  { %v20197_v31 = vadd.f32 %v5316_v29, %v20115_v21  ;;  %15375 = vmatmul.msk.bf16.vlgmr.msrb.gmra.mxu2 %vm1042_vm2, %v20072_v39  ;;  %v18388_v21 = vld [vmem:[#allocation3 + $0xcbc] sm:$0xf]  ;;  %v15609_v9 = vld [vmem:[#allocation3 + $0xdc8] sm:$0xf0] }
 0x482   :  { %5747 = vmatpush.bf16.msrb.mxu2 %v15352_v60  ;;  %v15516_v2 = vor.u32 %v18388_v21, %v15513_v24  ;;  %v15556_v60 = vor.u32 %v18399_v15, %v15553_v57  ;;  %v15545_v21 = vld [vmem:[#allocation3 + $0xd48] sm:$0xf0]  ;;  %v18390_v24 = vld [vmem:[#allocation3 + $0xcc4] sm:$0xf0] }
 0x483   :  { %15526 = vmatmul.msk.bf16.vlgmr.msrb.gmra.mxu1 %vm1042_vm2, %v20154_v56 }
 0x484   :  { %v4804_v30 = vpop.f32.mrf.mxu2  ;;  %6472 = vmatpush.bf16.msrb.mxu1 %v15604_v1 }
 0x485   :  { %v20204_v58 = vadd.f32 %v4804_v30, %v20122_v42  ;;  %v15367_v42 = vld [vmem:[#allocation3 + $0xbb8] sm:$0xf] }
 0x486   :  { %v3621_v40 = vpop.f32.mrf.mxu3  ;;  %5748 = vmatpush.bf16.msrb.mxu2 %v15288_v23  ;;  %v15368_v22 = vor.u32 %v18364_v52, %v15367_v42  ;;  %v14991_v23 = vld [vmem:[#allocation3 + $0x920] sm:$0xf]  ;;  %v18374_v42 = vld [vmem:[#allocation3 + $0xc44] sm:$0xf0] }
 0x488   :  { %v5290_v20 = vpop.f32.mrf.mxu0  ;;  %v5318_v10 = vpop.f32.mrf.mxu1  ;;  %6473 = vmatpush.bf16.msrb.mxu1 %v15540_v4  ;;  %v18281_v4 = vld [vmem:[#allocation3 + $0x95c] sm:$0xf0] }
 0x489   :  { %v20207_v53 = vadd.f32 %v5290_v20, %v20125_v35  ;;  %v14992_v20 = vor.u32 %v18281_v4, %v14991_v23  ;;  %v15548_v10 = vor.u32 %v18398_v7, %v15545_v21  ;;  %v15649_v4 = vld [vmem:[#allocation3 + $0xdf0] sm:$0xf0] }
 0x48b   :  { %14953 = vmatmul.msk.bf16.vlgmr.msra.gmra.mxu3 %vm1042_vm2, %v19823_v26  ;;  %15524 = vmatmul.msk.bf16.vlgmr.msrb.gmra.mxu0 %vm1042_vm2, %v20154_v56 }
 0x48c   :  { %v4806_v3 = vpop.f32.mrf.mxu2  ;;  %4827 = vmatpush.bf16.msra.mxu3 %v15040_v62  ;;  %6233 = vmatpush.bf16.msrb.mxu0 %v15516_v2  ;;  %v18417_v62 = vld [vmem:[#allocation3 + $0xda4] sm:$0xf] }
 0x48e   :  { %v3671_v35 = vpop.f32.mrf.mxu3 }
 0x48f   :  { %v20214_v33 = vadd.f32 %v3671_v35, %v20132_v19  ;;  %v15569_v35 = vld [vmem:[#allocation3 + $0xd60] sm:$0xf0] }
 0x490   :  { %v5292_v26 = vpop.f32.mrf.mxu0  ;;  %v5368_v34 = vpop.f32.mrf.mxu1  ;;  %4828 = vmatpush.bf16.msra.mxu3 %v14976_v36  ;;  %6234 = vmatpush.bf16.msrb.mxu0 %v15452_v17  ;;  %v15636_v36 = vor.u32 %v18417_v62, %v15633_v44  ;;  %v15572_v18 = vor.u32 %v18401_v55, %v15569_v35  ;;  %v18403_v44 = vld [vmem:[#allocation3 + $0xd34] sm:$0xf] }
 0x491   :  { %v20217_v11 = vadd.f32 %v5368_v34, %v20135_v27  ;;  %15379 = vmatmul.msk.bf16.vlgmr.msra.gmra.mxu2 %vm1042_vm2, %v20072_v39  ;;  %v18414_v27 = vld [vmem:[#allocation3 + $0xd8c] sm:$0xf]  ;;  %v18299_v34 = vld [vmem:[#allocation3 + $0x9ec] sm:$0xf0] }
 0x492   :  { %5799 = vmatpush.bf16.msra.mxu2 %v15368_v22  ;;  %v15612_v30 = vor.u32 %v18414_v27, %v15609_v9  ;;  %v18283_v27 = vld [vmem:[#allocation3 + $0x96c] sm:$0xf0]  ;;  %v18400_v9 = vld [vmem:[#allocation3 + $0xd1c] sm:$0xf] }
 0x493   :  { %15530 = vmatmul.msk.bf16.vlgmr.msra.gmra.mxu1 %vm1042_vm2, %v20154_v56 }
 0x494   :  { %v4856_v19 = vpop.f32.mrf.mxu2  ;;  %6524 = vmatpush.bf16.msra.mxu1 %v15620_v43  ;;  %v15625_v43 = vld [vmem:[#allocation3 + $0xdd8] sm:$0xf0] }
 0x495   :  { %v20224_v59 = vadd.f32 %v4856_v19, %v20142_v38  ;;  %v15463_v38 = vld [vmem:[#allocation3 + $0xc88] sm:$0xf]  ;;  %v15072_v19 = vor.u32 %v18299_v34, %v15071_v37  ;;  %v18309_v34 = vld [vmem:[#allocation3 + $0xa3c] sm:$0xf0] }
 0x496   :  { %v3673_v29 = vpop.f32.mrf.mxu3  ;;  %5800 = vmatpush.bf16.msra.mxu2 %v15304_v49  ;;  %v15464_v41 = vor.u32 %v18390_v24, %v15463_v38  ;;  %v15415_v38 = vld [vmem:[#allocation3 + $0xc18] sm:$0xf] }
 0x497   :  { %v15561_v29 = vld [vmem:[#allocation3 + $0xd58] sm:$0xf0]  ;;  %v18376_v24 = vld [vmem:[#allocation3 + $0xc54] sm:$0xf0] }
 0x498   :  { %v5342_v1 = vpop.f32.mrf.mxu0  ;;  %v5370_v13 = vpop.f32.mrf.mxu1  ;;  %6525 = vmatpush.bf16.msra.mxu1 %v15556_v60  ;;  %v15564_v23 = vor.u32 %v18400_v9, %v15561_v29  ;;  %v15431_v29 = vld [vmem:[#allocation3 + $0xc28] sm:$0xf] }
 0x499   :  { %v20227_v8 = vadd.f32 %v5342_v1, %v20145_v63  ;;  %v6256_v63 = vld [vmem:[#allocation2 + $0x68] sm:$0xff] }
 0x49a   :  { %v20236_v17 = vpack.c.bf16 %v6256_v63, %v6256_v63  ;;  %v18392_v1 = vld [vmem:[#allocation3 + $0xcd4] sm:$0xf0]  ;;  %v15585_v63 = vld [vmem:[#allocation3 + $0xd70] sm:$0xf0] }
 0x49b   :  { %15085 = vmatmul.msk.bf16.vlgmr.msrb.gmra.mxu3 %vm1042_vm2, %v19908_v45  ;;  %15528 = vmatmul.msk.bf16.vlgmr.msra.gmra.mxu0 %vm1042_vm2, %v20154_v56 }
 0x49c   :  { %v4858_v40 = vpop.f32.mrf.mxu2  ;;  %4879 = vmatpush.bf16.msrb.mxu3 %v15056_v25  ;;  %6498 = vmatpush.bf16.msra.mxu0 %v15612_v30  ;;  %v15008_v25 = vor.u32 %v18283_v27, %v15007_v5  ;;  %v18419_v30 = vld [vmem:[#allocation3 + $0xdb4] sm:$0xf]  ;;  %v18445_v5 = vld [vmem:[#allocation3 + $0xe84] sm:$0xf] }
 0x49e   :  { %v3936_v2 = vpop.f32.mrf.mxu3 }
 0x49f   :  { %v20234_v12 = vadd.f32 %v3936_v2, %v20152_v32  ;;  %v15400_v32 = vor.u32 %v18374_v42, %v15399_v61  ;;  %v15416_v2 = vor.u32 %v18376_v24, %v15415_v38  ;;  %v15588_v61 = vor.u32 %v18403_v44, %v15585_v63 }
 0x4a0   :  { %v5344_v52 = vpop.f32.mrf.mxu0  ;;  %v5633_v3 = vpop.f32.mrf.mxu1  ;;  %4880 = vmatpush.bf16.msrb.mxu3 %v14992_v20  ;;  %6499 = vmatpush.bf16.msra.mxu0 %v15548_v10  ;;  %v15652_v10 = vor.u32 %v18419_v30, %v15649_v4  ;;  %v18429_v30 = vld [vmem:[#allocation3 + $0xe04] sm:$0xf] }
 0x4a1   :  { %v20239_v16 = vadd.f32 %v5633_v3, %v20157_v6  ;;  %15383 = vmatmul.msk.bf16.vlgmr.msrb.gmra.mxu2 %vm1042_vm2, %v20072_v39  ;;  %v18416_v6 = vld [vmem:[#allocation3 + $0xd9c] sm:$0xf]  ;;  %v18325_v52 = vld [vmem:[#allocation3 + $0xabc] sm:$0xf0]  ;;  %v15641_v3 = vld [vmem:[#allocation3 + $0xde8] sm:$0xf0] }
 0x4a2   :  { %6064 = vmatpush.bf16.msrb.mxu2 %v15464_v41  ;;  %v15628_v60 = vor.u32 %v18416_v6, %v15625_v43  ;;  %v15167_v41 = vld [vmem:[#allocation3 + $0xa80] sm:$0xf]  ;;  %v18402_v6 = vld [vmem:[#allocation3 + $0xd2c] sm:$0xf]  ;;  %v15681_v4 = vld [vmem:[#allocation3 + $0xe40] sm:$0xf0] }
 0x4a3   :  { %15662 = vmatmul.msk.bf16.vlgmr.msrb.gmra.mxu1 %vm1042_vm2, %v20236_v17  ;;  %v15577_v43 = vld [vmem:[#allocation3 + $0xd68] sm:$0xf0]  ;;  %v15684_v38 = vor.u32 %v18429_v30, %v15681_v4 }
 0x4a4   :  { %v4908_v22 = vpop.f32.mrf.mxu2  ;;  %6576 = vmatpush.bf16.msrb.mxu1 %v15636_v36 }
 0x4a5   :  { %v20246_v26 = vadd.f32 %v4908_v22, %v20164_v51  ;;  %v15479_v51 = vld [vmem:[#allocation3 + $0xc98] sm:$0xf]  ;;  %v15103_v22 = vld [vmem:[#allocation3 + $0xa00] sm:$0xf] }
 0x4a6   :  { %v3938_v15 = vpop.f32.mrf.mxu3  ;;  %6065 = vmatpush.bf16.msrb.mxu2 %v15400_v32  ;;  %v15480_v7 = vor.u32 %v18392_v1, %v15479_v51  ;;  %v15168_v32 = vor.u32 %v18325_v52, %v15167_v41  ;;  %v18378_v51 = vld [vmem:[#allocation3 + $0xc64] sm:$0xf0]  ;;  %v18311_v52 = vld [vmem:[#allocation3 + $0xa4c] sm:$0xf0] }
 0x4a7   :  { %v18394_v15 = vld [vmem:[#allocation3 + $0xce4] sm:$0xf0] }
 0x4a8   :  { %v5394_v57 = vpop.f32.mrf.mxu0  ;;  %v5635_v49 = vpop.f32.mrf.mxu1  ;;  %6577 = vmatpush.bf16.msrb.mxu1 %v15572_v18 }
 0x4a9   :  { %v20249_v54 = vadd.f32 %v5394_v57, %v20167_v50  ;;  %v15104_v49 = vor.u32 %v18309_v34, %v15103_v22  ;;  %v18447_v22 = vld [vmem:[#allocation3 + $0xe94] sm:$0xf] }
 0x4ab   :  { %15089 = vmatmul.msk.bf16.vlgmr.msra.gmra.mxu3 %vm1042_vm2, %v19908_v45  ;;  %15532 = vmatmul.msk.bf16.vlgmr.msrb.gmra.mxu0 %vm1042_vm2, %v20154_v56 }
 0x4ac   :  { %v4910_v13 = vpop.f32.mrf.mxu2  ;;  %4931 = vmatpush.bf16.msra.mxu3 %v15072_v19  ;;  %6550 = vmatpush.bf16.msrb.mxu0 %v15628_v60  ;;  %v15580_v19 = vor.u32 %v18402_v6, %v15577_v43  ;;  %v15745_v60 = vld [vmem:[#allocation3 + $0xec0] sm:$0xf0]  ;;  %v15447_v43 = vld [vmem:[#allocation3 + $0xc38] sm:$0xf] }
 0x4ae   :  { %v3988_v50 = vpop.f32.mrf.mxu3 }
 0x4af   :  { %v20256_v21 = vadd.f32 %v3988_v50, %v20174_v28  ;;  %v15432_v50 = vor.u32 %v18378_v51, %v15431_v29  ;;  %v18329_v51 = vld [vmem:[#allocation3 + $0xadc] sm:$0xf0] }
 0x4b0   :  { %v5396_v40 = vpop.f32.mrf.mxu0  ;;  %v5685_v20 = vpop.f32.mrf.mxu1  ;;  %4932 = vmatpush.bf16.msra.mxu3 %v15008_v25  ;;  %6551 = vmatpush.bf16.msrb.mxu0 %v15564_v23  ;;  %v15748_v25 = vor.u32 %v18445_v5, %v15745_v60  ;;  %v15697_v5 = vld [vmem:[#allocation3 + $0xe50] sm:$0xf0] }
 0x4b1   :  { %v20259_v62 = vadd.f32 %v5685_v20, %v20177_v48  ;;  %15387 = vmatmul.msk.bf16.vlgmr.msra.gmra.mxu2 %vm1042_vm2, %v20072_v39  ;;  %v18418_v48 = vld [vmem:[#allocation3 + $0xdac] sm:$0xf]  ;;  %v18327_v40 = vld [vmem:[#allocation3 + $0xacc] sm:$0xf0]  ;;  %v15657_v20 = vld [vmem:[#allocation3 + $0xdf8] sm:$0xf0] }
 0x4b2   :  { %6116 = vmatpush.bf16.msra.mxu2 %v15480_v7  ;;  %v15644_v37 = vor.u32 %v18418_v48, %v15641_v3  ;;  %v15183_v7 = vld [vmem:[#allocation3 + $0xa90] sm:$0xf]  ;;  %v18404_v48 = vld [vmem:[#allocation3 + $0xd3c] sm:$0xf] }
 0x4b3   :  { %15666 = vmatmul.msk.bf16.vlgmr.msra.gmra.mxu1 %vm1042_vm2, %v20236_v17  ;;  %v15593_v3 = vld [vmem:[#allocation3 + $0xd78] sm:$0xf0] }
 0x4b4   :  { %v4960_v28 = vpop.f32.mrf.mxu2  ;;  %6628 = vmatpush.bf16.msra.mxu1 %v15652_v10 }
 0x4b5   :  { %v20266_v42 = vadd.f32 %v4960_v28, %v20184_v14  ;;  %v15495_v14 = vld [vmem:[#allocation3 + $0xca8] sm:$0xf]  ;;  %v15119_v28 = vld [vmem:[#allocation3 + $0xa10] sm:$0xf] }
 0x4b6   :  { %v3990_v36 = vpop.f32.mrf.mxu3  ;;  %6117 = vmatpush.bf16.msra.mxu2 %v15416_v2  ;;  %v15496_v27 = vor.u32 %v18394_v15, %v15495_v14  ;;  %v15184_v2 = vor.u32 %v18327_v40, %v15183_v7  ;;  %v18380_v14 = vld [vmem:[#allocation3 + $0xc74] sm:$0xf0]  ;;  %v18430_v40 = vld [vmem:[#allocation3 + $0xe0c] sm:$0xf] }
 0x4b7   :  { %v18396_v36 = vld [vmem:[#allocation3 + $0xcf4] sm:$0xf0]  ;;  %v15448_v60 = vor.u32 %v18380_v14, %v15447_v43  ;;  %v15215_v43 = vld [vmem:[#allocation3 + $0xab0] sm:$0xf] }
 0x4b8   :  { %v5659_v55 = vpop.f32.mrf.mxu0  ;;  %v5687_v35 = vpop.f32.mrf.mxu1  ;;  %6629 = vmatpush.bf16.msra.mxu1 %v15588_v61 }
 0x4b9   :  { %v20269_v18 = vadd.f32 %v5659_v55, %v20187_v47  ;;  %v15120_v35 = vor.u32 %v18311_v52, %v15119_v28  ;;  %v15777_v28 = vld [vmem:[#allocation3 + $0xee0] sm:$0xf0] }
 0x4bb   :  { %15093 = vmatmul.msk.bf16.vlgmr.msrb.gmra.mxu3 %vm1042_vm2, %v19908_v45  ;;  %15664 = vmatmul.msk.bf16.vlgmr.msra.gmra.mxu0 %vm1042_vm2, %v20236_v17 }
 0x4bc   :  { %v4962_v57 = vpop.f32.mrf.mxu2  ;;  %5196 = vmatpush.bf16.msrb.mxu3 %v15168_v32  ;;  %6602 = vmatpush.bf16.msra.mxu0 %v15644_v37  ;;  %v15596_v32 = vor.u32 %v18404_v48, %v15593_v3  ;;  %v15761_v37 = vld [vmem:[#allocation3 + $0xed0] sm:$0xf0]  ;;  %v15543_v3 = vld [vmem:[#allocation3 + $0xd08] sm:$0xf] }
 0x4bd   :  { %v15764_v57 = vor.u32 %v18447_v22, %v15761_v37  ;;  %v18433_v37 = vld [vmem:[#allocation3 + $0xe24] sm:$0xf] }
 0x4be   :  { %v4040_v47 = vpop.f32.mrf.mxu3 }
 0x4bf   :  { %v20276_v9 = vadd.f32 %v4040_v47, %v20194_v0  ;;  %v15199_v47 = vld [vmem:[#allocation3 + $0xaa0] sm:$0xf] }
 0x4c0   :  { %v5661_v1 = vpop.f32.mrf.mxu0  ;;  %v5737_v13 = vpop.f32.mrf.mxu1  ;;  %5197 = vmatpush.bf16.msrb.mxu3 %v15104_v49  ;;  %6603 = vmatpush.bf16.msra.mxu0 %v15580_v19  ;;  %v18431_v19 = vld [vmem:[#allocation3 + $0xe14] sm:$0xf]  ;;  %v15200_v4 = vor.u32 %v18329_v51, %v15199_v47  ;;  %v15151_v47 = vld [vmem:[#allocation3 + $0xa30] sm:$0xf] }
 0x4c1   :  { %v20279_v23 = vadd.f32 %v5737_v13, %v20197_v31  ;;  %15519 = vmatmul.msk.bf16.vlgmr.msrb.gmra.mxu2 %vm1042_vm2, %v20154_v56  ;;  %v18420_v31 = vld [vmem:[#allocation3 + $0xdbc] sm:$0xf]  ;;  %v15753_v1 = vld [vmem:[#allocation3 + $0xec8] sm:$0xf0] }
 0x4c2   :  { %6168 = vmatpush.bf16.msrb.mxu2 %v15496_v27  ;;  %v15660_v41 = vor.u32 %v18420_v31, %v15657_v20  ;;  %v15700_v27 = vor.u32 %v18431_v19, %v15697_v5  ;;  %v15689_v31 = vld [vmem:[#allocation3 + $0xe48] sm:$0xf0]  ;;  %v18422_v20 = vld [vmem:[#allocation3 + $0xdc4] sm:$0xf0] }
 0x4c3   :  { %15670 = vmatmul.msk.bf16.vlgmr.msrb.gmra.mxu1 %vm1042_vm2, %v20236_v17 }
 0x4c4   :  { %v5225_v0 = vpop.f32.mrf.mxu2  ;;  %6893 = vmatpush.bf16.msrb.mxu1 %v15748_v25 }
 0x4c5   :  { %v20286_v24 = vadd.f32 %v5225_v0, %v20204_v58  ;;  %v15511_v58 = vld [vmem:[#allocation3 + $0xcb8] sm:$0xf] }
 0x4c6   :  { %v4042_v10 = vpop.f32.mrf.mxu3  ;;  %6169 = vmatpush.bf16.msrb.mxu2 %v15432_v50  ;;  %v15512_v34 = vor.u32 %v18396_v36, %v15511_v58  ;;  %v15135_v50 = vld [vmem:[#allocation3 + $0xa20] sm:$0xf]  ;;  %v18406_v58 = vld [vmem:[#allocation3 + $0xd44] sm:$0xf0] }
 0x4c8   :  { %v5711_v44 = vpop.f32.mrf.mxu0  ;;  %v5739_v63 = vpop.f32.mrf.mxu1  ;;  %6894 = vmatpush.bf16.msrb.mxu1 %v15684_v38  ;;  %v18313_v38 = vld [vmem:[#allocation3 + $0xa5c] sm:$0xf0] }
 0x4c9   :  { %v20289_v61 = vadd.f32 %v5711_v44, %v20207_v53  ;;  %v15136_v44 = vor.u32 %v18313_v38, %v15135_v50  ;;  %v15692_v63 = vor.u32 %v18430_v40, %v15689_v31  ;;  %v15793_v38 = vld [vmem:[#allocation3 + $0xef0] sm:$0xf0] }
 0x4cb   :  { %15097 = vmatmul.msk.bf16.vlgmr.msra.gmra.mxu3 %vm1042_vm2, %v19908_v45  ;;  %15668 = vmatmul.msk.bf16.vlgmr.msrb.gmra.mxu0 %vm1042_vm2, %v20236_v17 }
 0x4cc   :  { %v5227_v55 = vpop.f32.mrf.mxu2  ;;  %5248 = vmatpush.bf16.msra.mxu3 %v15184_v2  ;;  %6654 = vmatpush.bf16.msrb.mxu0 %v15660_v41  ;;  %v18449_v2 = vld [vmem:[#allocation3 + $0xea4] sm:$0xf] }
 0x4ce   :  { %v4092_v53 = vpop.f32.mrf.mxu3 }
 0x4cf   :  { %v20296_v6 = vadd.f32 %v4092_v53, %v20214_v33  ;;  %v15713_v53 = vld [vmem:[#allocation3 + $0xe60] sm:$0xf0] }
 0x4d0   :  { %v5713_v45 = vpop.f32.mrf.mxu0  ;;  %v5789_v15 = vpop.f32.mrf.mxu1  ;;  %5249 = vmatpush.bf16.msra.mxu3 %v15120_v35  ;;  %6655 = vmatpush.bf16.msrb.mxu0 %v15596_v32  ;;  %v15780_v35 = vor.u32 %v18449_v2, %v15777_v28  ;;  %v15716_v14 = vor.u32 %v18433_v37, %v15713_v53  ;;  %v18435_v28 = vld [vmem:[#allocation3 + $0xe34] sm:$0xf] }
 0x4d1   :  { %v20299_v49 = vadd.f32 %v5789_v15, %v20217_v11  ;;  %15523 = vmatmul.msk.bf16.vlgmr.msra.gmra.mxu2 %vm1042_vm2, %v20154_v56  ;;  %v18446_v11 = vld [vmem:[#allocation3 + $0xe8c] sm:$0xf]  ;;  %v18331_v15 = vld [vmem:[#allocation3 + $0xaec] sm:$0xf0] }
 0x4d2   :  { %6220 = vmatpush.bf16.msra.mxu2 %v15512_v34  ;;  %v15756_v0 = vor.u32 %v18446_v11, %v15753_v1  ;;  %v18315_v11 = vld [vmem:[#allocation3 + $0xa6c] sm:$0xf0]  ;;  %v18432_v1 = vld [vmem:[#allocation3 + $0xe1c] sm:$0xf] }
 0x4d3   :  { %15674 = vmatmul.msk.bf16.vlgmr.msra.gmra.mxu1 %vm1042_vm2, %v20236_v17 }
 0x4d4   :  { %v5277_v33 = vpop.f32.mrf.mxu2  ;;  %6945 = vmatpush.bf16.msra.mxu1 %v15764_v57  ;;  %v15769_v57 = vld [vmem:[#allocation3 + $0xed8] sm:$0xf0] }
 0x4d5   :  { %v20306_v29 = vadd.f32 %v5277_v33, %v20224_v59  ;;  %v15607_v59 = vld [vmem:[#allocation3 + $0xd88] sm:$0xf]  ;;  %v15216_v33 = vor.u32 %v18331_v15, %v15215_v43  ;;  %v18341_v15 = vld [vmem:[#allocation3 + $0xb3c] sm:$0xf0] }
 0x4d6   :  { %v4094_v13 = vpop.f32.mrf.mxu3  ;;  %6221 = vmatpush.bf16.msra.mxu2 %v15448_v60  ;;  %v15608_v52 = vor.u32 %v18422_v20, %v15607_v59  ;;  %v15559_v59 = vld [vmem:[#allocation3 + $0xd18] sm:$0xf] }
 0x4d7   :  { %v15705_v13 = vld [vmem:[#allocation3 + $0xe58] sm:$0xf0]  ;;  %v18408_v20 = vld [vmem:[#allocation3 + $0xd54] sm:$0xf0] }
 0x4d8   :  { %v5763_v25 = vpop.f32.mrf.mxu0  ;;  %v5791_v30 = vpop.f32.mrf.mxu1  ;;  %6946 = vmatpush.bf16.msra.mxu1 %v15700_v27  ;;  %v15708_v50 = vor.u32 %v18432_v1, %v15705_v13  ;;  %v15575_v13 = vld [vmem:[#allocation3 + $0xd28] sm:$0xf] }
 0x4d9   :  { %v20309_v7 = vadd.f32 %v5763_v25, %v20227_v8  ;;  %v6677_v8 = vld [vmem:[#allocation2 + $0x70] sm:$0xff]  ;;  %v18424_v25 = vld [vmem:[#allocation3 + $0xdd4] sm:$0xf0] }
 0x4da   :  { %v20318_v32 = vpack.c.bf16 %v6677_v8, %v6677_v8  ;;  %v15729_v8 = vld [vmem:[#allocation3 + $0xe70] sm:$0xf0] }
 0x4db   :  { %15229 = vmatmul.msk.bf16.vlgmr.msrb.gmra.mxu3 %vm1042_vm2, %v19990_v46  ;;  %15672 = vmatmul.msk.bf16.vlgmr.msra.gmra.mxu0 %vm1042_vm2, %v20236_v17 }
 0x4dc   :  { %v5279_v10 = vpop.f32.mrf.mxu2  ;;  %5300 = vmatpush.bf16.msrb.mxu3 %v15200_v4  ;;  %6919 = vmatpush.bf16.msra.mxu0 %v15756_v0  ;;  %v15152_v4 = vor.u32 %v18315_v11, %v15151_v47  ;;  %v18451_v0 = vld [vmem:[#allocation3 + $0xeb4] sm:$0xf]  ;;  %v18477_v47 = vld [vmem:[#allocation3 + $0xf84] sm:$0xf] }
 0x4de   :  { %v4357_v41 = vpop.f32.mrf.mxu3 }
 0x4df   :  { %v20316_v48 = vadd.f32 %v4357_v41, %v20234_v12  ;;  %v15544_v12 = vor.u32 %v18406_v58, %v15543_v3  ;;  %v15560_v41 = vor.u32 %v18408_v20, %v15559_v59  ;;  %v15732_v3 = vor.u32 %v18435_v28, %v15729_v8 }
 0x4e0   :  { %v5765_v36 = vpop.f32.mrf.mxu0  ;;  %v6054_v55 = vpop.f32.mrf.mxu1  ;;  %5301 = vmatpush.bf16.msrb.mxu3 %v15136_v44  ;;  %6920 = vmatpush.bf16.msra.mxu0 %v15692_v63  ;;  %v15796_v63 = vor.u32 %v18451_v0, %v15793_v38  ;;  %v18461_v0 = vld [vmem:[#allocation3 + $0xf04] sm:$0xf] }
 0x4e1   :  { %v20321_v22 = vadd.f32 %v6054_v55, %v20239_v16  ;;  %15527 = vmatmul.msk.bf16.vlgmr.msrb.gmra.mxu2 %vm1042_vm2, %v20154_v56  ;;  %v18448_v16 = vld [vmem:[#allocation3 + $0xe9c] sm:$0xf]  ;;  %v18357_v36 = vld [vmem:[#allocation3 + $0xbbc] sm:$0xf0]  ;;  %v15785_v55 = vld [vmem:[#allocation3 + $0xee8] sm:$0xf0] }
 0x4e2   :  { %6485 = vmatpush.bf16.msrb.mxu2 %v15608_v52  ;;  %v15772_v27 = vor.u32 %v18448_v16, %v15769_v57  ;;  %v15311_v52 = vld [vmem:[#allocation3 + $0xb80] sm:$0xf]  ;;  %v18434_v16 = vld [vmem:[#allocation3 + $0xe2c] sm:$0xf]  ;;  %v15825_v38 = vld [vmem:[#allocation3 + $0xf40] sm:$0xf0] }
 0x4e3   :  { %15806 = vmatmul.msk.bf16.vlgmr.msrb.gmra.mxu1 %vm1042_vm2, %v20318_v32  ;;  %v15721_v57 = vld [vmem:[#allocation3 + $0xe68] sm:$0xf0]  ;;  %v15828_v59 = vor.u32 %v18461_v0, %v15825_v38 }
 0x4e4   :  { %v5329_v34 = vpop.f32.mrf.mxu2  ;;  %6997 = vmatpush.bf16.msrb.mxu1 %v15780_v35 }
 0x4e5   :  { %v20328_v45 = vadd.f32 %v5329_v34, %v20246_v26  ;;  %v15623_v26 = vld [vmem:[#allocation3 + $0xd98] sm:$0xf]  ;;  %v15247_v34 = vld [vmem:[#allocation3 + $0xb00] sm:$0xf] }
 0x4e6   :  { %v4359_v19 = vpop.f32.mrf.mxu3  ;;  %6486 = vmatpush.bf16.msrb.mxu2 %v15544_v12  ;;  %v15624_v40 = vor.u32 %v18424_v25, %v15623_v26  ;;  %v15312_v12 = vor.u32 %v18357_v36, %v15311_v52  ;;  %v18410_v26 = vld [vmem:[#allocation3 + $0xd64] sm:$0xf0]  ;;  %v18343_v36 = vld [vmem:[#allocation3 + $0xb4c] sm:$0xf0] }
 0x4e7   :  { %v18426_v19 = vld [vmem:[#allocation3 + $0xde4] sm:$0xf0] }
 0x4e8   :  { %v5815_v5 = vpop.f32.mrf.mxu0  ;;  %v6056_v60 = vpop.f32.mrf.mxu1  ;;  %6998 = vmatpush.bf16.msrb.mxu1 %v15716_v14 }
 0x4e9   :  { %v20331_v51 = vadd.f32 %v5815_v5, %v20249_v54  ;;  %v15248_v60 = vor.u32 %v18341_v15, %v15247_v34  ;;  %v18479_v34 = vld [vmem:[#allocation3 + $0xf94] sm:$0xf] }
 0x4eb   :  { %15233 = vmatmul.msk.bf16.vlgmr.msra.gmra.mxu3 %vm1042_vm2, %v19990_v46  ;;  %15676 = vmatmul.msk.bf16.vlgmr.msrb.gmra.mxu0 %vm1042_vm2, %v20236_v17 }
 0x4ec   :  { %v5331_v30 = vpop.f32.mrf.mxu2  ;;  %5352 = vmatpush.bf16.msra.mxu3 %v15216_v33  ;;  %6971 = vmatpush.bf16.msrb.mxu0 %v15772_v27  ;;  %v15724_v33 = vor.u32 %v18434_v16, %v15721_v57  ;;  %v15889_v27 = vld [vmem:[#allocation3 + $0xfc0] sm:$0xf0]  ;;  %v15591_v57 = vld [vmem:[#allocation3 + $0xd38] sm:$0xf] }
 0x4ee   :  { %v4409_v54 = vpop.f32.mrf.mxu3 }
 0x4ef   :  { %v20338_v31 = vadd.f32 %v4409_v54, %v20256_v21  ;;  %v15576_v54 = vor.u32 %v18410_v26, %v15575_v13  ;;  %v18361_v26 = vld [vmem:[#allocation3 + $0xbdc] sm:$0xf0] }
 0x4f0   :  { %v5817_v10 = vpop.f32.mrf.mxu0  ;;  %v6106_v44 = vpop.f32.mrf.mxu1  ;;  %5353 = vmatpush.bf16.msra.mxu3 %v15152_v4  ;;  %6972 = vmatpush.bf16.msrb.mxu0 %v15708_v50  ;;  %v15892_v4 = vor.u32 %v18477_v47, %v15889_v27  ;;  %v15841_v47 = vld [vmem:[#allocation3 + $0xf50] sm:$0xf0] }
 0x4f1   :  { %v20341_v2 = vadd.f32 %v6106_v44, %v20259_v62  ;;  %15531 = vmatmul.msk.bf16.vlgmr.msra.gmra.mxu2 %vm1042_vm2, %v20154_v56  ;;  %v18450_v62 = vld [vmem:[#allocation3 + $0xeac] sm:$0xf]  ;;  %v18359_v10 = vld [vmem:[#allocation3 + $0xbcc] sm:$0xf0]  ;;  %v15801_v44 = vld [vmem:[#allocation3 + $0xef8] sm:$0xf0] }
 0x4f2   :  { %6537 = vmatpush.bf16.msra.mxu2 %v15624_v40  ;;  %v15788_v43 = vor.u32 %v18450_v62, %v15785_v55  ;;  %v15327_v40 = vld [vmem:[#allocation3 + $0xb90] sm:$0xf]  ;;  %v18436_v62 = vld [vmem:[#allocation3 + $0xe3c] sm:$0xf] }
 0x4f3   :  { %15810 = vmatmul.msk.bf16.vlgmr.msra.gmra.mxu1 %vm1042_vm2, %v20318_v32  ;;  %v15737_v55 = vld [vmem:[#allocation3 + $0xe78] sm:$0xf0] }
 0x4f4   :  { %v5381_v21 = vpop.f32.mrf.mxu2  ;;  %7049 = vmatpush.bf16.msra.mxu1 %v15796_v63 }
 0x4f5   :  { %v20348_v58 = vadd.f32 %v5381_v21, %v20266_v42  ;;  %v15639_v42 = vld [vmem:[#allocation3 + $0xda8] sm:$0xf]  ;;  %v15263_v21 = vld [vmem:[#allocation3 + $0xb10] sm:$0xf] }
 0x4f6   :  { %v4411_v35 = vpop.f32.mrf.mxu3  ;;  %6538 = vmatpush.bf16.msra.mxu2 %v15560_v41  ;;  %v15640_v11 = vor.u32 %v18426_v19, %v15639_v42  ;;  %v15328_v41 = vor.u32 %v18359_v10, %v15327_v40  ;;  %v18412_v42 = vld [vmem:[#allocation3 + $0xd74] sm:$0xf0]  ;;  %v18462_v10 = vld [vmem:[#allocation3 + $0xf0c] sm:$0xf] }
 0x4f7   :  { %v18428_v35 = vld [vmem:[#allocation3 + $0xdf4] sm:$0xf0]  ;;  %v15592_v27 = vor.u32 %v18412_v42, %v15591_v57  ;;  %v15359_v57 = vld [vmem:[#allocation3 + $0xbb0] sm:$0xf] }
 0x4f8   :  { %v6080_v37 = vpop.f32.mrf.mxu0  ;;  %v6108_v53 = vpop.f32.mrf.mxu1  ;;  %7050 = vmatpush.bf16.msra.mxu1 %v15732_v3 }
 0x4f9   :  { %v20351_v14 = vadd.f32 %v6080_v37, %v20269_v18  ;;  %v15264_v53 = vor.u32 %v18343_v36, %v15263_v21  ;;  %v15921_v21 = vld [vmem:[#allocation3 + $0xfe0] sm:$0xf0] }
 0x4fb   :  { %15237 = vmatmul.msk.bf16.vlgmr.msrb.gmra.mxu3 %vm1042_vm2, %v19990_v46  ;;  %15808 = vmatmul.msk.bf16.vlgmr.msra.gmra.mxu0 %vm1042_vm2, %v20318_v32 }
 0x4fc   :  { %v5383_v5 = vpop.f32.mrf.mxu2  ;;  %5617 = vmatpush.bf16.msrb.mxu3 %v15312_v12  ;;  %7023 = vmatpush.bf16.msra.mxu0 %v15788_v43  ;;  %v15740_v12 = vor.u32 %v18436_v62, %v15737_v55  ;;  %v15905_v43 = vld [vmem:[#allocation3 + $0xfd0] sm:$0xf0]  ;;  %v15687_v55 = vld [vmem:[#allocation3 + $0xe08] sm:$0xf] }
 0x4fd   :  { %v15908_v5 = vor.u32 %v18479_v34, %v15905_v43  ;;  %v18465_v43 = vld [vmem:[#allocation3 + $0xf24] sm:$0xf] }
 0x4fe   :  { %v4461_v18 = vpop.f32.mrf.mxu3 }
 0x4ff   :  { %v20358_v1 = vadd.f32 %v4461_v18, %v20276_v9  ;;  %v15343_v18 = vld [vmem:[#allocation3 + $0xba0] sm:$0xf] }
 0x500   :  { %v6082_v25 = vpop.f32.mrf.mxu0  ;;  %v6158_v30 = vpop.f32.mrf.mxu1  ;;  %5618 = vmatpush.bf16.msrb.mxu3 %v15248_v60  ;;  %7024 = vmatpush.bf16.msra.mxu0 %v15724_v33  ;;  %v18463_v33 = vld [vmem:[#allocation3 + $0xf14] sm:$0xf]  ;;  %v15344_v38 = vor.u32 %v18361_v26, %v15343_v18  ;;  %v15295_v18 = vld [vmem:[#allocation3 + $0xb30] sm:$0xf] }
 0x501   :  { %v20361_v50 = vadd.f32 %v6158_v30, %v20279_v23  ;;  %15663 = vmatmul.msk.bf16.vlgmr.msrb.gmra.mxu2 %vm1042_vm2, %v20236_v17  ;;  %v18452_v23 = vld [vmem:[#allocation3 + $0xebc] sm:$0xf]  ;;  %v15897_v25 = vld [vmem:[#allocation3 + $0xfc8] sm:$0xf0] }
 0x502   :  { %6589 = vmatpush.bf16.msrb.mxu2 %v15640_v11  ;;  %v15804_v52 = vor.u32 %v18452_v23, %v15801_v44  ;;  %v15844_v11 = vor.u32 %v18463_v33, %v15841_v47  ;;  %v15833_v23 = vld [vmem:[#allocation3 + $0xf48] sm:$0xf0]  ;;  %v18454_v44 = vld [vmem:[#allocation3 + $0xec4] sm:$0xf0] }
 0x503   :  { %15814 = vmatmul.msk.bf16.vlgmr.msrb.gmra.mxu1 %vm1042_vm2, %v20318_v32 }
 0x504   :  { %v5646_v9 = vpop.f32.mrf.mxu2  ;;  %7314 = vmatpush.bf16.msrb.mxu1 %v15892_v4 }
 0x505   :  { %v20368_v20 = vadd.f32 %v5646_v9, %v20286_v24  ;;  %v15655_v24 = vld [vmem:[#allocation3 + $0xdb8] sm:$0xf] }
 0x506   :  { %v4463_v63 = vpop.f32.mrf.mxu3  ;;  %6590 = vmatpush.bf16.msrb.mxu2 %v15576_v54  ;;  %v15656_v15 = vor.u32 %v18428_v35, %v15655_v24  ;;  %v15279_v54 = vld [vmem:[#allocation3 + $0xb20] sm:$0xf]  ;;  %v18438_v24 = vld [vmem:[#allocation3 + $0xe44] sm:$0xf0] }
 0x508   :  { %v6132_v28 = vpop.f32.mrf.mxu0  ;;  %v6160_v8 = vpop.f32.mrf.mxu1  ;;  %7315 = vmatpush.bf16.msrb.mxu1 %v15828_v59  ;;  %v18345_v59 = vld [vmem:[#allocation3 + $0xb5c] sm:$0xf0] }
 0x509   :  { %v20371_v3 = vadd.f32 %v6132_v28, %v20289_v61  ;;  %v15280_v28 = vor.u32 %v18345_v59, %v15279_v54  ;;  %v15836_v8 = vor.u32 %v18462_v10, %v15833_v23  ;;  %v15937_v59 = vld [vmem:[#allocation3 + $0xff0] sm:$0xf0] }
 0x50b   :  { %15241 = vmatmul.msk.bf16.vlgmr.msra.gmra.mxu3 %vm1042_vm2, %v19990_v46  ;;  %15812 = vmatmul.msk.bf16.vlgmr.msrb.gmra.mxu0 %vm1042_vm2, %v20318_v32 }
 0x50c   :  { %v5648_v37 = vpop.f32.mrf.mxu2  ;;  %5669 = vmatpush.bf16.msra.mxu3 %v15328_v41  ;;  %7075 = vmatpush.bf16.msrb.mxu0 %v15804_v52  ;;  %v18481_v41 = vld [vmem:[#allocation3 + $0xfa4] sm:$0xf] }
 0x50e   :  { %v4513_v61 = vpop.f32.mrf.mxu3 }
 0x50f   :  { %v20378_v16 = vadd.f32 %v4513_v61, %v20296_v6  ;;  %v15857_v61 = vld [vmem:[#allocation3 + $0xf60] sm:$0xf0] }
 0x510   :  { %v6134_v46 = vpop.f32.mrf.mxu0  ;;  %v6210_v19 = vpop.f32.mrf.mxu1  ;;  %5670 = vmatpush.bf16.msra.mxu3 %v15264_v53  ;;  %7076 = vmatpush.bf16.msrb.mxu0 %v15740_v12  ;;  %v15924_v53 = vor.u32 %v18481_v41, %v15921_v21  ;;  %v15860_v42 = vor.u32 %v18465_v43, %v15857_v61  ;;  %v18467_v21 = vld [vmem:[#allocation3 + $0xf34] sm:$0xf] }
 0x511   :  { %v20381_v60 = vadd.f32 %v6210_v19, %v20299_v49  ;;  %15667 = vmatmul.msk.bf16.vlgmr.msra.gmra.mxu2 %vm1042_vm2, %v20236_v17  ;;  %v18478_v49 = vld [vmem:[#allocation3 + $0xf8c] sm:$0xf]  ;;  %v18363_v19 = vld [vmem:[#allocation3 + $0xbec] sm:$0xf0] }
 0x512   :  { %6641 = vmatpush.bf16.msra.mxu2 %v15656_v15  ;;  %v15900_v9 = vor.u32 %v18478_v49, %v15897_v25  ;;  %v18347_v49 = vld [vmem:[#allocation3 + $0xb6c] sm:$0xf0]  ;;  %v18464_v25 = vld [vmem:[#allocation3 + $0xf1c] sm:$0xf] }
 0x513   :  { %15818 = vmatmul.msk.bf16.vlgmr.msra.gmra.mxu1 %vm1042_vm2, %v20318_v32 }
 0x514   :  { %v5698_v6 = vpop.f32.mrf.mxu2  ;;  %7366 = vmatpush.bf16.msra.mxu1 %v15908_v5  ;;  %v15913_v5 = vld [vmem:[#allocation3 + $0xfd8] sm:$0xf0] }
 0x515   :  { %v20388_v13 = vadd.f32 %v5698_v6, %v20306_v29  ;;  %v15751_v29 = vld [vmem:[#allocation3 + $0xe88] sm:$0xf]  ;;  %v15360_v6 = vor.u32 %v18363_v19, %v15359_v57  ;;  %v18373_v19 = vld [vmem:[#allocation3 + $0xc3c] sm:$0xf0] }
 0x516   :  { %v4515_v30 = vpop.f32.mrf.mxu3  ;;  %6642 = vmatpush.bf16.msra.mxu2 %v15592_v27  ;;  %v15752_v36 = vor.u32 %v18454_v44, %v15751_v29  ;;  %v15703_v29 = vld [vmem:[#allocation3 + $0xe18] sm:$0xf] }
 0x517   :  { %v15849_v30 = vld [vmem:[#allocation3 + $0xf58] sm:$0xf0]  ;;  %v18440_v44 = vld [vmem:[#allocation3 + $0xe54] sm:$0xf0] }
 0x518   :  { %v6184_v4 = vpop.f32.mrf.mxu0  ;;  %v6212_v0 = vpop.f32.mrf.mxu1  ;;  %7367 = vmatpush.bf16.msra.mxu1 %v15844_v11  ;;  %v15852_v54 = vor.u32 %v18464_v25, %v15849_v30  ;;  %v15719_v30 = vld [vmem:[#allocation3 + $0xe28] sm:$0xf] }
 0x519   :  { %v20391_v40 = vadd.f32 %v6184_v4, %v20309_v7  ;;  %v7098_v7 = vld [vmem:[#allocation2 + $0x78] sm:$0xff]  ;;  %v18456_v4 = vld [vmem:[#allocation3 + $0xed4] sm:$0xf0] }
 0x51a   :  { %v20400_v12 = vpack.c.bf16 %v7098_v7, %v7098_v7  ;;  %v15873_v7 = vld [vmem:[#allocation3 + $0xf70] sm:$0xf0] }
 0x51b   :  { %15373 = vmatmul.msk.bf16.vlgmr.msrb.gmra.mxu3 %vm1042_vm2, %v20072_v39  ;;  %15816 = vmatmul.msk.bf16.vlgmr.msra.gmra.mxu0 %vm1042_vm2, %v20318_v32 }
 0x51c   :  { %v5700_v63 = vpop.f32.mrf.mxu2  ;;  %5721 = vmatpush.bf16.msrb.mxu3 %v15344_v38  ;;  %7340 = vmatpush.bf16.msra.mxu0 %v15900_v9  ;;  %v15296_v38 = vor.u32 %v18347_v49, %v15295_v18  ;;  %v18483_v9 = vld [vmem:[#allocation3 + $0xfb4] sm:$0xf]  ;;  %v18509_v18 = vld [vmem:[#allocation3 + $0x1084] sm:$0xf] }
 0x51e   :  { %v4778_v52 = vpop.f32.mrf.mxu3 }
 0x51f   :  { %v20398_v62 = vadd.f32 %v4778_v52, %v20316_v48  ;;  %v15688_v48 = vor.u32 %v18438_v24, %v15687_v55  ;;  %v15704_v52 = vor.u32 %v18440_v44, %v15703_v29  ;;  %v15876_v55 = vor.u32 %v18467_v21, %v15873_v7 }
 0x520   :  { %v6186_v35 = vpop.f32.mrf.mxu0  ;;  %v6475_v37 = vpop.f32.mrf.mxu1  ;;  %5722 = vmatpush.bf16.msrb.mxu3 %v15280_v28  ;;  %7341 = vmatpush.bf16.msra.mxu0 %v15836_v8  ;;  %v15940_v8 = vor.u32 %v18483_v9, %v15937_v59  ;;  %v18493_v9 = vld [vmem:[#allocation3 + $0x1004] sm:$0xf] }
 0x521   :  { %v20403_v34 = vadd.f32 %v6475_v37, %v20321_v22  ;;  %15671 = vmatmul.msk.bf16.vlgmr.msrb.gmra.mxu2 %vm1042_vm2, %v20236_v17  ;;  %v18480_v22 = vld [vmem:[#allocation3 + $0xf9c] sm:$0xf]  ;;  %v18389_v35 = vld [vmem:[#allocation3 + $0xcbc] sm:$0xf0]  ;;  %v15929_v37 = vld [vmem:[#allocation3 + $0xfe8] sm:$0xf0] }
 0x522   :  { %6906 = vmatpush.bf16.msrb.mxu2 %v15752_v36  ;;  %v15916_v11 = vor.u32 %v18480_v22, %v15913_v5  ;;  %v15455_v36 = vld [vmem:[#allocation3 + $0xc80] sm:$0xf]  ;;  %v18466_v22 = vld [vmem:[#allocation3 + $0xf2c] sm:$0xf]  ;;  %v15969_v59 = vld [vmem:[#allocation3 + $0x1040] sm:$0xf0] }
 0x523   :  { %15950 = vmatmul.msk.bf16.vlgmr.msrb.gmra.mxu1 %vm1042_vm2, %v20400_v12  ;;  %v15865_v5 = vld [vmem:[#allocation3 + $0xf68] sm:$0xf0]  ;;  %v15972_v29 = vor.u32 %v18493_v9, %v15969_v59 }
 0x524   :  { %v5750_v15 = vpop.f32.mrf.mxu2  ;;  %7418 = vmatpush.bf16.msrb.mxu1 %v15924_v53 }
 0x525   :  { %v20410_v46 = vadd.f32 %v5750_v15, %v20328_v45  ;;  %v15767_v45 = vld [vmem:[#allocation3 + $0xe98] sm:$0xf]  ;;  %v15391_v15 = vld [vmem:[#allocation3 + $0xc00] sm:$0xf] }
 0x526   :  { %v4780_v33 = vpop.f32.mrf.mxu3  ;;  %6907 = vmatpush.bf16.msrb.mxu2 %v15688_v48  ;;  %v15768_v10 = vor.u32 %v18456_v4, %v15767_v45  ;;  %v15456_v48 = vor.u32 %v18389_v35, %v15455_v36  ;;  %v18442_v45 = vld [vmem:[#allocation3 + $0xe64] sm:$0xf0]  ;;  %v18375_v35 = vld [vmem:[#allocation3 + $0xc4c] sm:$0xf0] }
 0x527   :  { %v18458_v33 = vld [vmem:[#allocation3 + $0xee4] sm:$0xf0] }
 0x528   :  { %v6236_v47 = vpop.f32.mrf.mxu0  ;;  %v6477_v27 = vpop.f32.mrf.mxu1  ;;  %7419 = vmatpush.bf16.msrb.mxu1 %v15860_v42 }
 0x529   :  { %v20413_v26 = vadd.f32 %v6236_v47, %v20331_v51  ;;  %v15392_v27 = vor.u32 %v18373_v19, %v15391_v15  ;;  %v18511_v15 = vld [vmem:[#allocation3 + $0x1094] sm:$0xf] }
 0x52b   :  { %15377 = vmatmul.msk.bf16.vlgmr.msra.gmra.mxu3 %vm1042_vm2, %v20072_v39  ;;  %15820 = vmatmul.msk.bf16.vlgmr.msrb.gmra.mxu0 %vm1042_vm2, %v20318_v32 }
 0x52c   :  { %v5752_v0 = vpop.f32.mrf.mxu2  ;;  %5773 = vmatpush.bf16.msra.mxu3 %v15360_v6  ;;  %7392 = vmatpush.bf16.msrb.mxu0 %v15916_v11  ;;  %v15868_v6 = vor.u32 %v18466_v22, %v15865_v5  ;;  %v16033_v11 = vld [vmem:[#allocation3 + $0x10c0] sm:$0xf0]  ;;  %v15735_v5 = vld [vmem:[#allocation3 + $0xe38] sm:$0xf] }
 0x52e   :  { %v4830_v51 = vpop.f32.mrf.mxu3 }
 0x52f   :  { %v20420_v23 = vadd.f32 %v4830_v51, %v20338_v31  ;;  %v15720_v51 = vor.u32 %v18442_v45, %v15719_v30  ;;  %v18393_v45 = vld [vmem:[#allocation3 + $0xcdc] sm:$0xf0] }
 0x530   :  { %v6238_v63 = vpop.f32.mrf.mxu0  ;;  %v6527_v28 = vpop.f32.mrf.mxu1  ;;  %5774 = vmatpush.bf16.msra.mxu3 %v15296_v38  ;;  %7393 = vmatpush.bf16.msrb.mxu0 %v15852_v54  ;;  %v16036_v38 = vor.u32 %v18509_v18, %v16033_v11  ;;  %v15985_v18 = vld [vmem:[#allocation3 + $0x1050] sm:$0xf0] }
 0x531   :  { %v20423_v41 = vadd.f32 %v6527_v28, %v20341_v2  ;;  %15675 = vmatmul.msk.bf16.vlgmr.msra.gmra.mxu2 %vm1042_vm2, %v20236_v17  ;;  %v18482_v2 = vld [vmem:[#allocation3 + $0xfac] sm:$0xf]  ;;  %v18391_v63 = vld [vmem:[#allocation3 + $0xccc] sm:$0xf0]  ;;  %v15945_v28 = vld [vmem:[#allocation3 + $0xff8] sm:$0xf0] }
 0x532   :  { %6958 = vmatpush.bf16.msra.mxu2 %v15768_v10  ;;  %v15932_v57 = vor.u32 %v18482_v2, %v15929_v37  ;;  %v15471_v10 = vld [vmem:[#allocation3 + $0xc90] sm:$0xf]  ;;  %v18468_v2 = vld [vmem:[#allocation3 + $0xf3c] sm:$0xf] }
 0x533   :  { %15954 = vmatmul.msk.bf16.vlgmr.msra.gmra.mxu1 %vm1042_vm2, %v20400_v12  ;;  %v15881_v37 = vld [vmem:[#allocation3 + $0xf78] sm:$0xf0] }
 0x534   :  { %v5802_v31 = vpop.f32.mrf.mxu2  ;;  %7470 = vmatpush.bf16.msra.mxu1 %v15940_v8 }
 0x535   :  { %v20430_v24 = vadd.f32 %v5802_v31, %v20348_v58  ;;  %v15783_v58 = vld [vmem:[#allocation3 + $0xea8] sm:$0xf]  ;;  %v15407_v31 = vld [vmem:[#allocation3 + $0xc10] sm:$0xf] }
 0x536   :  { %v4832_v53 = vpop.f32.mrf.mxu3  ;;  %6959 = vmatpush.bf16.msra.mxu2 %v15704_v52  ;;  %v15784_v49 = vor.u32 %v18458_v33, %v15783_v58  ;;  %v15472_v52 = vor.u32 %v18391_v63, %v15471_v10  ;;  %v18444_v58 = vld [vmem:[#allocation3 + $0xe74] sm:$0xf0]  ;;  %v18494_v63 = vld [vmem:[#allocation3 + $0x100c] sm:$0xf] }
 0x537   :  { %v18460_v53 = vld [vmem:[#allocation3 + $0xef4] sm:$0xf0]  ;;  %v15736_v11 = vor.u32 %v18444_v58, %v15735_v5  ;;  %v15503_v5 = vld [vmem:[#allocation3 + $0xcb0] sm:$0xf] }
 0x538   :  { %v6501_v43 = vpop.f32.mrf.mxu0  ;;  %v6529_v61 = vpop.f32.mrf.mxu1  ;;  %7471 = vmatpush.bf16.msra.mxu1 %v15876_v55 }
 0x539   :  { %v20433_v42 = vadd.f32 %v6501_v43, %v20351_v14  ;;  %v15408_v61 = vor.u32 %v18375_v35, %v15407_v31  ;;  %v16065_v31 = vld [vmem:[#allocation3 + $0x10e0] sm:$0xf0] }
 0x53b   :  { %15381 = vmatmul.msk.bf16.vlgmr.msrb.gmra.mxu3 %vm1042_vm2, %v20072_v39  ;;  %15952 = vmatmul.msk.bf16.vlgmr.msra.gmra.mxu0 %vm1042_vm2, %v20400_v12 }
 0x53c   :  { %v5804_v47 = vpop.f32.mrf.mxu2  ;;  %6038 = vmatpush.bf16.msrb.mxu3 %v15456_v48  ;;  %7444 = vmatpush.bf16.msra.mxu0 %v15932_v57  ;;  %v15884_v48 = vor.u32 %v18468_v2, %v15881_v37  ;;  %v16049_v57 = vld [vmem:[#allocation3 + $0x10d0] sm:$0xf0]  ;;  %v15831_v37 = vld [vmem:[#allocation3 + $0xf08] sm:$0xf] }
 0x53d   :  { %v16052_v47 = vor.u32 %v18511_v15, %v16049_v57  ;;  %v18497_v57 = vld [vmem:[#allocation3 + $0x1024] sm:$0xf] }
 0x53e   :  { %v4882_v14 = vpop.f32.mrf.mxu3 }
 0x53f   :  { %v20440_v25 = vadd.f32 %v4882_v14, %v20358_v1  ;;  %v15487_v14 = vld [vmem:[#allocation3 + $0xca0] sm:$0xf] }
 0x540   :  { %v6503_v4 = vpop.f32.mrf.mxu0  ;;  %v6579_v0 = vpop.f32.mrf.mxu1  ;;  %6039 = vmatpush.bf16.msrb.mxu3 %v15392_v27  ;;  %7445 = vmatpush.bf16.msra.mxu0 %v15868_v6  ;;  %v18495_v6 = vld [vmem:[#allocation3 + $0x1014] sm:$0xf]  ;;  %v15488_v59 = vor.u32 %v18393_v45, %v15487_v14  ;;  %v15439_v14 = vld [vmem:[#allocation3 + $0xc30] sm:$0xf] }
 0x541   :  { %v20443_v54 = vadd.f32 %v6579_v0, %v20361_v50  ;;  %15807 = vmatmul.msk.bf16.vlgmr.msrb.gmra.mxu2 %vm1042_vm2, %v20318_v32  ;;  %v18484_v50 = vld [vmem:[#allocation3 + $0xfbc] sm:$0xf]  ;;  %v16041_v4 = vld [vmem:[#allocation3 + $0x10c8] sm:$0xf0] }
 0x542   :  { %7010 = vmatpush.bf16.msrb.mxu2 %v15784_v49  ;;  %v15948_v36 = vor.u32 %v18484_v50, %v15945_v28  ;;  %v15988_v49 = vor.u32 %v18495_v6, %v15985_v18  ;;  %v15977_v50 = vld [vmem:[#allocation3 + $0x1048] sm:$0xf0]  ;;  %v18486_v28 = vld [vmem:[#allocation3 + $0xfc4] sm:$0xf0] }
 0x543   :  { %15958 = vmatmul.msk.bf16.vlgmr.msrb.gmra.mxu1 %vm1042_vm2, %v20400_v12 }
 0x544   :  { %v6067_v1 = vpop.f32.mrf.mxu2  ;;  %7735 = vmatpush.bf16.msrb.mxu1 %v16036_v38 }
 0x545   :  { %v20450_v44 = vadd.f32 %v6067_v1, %v20368_v20  ;;  %v15799_v20 = vld [vmem:[#allocation3 + $0xeb8] sm:$0xf] }
 0x546   :  { %v4884_v8 = vpop.f32.mrf.mxu3  ;;  %7011 = vmatpush.bf16.msrb.mxu2 %v15720_v51  ;;  %v15800_v19 = vor.u32 %v18460_v53, %v15799_v20  ;;  %v15423_v51 = vld [vmem:[#allocation3 + $0xc20] sm:$0xf]  ;;  %v18470_v20 = vld [vmem:[#allocation3 + $0xf44] sm:$0xf0] }
 0x548   :  { %v6553_v21 = vpop.f32.mrf.mxu0  ;;  %v6581_v7 = vpop.f32.mrf.mxu1  ;;  %7736 = vmatpush.bf16.msrb.mxu1 %v15972_v29  ;;  %v18377_v29 = vld [vmem:[#allocation3 + $0xc5c] sm:$0xf0] }
 0x549   :  { %v20453_v55 = vadd.f32 %v6553_v21, %v20371_v3  ;;  %v15424_v21 = vor.u32 %v18377_v29, %v15423_v51  ;;  %v15980_v7 = vor.u32 %v18494_v63, %v15977_v50  ;;  %v16081_v29 = vld [vmem:[#allocation3 + $0x10f0] sm:$0xf0] }
 0x54b   :  { %15385 = vmatmul.msk.bf16.vlgmr.msra.gmra.mxu3 %vm1042_vm2, %v20072_v39  ;;  %15956 = vmatmul.msk.bf16.vlgmr.msrb.gmra.mxu0 %vm1042_vm2, %v20400_v12 }
 0x54c   :  { %v6069_v43 = vpop.f32.mrf.mxu2  ;;  %6090 = vmatpush.bf16.msra.mxu3 %v15472_v52  ;;  %7496 = vmatpush.bf16.msrb.mxu0 %v15948_v36  ;;  %v18513_v52 = vld [vmem:[#allocation3 + $0x10a4] sm:$0xf] }
 0x54e   :  { %v4934_v3 = vpop.f32.mrf.mxu3 }
 0x54f   :  { %v20460_v22 = vadd.f32 %v4934_v3, %v20378_v16  ;;  %v16001_v3 = vld [vmem:[#allocation3 + $0x1060] sm:$0xf0] }
 0x550   :  { %v6555_v39 = vpop.f32.mrf.mxu0  ;;  %v6631_v33 = vpop.f32.mrf.mxu1  ;;  %6091 = vmatpush.bf16.msra.mxu3 %v15408_v61  ;;  %7497 = vmatpush.bf16.msrb.mxu0 %v15884_v48  ;;  %v16068_v61 = vor.u32 %v18513_v52, %v16065_v31  ;;  %v16004_v58 = vor.u32 %v18497_v57, %v16001_v3  ;;  %v18499_v31 = vld [vmem:[#allocation3 + $0x1034] sm:$0xf] }
 0x551   :  { %v20463_v27 = vadd.f32 %v6631_v33, %v20381_v60  ;;  %15811 = vmatmul.msk.bf16.vlgmr.msra.gmra.mxu2 %vm1042_vm2, %v20318_v32  ;;  %v18510_v60 = vld [vmem:[#allocation3 + $0x108c] sm:$0xf]  ;;  %v18395_v33 = vld [vmem:[#allocation3 + $0xcec] sm:$0xf0] }
 0x552   :  { %7062 = vmatpush.bf16.msra.mxu2 %v15800_v19  ;;  %v16044_v1 = vor.u32 %v18510_v60, %v16041_v4  ;;  %v18379_v60 = vld [vmem:[#allocation3 + $0xc6c] sm:$0xf0]  ;;  %v18496_v4 = vld [vmem:[#allocation3 + $0x101c] sm:$0xf] }
 0x553   :  { %15962 = vmatmul.msk.bf16.vlgmr.msra.gmra.mxu1 %vm1042_vm2, %v20400_v12 }
 0x554   :  { %v6119_v16 = vpop.f32.mrf.mxu2  ;;  %7787 = vmatpush.bf16.msra.mxu1 %v16052_v47  ;;  %v16057_v47 = vld [vmem:[#allocation3 + $0x10d8] sm:$0xf0] }
 0x555   :  { %v20470_v30 = vadd.f32 %v6119_v16, %v20388_v13  ;;  %v15895_v13 = vld [vmem:[#allocation3 + $0xf88] sm:$0xf]  ;;  %v15504_v16 = vor.u32 %v18395_v33, %v15503_v5  ;;  %v18405_v33 = vld [vmem:[#allocation3 + $0xd3c] sm:$0xf0] }
 0x556   :  { %v4936_v0 = vpop.f32.mrf.mxu3  ;;  %7063 = vmatpush.bf16.msra.mxu2 %v15736_v11  ;;  %v15896_v35 = vor.u32 %v18486_v28, %v15895_v13  ;;  %v15847_v13 = vld [vmem:[#allocation3 + $0xf18] sm:$0xf] }
 0x557   :  { %v15993_v0 = vld [vmem:[#allocation3 + $0x1058] sm:$0xf0]  ;;  %v18472_v28 = vld [vmem:[#allocation3 + $0xf54] sm:$0xf0] }
 0x558   :  { %v6605_v38 = vpop.f32.mrf.mxu0  ;;  %v6633_v9 = vpop.f32.mrf.mxu1  ;;  %7788 = vmatpush.bf16.msra.mxu1 %v15988_v49  ;;  %v15996_v51 = vor.u32 %v18496_v4, %v15993_v0  ;;  %v15863_v0 = vld [vmem:[#allocation3 + $0xf28] sm:$0xf] }
 0x559   :  { %v20473_v10 = vadd.f32 %v6605_v38, %v20391_v40  ;;  %v7519_v40 = vld [vmem:[#allocation2 + $0x80] sm:$0xff]  ;;  %v18488_v38 = vld [vmem:[#allocation3 + $0xfd4] sm:$0xf0] }
 0x55a   :  { %v20482_v48 = vpack.c.bf16 %v7519_v40, %v7519_v40  ;;  %v16017_v40 = vld [vmem:[#allocation3 + $0x1070] sm:$0xf0] }
 0x55b   :  { %15517 = vmatmul.msk.bf16.vlgmr.msrb.gmra.mxu3 %vm1042_vm2, %v20154_v56  ;;  %15960 = vmatmul.msk.bf16.vlgmr.msra.gmra.mxu0 %vm1042_vm2, %v20400_v12 }
 0x55c   :  { %v6121_v8 = vpop.f32.mrf.mxu2  ;;  %6142 = vmatpush.bf16.msrb.mxu3 %v15488_v59  ;;  %7761 = vmatpush.bf16.msra.mxu0 %v16044_v1  ;;  %v15440_v59 = vor.u32 %v18379_v60, %v15439_v14  ;;  %v18515_v1 = vld [vmem:[#allocation3 + $0x10b4] sm:$0xf]  ;;  %v18541_v14 = vld [vmem:[#allocation3 + $0x1184] sm:$0xf] }
 0x55e   :  { %v5199_v36 = vpop.f32.mrf.mxu3 }
 0x55f   :  { %v20480_v2 = vadd.f32 %v5199_v36, %v20398_v62  ;;  %v15832_v62 = vor.u32 %v18470_v20, %v15831_v37  ;;  %v15848_v36 = vor.u32 %v18472_v28, %v15847_v13  ;;  %v16020_v37 = vor.u32 %v18499_v31, %v16017_v40 }
 0x560   :  { %v6607_v53 = vpop.f32.mrf.mxu0  ;;  %v6896_v43 = vpop.f32.mrf.mxu1  ;;  %6143 = vmatpush.bf16.msrb.mxu3 %v15424_v21  ;;  %7762 = vmatpush.bf16.msra.mxu0 %v15980_v7  ;;  %v16084_v7 = vor.u32 %v18515_v1, %v16081_v29  ;;  %v18525_v1 = vld [vmem:[#allocation3 + $0x1104] sm:$0xf] }
 0x561   :  { %v20485_v15 = vadd.f32 %v6896_v43, %v20403_v34  ;;  %15815 = vmatmul.msk.bf16.vlgmr.msrb.gmra.mxu2 %vm1042_vm2, %v20318_v32  ;;  %v18512_v34 = vld [vmem:[#allocation3 + $0x109c] sm:$0xf]  ;;  %v18421_v53 = vld [vmem:[#allocation3 + $0xdbc] sm:$0xf0]  ;;  %v16073_v43 = vld [vmem:[#allocation3 + $0x10e8] sm:$0xf0] }
 0x562   :  { %7327 = vmatpush.bf16.msrb.mxu2 %v15896_v35  ;;  %v16060_v49 = vor.u32 %v18512_v34, %v16057_v47  ;;  %v15599_v35 = vld [vmem:[#allocation3 + $0xd80] sm:$0xf]  ;;  %v18498_v34 = vld [vmem:[#allocation3 + $0x102c] sm:$0xf]  ;;  %v16113_v29 = vld [vmem:[#allocation3 + $0x1140] sm:$0xf0] }
 0x563   :  { %16094 = vmatmul.msk.bf16.vlgmr.msrb.gmra.mxu1 %vm1042_vm2, %v20482_v48  ;;  %v16009_v47 = vld [vmem:[#allocation3 + $0x1068] sm:$0xf0]  ;;  %v16116_v13 = vor.u32 %v18525_v1, %v16113_v29 }
 0x564   :  { %v6171_v19 = vpop.f32.mrf.mxu2  ;;  %7839 = vmatpush.bf16.msrb.mxu1 %v16068_v61 }
 0x565   :  { %v20492_v39 = vadd.f32 %v6171_v19, %v20410_v46  ;;  %v15911_v46 = vld [vmem:[#allocation3 + $0xf98] sm:$0xf]  ;;  %v15535_v19 = vld [vmem:[#allocation3 + $0xd00] sm:$0xf] }
 0x566   :  { %v5201_v6 = vpop.f32.mrf.mxu3  ;;  %7328 = vmatpush.bf16.msrb.mxu2 %v15832_v62  ;;  %v15912_v63 = vor.u32 %v18488_v38, %v15911_v46  ;;  %v15600_v62 = vor.u32 %v18421_v53, %v15599_v35  ;;  %v18474_v46 = vld [vmem:[#allocation3 + $0xf64] sm:$0xf0]  ;;  %v18407_v53 = vld [vmem:[#allocation3 + $0xd4c] sm:$0xf0] }
 0x567   :  { %v18490_v6 = vld [vmem:[#allocation3 + $0xfe4] sm:$0xf0] }
 0x568   :  { %v6657_v18 = vpop.f32.mrf.mxu0  ;;  %v6898_v11 = vpop.f32.mrf.mxu1  ;;  %7840 = vmatpush.bf16.msrb.mxu1 %v16004_v58 }
 0x569   :  { %v20495_v45 = vadd.f32 %v6657_v18, %v20413_v26  ;;  %v15536_v11 = vor.u32 %v18405_v33, %v15535_v19  ;;  %v18543_v19 = vld [vmem:[#allocation3 + $0x1194] sm:$0xf] }
 0x56b   :  { %15521 = vmatmul.msk.bf16.vlgmr.msra.gmra.mxu3 %vm1042_vm2, %v20154_v56  ;;  %15964 = vmatmul.msk.bf16.vlgmr.msrb.gmra.mxu0 %vm1042_vm2, %v20400_v12 }
 0x56c   :  { %v6173_v9 = vpop.f32.mrf.mxu2  ;;  %6194 = vmatpush.bf16.msra.mxu3 %v15504_v16  ;;  %7813 = vmatpush.bf16.msrb.mxu0 %v16060_v49  ;;  %v16012_v16 = vor.u32 %v18498_v34, %v16009_v47  ;;  %v16177_v49 = vld [vmem:[#allocation3 + $0x11c0] sm:$0xf0]  ;;  %v15879_v47 = vld [vmem:[#allocation3 + $0xf38] sm:$0xf] }
 0x56e   :  { %v5251_v26 = vpop.f32.mrf.mxu3 }
 0x56f   :  { %v20502_v50 = vadd.f32 %v5251_v26, %v20420_v23  ;;  %v15864_v26 = vor.u32 %v18474_v46, %v15863_v0  ;;  %v18425_v46 = vld [vmem:[#allocation3 + $0xddc] sm:$0xf0] }
 0x570   :  { %v6659_v8 = vpop.f32.mrf.mxu0  ;;  %v6948_v21 = vpop.f32.mrf.mxu1  ;;  %6195 = vmatpush.bf16.msra.mxu3 %v15440_v59  ;;  %7814 = vmatpush.bf16.msrb.mxu0 %v15996_v51  ;;  %v16180_v59 = vor.u32 %v18541_v14, %v16177_v49  ;;  %v16129_v14 = vld [vmem:[#allocation3 + $0x1150] sm:$0xf0] }
 0x571   :  { %v20505_v52 = vadd.f32 %v6948_v21, %v20423_v41  ;;  %15819 = vmatmul.msk.bf16.vlgmr.msra.gmra.mxu2 %vm1042_vm2, %v20318_v32  ;;  %v18514_v41 = vld [vmem:[#allocation3 + $0x10ac] sm:$0xf]  ;;  %v18423_v8 = vld [vmem:[#allocation3 + $0xdcc] sm:$0xf0]  ;;  %v16089_v21 = vld [vmem:[#allocation3 + $0x10f8] sm:$0xf0] }
 0x572   :  { %7379 = vmatpush.bf16.msra.mxu2 %v15912_v63  ;;  %v16076_v5 = vor.u32 %v18514_v41, %v16073_v43  ;;  %v15615_v63 = vld [vmem:[#allocation3 + $0xd90] sm:$0xf]  ;;  %v18500_v41 = vld [vmem:[#allocation3 + $0x103c] sm:$0xf] }
 0x573   :  { %16098 = vmatmul.msk.bf16.vlgmr.msra.gmra.mxu1 %vm1042_vm2, %v20482_v48  ;;  %v16025_v43 = vld [vmem:[#allocation3 + $0x1078] sm:$0xf0] }
 0x574   :  { %v6223_v23 = vpop.f32.mrf.mxu2  ;;  %7891 = vmatpush.bf16.msra.mxu1 %v16084_v7 }
 0x575   :  { %v20512_v20 = vadd.f32 %v6223_v23, %v20430_v24  ;;  %v15927_v24 = vld [vmem:[#allocation3 + $0xfa8] sm:$0xf]  ;;  %v15551_v23 = vld [vmem:[#allocation3 + $0xd10] sm:$0xf] }
 0x576   :  { %v5253_v61 = vpop.f32.mrf.mxu3  ;;  %7380 = vmatpush.bf16.msra.mxu2 %v15848_v36  ;;  %v15928_v60 = vor.u32 %v18490_v6, %v15927_v24  ;;  %v15616_v36 = vor.u32 %v18423_v8, %v15615_v63  ;;  %v18476_v24 = vld [vmem:[#allocation3 + $0xf74] sm:$0xf0]  ;;  %v18526_v8 = vld [vmem:[#allocation3 + $0x110c] sm:$0xf] }
 0x577   :  { %v18492_v61 = vld [vmem:[#allocation3 + $0xff4] sm:$0xf0]  ;;  %v15880_v49 = vor.u32 %v18476_v24, %v15879_v47  ;;  %v15647_v47 = vld [vmem:[#allocation3 + $0xdb0] sm:$0xf] }
 0x578   :  { %v6922_v57 = vpop.f32.mrf.mxu0  ;;  %v6950_v3 = vpop.f32.mrf.mxu1  ;;  %7892 = vmatpush.bf16.msra.mxu1 %v16020_v37 }
 0x579   :  { %v20515_v58 = vadd.f32 %v6922_v57, %v20433_v42  ;;  %v15552_v3 = vor.u32 %v18407_v53, %v15551_v23  ;;  %v16209_v23 = vld [vmem:[#allocation3 + $0x11e0] sm:$0xf0] }
 0x57b   :  { %15525 = vmatmul.msk.bf16.vlgmr.msrb.gmra.mxu3 %vm1042_vm2, %v20154_v56  ;;  %16096 = vmatmul.msk.bf16.vlgmr.msra.gmra.mxu0 %vm1042_vm2, %v20482_v48 }
 0x57c   :  { %v6225_v18 = vpop.f32.mrf.mxu2  ;;  %6459 = vmatpush.bf16.msrb.mxu3 %v15600_v62  ;;  %7865 = vmatpush.bf16.msra.mxu0 %v16076_v5  ;;  %v16028_v62 = vor.u32 %v18500_v41, %v16025_v43  ;;  %v16193_v5 = vld [vmem:[#allocation3 + $0x11d0] sm:$0xf0]  ;;  %v15975_v43 = vld [vmem:[#allocation3 + $0x1008] sm:$0xf] }
 0x57d   :  { %v16196_v18 = vor.u32 %v18543_v19, %v16193_v5  ;;  %v18529_v5 = vld [vmem:[#allocation3 + $0x1124] sm:$0xf] }
 0x57e   :  { %v5303_v42 = vpop.f32.mrf.mxu3 }
 0x57f   :  { %v20522_v4 = vadd.f32 %v5303_v42, %v20440_v25  ;;  %v15631_v42 = vld [vmem:[#allocation3 + $0xda0] sm:$0xf] }
 0x580   :  { %v6924_v38 = vpop.f32.mrf.mxu0  ;;  %v7000_v9 = vpop.f32.mrf.mxu1  ;;  %6460 = vmatpush.bf16.msrb.mxu3 %v15536_v11  ;;  %7866 = vmatpush.bf16.msra.mxu0 %v16012_v16  ;;  %v18527_v16 = vld [vmem:[#allocation3 + $0x1114] sm:$0xf]  ;;  %v15632_v29 = vor.u32 %v18425_v46, %v15631_v42  ;;  %v15583_v42 = vld [vmem:[#allocation3 + $0xd30] sm:$0xf] }
 0x581   :  { %v20525_v51 = vadd.f32 %v7000_v9, %v20443_v54  ;;  %15951 = vmatmul.msk.bf16.vlgmr.msrb.gmra.mxu2 %vm1042_vm2, %v20400_v12  ;;  %v18516_v54 = vld [vmem:[#allocation3 + $0x10bc] sm:$0xf]  ;;  %v16185_v38 = vld [vmem:[#allocation3 + $0x11c8] sm:$0xf0] }
 0x582   :  { %7431 = vmatpush.bf16.msrb.mxu2 %v15928_v60  ;;  %v16092_v35 = vor.u32 %v18516_v54, %v16089_v21  ;;  %v16132_v60 = vor.u32 %v18527_v16, %v16129_v14  ;;  %v16121_v54 = vld [vmem:[#allocation3 + $0x1148] sm:$0xf0]  ;;  %v18518_v21 = vld [vmem:[#allocation3 + $0x10c4] sm:$0xf0] }
 0x583   :  { %16102 = vmatmul.msk.bf16.vlgmr.msrb.gmra.mxu1 %vm1042_vm2, %v20482_v48 }
 0x584   :  { %v6488_v25 = vpop.f32.mrf.mxu2  ;;  %8156 = vmatpush.bf16.msrb.mxu1 %v16180_v59 }
 0x585   :  { %v20532_v28 = vadd.f32 %v6488_v25, %v20450_v44  ;;  %v15943_v44 = vld [vmem:[#allocation3 + $0xfb8] sm:$0xf] }
 0x586   :  { %v5305_v7 = vpop.f32.mrf.mxu3  ;;  %7432 = vmatpush.bf16.msrb.mxu2 %v15864_v26  ;;  %v15944_v33 = vor.u32 %v18492_v61, %v15943_v44  ;;  %v15567_v26 = vld [vmem:[#allocation3 + $0xd20] sm:$0xf]  ;;  %v18502_v44 = vld [vmem:[#allocation3 + $0x1044] sm:$0xf0] }
 0x588   :  { %v6974_v31 = vpop.f32.mrf.mxu0  ;;  %v7002_v40 = vpop.f32.mrf.mxu1  ;;  %8157 = vmatpush.bf16.msrb.mxu1 %v16116_v13  ;;  %v18409_v13 = vld [vmem:[#allocation3 + $0xd5c] sm:$0xf0] }
 0x589   :  { %v20535_v37 = vadd.f32 %v6974_v31, %v20453_v55  ;;  %v15568_v31 = vor.u32 %v18409_v13, %v15567_v26  ;;  %v16124_v40 = vor.u32 %v18526_v8, %v16121_v54  ;;  %v16225_v13 = vld [vmem:[#allocation3 + $0x11f0] sm:$0xf0] }
 0x58b   :  { %15529 = vmatmul.msk.bf16.vlgmr.msra.gmra.mxu3 %vm1042_vm2, %v20154_v56  ;;  %16100 = vmatmul.msk.bf16.vlgmr.msrb.gmra.mxu0 %vm1042_vm2, %v20482_v48 }
 0x58c   :  { %v6490_v57 = vpop.f32.mrf.mxu2  ;;  %6511 = vmatpush.bf16.msra.mxu3 %v15616_v36  ;;  %7917 = vmatpush.bf16.msrb.mxu0 %v16092_v35  ;;  %v18545_v36 = vld [vmem:[#allocation3 + $0x11a4] sm:$0xf] }
 0x58e   :  { %v5355_v55 = vpop.f32.mrf.mxu3 }
 0x58f   :  { %v20542_v34 = vadd.f32 %v5355_v55, %v20460_v22  ;;  %v16145_v55 = vld [vmem:[#allocation3 + $0x1160] sm:$0xf0] }
 0x590   :  { %v6976_v56 = vpop.f32.mrf.mxu0  ;;  %v7052_v6 = vpop.f32.mrf.mxu1  ;;  %6512 = vmatpush.bf16.msra.mxu3 %v15552_v3  ;;  %7918 = vmatpush.bf16.msrb.mxu0 %v16028_v62  ;;  %v16212_v3 = vor.u32 %v18545_v36, %v16209_v23  ;;  %v16148_v24 = vor.u32 %v18529_v5, %v16145_v55  ;;  %v18531_v23 = vld [vmem:[#allocation3 + $0x1134] sm:$0xf] }
 0x591   :  { %v20545_v11 = vadd.f32 %v7052_v6, %v20463_v27  ;;  %15955 = vmatmul.msk.bf16.vlgmr.msra.gmra.mxu2 %vm1042_vm2, %v20400_v12  ;;  %v18542_v27 = vld [vmem:[#allocation3 + $0x118c] sm:$0xf]  ;;  %v18427_v6 = vld [vmem:[#allocation3 + $0xdec] sm:$0xf0] }
 0x592   :  { %7483 = vmatpush.bf16.msra.mxu2 %v15944_v33  ;;  %v16188_v25 = vor.u32 %v18542_v27, %v16185_v38  ;;  %v18411_v27 = vld [vmem:[#allocation3 + $0xd6c] sm:$0xf0]  ;;  %v18528_v38 = vld [vmem:[#allocation3 + $0x111c] sm:$0xf] }
 0x593   :  { %16106 = vmatmul.msk.bf16.vlgmr.msra.gmra.mxu1 %vm1042_vm2, %v20482_v48 }
 0x594   :  { %v6540_v22 = vpop.f32.mrf.mxu2  ;;  %8208 = vmatpush.bf16.msra.mxu1 %v16196_v18  ;;  %v16201_v18 = vld [vmem:[#allocation3 + $0x11d8] sm:$0xf0] }
 0x595   :  { %v20552_v0 = vadd.f32 %v6540_v22, %v20470_v30  ;;  %v16039_v30 = vld [vmem:[#allocation3 + $0x1088] sm:$0xf]  ;;  %v15648_v22 = vor.u32 %v18427_v6, %v15647_v47  ;;  %v18437_v6 = vld [vmem:[#allocation3 + $0xe3c] sm:$0xf0] }
 0x596   :  { %v5357_v9 = vpop.f32.mrf.mxu3  ;;  %7484 = vmatpush.bf16.msra.mxu2 %v15880_v49  ;;  %v16040_v53 = vor.u32 %v18518_v21, %v16039_v30  ;;  %v15991_v30 = vld [vmem:[#allocation3 + $0x1018] sm:$0xf] }
 0x597   :  { %v16137_v9 = vld [vmem:[#allocation3 + $0x1158] sm:$0xf0]  ;;  %v18504_v21 = vld [vmem:[#allocation3 + $0x1054] sm:$0xf0] }
 0x598   :  { %v7026_v59 = vpop.f32.mrf.mxu0  ;;  %v7054_v1 = vpop.f32.mrf.mxu1  ;;  %8209 = vmatpush.bf16.msra.mxu1 %v16132_v60  ;;  %v16140_v26 = vor.u32 %v18528_v38, %v16137_v9  ;;  %v16007_v9 = vld [vmem:[#allocation3 + $0x1028] sm:$0xf] }
 0x599   :  { %v20555_v63 = vadd.f32 %v7026_v59, %v20473_v10  ;;  %v7940_v10 = vld [vmem:[#allocation2 + $0x88] sm:$0xff] }
 0x59a   :  { %v20564_v62 = vpack.c.bf16 %v7940_v10, %v7940_v10  ;;  %v18520_v59 = vld [vmem:[#allocation3 + $0x10d4] sm:$0xf0]  ;;  %v16161_v10 = vld [vmem:[#allocation3 + $0x1170] sm:$0xf0] }
 0x59b   :  { %15661 = vmatmul.msk.bf16.vlgmr.msrb.gmra.mxu3 %vm1042_vm2, %v20236_v17  ;;  %16104 = vmatmul.msk.bf16.vlgmr.msra.gmra.mxu0 %vm1042_vm2, %v20482_v48 }
 0x59c   :  { %v6542_v7 = vpop.f32.mrf.mxu2  ;;  %6563 = vmatpush.bf16.msrb.mxu3 %v15632_v29  ;;  %8182 = vmatpush.bf16.msra.mxu0 %v16188_v25  ;;  %v15584_v29 = vor.u32 %v18411_v27, %v15583_v42  ;;  %v18547_v25 = vld [vmem:[#allocation3 + $0x11b4] sm:$0xf]  ;;  %v18573_v42 = vld [vmem:[#allocation3 + $0x1284] sm:$0xf] }
 0x59e   :  { %v5620_v35 = vpop.f32.mrf.mxu3 }
 0x59f   :  { %v20562_v41 = vadd.f32 %v5620_v35, %v20480_v2  ;;  %v15976_v2 = vor.u32 %v18502_v44, %v15975_v43  ;;  %v15992_v35 = vor.u32 %v18504_v21, %v15991_v30  ;;  %v16164_v43 = vor.u32 %v18531_v23, %v16161_v10 }
 0x5a0   :  { %v7028_v61 = vpop.f32.mrf.mxu0  ;;  %v7317_v57 = vpop.f32.mrf.mxu1  ;;  %6564 = vmatpush.bf16.msrb.mxu3 %v15568_v31  ;;  %8183 = vmatpush.bf16.msra.mxu0 %v16124_v40  ;;  %v16228_v40 = vor.u32 %v18547_v25, %v16225_v13  ;;  %v18557_v25 = vld [vmem:[#allocation3 + $0x1204] sm:$0xf] }
 0x5a1   :  { %v20567_v19 = vadd.f32 %v7317_v57, %v20485_v15  ;;  %15959 = vmatmul.msk.bf16.vlgmr.msrb.gmra.mxu2 %vm1042_vm2, %v20400_v12  ;;  %v18544_v15 = vld [vmem:[#allocation3 + $0x119c] sm:$0xf]  ;;  %v18453_v61 = vld [vmem:[#allocation3 + $0xebc] sm:$0xf0]  ;;  %v16217_v57 = vld [vmem:[#allocation3 + $0x11e8] sm:$0xf0] }
 0x5a2   :  { %7748 = vmatpush.bf16.msrb.mxu2 %v16040_v53  ;;  %v16204_v60 = vor.u32 %v18544_v15, %v16201_v18  ;;  %v15743_v53 = vld [vmem:[#allocation3 + $0xe80] sm:$0xf]  ;;  %v18530_v15 = vld [vmem:[#allocation3 + $0x112c] sm:$0xf]  ;;  %v16257_v13 = vld [vmem:[#allocation3 + $0x1240] sm:$0xf0] }
 0x5a3   :  { %16238 = vmatmul.msk.bf16.vlgmr.msrb.gmra.mxu1 %vm1042_vm2, %v20564_v62  ;;  %v16153_v18 = vld [vmem:[#allocation3 + $0x1168] sm:$0xf0]  ;;  %v16260_v30 = vor.u32 %v18557_v25, %v16257_v13 }
 0x5a4   :  { %v6592_v33 = vpop.f32.mrf.mxu2  ;;  %8260 = vmatpush.bf16.msrb.mxu1 %v16212_v3 }
 0x5a5   :  { %v20574_v56 = vadd.f32 %v6592_v33, %v20492_v39  ;;  %v16055_v39 = vld [vmem:[#allocation3 + $0x1098] sm:$0xf]  ;;  %v15679_v33 = vld [vmem:[#allocation3 + $0xe00] sm:$0xf] }
 0x5a6   :  { %v5622_v16 = vpop.f32.mrf.mxu3  ;;  %7749 = vmatpush.bf16.msrb.mxu2 %v15976_v2  ;;  %v16056_v8 = vor.u32 %v18520_v59, %v16055_v39  ;;  %v15744_v2 = vor.u32 %v18453_v61, %v15743_v53  ;;  %v18506_v39 = vld [vmem:[#allocation3 + $0x1064] sm:$0xf0]  ;;  %v18439_v61 = vld [vmem:[#allocation3 + $0xe4c] sm:$0xf0] }
 0x5a7   :  { %v18522_v16 = vld [vmem:[#allocation3 + $0x10e4] sm:$0xf0] }
 0x5a8   :  { %v7078_v14 = vpop.f32.mrf.mxu0  ;;  %v7319_v49 = vpop.f32.mrf.mxu1  ;;  %8261 = vmatpush.bf16.msrb.mxu1 %v16148_v24 }
 0x5a9   :  { %v20577_v46 = vadd.f32 %v7078_v14, %v20495_v45  ;;  %v15680_v49 = vor.u32 %v18437_v6, %v15679_v33  ;;  %v18575_v33 = vld [vmem:[#allocation3 + $0x1294] sm:$0xf] }
 0x5ab   :  { %15665 = vmatmul.msk.bf16.vlgmr.msra.gmra.mxu3 %vm1042_vm2, %v20236_v17  ;;  %16108 = vmatmul.msk.bf16.vlgmr.msrb.gmra.mxu0 %vm1042_vm2, %v20482_v48 }
 0x5ac   :  { %v6594_v1 = vpop.f32.mrf.mxu2  ;;  %6615 = vmatpush.bf16.msra.mxu3 %v15648_v22  ;;  %8234 = vmatpush.bf16.msrb.mxu0 %v16204_v60  ;;  %v16156_v22 = vor.u32 %v18530_v15, %v16153_v18  ;;  %v16321_v60 = vld [vmem:[#allocation3 + $0x12c0] sm:$0xf0]  ;;  %v16023_v18 = vld [vmem:[#allocation3 + $0x1038] sm:$0xf] }
 0x5ae   :  { %v5672_v45 = vpop.f32.mrf.mxu3 }
 0x5af   :  { %v20584_v54 = vadd.f32 %v5672_v45, %v20502_v50  ;;  %v16008_v45 = vor.u32 %v18506_v39, %v16007_v9  ;;  %v18457_v39 = vld [vmem:[#allocation3 + $0xedc] sm:$0xf0] }
 0x5b0   :  { %v7080_v7 = vpop.f32.mrf.mxu0  ;;  %v7369_v31 = vpop.f32.mrf.mxu1  ;;  %6616 = vmatpush.bf16.msra.mxu3 %v15584_v29  ;;  %8235 = vmatpush.bf16.msrb.mxu0 %v16140_v26  ;;  %v16324_v29 = vor.u32 %v18573_v42, %v16321_v60  ;;  %v16273_v42 = vld [vmem:[#allocation3 + $0x1250] sm:$0xf0] }
 0x5b1   :  { %v20587_v36 = vadd.f32 %v7369_v31, %v20505_v52  ;;  %15963 = vmatmul.msk.bf16.vlgmr.msra.gmra.mxu2 %vm1042_vm2, %v20400_v12  ;;  %v18546_v52 = vld [vmem:[#allocation3 + $0x11ac] sm:$0xf]  ;;  %v18455_v7 = vld [vmem:[#allocation3 + $0xecc] sm:$0xf0]  ;;  %v16233_v31 = vld [vmem:[#allocation3 + $0x11f8] sm:$0xf0] }
 0x5b2   :  { %7800 = vmatpush.bf16.msra.mxu2 %v16056_v8  ;;  %v16220_v47 = vor.u32 %v18546_v52, %v16217_v57  ;;  %v15759_v8 = vld [vmem:[#allocation3 + $0xe90] sm:$0xf]  ;;  %v18532_v52 = vld [vmem:[#allocation3 + $0x113c] sm:$0xf] }
 0x5b3   :  { %16242 = vmatmul.msk.bf16.vlgmr.msra.gmra.mxu1 %vm1042_vm2, %v20564_v62  ;;  %v16169_v57 = vld [vmem:[#allocation3 + $0x1178] sm:$0xf0] }
 0x5b4   :  { %v6644_v50 = vpop.f32.mrf.mxu2  ;;  %8312 = vmatpush.bf16.msra.mxu1 %v16228_v40 }
 0x5b5   :  { %v20594_v44 = vadd.f32 %v6644_v50, %v20512_v20  ;;  %v16071_v20 = vld [vmem:[#allocation3 + $0x10a8] sm:$0xf]  ;;  %v15695_v50 = vld [vmem:[#allocation3 + $0xe10] sm:$0xf] }
 0x5b6   :  { %v5674_v3 = vpop.f32.mrf.mxu3  ;;  %7801 = vmatpush.bf16.msra.mxu2 %v15992_v35  ;;  %v16072_v27 = vor.u32 %v18522_v16, %v16071_v20  ;;  %v15760_v35 = vor.u32 %v18455_v7, %v15759_v8  ;;  %v18508_v20 = vld [vmem:[#allocation3 + $0x1074] sm:$0xf0]  ;;  %v18558_v7 = vld [vmem:[#allocation3 + $0x120c] sm:$0xf] }
 0x5b7   :  { %v18524_v3 = vld [vmem:[#allocation3 + $0x10f4] sm:$0xf0]  ;;  %v16024_v60 = vor.u32 %v18508_v20, %v16023_v18  ;;  %v15791_v18 = vld [vmem:[#allocation3 + $0xeb0] sm:$0xf] }
 0x5b8   :  { %v7343_v5 = vpop.f32.mrf.mxu0  ;;  %v7371_v55 = vpop.f32.mrf.mxu1  ;;  %8313 = vmatpush.bf16.msra.mxu1 %v16164_v43 }
 0x5b9   :  { %v20597_v24 = vadd.f32 %v7343_v5, %v20515_v58  ;;  %v15696_v55 = vor.u32 %v18439_v61, %v15695_v50  ;;  %v16353_v50 = vld [vmem:[#allocation3 + $0x12e0] sm:$0xf0] }
 0x5bb   :  { %15669 = vmatmul.msk.bf16.vlgmr.msrb.gmra.mxu3 %vm1042_vm2, %v20236_v17  ;;  %16240 = vmatmul.msk.bf16.vlgmr.msra.gmra.mxu0 %vm1042_vm2, %v20564_v62 }
 0x5bc   :  { %v6646_v14 = vpop.f32.mrf.mxu2  ;;  %6880 = vmatpush.bf16.msrb.mxu3 %v15744_v2  ;;  %8286 = vmatpush.bf16.msra.mxu0 %v16220_v47  ;;  %v16172_v2 = vor.u32 %v18532_v52, %v16169_v57  ;;  %v16337_v47 = vld [vmem:[#allocation3 + $0x12d0] sm:$0xf0]  ;;  %v16119_v57 = vld [vmem:[#allocation3 + $0x1108] sm:$0xf] }
 0x5bd   :  { %v16340_v14 = vor.u32 %v18575_v33, %v16337_v47  ;;  %v18561_v47 = vld [vmem:[#allocation3 + $0x1224] sm:$0xf] }
 0x5be   :  { %v5724_v58 = vpop.f32.mrf.mxu3 }
 0x5bf   :  { %v20604_v38 = vadd.f32 %v5724_v58, %v20522_v4  ;;  %v15775_v58 = vld [vmem:[#allocation3 + $0xea0] sm:$0xf] }
 0x5c0   :  { %v7345_v59 = vpop.f32.mrf.mxu0  ;;  %v7421_v1 = vpop.f32.mrf.mxu1  ;;  %6881 = vmatpush.bf16.msrb.mxu3 %v15680_v49  ;;  %8287 = vmatpush.bf16.msra.mxu0 %v16156_v22  ;;  %v18559_v22 = vld [vmem:[#allocation3 + $0x1214] sm:$0xf]  ;;  %v15776_v13 = vor.u32 %v18457_v39, %v15775_v58  ;;  %v15727_v58 = vld [vmem:[#allocation3 + $0xe30] sm:$0xf] }
 0x5c1   :  { %v20607_v26 = vadd.f32 %v7421_v1, %v20525_v51  ;;  %16095 = vmatmul.msk.bf16.vlgmr.msrb.gmra.mxu2 %vm1042_vm2, %v20482_v48  ;;  %v18548_v51 = vld [vmem:[#allocation3 + $0x11bc] sm:$0xf]  ;;  %v16329_v59 = vld [vmem:[#allocation3 + $0x12c8] sm:$0xf0] }
 0x5c2   :  { %7852 = vmatpush.bf16.msrb.mxu2 %v16072_v27  ;;  %v16236_v53 = vor.u32 %v18548_v51, %v16233_v31  ;;  %v16276_v27 = vor.u32 %v18559_v22, %v16273_v42  ;;  %v16265_v51 = vld [vmem:[#allocation3 + $0x1248] sm:$0xf0]  ;;  %v18550_v31 = vld [vmem:[#allocation3 + $0x11c4] sm:$0xf0] }
 0x5c3   :  { %16246 = vmatmul.msk.bf16.vlgmr.msrb.gmra.mxu1 %vm1042_vm2, %v20564_v62 }
 0x5c4   :  { %v6909_v4 = vpop.f32.mrf.mxu2  ;;  %8577 = vmatpush.bf16.msrb.mxu1 %v16324_v29 }
 0x5c5   :  { %v20614_v21 = vadd.f32 %v6909_v4, %v20532_v28  ;;  %v16087_v28 = vld [vmem:[#allocation3 + $0x10b8] sm:$0xf] }
 0x5c6   :  { %v5726_v40 = vpop.f32.mrf.mxu3  ;;  %7853 = vmatpush.bf16.msrb.mxu2 %v16008_v45  ;;  %v16088_v6 = vor.u32 %v18524_v3, %v16087_v28  ;;  %v15711_v45 = vld [vmem:[#allocation3 + $0xe20] sm:$0xf]  ;;  %v18534_v28 = vld [vmem:[#allocation3 + $0x1144] sm:$0xf0] }
 0x5c8   :  { %v7395_v23 = vpop.f32.mrf.mxu0  ;;  %v7423_v10 = vpop.f32.mrf.mxu1  ;;  %8578 = vmatpush.bf16.msrb.mxu1 %v16260_v30  ;;  %v18441_v30 = vld [vmem:[#allocation3 + $0xe5c] sm:$0xf0] }
 0x5c9   :  { %v20617_v43 = vadd.f32 %v7395_v23, %v20535_v37  ;;  %v15712_v23 = vor.u32 %v18441_v30, %v15711_v45  ;;  %v16268_v10 = vor.u32 %v18558_v7, %v16265_v51  ;;  %v16369_v30 = vld [vmem:[#allocation3 + $0x12f0] sm:$0xf0] }
 0x5cb   :  { %15673 = vmatmul.msk.bf16.vlgmr.msra.gmra.mxu3 %vm1042_vm2, %v20236_v17  ;;  %16244 = vmatmul.msk.bf16.vlgmr.msrb.gmra.mxu0 %vm1042_vm2, %v20564_v62 }
 0x5cc   :  { %v6911_v5 = vpop.f32.mrf.mxu2  ;;  %6932 = vmatpush.bf16.msra.mxu3 %v15760_v35  ;;  %8338 = vmatpush.bf16.msrb.mxu0 %v16236_v53  ;;  %v18577_v35 = vld [vmem:[#allocation3 + $0x12a4] sm:$0xf] }
 0x5ce   :  { %v5776_v37 = vpop.f32.mrf.mxu3 }
 0x5cf   :  { %v20624_v15 = vadd.f32 %v5776_v37, %v20542_v34  ;;  %v16289_v37 = vld [vmem:[#allocation3 + $0x1260] sm:$0xf0] }
 0x5d0   :  { %v7397_v17 = vpop.f32.mrf.mxu0  ;;  %v7473_v16 = vpop.f32.mrf.mxu1  ;;  %6933 = vmatpush.bf16.msra.mxu3 %v15696_v55  ;;  %8339 = vmatpush.bf16.msrb.mxu0 %v16172_v2  ;;  %v16356_v55 = vor.u32 %v18577_v35, %v16353_v50  ;;  %v16292_v20 = vor.u32 %v18561_v47, %v16289_v37  ;;  %v18563_v50 = vld [vmem:[#allocation3 + $0x1234] sm:$0xf] }
 0x5d1   :  { %v20627_v49 = vadd.f32 %v7473_v16, %v20545_v11  ;;  %16099 = vmatmul.msk.bf16.vlgmr.msra.gmra.mxu2 %vm1042_vm2, %v20482_v48  ;;  %v18574_v11 = vld [vmem:[#allocation3 + $0x128c] sm:$0xf]  ;;  %v18459_v16 = vld [vmem:[#allocation3 + $0xeec] sm:$0xf0] }
 0x5d2   :  { %7904 = vmatpush.bf16.msra.mxu2 %v16088_v6  ;;  %v16332_v4 = vor.u32 %v18574_v11, %v16329_v59  ;;  %v18443_v11 = vld [vmem:[#allocation3 + $0xe6c] sm:$0xf0]  ;;  %v18560_v59 = vld [vmem:[#allocation3 + $0x121c] sm:$0xf] }
 0x5d3   :  { %16250 = vmatmul.msk.bf16.vlgmr.msra.gmra.mxu1 %vm1042_vm2, %v20564_v62 }
 0x5d4   :  { %v6961_v34 = vpop.f32.mrf.mxu2  ;;  %8629 = vmatpush.bf16.msra.mxu1 %v16340_v14  ;;  %v16345_v14 = vld [vmem:[#allocation3 + $0x12d8] sm:$0xf0] }
 0x5d5   :  { %v20634_v9 = vadd.f32 %v6961_v34, %v20552_v0  ;;  %v16183_v0 = vld [vmem:[#allocation3 + $0x1188] sm:$0xf]  ;;  %v15792_v34 = vor.u32 %v18459_v16, %v15791_v18  ;;  %v18469_v16 = vld [vmem:[#allocation3 + $0xf3c] sm:$0xf0] }
 0x5d6   :  { %v5778_v1 = vpop.f32.mrf.mxu3  ;;  %7905 = vmatpush.bf16.msra.mxu2 %v16024_v60  ;;  %v16184_v61 = vor.u32 %v18550_v31, %v16183_v0  ;;  %v16135_v0 = vld [vmem:[#allocation3 + $0x1118] sm:$0xf] }
 0x5d7   :  { %v16281_v1 = vld [vmem:[#allocation3 + $0x1258] sm:$0xf0]  ;;  %v18536_v31 = vld [vmem:[#allocation3 + $0x1154] sm:$0xf0] }
 0x5d8   :  { %v7447_v29 = vpop.f32.mrf.mxu0  ;;  %v7475_v25 = vpop.f32.mrf.mxu1  ;;  %8630 = vmatpush.bf16.msra.mxu1 %v16276_v27  ;;  %v16284_v45 = vor.u32 %v18560_v59, %v16281_v1  ;;  %v16151_v1 = vld [vmem:[#allocation3 + $0x1128] sm:$0xf] }
 0x5d9   :  { %v20637_v8 = vadd.f32 %v7447_v29, %v20555_v63  ;;  %v8361_v63 = vld [vmem:[#allocation2 + $0x90] sm:$0xff]  ;;  %v18552_v29 = vld [vmem:[#allocation3 + $0x11d4] sm:$0xf0] }
 0x5da   :  { %v20646_v2 = vpack.c.bf16 %v8361_v63, %v8361_v63  ;;  %v16305_v63 = vld [vmem:[#allocation3 + $0x1270] sm:$0xf0] }
 0x5db   :  { %15805 = vmatmul.msk.bf16.vlgmr.msrb.gmra.mxu3 %vm1042_vm2, %v20318_v32  ;;  %16248 = vmatmul.msk.bf16.vlgmr.msra.gmra.mxu0 %vm1042_vm2, %v20564_v62 }
 0x5dc   :  { %v6963_v40 = vpop.f32.mrf.mxu2  ;;  %6984 = vmatpush.bf16.msrb.mxu3 %v15776_v13  ;;  %8603 = vmatpush.bf16.msra.mxu0 %v16332_v4  ;;  %v15728_v13 = vor.u32 %v18443_v11, %v15727_v58  ;;  %v18579_v4 = vld [vmem:[#allocation3 + $0x12b4] sm:$0xf]  ;;  %v18605_v58 = vld [vmem:[#allocation3 + $0x1384] sm:$0xf] }
 0x5de   :  { %v6041_v53 = vpop.f32.mrf.mxu3 }
 0x5df   :  { %v20644_v52 = vadd.f32 %v6041_v53, %v20562_v41  ;;  %v16120_v41 = vor.u32 %v18534_v28, %v16119_v57  ;;  %v16136_v53 = vor.u32 %v18536_v31, %v16135_v0  ;;  %v16308_v57 = vor.u32 %v18563_v50, %v16305_v63 }
 0x5e0   :  { %v7449_v3 = vpop.f32.mrf.mxu0  ;;  %v7738_v5 = vpop.f32.mrf.mxu1  ;;  %6985 = vmatpush.bf16.msrb.mxu3 %v15712_v23  ;;  %8604 = vmatpush.bf16.msra.mxu0 %v16268_v10  ;;  %v16372_v10 = vor.u32 %v18579_v4, %v16369_v30  ;;  %v18589_v4 = vld [vmem:[#allocation3 + $0x1304] sm:$0xf] }
 0x5e1   :  { %v20649_v33 = vadd.f32 %v7738_v5, %v20567_v19  ;;  %16103 = vmatmul.msk.bf16.vlgmr.msrb.gmra.mxu2 %vm1042_vm2, %v20482_v48  ;;  %v18576_v19 = vld [vmem:[#allocation3 + $0x129c] sm:$0xf]  ;;  %v18485_v3 = vld [vmem:[#allocation3 + $0xfbc] sm:$0xf0]  ;;  %v16361_v5 = vld [vmem:[#allocation3 + $0x12e8] sm:$0xf0] }
 0x5e2   :  { %8169 = vmatpush.bf16.msrb.mxu2 %v16184_v61  ;;  %v16348_v27 = vor.u32 %v18576_v19, %v16345_v14  ;;  %v15887_v61 = vld [vmem:[#allocation3 + $0xf80] sm:$0xf]  ;;  %v18562_v19 = vld [vmem:[#allocation3 + $0x122c] sm:$0xf]  ;;  %v16401_v30 = vld [vmem:[#allocation3 + $0x1340] sm:$0xf0] }
 0x5e3   :  { %16382 = vmatmul.msk.bf16.vlgmr.msrb.gmra.mxu1 %vm1042_vm2, %v20646_v2  ;;  %v16297_v14 = vld [vmem:[#allocation3 + $0x1268] sm:$0xf0]  ;;  %v16404_v0 = vor.u32 %v18589_v4, %v16401_v30 }
 0x5e4   :  { %v7013_v6 = vpop.f32.mrf.mxu2  ;;  %8681 = vmatpush.bf16.msrb.mxu1 %v16356_v55 }
 0x5e5   :  { %v20656_v17 = vadd.f32 %v7013_v6, %v20574_v56  ;;  %v16199_v56 = vld [vmem:[#allocation3 + $0x1198] sm:$0xf]  ;;  %v15823_v6 = vld [vmem:[#allocation3 + $0xf00] sm:$0xf] }
 0x5e6   :  { %v6043_v22 = vpop.f32.mrf.mxu3  ;;  %8170 = vmatpush.bf16.msrb.mxu2 %v16120_v41  ;;  %v16200_v7 = vor.u32 %v18552_v29, %v16199_v56  ;;  %v15888_v41 = vor.u32 %v18485_v3, %v15887_v61  ;;  %v18538_v56 = vld [vmem:[#allocation3 + $0x1164] sm:$0xf0]  ;;  %v18471_v3 = vld [vmem:[#allocation3 + $0xf4c] sm:$0xf0] }
 0x5e7   :  { %v18554_v22 = vld [vmem:[#allocation3 + $0x11e4] sm:$0xf0] }
 0x5e8   :  { %v7499_v42 = vpop.f32.mrf.mxu0  ;;  %v7740_v60 = vpop.f32.mrf.mxu1  ;;  %8682 = vmatpush.bf16.msrb.mxu1 %v16292_v20 }
 0x5e9   :  { %v20659_v39 = vadd.f32 %v7499_v42, %v20577_v46  ;;  %v15824_v60 = vor.u32 %v18469_v16, %v15823_v6  ;;  %v18607_v6 = vld [vmem:[#allocation3 + $0x1394] sm:$0xf] }
 0x5eb   :  { %15809 = vmatmul.msk.bf16.vlgmr.msra.gmra.mxu3 %vm1042_vm2, %v20318_v32  ;;  %16252 = vmatmul.msk.bf16.vlgmr.msrb.gmra.mxu0 %vm1042_vm2, %v20564_v62 }
 0x5ec   :  { %v7015_v25 = vpop.f32.mrf.mxu2  ;;  %7036 = vmatpush.bf16.msra.mxu3 %v15792_v34  ;;  %8655 = vmatpush.bf16.msrb.mxu0 %v16348_v27  ;;  %v16300_v34 = vor.u32 %v18562_v19, %v16297_v14  ;;  %v16465_v27 = vld [vmem:[#allocation3 + $0x13c0] sm:$0xf0]  ;;  %v16167_v14 = vld [vmem:[#allocation3 + $0x1138] sm:$0xf] }
 0x5ee   :  { %v6093_v46 = vpop.f32.mrf.mxu3 }
 0x5ef   :  { %v20666_v51 = vadd.f32 %v6093_v46, %v20584_v54  ;;  %v16152_v46 = vor.u32 %v18538_v56, %v16151_v1  ;;  %v18489_v56 = vld [vmem:[#allocation3 + $0xfdc] sm:$0xf0] }
 0x5f0   :  { %v7501_v40 = vpop.f32.mrf.mxu0  ;;  %v7790_v23 = vpop.f32.mrf.mxu1  ;;  %7037 = vmatpush.bf16.msra.mxu3 %v15728_v13  ;;  %8656 = vmatpush.bf16.msrb.mxu0 %v16284_v45  ;;  %v16468_v13 = vor.u32 %v18605_v58, %v16465_v27  ;;  %v16417_v58 = vld [vmem:[#allocation3 + $0x1350] sm:$0xf0] }
 0x5f1   :  { %v20669_v35 = vadd.f32 %v7790_v23, %v20587_v36  ;;  %16107 = vmatmul.msk.bf16.vlgmr.msra.gmra.mxu2 %vm1042_vm2, %v20482_v48  ;;  %v18578_v36 = vld [vmem:[#allocation3 + $0x12ac] sm:$0xf]  ;;  %v18487_v40 = vld [vmem:[#allocation3 + $0xfcc] sm:$0xf0]  ;;  %v16377_v23 = vld [vmem:[#allocation3 + $0x12f8] sm:$0xf0] }
 0x5f2   :  { %8221 = vmatpush.bf16.msra.mxu2 %v16200_v7  ;;  %v16364_v18 = vor.u32 %v18578_v36, %v16361_v5  ;;  %v15903_v7 = vld [vmem:[#allocation3 + $0xf90] sm:$0xf]  ;;  %v18564_v36 = vld [vmem:[#allocation3 + $0x123c] sm:$0xf] }
 0x5f3   :  { %16386 = vmatmul.msk.bf16.vlgmr.msra.gmra.mxu1 %vm1042_vm2, %v20646_v2  ;;  %v16313_v5 = vld [vmem:[#allocation3 + $0x1278] sm:$0xf0] }
 0x5f4   :  { %v7065_v54 = vpop.f32.mrf.mxu2  ;;  %8733 = vmatpush.bf16.msra.mxu1 %v16372_v10 }
 0x5f5   :  { %v20676_v28 = vadd.f32 %v7065_v54, %v20594_v44  ;;  %v16215_v44 = vld [vmem:[#allocation3 + $0x11a8] sm:$0xf]  ;;  %v15839_v54 = vld [vmem:[#allocation3 + $0xf10] sm:$0xf] }
 0x5f6   :  { %v6095_v55 = vpop.f32.mrf.mxu3  ;;  %8222 = vmatpush.bf16.msra.mxu2 %v16136_v53  ;;  %v16216_v11 = vor.u32 %v18554_v22, %v16215_v44  ;;  %v15904_v53 = vor.u32 %v18487_v40, %v15903_v7  ;;  %v18540_v44 = vld [vmem:[#allocation3 + $0x1174] sm:$0xf0]  ;;  %v18590_v40 = vld [vmem:[#allocation3 + $0x130c] sm:$0xf] }
 0x5f7   :  { %v18556_v55 = vld [vmem:[#allocation3 + $0x11f4] sm:$0xf0]  ;;  %v16168_v27 = vor.u32 %v18540_v44, %v16167_v14  ;;  %v15935_v14 = vld [vmem:[#allocation3 + $0xfb0] sm:$0xf] }
 0x5f8   :  { %v7764_v47 = vpop.f32.mrf.mxu0  ;;  %v7792_v37 = vpop.f32.mrf.mxu1  ;;  %8734 = vmatpush.bf16.msra.mxu1 %v16308_v57 }
 0x5f9   :  { %v20679_v20 = vadd.f32 %v7764_v47, %v20597_v24  ;;  %v15840_v37 = vor.u32 %v18471_v3, %v15839_v54  ;;  %v16497_v54 = vld [vmem:[#allocation3 + $0x13e0] sm:$0xf0] }
 0x5fb   :  { %15813 = vmatmul.msk.bf16.vlgmr.msrb.gmra.mxu3 %vm1042_vm2, %v20318_v32  ;;  %16384 = vmatmul.msk.bf16.vlgmr.msra.gmra.mxu0 %vm1042_vm2, %v20646_v2 }
 0x5fc   :  { %v7067_v42 = vpop.f32.mrf.mxu2  ;;  %7301 = vmatpush.bf16.msrb.mxu3 %v15888_v41  ;;  %8707 = vmatpush.bf16.msra.mxu0 %v16364_v18  ;;  %v16316_v41 = vor.u32 %v18564_v36, %v16313_v5  ;;  %v16481_v18 = vld [vmem:[#allocation3 + $0x13d0] sm:$0xf0]  ;;  %v16263_v5 = vld [vmem:[#allocation3 + $0x1208] sm:$0xf] }
 0x5fd   :  { %v16484_v42 = vor.u32 %v18607_v6, %v16481_v18  ;;  %v18593_v18 = vld [vmem:[#allocation3 + $0x1324] sm:$0xf] }
 0x5fe   :  { %v6145_v24 = vpop.f32.mrf.mxu3 }
 0x5ff   :  { %v20686_v59 = vadd.f32 %v6145_v24, %v20604_v38  ;;  %v15919_v24 = vld [vmem:[#allocation3 + $0xfa0] sm:$0xf] }
 0x600   :  { %v7766_v29 = vpop.f32.mrf.mxu0  ;;  %v7842_v25 = vpop.f32.mrf.mxu1  ;;  %7302 = vmatpush.bf16.msrb.mxu3 %v15824_v60  ;;  %8708 = vmatpush.bf16.msra.mxu0 %v16300_v34  ;;  %v18591_v34 = vld [vmem:[#allocation3 + $0x1314] sm:$0xf]  ;;  %v15920_v30 = vor.u32 %v18489_v56, %v15919_v24  ;;  %v15871_v24 = vld [vmem:[#allocation3 + $0xf30] sm:$0xf] }
 0x601   :  { %v20689_v45 = vadd.f32 %v7842_v25, %v20607_v26  ;;  %16239 = vmatmul.msk.bf16.vlgmr.msrb.gmra.mxu2 %vm1042_vm2, %v20564_v62  ;;  %v18580_v26 = vld [vmem:[#allocation3 + $0x12bc] sm:$0xf]  ;;  %v16473_v29 = vld [vmem:[#allocation3 + $0x13c8] sm:$0xf0] }
 0x602   :  { %8273 = vmatpush.bf16.msrb.mxu2 %v16216_v11  ;;  %v16380_v61 = vor.u32 %v18580_v26, %v16377_v23  ;;  %v16420_v11 = vor.u32 %v18591_v34, %v16417_v58  ;;  %v16409_v26 = vld [vmem:[#allocation3 + $0x1348] sm:$0xf0]  ;;  %v18582_v23 = vld [vmem:[#allocation3 + $0x12c4] sm:$0xf0] }
 0x603   :  { %16390 = vmatmul.msk.bf16.vlgmr.msrb.gmra.mxu1 %vm1042_vm2, %v20646_v2 }
 0x604   :  { %v7330_v38 = vpop.f32.mrf.mxu2  ;;  %8998 = vmatpush.bf16.msrb.mxu1 %v16468_v13 }
 0x605   :  { %v20696_v31 = vadd.f32 %v7330_v38, %v20614_v21  ;;  %v16231_v21 = vld [vmem:[#allocation3 + $0x11b8] sm:$0xf] }
 0x606   :  { %v6147_v10 = vpop.f32.mrf.mxu3  ;;  %8274 = vmatpush.bf16.msrb.mxu2 %v16152_v46  ;;  %v16232_v16 = vor.u32 %v18556_v55, %v16231_v21  ;;  %v15855_v46 = vld [vmem:[#allocation3 + $0xf20] sm:$0xf]  ;;  %v18566_v21 = vld [vmem:[#allocation3 + $0x1244] sm:$0xf0] }
 0x608   :  { %v7816_v50 = vpop.f32.mrf.mxu0  ;;  %v7844_v63 = vpop.f32.mrf.mxu1  ;;  %8999 = vmatpush.bf16.msrb.mxu1 %v16404_v0  ;;  %v18473_v0 = vld [vmem:[#allocation3 + $0xf5c] sm:$0xf0] }
 0x609   :  { %v20699_v57 = vadd.f32 %v7816_v50, %v20617_v43  ;;  %v15856_v50 = vor.u32 %v18473_v0, %v15855_v46  ;;  %v16412_v63 = vor.u32 %v18590_v40, %v16409_v26  ;;  %v16513_v0 = vld [vmem:[#allocation3 + $0x13f0] sm:$0xf0] }
 0x60b   :  { %15817 = vmatmul.msk.bf16.vlgmr.msra.gmra.mxu3 %vm1042_vm2, %v20318_v32  ;;  %16388 = vmatmul.msk.bf16.vlgmr.msrb.gmra.mxu0 %vm1042_vm2, %v20646_v2 }
 0x60c   :  { %v7332_v47 = vpop.f32.mrf.mxu2  ;;  %7353 = vmatpush.bf16.msra.mxu3 %v15904_v53  ;;  %8759 = vmatpush.bf16.msrb.mxu0 %v16380_v61  ;;  %v18609_v53 = vld [vmem:[#allocation3 + $0x13a4] sm:$0xf] }
 0x60e   :  { %v6197_v43 = vpop.f32.mrf.mxu3 }
 0x60f   :  { %v20706_v19 = vadd.f32 %v6197_v43, %v20624_v15  ;;  %v16433_v43 = vld [vmem:[#allocation3 + $0x1360] sm:$0xf0] }
 0x610   :  { %v7818_v32 = vpop.f32.mrf.mxu0  ;;  %v7894_v22 = vpop.f32.mrf.mxu1  ;;  %7354 = vmatpush.bf16.msra.mxu3 %v15840_v37  ;;  %8760 = vmatpush.bf16.msrb.mxu0 %v16316_v41  ;;  %v16500_v37 = vor.u32 %v18609_v53, %v16497_v54  ;;  %v16436_v44 = vor.u32 %v18593_v18, %v16433_v43  ;;  %v18595_v54 = vld [vmem:[#allocation3 + $0x1334] sm:$0xf] }
 0x611   :  { %v20709_v60 = vadd.f32 %v7894_v22, %v20627_v49  ;;  %16243 = vmatmul.msk.bf16.vlgmr.msra.gmra.mxu2 %vm1042_vm2, %v20564_v62  ;;  %v18606_v49 = vld [vmem:[#allocation3 + $0x138c] sm:$0xf]  ;;  %v18491_v22 = vld [vmem:[#allocation3 + $0xfec] sm:$0xf0] }
 0x612   :  { %8325 = vmatpush.bf16.msra.mxu2 %v16232_v16  ;;  %v16476_v38 = vor.u32 %v18606_v49, %v16473_v29  ;;  %v18475_v49 = vld [vmem:[#allocation3 + $0xf6c] sm:$0xf0]  ;;  %v18592_v29 = vld [vmem:[#allocation3 + $0x131c] sm:$0xf] }
 0x613   :  { %16394 = vmatmul.msk.bf16.vlgmr.msra.gmra.mxu1 %vm1042_vm2, %v20646_v2 }
 0x614   :  { %v7382_v15 = vpop.f32.mrf.mxu2  ;;  %9050 = vmatpush.bf16.msra.mxu1 %v16484_v42  ;;  %v16489_v42 = vld [vmem:[#allocation3 + $0x13d8] sm:$0xf0] }
 0x615   :  { %v20716_v1 = vadd.f32 %v7382_v15, %v20634_v9  ;;  %v16327_v9 = vld [vmem:[#allocation3 + $0x1288] sm:$0xf]  ;;  %v15936_v15 = vor.u32 %v18491_v22, %v15935_v14  ;;  %v18501_v22 = vld [vmem:[#allocation3 + $0x103c] sm:$0xf0] }
 0x616   :  { %v6199_v25 = vpop.f32.mrf.mxu3  ;;  %8326 = vmatpush.bf16.msra.mxu2 %v16168_v27  ;;  %v16328_v3 = vor.u32 %v18582_v23, %v16327_v9  ;;  %v16279_v9 = vld [vmem:[#allocation3 + $0x1218] sm:$0xf] }
 0x617   :  { %v16425_v25 = vld [vmem:[#allocation3 + $0x1358] sm:$0xf0]  ;;  %v18568_v23 = vld [vmem:[#allocation3 + $0x1254] sm:$0xf0] }
 0x618   :  { %v7868_v13 = vpop.f32.mrf.mxu0  ;;  %v7896_v4 = vpop.f32.mrf.mxu1  ;;  %9051 = vmatpush.bf16.msra.mxu1 %v16420_v11  ;;  %v16428_v46 = vor.u32 %v18592_v29, %v16425_v25  ;;  %v16295_v25 = vld [vmem:[#allocation3 + $0x1228] sm:$0xf] }
 0x619   :  { %v20719_v7 = vadd.f32 %v7868_v13, %v20637_v8  ;;  %v8782_v8 = vld [vmem:[#allocation2 + $0x98] sm:$0xff]  ;;  %v18584_v13 = vld [vmem:[#allocation3 + $0x12d4] sm:$0xf0] }
 0x61a   :  { %v20728_v41 = vpack.c.bf16 %v8782_v8, %v8782_v8  ;;  %v16449_v8 = vld [vmem:[#allocation3 + $0x1370] sm:$0xf0] }
 0x61b   :  { %15949 = vmatmul.msk.bf16.vlgmr.msrb.gmra.mxu3 %vm1042_vm2, %v20400_v12  ;;  %16392 = vmatmul.msk.bf16.vlgmr.msra.gmra.mxu0 %vm1042_vm2, %v20646_v2 }
 0x61c   :  { %v7384_v10 = vpop.f32.mrf.mxu2  ;;  %7405 = vmatpush.bf16.msrb.mxu3 %v15920_v30  ;;  %9024 = vmatpush.bf16.msra.mxu0 %v16476_v38  ;;  %v15872_v30 = vor.u32 %v18475_v49, %v15871_v24  ;;  %v18611_v38 = vld [vmem:[#allocation3 + $0x13b4] sm:$0xf]  ;;  %v18637_v24 = vld [vmem:[#allocation3 + $0x1484] sm:$0xf] }
 0x61e   :  { %v6462_v61 = vpop.f32.mrf.mxu3 }
 0x61f   :  { %v20726_v36 = vadd.f32 %v6462_v61, %v20644_v52  ;;  %v16264_v52 = vor.u32 %v18566_v21, %v16263_v5  ;;  %v16280_v61 = vor.u32 %v18568_v23, %v16279_v9  ;;  %v16452_v5 = vor.u32 %v18595_v54, %v16449_v8 }
 0x620   :  { %v7870_v55 = vpop.f32.mrf.mxu0  ;;  %v8159_v47 = vpop.f32.mrf.mxu1  ;;  %7406 = vmatpush.bf16.msrb.mxu3 %v15856_v50  ;;  %9025 = vmatpush.bf16.msra.mxu0 %v16412_v63  ;;  %v16516_v63 = vor.u32 %v18611_v38, %v16513_v0  ;;  %v18621_v38 = vld [vmem:[#allocation3 + $0x1404] sm:$0xf] }
 0x621   :  { %v20731_v6 = vadd.f32 %v8159_v47, %v20649_v33  ;;  %16247 = vmatmul.msk.bf16.vlgmr.msrb.gmra.mxu2 %vm1042_vm2, %v20564_v62  ;;  %v18608_v33 = vld [vmem:[#allocation3 + $0x139c] sm:$0xf]  ;;  %v18517_v55 = vld [vmem:[#allocation3 + $0x10bc] sm:$0xf0]  ;;  %v16505_v47 = vld [vmem:[#allocation3 + $0x13e8] sm:$0xf0] }
 0x622   :  { %8590 = vmatpush.bf16.msrb.mxu2 %v16328_v3  ;;  %v16492_v11 = vor.u32 %v18608_v33, %v16489_v42  ;;  %v16031_v3 = vld [vmem:[#allocation3 + $0x1080] sm:$0xf]  ;;  %v18594_v33 = vld [vmem:[#allocation3 + $0x132c] sm:$0xf]  ;;  %v16545_v0 = vld [vmem:[#allocation3 + $0x1440] sm:$0xf0] }
 0x623   :  { %16526 = vmatmul.msk.bf16.vlgmr.msrb.gmra.mxu1 %vm1042_vm2, %v20728_v41  ;;  %v16441_v42 = vld [vmem:[#allocation3 + $0x1368] sm:$0xf0]  ;;  %v16548_v9 = vor.u32 %v18621_v38, %v16545_v0 }
 0x624   :  { %v7434_v16 = vpop.f32.mrf.mxu2  ;;  %9102 = vmatpush.bf16.msrb.mxu1 %v16500_v37 }
 0x625   :  { %v20738_v32 = vadd.f32 %v7434_v16, %v20656_v17  ;;  %v16343_v17 = vld [vmem:[#allocation3 + $0x1298] sm:$0xf]  ;;  %v15967_v16 = vld [vmem:[#allocation3 + $0x1000] sm:$0xf] }
 0x626   :  { %v6464_v34 = vpop.f32.mrf.mxu3  ;;  %8591 = vmatpush.bf16.msrb.mxu2 %v16264_v52  ;;  %v16344_v40 = vor.u32 %v18584_v13, %v16343_v17  ;;  %v16032_v52 = vor.u32 %v18517_v55, %v16031_v3  ;;  %v18570_v17 = vld [vmem:[#allocation3 + $0x1264] sm:$0xf0]  ;;  %v18503_v55 = vld [vmem:[#allocation3 + $0x104c] sm:$0xf0] }
 0x627   :  { %v18586_v34 = vld [vmem:[#allocation3 + $0x12e4] sm:$0xf0] }
 0x628   :  { %v7920_v58 = vpop.f32.mrf.mxu0  ;;  %v8161_v27 = vpop.f32.mrf.mxu1  ;;  %9103 = vmatpush.bf16.msrb.mxu1 %v16436_v44 }
 0x629   :  { %v20741_v56 = vadd.f32 %v7920_v58, %v20659_v39  ;;  %v15968_v27 = vor.u32 %v18501_v22, %v15967_v16  ;;  %v18639_v16 = vld [vmem:[#allocation3 + $0x1494] sm:$0xf] }
 0x62b   :  { %15953 = vmatmul.msk.bf16.vlgmr.msra.gmra.mxu3 %vm1042_vm2, %v20400_v12  ;;  %16396 = vmatmul.msk.bf16.vlgmr.msrb.gmra.mxu0 %vm1042_vm2, %v20646_v2 }
 0x62c   :  { %v7436_v4 = vpop.f32.mrf.mxu2  ;;  %7457 = vmatpush.bf16.msra.mxu3 %v15936_v15  ;;  %9076 = vmatpush.bf16.msrb.mxu0 %v16492_v11  ;;  %v16444_v15 = vor.u32 %v18594_v33, %v16441_v42  ;;  %v16609_v11 = vld [vmem:[#allocation3 + $0x14c0] sm:$0xf0]  ;;  %v16311_v42 = vld [vmem:[#allocation3 + $0x1238] sm:$0xf] }
 0x62e   :  { %v6514_v39 = vpop.f32.mrf.mxu3 }
 0x62f   :  { %v20748_v26 = vadd.f32 %v6514_v39, %v20666_v51  ;;  %v16296_v39 = vor.u32 %v18570_v17, %v16295_v25  ;;  %v18521_v17 = vld [vmem:[#allocation3 + $0x10dc] sm:$0xf0] }
 0x630   :  { %v7922_v10 = vpop.f32.mrf.mxu0  ;;  %v8211_v50 = vpop.f32.mrf.mxu1  ;;  %7458 = vmatpush.bf16.msra.mxu3 %v15872_v30  ;;  %9077 = vmatpush.bf16.msrb.mxu0 %v16428_v46  ;;  %v16612_v30 = vor.u32 %v18637_v24, %v16609_v11  ;;  %v16561_v24 = vld [vmem:[#allocation3 + $0x1450] sm:$0xf0] }
 0x631   :  { %v20751_v53 = vadd.f32 %v8211_v50, %v20669_v35  ;;  %16251 = vmatmul.msk.bf16.vlgmr.msra.gmra.mxu2 %vm1042_vm2, %v20564_v62  ;;  %v18610_v35 = vld [vmem:[#allocation3 + $0x13ac] sm:$0xf]  ;;  %v18519_v10 = vld [vmem:[#allocation3 + $0x10cc] sm:$0xf0]  ;;  %v16521_v50 = vld [vmem:[#allocation3 + $0x13f8] sm:$0xf0] }
 0x632   :  { %8642 = vmatpush.bf16.msra.mxu2 %v16344_v40  ;;  %v16508_v14 = vor.u32 %v18610_v35, %v16505_v47  ;;  %v16047_v40 = vld [vmem:[#allocation3 + $0x1090] sm:$0xf]  ;;  %v18596_v35 = vld [vmem:[#allocation3 + $0x133c] sm:$0xf] }
 0x633   :  { %16530 = vmatmul.msk.bf16.vlgmr.msra.gmra.mxu1 %vm1042_vm2, %v20728_v41  ;;  %v16457_v47 = vld [vmem:[#allocation3 + $0x1378] sm:$0xf0] }
 0x634   :  { %v7486_v51 = vpop.f32.mrf.mxu2  ;;  %9154 = vmatpush.bf16.msra.mxu1 %v16516_v63 }
 0x635   :  { %v20758_v21 = vadd.f32 %v7486_v51, %v20676_v28  ;;  %v16359_v28 = vld [vmem:[#allocation3 + $0x12a8] sm:$0xf]  ;;  %v15983_v51 = vld [vmem:[#allocation3 + $0x1010] sm:$0xf] }
 0x636   :  { %v6516_v37 = vpop.f32.mrf.mxu3  ;;  %8643 = vmatpush.bf16.msra.mxu2 %v16280_v61  ;;  %v16360_v49 = vor.u32 %v18586_v34, %v16359_v28  ;;  %v16048_v61 = vor.u32 %v18519_v10, %v16047_v40  ;;  %v18572_v28 = vld [vmem:[#allocation3 + $0x1274] sm:$0xf0]  ;;  %v18622_v10 = vld [vmem:[#allocation3 + $0x140c] sm:$0xf] }
 0x637   :  { %v18588_v37 = vld [vmem:[#allocation3 + $0x12f4] sm:$0xf0]  ;;  %v16312_v11 = vor.u32 %v18572_v28, %v16311_v42  ;;  %v16079_v42 = vld [vmem:[#allocation3 + $0x10b0] sm:$0xf] }
 0x638   :  { %v8185_v18 = vpop.f32.mrf.mxu0  ;;  %v8213_v43 = vpop.f32.mrf.mxu1  ;;  %9155 = vmatpush.bf16.msra.mxu1 %v16452_v5 }
 0x639   :  { %v20761_v44 = vadd.f32 %v8185_v18, %v20679_v20  ;;  %v15984_v43 = vor.u32 %v18503_v55, %v15983_v51  ;;  %v16641_v51 = vld [vmem:[#allocation3 + $0x14e0] sm:$0xf0] }
 0x63b   :  { %15957 = vmatmul.msk.bf16.vlgmr.msrb.gmra.mxu3 %vm1042_vm2, %v20400_v12  ;;  %16528 = vmatmul.msk.bf16.vlgmr.msra.gmra.mxu0 %vm1042_vm2, %v20728_v41 }
 0x63c   :  { %v7488_v58 = vpop.f32.mrf.mxu2  ;;  %7722 = vmatpush.bf16.msrb.mxu3 %v16032_v52  ;;  %9128 = vmatpush.bf16.msra.mxu0 %v16508_v14  ;;  %v16460_v52 = vor.u32 %v18596_v35, %v16457_v47  ;;  %v16625_v14 = vld [vmem:[#allocation3 + $0x14d0] sm:$0xf0]  ;;  %v16407_v47 = vld [vmem:[#allocation3 + $0x1308] sm:$0xf] }
 0x63d   :  { %v16628_v58 = vor.u32 %v18639_v16, %v16625_v14  ;;  %v18625_v14 = vld [vmem:[#allocation3 + $0x1424] sm:$0xf] }
 0x63e   :  { %v6566_v20 = vpop.f32.mrf.mxu3 }
 0x63f   :  { %v20768_v29 = vadd.f32 %v6566_v20, %v20686_v59  ;;  %v16063_v20 = vld [vmem:[#allocation3 + $0x10a0] sm:$0xf] }
 0x640   :  { %v8187_v13 = vpop.f32.mrf.mxu0  ;;  %v8263_v4 = vpop.f32.mrf.mxu1  ;;  %7723 = vmatpush.bf16.msrb.mxu3 %v15968_v27  ;;  %9129 = vmatpush.bf16.msra.mxu0 %v16444_v15  ;;  %v18623_v15 = vld [vmem:[#allocation3 + $0x1414] sm:$0xf]  ;;  %v16064_v0 = vor.u32 %v18521_v17, %v16063_v20  ;;  %v16015_v20 = vld [vmem:[#allocation3 + $0x1030] sm:$0xf] }
 0x641   :  { %v20771_v46 = vadd.f32 %v8263_v4, %v20689_v45  ;;  %16383 = vmatmul.msk.bf16.vlgmr.msrb.gmra.mxu2 %vm1042_vm2, %v20646_v2  ;;  %v18612_v45 = vld [vmem:[#allocation3 + $0x13bc] sm:$0xf]  ;;  %v16617_v13 = vld [vmem:[#allocation3 + $0x14c8] sm:$0xf0] }
 0x642   :  { %8694 = vmatpush.bf16.msrb.mxu2 %v16360_v49  ;;  %v16524_v3 = vor.u32 %v18612_v45, %v16521_v50  ;;  %v16564_v49 = vor.u32 %v18623_v15, %v16561_v24  ;;  %v16553_v45 = vld [vmem:[#allocation3 + $0x1448] sm:$0xf0]  ;;  %v18614_v50 = vld [vmem:[#allocation3 + $0x13c4] sm:$0xf0] }
 0x643   :  { %16534 = vmatmul.msk.bf16.vlgmr.msrb.gmra.mxu1 %vm1042_vm2, %v20728_v41 }
 0x644   :  { %v7751_v59 = vpop.f32.mrf.mxu2  ;;  %9419 = vmatpush.bf16.msrb.mxu1 %v16612_v30 }
 0x645   :  { %v20778_v23 = vadd.f32 %v7751_v59, %v20696_v31  ;;  %v16375_v31 = vld [vmem:[#allocation3 + $0x12b8] sm:$0xf] }
 0x646   :  { %v6568_v63 = vpop.f32.mrf.mxu3  ;;  %8695 = vmatpush.bf16.msrb.mxu2 %v16296_v39  ;;  %v16376_v22 = vor.u32 %v18588_v37, %v16375_v31  ;;  %v15999_v39 = vld [vmem:[#allocation3 + $0x1020] sm:$0xf]  ;;  %v18598_v31 = vld [vmem:[#allocation3 + $0x1344] sm:$0xf0] }
 0x648   :  { %v8237_v54 = vpop.f32.mrf.mxu0  ;;  %v8265_v8 = vpop.f32.mrf.mxu1  ;;  %9420 = vmatpush.bf16.msrb.mxu1 %v16548_v9  ;;  %v18505_v9 = vld [vmem:[#allocation3 + $0x105c] sm:$0xf0] }
 0x649   :  { %v20781_v5 = vadd.f32 %v8237_v54, %v20699_v57  ;;  %v16000_v54 = vor.u32 %v18505_v9, %v15999_v39  ;;  %v16556_v8 = vor.u32 %v18622_v10, %v16553_v45  ;;  %v16657_v9 = vld [vmem:[#allocation3 + $0x14f0] sm:$0xf0] }
 0x64b   :  { %15961 = vmatmul.msk.bf16.vlgmr.msra.gmra.mxu3 %vm1042_vm2, %v20400_v12  ;;  %16532 = vmatmul.msk.bf16.vlgmr.msrb.gmra.mxu0 %vm1042_vm2, %v20728_v41 }
 0x64c   :  { %v7753_v18 = vpop.f32.mrf.mxu2  ;;  %7774 = vmatpush.bf16.msra.mxu3 %v16048_v61  ;;  %9180 = vmatpush.bf16.msrb.mxu0 %v16524_v3  ;;  %v18641_v61 = vld [vmem:[#allocation3 + $0x14a4] sm:$0xf] }
 0x64e   :  { %v6618_v57 = vpop.f32.mrf.mxu3 }
 0x64f   :  { %v20788_v33 = vadd.f32 %v6618_v57, %v20706_v19  ;;  %v16577_v57 = vld [vmem:[#allocation3 + $0x1460] sm:$0xf0] }
 0x650   :  { %v8239_v12 = vpop.f32.mrf.mxu0  ;;  %v8315_v34 = vpop.f32.mrf.mxu1  ;;  %7775 = vmatpush.bf16.msra.mxu3 %v15984_v43  ;;  %9181 = vmatpush.bf16.msrb.mxu0 %v16460_v52  ;;  %v16644_v43 = vor.u32 %v18641_v61, %v16641_v51  ;;  %v16580_v28 = vor.u32 %v18625_v14, %v16577_v57  ;;  %v18627_v51 = vld [vmem:[#allocation3 + $0x1434] sm:$0xf] }
 0x651   :  { %v20791_v27 = vadd.f32 %v8315_v34, %v20709_v60  ;;  %16387 = vmatmul.msk.bf16.vlgmr.msra.gmra.mxu2 %vm1042_vm2, %v20646_v2  ;;  %v18638_v60 = vld [vmem:[#allocation3 + $0x148c] sm:$0xf]  ;;  %v18523_v34 = vld [vmem:[#allocation3 + $0x10ec] sm:$0xf0] }
 0x652   :  { %8746 = vmatpush.bf16.msra.mxu2 %v16376_v22  ;;  %v16620_v59 = vor.u32 %v18638_v60, %v16617_v13  ;;  %v18507_v60 = vld [vmem:[#allocation3 + $0x106c] sm:$0xf0]  ;;  %v18624_v13 = vld [vmem:[#allocation3 + $0x141c] sm:$0xf] }
 0x653   :  { %16538 = vmatmul.msk.bf16.vlgmr.msra.gmra.mxu1 %vm1042_vm2, %v20728_v41 }
 0x654   :  { %v7803_v19 = vpop.f32.mrf.mxu2  ;;  %9471 = vmatpush.bf16.msra.mxu1 %v16628_v58  ;;  %v16633_v58 = vld [vmem:[#allocation3 + $0x14d8] sm:$0xf0] }
 0x655   :  { %v20798_v25 = vadd.f32 %v7803_v19, %v20716_v1  ;;  %v16471_v1 = vld [vmem:[#allocation3 + $0x1388] sm:$0xf]  ;;  %v16080_v19 = vor.u32 %v18523_v34, %v16079_v42  ;;  %v18533_v34 = vld [vmem:[#allocation3 + $0x113c] sm:$0xf0] }
 0x656   :  { %v6620_v4 = vpop.f32.mrf.mxu3  ;;  %8747 = vmatpush.bf16.msra.mxu2 %v16312_v11  ;;  %v16472_v55 = vor.u32 %v18614_v50, %v16471_v1  ;;  %v16423_v1 = vld [vmem:[#allocation3 + $0x1318] sm:$0xf] }
 0x657   :  { %v16569_v4 = vld [vmem:[#allocation3 + $0x1458] sm:$0xf0]  ;;  %v18600_v50 = vld [vmem:[#allocation3 + $0x1354] sm:$0xf0] }
 0x658   :  { %v8289_v30 = vpop.f32.mrf.mxu0  ;;  %v8317_v38 = vpop.f32.mrf.mxu1  ;;  %9472 = vmatpush.bf16.msra.mxu1 %v16564_v49  ;;  %v16572_v39 = vor.u32 %v18624_v13, %v16569_v4  ;;  %v16439_v4 = vld [vmem:[#allocation3 + $0x1328] sm:$0xf] }
 0x659   :  { %v20801_v40 = vadd.f32 %v8289_v30, %v20719_v7  ;;  %v9203_v7 = vld [vmem:[#allocation2 + $0xa0] sm:$0xff]  ;;  %v18616_v30 = vld [vmem:[#allocation3 + $0x13d4] sm:$0xf0] }
 0x65a   :  { %v20810_v52 = vpack.c.bf16 %v9203_v7, %v9203_v7  ;;  %v16593_v7 = vld [vmem:[#allocation3 + $0x1470] sm:$0xf0] }
 0x65b   :  { %16093 = vmatmul.msk.bf16.vlgmr.msrb.gmra.mxu3 %vm1042_vm2, %v20482_v48  ;;  %16536 = vmatmul.msk.bf16.vlgmr.msra.gmra.mxu0 %vm1042_vm2, %v20728_v41 }
 0x65c   :  { %v7805_v63 = vpop.f32.mrf.mxu2  ;;  %7826 = vmatpush.bf16.msrb.mxu3 %v16064_v0  ;;  %9445 = vmatpush.bf16.msra.mxu0 %v16620_v59  ;;  %v16016_v0 = vor.u32 %v18507_v60, %v16015_v20  ;;  %v18643_v59 = vld [vmem:[#allocation3 + $0x14b4] sm:$0xf]  ;;  %v18669_v20 = vld [vmem:[#allocation3 + $0x1584] sm:$0xf] }
 0x65e   :  { %v6883_v3 = vpop.f32.mrf.mxu3 }
 0x65f   :  { %v20808_v35 = vadd.f32 %v6883_v3, %v20726_v36  ;;  %v16408_v36 = vor.u32 %v18598_v31, %v16407_v47  ;;  %v16424_v3 = vor.u32 %v18600_v50, %v16423_v1  ;;  %v16596_v47 = vor.u32 %v18627_v51, %v16593_v7 }
 0x660   :  { %v8291_v37 = vpop.f32.mrf.mxu0  ;;  %v8580_v18 = vpop.f32.mrf.mxu1  ;;  %7827 = vmatpush.bf16.msrb.mxu3 %v16000_v54  ;;  %9446 = vmatpush.bf16.msra.mxu0 %v16556_v8  ;;  %v16660_v8 = vor.u32 %v18643_v59, %v16657_v9  ;;  %v18653_v59 = vld [vmem:[#allocation3 + $0x1504] sm:$0xf] }
 0x661   :  { %v20813_v16 = vadd.f32 %v8580_v18, %v20731_v6  ;;  %16391 = vmatmul.msk.bf16.vlgmr.msrb.gmra.mxu2 %vm1042_vm2, %v20646_v2  ;;  %v18640_v6 = vld [vmem:[#allocation3 + $0x149c] sm:$0xf]  ;;  %v18549_v37 = vld [vmem:[#allocation3 + $0x11bc] sm:$0xf0]  ;;  %v16649_v18 = vld [vmem:[#allocation3 + $0x14e8] sm:$0xf0] }
 0x662   :  { %9011 = vmatpush.bf16.msrb.mxu2 %v16472_v55  ;;  %v16636_v49 = vor.u32 %v18640_v6, %v16633_v58  ;;  %v16175_v55 = vld [vmem:[#allocation3 + $0x1180] sm:$0xf]  ;;  %v18626_v6 = vld [vmem:[#allocation3 + $0x142c] sm:$0xf]  ;;  %v16689_v9 = vld [vmem:[#allocation3 + $0x1540] sm:$0xf0] }
 0x663   :  { %16670 = vmatmul.msk.bf16.vlgmr.msrb.gmra.mxu1 %vm1042_vm2, %v20810_v52  ;;  %v16585_v58 = vld [vmem:[#allocation3 + $0x1468] sm:$0xf0]  ;;  %v16692_v1 = vor.u32 %v18653_v59, %v16689_v9 }
 0x664   :  { %v7855_v22 = vpop.f32.mrf.mxu2  ;;  %9523 = vmatpush.bf16.msrb.mxu1 %v16644_v43 }
 0x665   :  { %v20820_v12 = vadd.f32 %v7855_v22, %v20738_v32  ;;  %v16487_v32 = vld [vmem:[#allocation3 + $0x1398] sm:$0xf]  ;;  %v16111_v22 = vld [vmem:[#allocation3 + $0x1100] sm:$0xf] }
 0x666   :  { %v6885_v15 = vpop.f32.mrf.mxu3  ;;  %9012 = vmatpush.bf16.msrb.mxu2 %v16408_v36  ;;  %v16488_v10 = vor.u32 %v18616_v30, %v16487_v32  ;;  %v16176_v36 = vor.u32 %v18549_v37, %v16175_v55  ;;  %v18602_v32 = vld [vmem:[#allocation3 + $0x1364] sm:$0xf0]  ;;  %v18535_v37 = vld [vmem:[#allocation3 + $0x114c] sm:$0xf0] }
 0x667   :  { %v18618_v15 = vld [vmem:[#allocation3 + $0x13e4] sm:$0xf0] }
 0x668   :  { %v8341_v24 = vpop.f32.mrf.mxu0  ;;  %v8582_v11 = vpop.f32.mrf.mxu1  ;;  %9524 = vmatpush.bf16.msrb.mxu1 %v16580_v28 }
 0x669   :  { %v20823_v17 = vadd.f32 %v8341_v24, %v20741_v56  ;;  %v16112_v11 = vor.u32 %v18533_v34, %v16111_v22  ;;  %v18671_v22 = vld [vmem:[#allocation3 + $0x1594] sm:$0xf] }
 0x66b   :  { %16097 = vmatmul.msk.bf16.vlgmr.msra.gmra.mxu3 %vm1042_vm2, %v20482_v48  ;;  %16540 = vmatmul.msk.bf16.vlgmr.msrb.gmra.mxu0 %vm1042_vm2, %v20728_v41 }
 0x66c   :  { %v7857_v38 = vpop.f32.mrf.mxu2  ;;  %7878 = vmatpush.bf16.msra.mxu3 %v16080_v19  ;;  %9497 = vmatpush.bf16.msrb.mxu0 %v16636_v49  ;;  %v16588_v19 = vor.u32 %v18626_v6, %v16585_v58  ;;  %v16753_v49 = vld [vmem:[#allocation3 + $0x15c0] sm:$0xf0]  ;;  %v16455_v58 = vld [vmem:[#allocation3 + $0x1338] sm:$0xf] }
 0x66e   :  { %v6935_v56 = vpop.f32.mrf.mxu3 }
 0x66f   :  { %v20830_v45 = vadd.f32 %v6935_v56, %v20748_v26  ;;  %v16440_v56 = vor.u32 %v18602_v32, %v16439_v4  ;;  %v18553_v32 = vld [vmem:[#allocation3 + $0x11dc] sm:$0xf0] }
 0x670   :  { %v8343_v63 = vpop.f32.mrf.mxu0  ;;  %v8632_v54 = vpop.f32.mrf.mxu1  ;;  %7879 = vmatpush.bf16.msra.mxu3 %v16016_v0  ;;  %9498 = vmatpush.bf16.msrb.mxu0 %v16572_v39  ;;  %v16756_v0 = vor.u32 %v18669_v20, %v16753_v49  ;;  %v16705_v20 = vld [vmem:[#allocation3 + $0x1550] sm:$0xf0] }
 0x671   :  { %v20833_v61 = vadd.f32 %v8632_v54, %v20751_v53  ;;  %16395 = vmatmul.msk.bf16.vlgmr.msra.gmra.mxu2 %vm1042_vm2, %v20646_v2  ;;  %v18642_v53 = vld [vmem:[#allocation3 + $0x14ac] sm:$0xf]  ;;  %v18551_v63 = vld [vmem:[#allocation3 + $0x11cc] sm:$0xf0]  ;;  %v16665_v54 = vld [vmem:[#allocation3 + $0x14f8] sm:$0xf0] }
 0x672   :  { %9063 = vmatpush.bf16.msra.mxu2 %v16488_v10  ;;  %v16652_v42 = vor.u32 %v18642_v53, %v16649_v18  ;;  %v16191_v10 = vld [vmem:[#allocation3 + $0x1190] sm:$0xf]  ;;  %v18628_v53 = vld [vmem:[#allocation3 + $0x143c] sm:$0xf] }
 0x673   :  { %16674 = vmatmul.msk.bf16.vlgmr.msra.gmra.mxu1 %vm1042_vm2, %v20810_v52  ;;  %v16601_v18 = vld [vmem:[#allocation3 + $0x1478] sm:$0xf0] }
 0x674   :  { %v7907_v26 = vpop.f32.mrf.mxu2  ;;  %9575 = vmatpush.bf16.msra.mxu1 %v16660_v8 }
 0x675   :  { %v20840_v31 = vadd.f32 %v7907_v26, %v20758_v21  ;;  %v16503_v21 = vld [vmem:[#allocation3 + $0x13a8] sm:$0xf]  ;;  %v16127_v26 = vld [vmem:[#allocation3 + $0x1110] sm:$0xf] }
 0x676   :  { %v6937_v43 = vpop.f32.mrf.mxu3  ;;  %9064 = vmatpush.bf16.msra.mxu2 %v16424_v3  ;;  %v16504_v60 = vor.u32 %v18618_v15, %v16503_v21  ;;  %v16192_v3 = vor.u32 %v18551_v63, %v16191_v10  ;;  %v18604_v21 = vld [vmem:[#allocation3 + $0x1374] sm:$0xf0]  ;;  %v18654_v63 = vld [vmem:[#allocation3 + $0x150c] sm:$0xf] }
 0x677   :  { %v18620_v43 = vld [vmem:[#allocation3 + $0x13f4] sm:$0xf0]  ;;  %v16456_v49 = vor.u32 %v18604_v21, %v16455_v58  ;;  %v16223_v58 = vld [vmem:[#allocation3 + $0x11b0] sm:$0xf] }
 0x678   :  { %v8606_v14 = vpop.f32.mrf.mxu0  ;;  %v8634_v57 = vpop.f32.mrf.mxu1  ;;  %9576 = vmatpush.bf16.msra.mxu1 %v16596_v47 }
 0x679   :  { %v20843_v28 = vadd.f32 %v8606_v14, %v20761_v44  ;;  %v16128_v57 = vor.u32 %v18535_v37, %v16127_v26  ;;  %v16785_v26 = vld [vmem:[#allocation3 + $0x15e0] sm:$0xf0] }
 0x67b   :  { %16101 = vmatmul.msk.bf16.vlgmr.msrb.gmra.mxu3 %vm1042_vm2, %v20482_v48  ;;  %16672 = vmatmul.msk.bf16.vlgmr.msra.gmra.mxu0 %vm1042_vm2, %v20810_v52 }
 0x67c   :  { %v7909_v24 = vpop.f32.mrf.mxu2  ;;  %8143 = vmatpush.bf16.msrb.mxu3 %v16176_v36  ;;  %9549 = vmatpush.bf16.msra.mxu0 %v16652_v42  ;;  %v16604_v36 = vor.u32 %v18628_v53, %v16601_v18  ;;  %v16769_v42 = vld [vmem:[#allocation3 + $0x15d0] sm:$0xf0]  ;;  %v16551_v18 = vld [vmem:[#allocation3 + $0x1408] sm:$0xf] }
 0x67d   :  { %v16772_v24 = vor.u32 %v18671_v22, %v16769_v42  ;;  %v18657_v42 = vld [vmem:[#allocation3 + $0x1524] sm:$0xf] }
 0x67e   :  { %v6987_v44 = vpop.f32.mrf.mxu3 }
 0x67f   :  { %v20850_v13 = vadd.f32 %v6987_v44, %v20768_v29  ;;  %v16207_v44 = vld [vmem:[#allocation3 + $0x11a0] sm:$0xf] }
 0x680   :  { %v8608_v30 = vpop.f32.mrf.mxu0  ;;  %v8684_v38 = vpop.f32.mrf.mxu1  ;;  %8144 = vmatpush.bf16.msrb.mxu3 %v16112_v11  ;;  %9550 = vmatpush.bf16.msra.mxu0 %v16588_v19  ;;  %v18655_v19 = vld [vmem:[#allocation3 + $0x1514] sm:$0xf]  ;;  %v16208_v9 = vor.u32 %v18553_v32, %v16207_v44  ;;  %v16159_v44 = vld [vmem:[#allocation3 + $0x1130] sm:$0xf] }
 0x681   :  { %v20853_v39 = vadd.f32 %v8684_v38, %v20771_v46  ;;  %16527 = vmatmul.msk.bf16.vlgmr.msrb.gmra.mxu2 %vm1042_vm2, %v20728_v41  ;;  %v18644_v46 = vld [vmem:[#allocation3 + $0x14bc] sm:$0xf]  ;;  %v16761_v30 = vld [vmem:[#allocation3 + $0x15c8] sm:$0xf0] }
 0x682   :  { %9115 = vmatpush.bf16.msrb.mxu2 %v16504_v60  ;;  %v16668_v55 = vor.u32 %v18644_v46, %v16665_v54  ;;  %v16708_v60 = vor.u32 %v18655_v19, %v16705_v20  ;;  %v16697_v46 = vld [vmem:[#allocation3 + $0x1548] sm:$0xf0]  ;;  %v18646_v54 = vld [vmem:[#allocation3 + $0x14c4] sm:$0xf0] }
 0x683   :  { %16678 = vmatmul.msk.bf16.vlgmr.msrb.gmra.mxu1 %vm1042_vm2, %v20810_v52 }
 0x684   :  { %v8172_v29 = vpop.f32.mrf.mxu2  ;;  %9840 = vmatpush.bf16.msrb.mxu1 %v16756_v0 }
 0x685   :  { %v20860_v50 = vadd.f32 %v8172_v29, %v20778_v23  ;;  %v16519_v23 = vld [vmem:[#allocation3 + $0x13b8] sm:$0xf] }
 0x686   :  { %v6989_v8 = vpop.f32.mrf.mxu3  ;;  %9116 = vmatpush.bf16.msrb.mxu2 %v16440_v56  ;;  %v16520_v34 = vor.u32 %v18620_v43, %v16519_v23  ;;  %v16143_v56 = vld [vmem:[#allocation3 + $0x1120] sm:$0xf]  ;;  %v18630_v23 = vld [vmem:[#allocation3 + $0x1444] sm:$0xf0] }
 0x688   :  { %v8658_v51 = vpop.f32.mrf.mxu0  ;;  %v8686_v7 = vpop.f32.mrf.mxu1  ;;  %9841 = vmatpush.bf16.msrb.mxu1 %v16692_v1  ;;  %v18537_v1 = vld [vmem:[#allocation3 + $0x115c] sm:$0xf0] }
 0x689   :  { %v20863_v47 = vadd.f32 %v8658_v51, %v20781_v5  ;;  %v16144_v51 = vor.u32 %v18537_v1, %v16143_v56  ;;  %v16700_v7 = vor.u32 %v18654_v63, %v16697_v46  ;;  %v16801_v1 = vld [vmem:[#allocation3 + $0x15f0] sm:$0xf0] }
 0x68b   :  { %16105 = vmatmul.msk.bf16.vlgmr.msra.gmra.mxu3 %vm1042_vm2, %v20482_v48  ;;  %16676 = vmatmul.msk.bf16.vlgmr.msrb.gmra.mxu0 %vm1042_vm2, %v20810_v52 }
 0x68c   :  { %v8174_v14 = vpop.f32.mrf.mxu2  ;;  %8195 = vmatpush.bf16.msra.mxu3 %v16192_v3  ;;  %9601 = vmatpush.bf16.msrb.mxu0 %v16668_v55  ;;  %v18673_v3 = vld [vmem:[#allocation3 + $0x15a4] sm:$0xf] }
 0x68e   :  { %v7039_v5 = vpop.f32.mrf.mxu3 }
 0x68f   :  { %v20870_v6 = vadd.f32 %v7039_v5, %v20788_v33  ;;  %v16721_v5 = vld [vmem:[#allocation3 + $0x1560] sm:$0xf0] }
 0x690   :  { %v8660_v48 = vpop.f32.mrf.mxu0  ;;  %v8736_v15 = vpop.f32.mrf.mxu1  ;;  %8196 = vmatpush.bf16.msra.mxu3 %v16128_v57  ;;  %9602 = vmatpush.bf16.msrb.mxu0 %v16604_v36  ;;  %v16788_v57 = vor.u32 %v18673_v3, %v16785_v26  ;;  %v16724_v21 = vor.u32 %v18657_v42, %v16721_v5  ;;  %v18659_v26 = vld [vmem:[#allocation3 + $0x1534] sm:$0xf] }
 0x691   :  { %v20873_v11 = vadd.f32 %v8736_v15, %v20791_v27  ;;  %16531 = vmatmul.msk.bf16.vlgmr.msra.gmra.mxu2 %vm1042_vm2, %v20728_v41  ;;  %v18670_v27 = vld [vmem:[#allocation3 + $0x158c] sm:$0xf]  ;;  %v18555_v15 = vld [vmem:[#allocation3 + $0x11ec] sm:$0xf0] }
 0x692   :  { %9167 = vmatpush.bf16.msra.mxu2 %v16520_v34  ;;  %v16764_v29 = vor.u32 %v18670_v27, %v16761_v30  ;;  %v18539_v27 = vld [vmem:[#allocation3 + $0x116c] sm:$0xf0]  ;;  %v18656_v30 = vld [vmem:[#allocation3 + $0x151c] sm:$0xf] }
 0x693   :  { %16682 = vmatmul.msk.bf16.vlgmr.msra.gmra.mxu1 %vm1042_vm2, %v20810_v52 }
 0x694   :  { %v8224_v33 = vpop.f32.mrf.mxu2  ;;  %9892 = vmatpush.bf16.msra.mxu1 %v16772_v24  ;;  %v16777_v24 = vld [vmem:[#allocation3 + $0x15d8] sm:$0xf0] }
 0x695   :  { %v20880_v4 = vadd.f32 %v8224_v33, %v20798_v25  ;;  %v16615_v25 = vld [vmem:[#allocation3 + $0x1488] sm:$0xf]  ;;  %v16224_v33 = vor.u32 %v18555_v15, %v16223_v58  ;;  %v18565_v15 = vld [vmem:[#allocation3 + $0x123c] sm:$0xf0] }
 0x696   :  { %v7041_v38 = vpop.f32.mrf.mxu3  ;;  %9168 = vmatpush.bf16.msra.mxu2 %v16456_v49  ;;  %v16616_v37 = vor.u32 %v18646_v54, %v16615_v25  ;;  %v16567_v25 = vld [vmem:[#allocation3 + $0x1418] sm:$0xf] }
 0x697   :  { %v16713_v38 = vld [vmem:[#allocation3 + $0x1558] sm:$0xf0]  ;;  %v18632_v54 = vld [vmem:[#allocation3 + $0x1454] sm:$0xf0] }
 0x698   :  { %v8710_v0 = vpop.f32.mrf.mxu0  ;;  %v8738_v59 = vpop.f32.mrf.mxu1  ;;  %9893 = vmatpush.bf16.msra.mxu1 %v16708_v60  ;;  %v16716_v56 = vor.u32 %v18656_v30, %v16713_v38  ;;  %v16583_v38 = vld [vmem:[#allocation3 + $0x1428] sm:$0xf] }
 0x699   :  { %v20883_v10 = vadd.f32 %v8710_v0, %v20801_v40  ;;  %v9624_v40 = vld [vmem:[#allocation2 + $0xa8] sm:$0xff] }
 0x69a   :  { %v20892_v36 = vpack.c.bf16 %v9624_v40, %v9624_v40  ;;  %v18648_v0 = vld [vmem:[#allocation3 + $0x14d4] sm:$0xf0]  ;;  %v16737_v40 = vld [vmem:[#allocation3 + $0x1570] sm:$0xf0] }
 0x69b   :  { %16237 = vmatmul.msk.bf16.vlgmr.msrb.gmra.mxu3 %vm1042_vm2, %v20564_v62  ;;  %16680 = vmatmul.msk.bf16.vlgmr.msra.gmra.mxu0 %vm1042_vm2, %v20810_v52 }
 0x69c   :  { %v8226_v8 = vpop.f32.mrf.mxu2  ;;  %8247 = vmatpush.bf16.msrb.mxu3 %v16208_v9  ;;  %9866 = vmatpush.bf16.msra.mxu0 %v16764_v29  ;;  %v16160_v9 = vor.u32 %v18539_v27, %v16159_v44  ;;  %v18675_v29 = vld [vmem:[#allocation3 + $0x15b4] sm:$0xf]  ;;  %v18701_v44 = vld [vmem:[#allocation3 + $0x1684] sm:$0xf] }
 0x69e   :  { %v7304_v55 = vpop.f32.mrf.mxu3 }
 0x69f   :  { %v20890_v53 = vadd.f32 %v7304_v55, %v20808_v35  ;;  %v16552_v35 = vor.u32 %v18630_v23, %v16551_v18  ;;  %v16568_v55 = vor.u32 %v18632_v54, %v16567_v25  ;;  %v16740_v18 = vor.u32 %v18659_v26, %v16737_v40 }
 0x6a0   :  { %v8712_v43 = vpop.f32.mrf.mxu0  ;;  %v9001_v14 = vpop.f32.mrf.mxu1  ;;  %8248 = vmatpush.bf16.msrb.mxu3 %v16144_v51  ;;  %9867 = vmatpush.bf16.msra.mxu0 %v16700_v7  ;;  %v16804_v7 = vor.u32 %v18675_v29, %v16801_v1  ;;  %v18685_v29 = vld [vmem:[#allocation3 + $0x1604] sm:$0xf] }
 0x6a1   :  { %v20895_v22 = vadd.f32 %v9001_v14, %v20813_v16  ;;  %16535 = vmatmul.msk.bf16.vlgmr.msrb.gmra.mxu2 %vm1042_vm2, %v20728_v41  ;;  %v18672_v16 = vld [vmem:[#allocation3 + $0x159c] sm:$0xf]  ;;  %v18581_v43 = vld [vmem:[#allocation3 + $0x12bc] sm:$0xf0]  ;;  %v16793_v14 = vld [vmem:[#allocation3 + $0x15e8] sm:$0xf0] }
 0x6a2   :  { %9432 = vmatpush.bf16.msrb.mxu2 %v16616_v37  ;;  %v16780_v60 = vor.u32 %v18672_v16, %v16777_v24  ;;  %v16319_v37 = vld [vmem:[#allocation3 + $0x1280] sm:$0xf]  ;;  %v18658_v16 = vld [vmem:[#allocation3 + $0x152c] sm:$0xf]  ;;  %v16833_v1 = vld [vmem:[#allocation3 + $0x1640] sm:$0xf0] }
 0x6a3   :  { %16814 = vmatmul.msk.bf16.vlgmr.msrb.gmra.mxu1 %vm1042_vm2, %v20892_v36  ;;  %v16729_v24 = vld [vmem:[#allocation3 + $0x1568] sm:$0xf0]  ;;  %v16836_v25 = vor.u32 %v18685_v29, %v16833_v1 }
 0x6a4   :  { %v8276_v34 = vpop.f32.mrf.mxu2  ;;  %9944 = vmatpush.bf16.msrb.mxu1 %v16788_v57 }
 0x6a5   :  { %v20902_v48 = vadd.f32 %v8276_v34, %v20820_v12  ;;  %v16631_v12 = vld [vmem:[#allocation3 + $0x1498] sm:$0xf]  ;;  %v16255_v34 = vld [vmem:[#allocation3 + $0x1200] sm:$0xf] }
 0x6a6   :  { %v7306_v19 = vpop.f32.mrf.mxu3  ;;  %9433 = vmatpush.bf16.msrb.mxu2 %v16552_v35  ;;  %v16632_v63 = vor.u32 %v18648_v0, %v16631_v12  ;;  %v16320_v35 = vor.u32 %v18581_v43, %v16319_v37  ;;  %v18634_v12 = vld [vmem:[#allocation3 + $0x1464] sm:$0xf0]  ;;  %v18567_v43 = vld [vmem:[#allocation3 + $0x124c] sm:$0xf0] }
 0x6a7   :  { %v18650_v19 = vld [vmem:[#allocation3 + $0x14e4] sm:$0xf0] }
 0x6a8   :  { %v8762_v20 = vpop.f32.mrf.mxu0  ;;  %v9003_v49 = vpop.f32.mrf.mxu1  ;;  %9945 = vmatpush.bf16.msrb.mxu1 %v16724_v21 }
 0x6a9   :  { %v20905_v32 = vadd.f32 %v8762_v20, %v20823_v17  ;;  %v16256_v49 = vor.u32 %v18565_v15, %v16255_v34  ;;  %v18703_v34 = vld [vmem:[#allocation3 + $0x1694] sm:$0xf] }
 0x6ab   :  { %16241 = vmatmul.msk.bf16.vlgmr.msra.gmra.mxu3 %vm1042_vm2, %v20564_v62  ;;  %16684 = vmatmul.msk.bf16.vlgmr.msrb.gmra.mxu0 %vm1042_vm2, %v20810_v52 }
 0x6ac   :  { %v8278_v59 = vpop.f32.mrf.mxu2  ;;  %8299 = vmatpush.bf16.msra.mxu3 %v16224_v33  ;;  %9918 = vmatpush.bf16.msrb.mxu0 %v16780_v60  ;;  %v16732_v33 = vor.u32 %v18658_v16, %v16729_v24  ;;  %v16897_v60 = vld [vmem:[#allocation3 + $0x16c0] sm:$0xf0]  ;;  %v16599_v24 = vld [vmem:[#allocation3 + $0x1438] sm:$0xf] }
 0x6ae   :  { %v7356_v17 = vpop.f32.mrf.mxu3 }
 0x6af   :  { %v20912_v46 = vadd.f32 %v7356_v17, %v20830_v45  ;;  %v16584_v17 = vor.u32 %v18634_v12, %v16583_v38  ;;  %v18585_v12 = vld [vmem:[#allocation3 + $0x12dc] sm:$0xf0] }
 0x6b0   :  { %v8764_v8 = vpop.f32.mrf.mxu0  ;;  %v9053_v51 = vpop.f32.mrf.mxu1  ;;  %8300 = vmatpush.bf16.msra.mxu3 %v16160_v9  ;;  %9919 = vmatpush.bf16.msrb.mxu0 %v16716_v56  ;;  %v16900_v9 = vor.u32 %v18701_v44, %v16897_v60  ;;  %v16849_v44 = vld [vmem:[#allocation3 + $0x1650] sm:$0xf0] }
 0x6b1   :  { %v20915_v3 = vadd.f32 %v9053_v51, %v20833_v61  ;;  %16539 = vmatmul.msk.bf16.vlgmr.msra.gmra.mxu2 %vm1042_vm2, %v20728_v41  ;;  %v18674_v61 = vld [vmem:[#allocation3 + $0x15ac] sm:$0xf]  ;;  %v18583_v8 = vld [vmem:[#allocation3 + $0x12cc] sm:$0xf0]  ;;  %v16809_v51 = vld [vmem:[#allocation3 + $0x15f8] sm:$0xf0] }
 0x6b2   :  { %9484 = vmatpush.bf16.msra.mxu2 %v16632_v63  ;;  %v16796_v58 = vor.u32 %v18674_v61, %v16793_v14  ;;  %v16335_v63 = vld [vmem:[#allocation3 + $0x1290] sm:$0xf]  ;;  %v18660_v61 = vld [vmem:[#allocation3 + $0x153c] sm:$0xf] }
 0x6b3   :  { %16818 = vmatmul.msk.bf16.vlgmr.msra.gmra.mxu1 %vm1042_vm2, %v20892_v36  ;;  %v16745_v14 = vld [vmem:[#allocation3 + $0x1578] sm:$0xf0] }
 0x6b4   :  { %v8328_v45 = vpop.f32.mrf.mxu2  ;;  %9996 = vmatpush.bf16.msra.mxu1 %v16804_v7 }
 0x6b5   :  { %v20922_v23 = vadd.f32 %v8328_v45, %v20840_v31  ;;  %v16647_v31 = vld [vmem:[#allocation3 + $0x14a8] sm:$0xf]  ;;  %v16271_v45 = vld [vmem:[#allocation3 + $0x1210] sm:$0xf] }
 0x6b6   :  { %v7358_v57 = vpop.f32.mrf.mxu3  ;;  %9485 = vmatpush.bf16.msra.mxu2 %v16568_v55  ;;  %v16648_v27 = vor.u32 %v18650_v19, %v16647_v31  ;;  %v16336_v55 = vor.u32 %v18583_v8, %v16335_v63  ;;  %v18636_v31 = vld [vmem:[#allocation3 + $0x1474] sm:$0xf0]  ;;  %v18686_v8 = vld [vmem:[#allocation3 + $0x160c] sm:$0xf] }
 0x6b7   :  { %v18652_v57 = vld [vmem:[#allocation3 + $0x14f4] sm:$0xf0]  ;;  %v16600_v60 = vor.u32 %v18636_v31, %v16599_v24  ;;  %v16367_v24 = vld [vmem:[#allocation3 + $0x12b0] sm:$0xf] }
 0x6b8   :  { %v9027_v42 = vpop.f32.mrf.mxu0  ;;  %v9055_v5 = vpop.f32.mrf.mxu1  ;;  %9997 = vmatpush.bf16.msra.mxu1 %v16740_v18 }
 0x6b9   :  { %v20925_v21 = vadd.f32 %v9027_v42, %v20843_v28  ;;  %v16272_v5 = vor.u32 %v18567_v43, %v16271_v45  ;;  %v16929_v45 = vld [vmem:[#allocation3 + $0x16e0] sm:$0xf0] }
 0x6bb   :  { %16245 = vmatmul.msk.bf16.vlgmr.msrb.gmra.mxu3 %vm1042_vm2, %v20564_v62  ;;  %16816 = vmatmul.msk.bf16.vlgmr.msra.gmra.mxu0 %vm1042_vm2, %v20892_v36 }
 0x6bc   :  { %v8330_v20 = vpop.f32.mrf.mxu2  ;;  %8564 = vmatpush.bf16.msrb.mxu3 %v16320_v35  ;;  %9970 = vmatpush.bf16.msra.mxu0 %v16796_v58  ;;  %v16748_v35 = vor.u32 %v18660_v61, %v16745_v14  ;;  %v16913_v58 = vld [vmem:[#allocation3 + $0x16d0] sm:$0xf0]  ;;  %v16695_v14 = vld [vmem:[#allocation3 + $0x1508] sm:$0xf] }
 0x6bd   :  { %v16916_v20 = vor.u32 %v18703_v34, %v16913_v58  ;;  %v18689_v58 = vld [vmem:[#allocation3 + $0x1624] sm:$0xf] }
 0x6be   :  { %v7408_v28 = vpop.f32.mrf.mxu3 }
 0x6bf   :  { %v20932_v30 = vadd.f32 %v7408_v28, %v20850_v13  ;;  %v16351_v28 = vld [vmem:[#allocation3 + $0x12a0] sm:$0xf] }
 0x6c0   :  { %v9029_v0 = vpop.f32.mrf.mxu0  ;;  %v9105_v59 = vpop.f32.mrf.mxu1  ;;  %8565 = vmatpush.bf16.msrb.mxu3 %v16256_v49  ;;  %9971 = vmatpush.bf16.msra.mxu0 %v16732_v33  ;;  %v18687_v33 = vld [vmem:[#allocation3 + $0x1614] sm:$0xf]  ;;  %v16352_v1 = vor.u32 %v18585_v12, %v16351_v28  ;;  %v16303_v28 = vld [vmem:[#allocation3 + $0x1230] sm:$0xf] }
 0x6c1   :  { %v20935_v56 = vadd.f32 %v9105_v59, %v20853_v39  ;;  %16671 = vmatmul.msk.bf16.vlgmr.msrb.gmra.mxu2 %vm1042_vm2, %v20810_v52  ;;  %v18676_v39 = vld [vmem:[#allocation3 + $0x15bc] sm:$0xf]  ;;  %v16905_v0 = vld [vmem:[#allocation3 + $0x16c8] sm:$0xf0] }
 0x6c2   :  { %9536 = vmatpush.bf16.msrb.mxu2 %v16648_v27  ;;  %v16812_v37 = vor.u32 %v18676_v39, %v16809_v51  ;;  %v16852_v27 = vor.u32 %v18687_v33, %v16849_v44  ;;  %v16841_v39 = vld [vmem:[#allocation3 + $0x1648] sm:$0xf0]  ;;  %v18678_v51 = vld [vmem:[#allocation3 + $0x15c4] sm:$0xf0] }
 0x6c3   :  { %16822 = vmatmul.msk.bf16.vlgmr.msrb.gmra.mxu1 %vm1042_vm2, %v20892_v36 }
 0x6c4   :  { %v8593_v13 = vpop.f32.mrf.mxu2  ;;  %10261 = vmatpush.bf16.msrb.mxu1 %v16900_v9 }
 0x6c5   :  { %v20942_v54 = vadd.f32 %v8593_v13, %v20860_v50  ;;  %v16663_v50 = vld [vmem:[#allocation3 + $0x14b8] sm:$0xf] }
 0x6c6   :  { %v7410_v7 = vpop.f32.mrf.mxu3  ;;  %9537 = vmatpush.bf16.msrb.mxu2 %v16584_v17  ;;  %v16664_v15 = vor.u32 %v18652_v57, %v16663_v50  ;;  %v16287_v17 = vld [vmem:[#allocation3 + $0x1220] sm:$0xf]  ;;  %v18662_v50 = vld [vmem:[#allocation3 + $0x1544] sm:$0xf0] }
 0x6c8   :  { %v9079_v26 = vpop.f32.mrf.mxu0  ;;  %v9107_v40 = vpop.f32.mrf.mxu1  ;;  %10262 = vmatpush.bf16.msrb.mxu1 %v16836_v25  ;;  %v18569_v25 = vld [vmem:[#allocation3 + $0x125c] sm:$0xf0] }
 0x6c9   :  { %v20945_v18 = vadd.f32 %v9079_v26, %v20863_v47  ;;  %v16288_v26 = vor.u32 %v18569_v25, %v16287_v17  ;;  %v16844_v40 = vor.u32 %v18686_v8, %v16841_v39  ;;  %v16945_v25 = vld [vmem:[#allocation3 + $0x16f0] sm:$0xf0] }
 0x6cb   :  { %16249 = vmatmul.msk.bf16.vlgmr.msra.gmra.mxu3 %vm1042_vm2, %v20564_v62  ;;  %16820 = vmatmul.msk.bf16.vlgmr.msrb.gmra.mxu0 %vm1042_vm2, %v20892_v36 }
 0x6cc   :  { %v8595_v42 = vpop.f32.mrf.mxu2  ;;  %8616 = vmatpush.bf16.msra.mxu3 %v16336_v55  ;;  %10022 = vmatpush.bf16.msrb.mxu0 %v16812_v37  ;;  %v18705_v55 = vld [vmem:[#allocation3 + $0x16a4] sm:$0xf] }
 0x6ce   :  { %v7460_v47 = vpop.f32.mrf.mxu3 }
 0x6cf   :  { %v20952_v16 = vadd.f32 %v7460_v47, %v20870_v6  ;;  %v16865_v47 = vld [vmem:[#allocation3 + $0x1660] sm:$0xf0] }
 0x6d0   :  { %v9081_v62 = vpop.f32.mrf.mxu0  ;;  %v9157_v19 = vpop.f32.mrf.mxu1  ;;  %8617 = vmatpush.bf16.msra.mxu3 %v16272_v5  ;;  %10023 = vmatpush.bf16.msrb.mxu0 %v16748_v35  ;;  %v16932_v5 = vor.u32 %v18705_v55, %v16929_v45  ;;  %v16868_v31 = vor.u32 %v18689_v58, %v16865_v47  ;;  %v18691_v45 = vld [vmem:[#allocation3 + $0x1634] sm:$0xf] }
 0x6d1   :  { %v20955_v49 = vadd.f32 %v9157_v19, %v20873_v11  ;;  %16675 = vmatmul.msk.bf16.vlgmr.msra.gmra.mxu2 %vm1042_vm2, %v20810_v52  ;;  %v18702_v11 = vld [vmem:[#allocation3 + $0x168c] sm:$0xf]  ;;  %v18587_v19 = vld [vmem:[#allocation3 + $0x12ec] sm:$0xf0] }
 0x6d2   :  { %9588 = vmatpush.bf16.msra.mxu2 %v16664_v15  ;;  %v16908_v13 = vor.u32 %v18702_v11, %v16905_v0  ;;  %v18571_v11 = vld [vmem:[#allocation3 + $0x126c] sm:$0xf0]  ;;  %v18688_v0 = vld [vmem:[#allocation3 + $0x161c] sm:$0xf] }
 0x6d3   :  { %16826 = vmatmul.msk.bf16.vlgmr.msra.gmra.mxu1 %vm1042_vm2, %v20892_v36 }
 0x6d4   :  { %v8645_v6 = vpop.f32.mrf.mxu2  ;;  %10313 = vmatpush.bf16.msra.mxu1 %v16916_v20  ;;  %v16921_v20 = vld [vmem:[#allocation3 + $0x16d8] sm:$0xf0] }
 0x6d5   :  { %v20962_v38 = vadd.f32 %v8645_v6, %v20880_v4  ;;  %v16759_v4 = vld [vmem:[#allocation3 + $0x1588] sm:$0xf]  ;;  %v16368_v6 = vor.u32 %v18587_v19, %v16367_v24  ;;  %v18597_v19 = vld [vmem:[#allocation3 + $0x133c] sm:$0xf0] }
 0x6d6   :  { %v7462_v59 = vpop.f32.mrf.mxu3  ;;  %9589 = vmatpush.bf16.msra.mxu2 %v16600_v60  ;;  %v16760_v43 = vor.u32 %v18678_v51, %v16759_v4  ;;  %v16711_v4 = vld [vmem:[#allocation3 + $0x1518] sm:$0xf] }
 0x6d7   :  { %v16857_v59 = vld [vmem:[#allocation3 + $0x1658] sm:$0xf0]  ;;  %v18664_v51 = vld [vmem:[#allocation3 + $0x1554] sm:$0xf0] }
 0x6d8   :  { %v9131_v9 = vpop.f32.mrf.mxu0  ;;  %v9159_v29 = vpop.f32.mrf.mxu1  ;;  %10314 = vmatpush.bf16.msra.mxu1 %v16852_v27  ;;  %v16860_v17 = vor.u32 %v18688_v0, %v16857_v59  ;;  %v16727_v59 = vld [vmem:[#allocation3 + $0x1528] sm:$0xf] }
 0x6d9   :  { %v20965_v63 = vadd.f32 %v9131_v9, %v20883_v10  ;;  %v10045_v10 = vld [vmem:[#allocation2 + $0xb0] sm:$0xff]  ;;  %v18680_v9 = vld [vmem:[#allocation3 + $0x15d4] sm:$0xf0] }
 0x6da   :  { %v20974_v35 = vpack.c.bf16 %v10045_v10, %v10045_v10  ;;  %v16881_v10 = vld [vmem:[#allocation3 + $0x1670] sm:$0xf0] }
 0x6db   :  { %16381 = vmatmul.msk.bf16.vlgmr.msrb.gmra.mxu3 %vm1042_vm2, %v20646_v2  ;;  %16824 = vmatmul.msk.bf16.vlgmr.msra.gmra.mxu0 %vm1042_vm2, %v20892_v36 }
 0x6dc   :  { %v8647_v7 = vpop.f32.mrf.mxu2  ;;  %8668 = vmatpush.bf16.msrb.mxu3 %v16352_v1  ;;  %10287 = vmatpush.bf16.msra.mxu0 %v16908_v13  ;;  %v16304_v1 = vor.u32 %v18571_v11, %v16303_v28  ;;  %v18707_v13 = vld [vmem:[#allocation3 + $0x16b4] sm:$0xf]  ;;  %v18733_v28 = vld [vmem:[#allocation3 + $0x1784] sm:$0xf] }
 0x6de   :  { %v7725_v37 = vpop.f32.mrf.mxu3 }
 0x6df   :  { %v20972_v61 = vadd.f32 %v7725_v37, %v20890_v53  ;;  %v16696_v53 = vor.u32 %v18662_v50, %v16695_v14  ;;  %v16712_v37 = vor.u32 %v18664_v51, %v16711_v4  ;;  %v16884_v14 = vor.u32 %v18691_v45, %v16881_v10 }
 0x6e0   :  { %v9133_v57 = vpop.f32.mrf.mxu0  ;;  %v9422_v42 = vpop.f32.mrf.mxu1  ;;  %8669 = vmatpush.bf16.msrb.mxu3 %v16288_v26  ;;  %10288 = vmatpush.bf16.msra.mxu0 %v16844_v40  ;;  %v16948_v40 = vor.u32 %v18707_v13, %v16945_v25  ;;  %v18717_v13 = vld [vmem:[#allocation3 + $0x1704] sm:$0xf] }
 0x6e1   :  { %v20977_v34 = vadd.f32 %v9422_v42, %v20895_v22  ;;  %16679 = vmatmul.msk.bf16.vlgmr.msrb.gmra.mxu2 %vm1042_vm2, %v20810_v52  ;;  %v18704_v22 = vld [vmem:[#allocation3 + $0x169c] sm:$0xf]  ;;  %v18613_v57 = vld [vmem:[#allocation3 + $0x13bc] sm:$0xf0]  ;;  %v16937_v42 = vld [vmem:[#allocation3 + $0x16e8] sm:$0xf0] }
 0x6e2   :  { %9853 = vmatpush.bf16.msrb.mxu2 %v16760_v43  ;;  %v16924_v27 = vor.u32 %v18704_v22, %v16921_v20  ;;  %v16463_v43 = vld [vmem:[#allocation3 + $0x1380] sm:$0xf]  ;;  %v18690_v22 = vld [vmem:[#allocation3 + $0x162c] sm:$0xf]  ;;  %v16977_v25 = vld [vmem:[#allocation3 + $0x1740] sm:$0xf0] }
 0x6e3   :  { %16958 = vmatmul.msk.bf16.vlgmr.msrb.gmra.mxu1 %vm1042_vm2, %v20974_v35  ;;  %v16873_v20 = vld [vmem:[#allocation3 + $0x1668] sm:$0xf0]  ;;  %v16980_v4 = vor.u32 %v18717_v13, %v16977_v25 }
 0x6e4   :  { %v8697_v15 = vpop.f32.mrf.mxu2  ;;  %10365 = vmatpush.bf16.msrb.mxu1 %v16932_v5 }
 0x6e5   :  { %v20984_v62 = vadd.f32 %v8697_v15, %v20902_v48  ;;  %v16775_v48 = vld [vmem:[#allocation3 + $0x1598] sm:$0xf]  ;;  %v16399_v15 = vld [vmem:[#allocation3 + $0x1300] sm:$0xf] }
 0x6e6   :  { %v7727_v33 = vpop.f32.mrf.mxu3  ;;  %9854 = vmatpush.bf16.msrb.mxu2 %v16696_v53  ;;  %v16776_v8 = vor.u32 %v18680_v9, %v16775_v48  ;;  %v16464_v53 = vor.u32 %v18613_v57, %v16463_v43  ;;  %v18666_v48 = vld [vmem:[#allocation3 + $0x1564] sm:$0xf0]  ;;  %v18599_v57 = vld [vmem:[#allocation3 + $0x134c] sm:$0xf0] }
 0x6e7   :  { %v18682_v33 = vld [vmem:[#allocation3 + $0x15e4] sm:$0xf0] }
 0x6e8   :  { %v9183_v44 = vpop.f32.mrf.mxu0  ;;  %v9424_v60 = vpop.f32.mrf.mxu1  ;;  %10366 = vmatpush.bf16.msrb.mxu1 %v16868_v31 }
 0x6e9   :  { %v20987_v12 = vadd.f32 %v9183_v44, %v20905_v32  ;;  %v16400_v60 = vor.u32 %v18597_v19, %v16399_v15  ;;  %v18735_v15 = vld [vmem:[#allocation3 + $0x1794] sm:$0xf] }
 0x6eb   :  { %16385 = vmatmul.msk.bf16.vlgmr.msra.gmra.mxu3 %vm1042_vm2, %v20646_v2  ;;  %16828 = vmatmul.msk.bf16.vlgmr.msrb.gmra.mxu0 %vm1042_vm2, %v20892_v36 }
 0x6ec   :  { %v8699_v29 = vpop.f32.mrf.mxu2  ;;  %8720 = vmatpush.bf16.msra.mxu3 %v16368_v6  ;;  %10339 = vmatpush.bf16.msrb.mxu0 %v16924_v27  ;;  %v16876_v6 = vor.u32 %v18690_v22, %v16873_v20  ;;  %v17041_v27 = vld [vmem:[#allocation3 + $0x17c0] sm:$0xf0]  ;;  %v16743_v20 = vld [vmem:[#allocation3 + $0x1538] sm:$0xf] }
 0x6ee   :  { %v7777_v32 = vpop.f32.mrf.mxu3 }
 0x6ef   :  { %v20994_v39 = vadd.f32 %v7777_v32, %v20912_v46  ;;  %v16728_v32 = vor.u32 %v18666_v48, %v16727_v59  ;;  %v18617_v48 = vld [vmem:[#allocation3 + $0x13dc] sm:$0xf0] }
 0x6f0   :  { %v9185_v7 = vpop.f32.mrf.mxu0  ;;  %v9474_v26 = vpop.f32.mrf.mxu1  ;;  %8721 = vmatpush.bf16.msra.mxu3 %v16304_v1  ;;  %10340 = vmatpush.bf16.msrb.mxu0 %v16860_v17  ;;  %v17044_v1 = vor.u32 %v18733_v28, %v17041_v27  ;;  %v16993_v28 = vld [vmem:[#allocation3 + $0x1750] sm:$0xf0] }
 0x6f1   :  { %v20997_v55 = vadd.f32 %v9474_v26, %v20915_v3  ;;  %16683 = vmatmul.msk.bf16.vlgmr.msra.gmra.mxu2 %vm1042_vm2, %v20810_v52  ;;  %v18706_v3 = vld [vmem:[#allocation3 + $0x16ac] sm:$0xf]  ;;  %v18615_v7 = vld [vmem:[#allocation3 + $0x13cc] sm:$0xf0]  ;;  %v16953_v26 = vld [vmem:[#allocation3 + $0x16f8] sm:$0xf0] }
 0x6f2   :  { %9905 = vmatpush.bf16.msra.mxu2 %v16776_v8  ;;  %v16940_v24 = vor.u32 %v18706_v3, %v16937_v42  ;;  %v16479_v8 = vld [vmem:[#allocation3 + $0x1390] sm:$0xf]  ;;  %v18692_v3 = vld [vmem:[#allocation3 + $0x163c] sm:$0xf] }
 0x6f3   :  { %16962 = vmatmul.msk.bf16.vlgmr.msra.gmra.mxu1 %vm1042_vm2, %v20974_v35  ;;  %v16889_v42 = vld [vmem:[#allocation3 + $0x1678] sm:$0xf0] }
 0x6f4   :  { %v8749_v46 = vpop.f32.mrf.mxu2  ;;  %10417 = vmatpush.bf16.msra.mxu1 %v16948_v40 }
 0x6f5   :  { %v21004_v50 = vadd.f32 %v8749_v46, %v20922_v23  ;;  %v16791_v23 = vld [vmem:[#allocation3 + $0x15a8] sm:$0xf]  ;;  %v16415_v46 = vld [vmem:[#allocation3 + $0x1310] sm:$0xf] }
 0x6f6   :  { %v7779_v5 = vpop.f32.mrf.mxu3  ;;  %9906 = vmatpush.bf16.msra.mxu2 %v16712_v37  ;;  %v16792_v11 = vor.u32 %v18682_v33, %v16791_v23  ;;  %v16480_v37 = vor.u32 %v18615_v7, %v16479_v8  ;;  %v18668_v23 = vld [vmem:[#allocation3 + $0x1574] sm:$0xf0]  ;;  %v18718_v7 = vld [vmem:[#allocation3 + $0x170c] sm:$0xf] }
 0x6f7   :  { %v18684_v5 = vld [vmem:[#allocation3 + $0x15f4] sm:$0xf0]  ;;  %v16744_v27 = vor.u32 %v18668_v23, %v16743_v20  ;;  %v16511_v20 = vld [vmem:[#allocation3 + $0x13b0] sm:$0xf] }
 0x6f8   :  { %v9448_v58 = vpop.f32.mrf.mxu0  ;;  %v9476_v47 = vpop.f32.mrf.mxu1  ;;  %10418 = vmatpush.bf16.msra.mxu1 %v16884_v14 }
 0x6f9   :  { %v21007_v31 = vadd.f32 %v9448_v58, %v20925_v21  ;;  %v16416_v47 = vor.u32 %v18599_v57, %v16415_v46  ;;  %v17073_v46 = vld [vmem:[#allocation3 + $0x17e0] sm:$0xf0] }
 0x6fb   :  { %16389 = vmatmul.msk.bf16.vlgmr.msrb.gmra.mxu3 %vm1042_vm2, %v20646_v2  ;;  %16960 = vmatmul.msk.bf16.vlgmr.msra.gmra.mxu0 %vm1042_vm2, %v20974_v35 }
 0x6fc   :  { %v8751_v44 = vpop.f32.mrf.mxu2  ;;  %8985 = vmatpush.bf16.msrb.mxu3 %v16464_v53  ;;  %10391 = vmatpush.bf16.msra.mxu0 %v16940_v24  ;;  %v16892_v53 = vor.u32 %v18692_v3, %v16889_v42  ;;  %v17057_v24 = vld [vmem:[#allocation3 + $0x17d0] sm:$0xf0]  ;;  %v16839_v42 = vld [vmem:[#allocation3 + $0x1608] sm:$0xf] }
 0x6fd   :  { %v17060_v44 = vor.u32 %v18735_v15, %v17057_v24  ;;  %v18721_v24 = vld [vmem:[#allocation3 + $0x1724] sm:$0xf] }
 0x6fe   :  { %v7829_v21 = vpop.f32.mrf.mxu3 }
 0x6ff   :  { %v21014_v0 = vadd.f32 %v7829_v21, %v20932_v30  ;;  %v16495_v21 = vld [vmem:[#allocation3 + $0x13a0] sm:$0xf] }
 0x700   :  { %v9450_v9 = vpop.f32.mrf.mxu0  ;;  %v9526_v29 = vpop.f32.mrf.mxu1  ;;  %8986 = vmatpush.bf16.msrb.mxu3 %v16400_v60  ;;  %10392 = vmatpush.bf16.msra.mxu0 %v16876_v6  ;;  %v18719_v6 = vld [vmem:[#allocation3 + $0x1714] sm:$0xf]  ;;  %v16496_v25 = vor.u32 %v18617_v48, %v16495_v21  ;;  %v16447_v21 = vld [vmem:[#allocation3 + $0x1330] sm:$0xf] }
 0x701   :  { %v21017_v17 = vadd.f32 %v9526_v29, %v20935_v56  ;;  %16815 = vmatmul.msk.bf16.vlgmr.msrb.gmra.mxu2 %vm1042_vm2, %v20892_v36  ;;  %v18708_v56 = vld [vmem:[#allocation3 + $0x16bc] sm:$0xf]  ;;  %v17049_v9 = vld [vmem:[#allocation3 + $0x17c8] sm:$0xf0] }
 0x702   :  { %9957 = vmatpush.bf16.msrb.mxu2 %v16792_v11  ;;  %v16956_v43 = vor.u32 %v18708_v56, %v16953_v26  ;;  %v16996_v11 = vor.u32 %v18719_v6, %v16993_v28  ;;  %v16985_v56 = vld [vmem:[#allocation3 + $0x1748] sm:$0xf0]  ;;  %v18710_v26 = vld [vmem:[#allocation3 + $0x16c4] sm:$0xf0] }
 0x703   :  { %16966 = vmatmul.msk.bf16.vlgmr.msrb.gmra.mxu1 %vm1042_vm2, %v20974_v35 }
 0x704   :  { %v9014_v30 = vpop.f32.mrf.mxu2  ;;  %10682 = vmatpush.bf16.msrb.mxu1 %v17044_v1 }
 0x705   :  { %v21024_v51 = vadd.f32 %v9014_v30, %v20942_v54  ;;  %v16807_v54 = vld [vmem:[#allocation3 + $0x15b8] sm:$0xf] }
 0x706   :  { %v7831_v40 = vpop.f32.mrf.mxu3  ;;  %9958 = vmatpush.bf16.msrb.mxu2 %v16728_v32  ;;  %v16808_v19 = vor.u32 %v18684_v5, %v16807_v54  ;;  %v16431_v32 = vld [vmem:[#allocation3 + $0x1320] sm:$0xf]  ;;  %v18694_v54 = vld [vmem:[#allocation3 + $0x1644] sm:$0xf0] }
 0x708   :  { %v9500_v45 = vpop.f32.mrf.mxu0  ;;  %v9528_v10 = vpop.f32.mrf.mxu1  ;;  %10683 = vmatpush.bf16.msrb.mxu1 %v16980_v4  ;;  %v18601_v4 = vld [vmem:[#allocation3 + $0x135c] sm:$0xf0] }
 0x709   :  { %v21027_v14 = vadd.f32 %v9500_v45, %v20945_v18  ;;  %v16432_v45 = vor.u32 %v18601_v4, %v16431_v32  ;;  %v16988_v10 = vor.u32 %v18718_v7, %v16985_v56  ;;  %v17089_v4 = vld [vmem:[#allocation3 + $0x17f0] sm:$0xf0] }
 0x70b   :  { %16393 = vmatmul.msk.bf16.vlgmr.msra.gmra.mxu3 %vm1042_vm2, %v20646_v2  ;;  %16964 = vmatmul.msk.bf16.vlgmr.msrb.gmra.mxu0 %vm1042_vm2, %v20974_v35 }
 0x70c   :  { %v9016_v58 = vpop.f32.mrf.mxu2  ;;  %9037 = vmatpush.bf16.msra.mxu3 %v16480_v37  ;;  %10443 = vmatpush.bf16.msrb.mxu0 %v16956_v43  ;;  %v18737_v37 = vld [vmem:[#allocation3 + $0x17a4] sm:$0xf] }
 0x70e   :  { %v7881_v18 = vpop.f32.mrf.mxu3 }
 0x70f   :  { %v21034_v22 = vadd.f32 %v7881_v18, %v20952_v16  ;;  %v17009_v18 = vld [vmem:[#allocation3 + $0x1760] sm:$0xf0] }
 0x710   :  { %v9502_v2 = vpop.f32.mrf.mxu0  ;;  %v9578_v33 = vpop.f32.mrf.mxu1  ;;  %9038 = vmatpush.bf16.msra.mxu3 %v16416_v47  ;;  %10444 = vmatpush.bf16.msrb.mxu0 %v16892_v53  ;;  %v17076_v47 = vor.u32 %v18737_v37, %v17073_v46  ;;  %v17012_v23 = vor.u32 %v18721_v24, %v17009_v18  ;;  %v18723_v46 = vld [vmem:[#allocation3 + $0x1734] sm:$0xf] }
 0x711   :  { %v21037_v60 = vadd.f32 %v9578_v33, %v20955_v49  ;;  %16819 = vmatmul.msk.bf16.vlgmr.msra.gmra.mxu2 %vm1042_vm2, %v20892_v36  ;;  %v18734_v49 = vld [vmem:[#allocation3 + $0x178c] sm:$0xf]  ;;  %v18619_v33 = vld [vmem:[#allocation3 + $0x13ec] sm:$0xf0] }
 0x712   :  { %10009 = vmatpush.bf16.msra.mxu2 %v16808_v19  ;;  %v17052_v30 = vor.u32 %v18734_v49, %v17049_v9  ;;  %v18603_v49 = vld [vmem:[#allocation3 + $0x136c] sm:$0xf0]  ;;  %v18720_v9 = vld [vmem:[#allocation3 + $0x171c] sm:$0xf] }
 0x713   :  { %16970 = vmatmul.msk.bf16.vlgmr.msra.gmra.mxu1 %vm1042_vm2, %v20974_v35 }
 0x714   :  { %v9066_v16 = vpop.f32.mrf.mxu2  ;;  %10734 = vmatpush.bf16.msra.mxu1 %v17060_v44  ;;  %v17065_v44 = vld [vmem:[#allocation3 + $0x17d8] sm:$0xf0] }
 0x715   :  { %v21044_v59 = vadd.f32 %v9066_v16, %v20962_v38  ;;  %v16903_v38 = vld [vmem:[#allocation3 + $0x1688] sm:$0xf]  ;;  %v16512_v16 = vor.u32 %v18619_v33, %v16511_v20  ;;  %v18629_v33 = vld [vmem:[#allocation3 + $0x143c] sm:$0xf0] }
 0x716   :  { %v7883_v29 = vpop.f32.mrf.mxu3  ;;  %10010 = vmatpush.bf16.msra.mxu2 %v16744_v27  ;;  %v16904_v57 = vor.u32 %v18710_v26, %v16903_v38  ;;  %v16855_v38 = vld [vmem:[#allocation3 + $0x1618] sm:$0xf] }
 0x717   :  { %v17001_v29 = vld [vmem:[#allocation3 + $0x1758] sm:$0xf0]  ;;  %v18696_v26 = vld [vmem:[#allocation3 + $0x1654] sm:$0xf0] }
 0x718   :  { %v9552_v1 = vpop.f32.mrf.mxu0  ;;  %v9580_v13 = vpop.f32.mrf.mxu1  ;;  %10735 = vmatpush.bf16.msra.mxu1 %v16996_v11  ;;  %v17004_v32 = vor.u32 %v18720_v9, %v17001_v29  ;;  %v16871_v29 = vld [vmem:[#allocation3 + $0x1628] sm:$0xf] }
 0x719   :  { %v21047_v8 = vadd.f32 %v9552_v1, %v20965_v63  ;;  %v10466_v63 = vld [vmem:[#allocation2 + $0xb8] sm:$0xff]  ;;  %v18712_v1 = vld [vmem:[#allocation3 + $0x16d4] sm:$0xf0] }
 0x71a   :  { %v21056_v53 = vpack.c.bf16 %v10466_v63, %v10466_v63  ;;  %v17025_v63 = vld [vmem:[#allocation3 + $0x1770] sm:$0xf0] }
 0x71b   :  { %16525 = vmatmul.msk.bf16.vlgmr.msrb.gmra.mxu3 %vm1042_vm2, %v20728_v41  ;;  %16968 = vmatmul.msk.bf16.vlgmr.msra.gmra.mxu0 %vm1042_vm2, %v20974_v35 }
 0x71c   :  { %v9068_v40 = vpop.f32.mrf.mxu2  ;;  %9089 = vmatpush.bf16.msrb.mxu3 %v16496_v25  ;;  %10708 = vmatpush.bf16.msra.mxu0 %v17052_v30  ;;  %v16448_v25 = vor.u32 %v18603_v49, %v16447_v21  ;;  %v18739_v30 = vld [vmem:[#allocation3 + $0x17b4] sm:$0xf]  ;;  %v18765_v21 = vld [vmem:[#allocation3 + $0x1884] sm:$0xf] }
 0x71e   :  { %v8146_v43 = vpop.f32.mrf.mxu3 }
 0x71f   :  { %v21054_v3 = vadd.f32 %v8146_v43, %v20972_v61  ;;  %v16840_v61 = vor.u32 %v18694_v54, %v16839_v42  ;;  %v16856_v43 = vor.u32 %v18696_v26, %v16855_v38  ;;  %v17028_v42 = vor.u32 %v18723_v46, %v17025_v63 }
 0x720   :  { %v9554_v5 = vpop.f32.mrf.mxu0  ;;  %v9843_v58 = vpop.f32.mrf.mxu1  ;;  %9090 = vmatpush.bf16.msrb.mxu3 %v16432_v45  ;;  %10709 = vmatpush.bf16.msra.mxu0 %v16988_v10  ;;  %v17092_v10 = vor.u32 %v18739_v30, %v17089_v4  ;;  %v18749_v30 = vld [vmem:[#allocation3 + $0x1804] sm:$0xf] }
 0x721   :  { %v21059_v15 = vadd.f32 %v9843_v58, %v20977_v34  ;;  %16823 = vmatmul.msk.bf16.vlgmr.msrb.gmra.mxu2 %vm1042_vm2, %v20892_v36  ;;  %v18736_v34 = vld [vmem:[#allocation3 + $0x179c] sm:$0xf]  ;;  %v18645_v5 = vld [vmem:[#allocation3 + $0x14bc] sm:$0xf0]  ;;  %v17081_v58 = vld [vmem:[#allocation3 + $0x17e8] sm:$0xf0] }
 0x722   :  { %10274 = vmatpush.bf16.msrb.mxu2 %v16904_v57  ;;  %v17068_v11 = vor.u32 %v18736_v34, %v17065_v44  ;;  %v16607_v57 = vld [vmem:[#allocation3 + $0x1480] sm:$0xf]  ;;  %v18722_v34 = vld [vmem:[#allocation3 + $0x172c] sm:$0xf]  ;;  %v17121_v4 = vld [vmem:[#allocation3 + $0x1840] sm:$0xf0] }
 0x723   :  { %17102 = vmatmul.msk.bf16.vlgmr.msrb.gmra.mxu1 %vm1042_vm2, %v21056_v53  ;;  %v17017_v44 = vld [vmem:[#allocation3 + $0x1768] sm:$0xf0]  ;;  %v17124_v38 = vor.u32 %v18749_v30, %v17121_v4 }
 0x724   :  { %v9118_v19 = vpop.f32.mrf.mxu2  ;;  %10786 = vmatpush.bf16.msrb.mxu1 %v17076_v47 }
 0x725   :  { %v21066_v2 = vadd.f32 %v9118_v19, %v20984_v62  ;;  %v16919_v62 = vld [vmem:[#allocation3 + $0x1698] sm:$0xf]  ;;  %v16543_v19 = vld [vmem:[#allocation3 + $0x1400] sm:$0xf] }
 0x726   :  { %v8148_v6 = vpop.f32.mrf.mxu3  ;;  %10275 = vmatpush.bf16.msrb.mxu2 %v16840_v61  ;;  %v16920_v7 = vor.u32 %v18712_v1, %v16919_v62  ;;  %v16608_v61 = vor.u32 %v18645_v5, %v16607_v57  ;;  %v18698_v62 = vld [vmem:[#allocation3 + $0x1664] sm:$0xf0]  ;;  %v18631_v5 = vld [vmem:[#allocation3 + $0x144c] sm:$0xf0] }
 0x727   :  { %v18714_v6 = vld [vmem:[#allocation3 + $0x16e4] sm:$0xf0] }
 0x728   :  { %v9604_v28 = vpop.f32.mrf.mxu0  ;;  %v9845_v27 = vpop.f32.mrf.mxu1  ;;  %10787 = vmatpush.bf16.msrb.mxu1 %v17012_v23 }
 0x729   :  { %v21069_v48 = vadd.f32 %v9604_v28, %v20987_v12  ;;  %v16544_v27 = vor.u32 %v18629_v33, %v16543_v19  ;;  %v18767_v19 = vld [vmem:[#allocation3 + $0x1894] sm:$0xf] }
 0x72b   :  { %16529 = vmatmul.msk.bf16.vlgmr.msra.gmra.mxu3 %vm1042_vm2, %v20728_v41  ;;  %16972 = vmatmul.msk.bf16.vlgmr.msrb.gmra.mxu0 %vm1042_vm2, %v20974_v35 }
 0x72c   :  { %v9120_v13 = vpop.f32.mrf.mxu2  ;;  %9141 = vmatpush.bf16.msra.mxu3 %v16512_v16  ;;  %10760 = vmatpush.bf16.msrb.mxu0 %v17068_v11  ;;  %v17020_v16 = vor.u32 %v18722_v34, %v17017_v44  ;;  %v17185_v11 = vld [vmem:[#allocation3 + $0x18c0] sm:$0xf0]  ;;  %v16887_v44 = vld [vmem:[#allocation3 + $0x1638] sm:$0xf] }
 0x72e   :  { %v8198_v12 = vpop.f32.mrf.mxu3 }
 0x72f   :  { %v21076_v56 = vadd.f32 %v8198_v12, %v20994_v39  ;;  %v16872_v12 = vor.u32 %v18698_v62, %v16871_v29  ;;  %v18649_v62 = vld [vmem:[#allocation3 + $0x14dc] sm:$0xf0] }
 0x730   :  { %v9606_v40 = vpop.f32.mrf.mxu0  ;;  %v9895_v45 = vpop.f32.mrf.mxu1  ;;  %9142 = vmatpush.bf16.msra.mxu3 %v16448_v25  ;;  %10761 = vmatpush.bf16.msrb.mxu0 %v17004_v32  ;;  %v17188_v25 = vor.u32 %v18765_v21, %v17185_v11  ;;  %v17137_v21 = vld [vmem:[#allocation3 + $0x1850] sm:$0xf0] }
 0x731   :  { %v21079_v37 = vadd.f32 %v9895_v45, %v20997_v55  ;;  %16827 = vmatmul.msk.bf16.vlgmr.msra.gmra.mxu2 %vm1042_vm2, %v20892_v36  ;;  %v18738_v55 = vld [vmem:[#allocation3 + $0x17ac] sm:$0xf]  ;;  %v18647_v40 = vld [vmem:[#allocation3 + $0x14cc] sm:$0xf0]  ;;  %v17097_v45 = vld [vmem:[#allocation3 + $0x17f8] sm:$0xf0] }
 0x732   :  { %10326 = vmatpush.bf16.msra.mxu2 %v16920_v7  ;;  %v17084_v20 = vor.u32 %v18738_v55, %v17081_v58  ;;  %v16623_v7 = vld [vmem:[#allocation3 + $0x1490] sm:$0xf]  ;;  %v18724_v55 = vld [vmem:[#allocation3 + $0x173c] sm:$0xf] }
 0x733   :  { %17106 = vmatmul.msk.bf16.vlgmr.msra.gmra.mxu1 %vm1042_vm2, %v21056_v53  ;;  %v17033_v58 = vld [vmem:[#allocation3 + $0x1778] sm:$0xf0] }
 0x734   :  { %v9170_v39 = vpop.f32.mrf.mxu2  ;;  %10838 = vmatpush.bf16.msra.mxu1 %v17092_v10 }
 0x735   :  { %v21086_v54 = vadd.f32 %v9170_v39, %v21004_v50  ;;  %v16935_v50 = vld [vmem:[#allocation3 + $0x16a8] sm:$0xf]  ;;  %v16559_v39 = vld [vmem:[#allocation3 + $0x1410] sm:$0xf] }
 0x736   :  { %v8200_v47 = vpop.f32.mrf.mxu3  ;;  %10327 = vmatpush.bf16.msra.mxu2 %v16856_v43  ;;  %v16936_v49 = vor.u32 %v18714_v6, %v16935_v50  ;;  %v16624_v43 = vor.u32 %v18647_v40, %v16623_v7  ;;  %v18700_v50 = vld [vmem:[#allocation3 + $0x1674] sm:$0xf0]  ;;  %v18750_v40 = vld [vmem:[#allocation3 + $0x180c] sm:$0xf] }
 0x737   :  { %v18716_v47 = vld [vmem:[#allocation3 + $0x16f4] sm:$0xf0]  ;;  %v16888_v11 = vor.u32 %v18700_v50, %v16887_v44  ;;  %v16655_v44 = vld [vmem:[#allocation3 + $0x14b0] sm:$0xf] }
 0x738   :  { %v9869_v24 = vpop.f32.mrf.mxu0  ;;  %v9897_v18 = vpop.f32.mrf.mxu1  ;;  %10839 = vmatpush.bf16.msra.mxu1 %v17028_v42 }
 0x739   :  { %v21089_v23 = vadd.f32 %v9869_v24, %v21007_v31  ;;  %v16560_v18 = vor.u32 %v18631_v5, %v16559_v39  ;;  %v17217_v39 = vld [vmem:[#allocation3 + $0x18e0] sm:$0xf0] }
 0x73b   :  { %16533 = vmatmul.msk.bf16.vlgmr.msrb.gmra.mxu3 %vm1042_vm2, %v20728_v41  ;;  %17104 = vmatmul.msk.bf16.vlgmr.msra.gmra.mxu0 %vm1042_vm2, %v21056_v53 }
 0x73c   :  { %v9172_v28 = vpop.f32.mrf.mxu2  ;;  %9406 = vmatpush.bf16.msrb.mxu3 %v16608_v61  ;;  %10812 = vmatpush.bf16.msra.mxu0 %v17084_v20  ;;  %v17036_v61 = vor.u32 %v18724_v55, %v17033_v58  ;;  %v17201_v20 = vld [vmem:[#allocation3 + $0x18d0] sm:$0xf0]  ;;  %v16983_v58 = vld [vmem:[#allocation3 + $0x1708] sm:$0xf] }
 0x73d   :  { %v17204_v28 = vor.u32 %v18767_v19, %v17201_v20  ;;  %v18753_v20 = vld [vmem:[#allocation3 + $0x1824] sm:$0xf] }
 0x73e   :  { %v8250_v31 = vpop.f32.mrf.mxu3 }
 0x73f   :  { %v21096_v9 = vadd.f32 %v8250_v31, %v21014_v0  ;;  %v16639_v31 = vld [vmem:[#allocation3 + $0x14a0] sm:$0xf] }
 0x740   :  { %v9871_v1 = vpop.f32.mrf.mxu0  ;;  %v9947_v13 = vpop.f32.mrf.mxu1  ;;  %9407 = vmatpush.bf16.msrb.mxu3 %v16544_v27  ;;  %10813 = vmatpush.bf16.msra.mxu0 %v17020_v16  ;;  %v18751_v16 = vld [vmem:[#allocation3 + $0x1814] sm:$0xf]  ;;  %v16640_v4 = vor.u32 %v18649_v62, %v16639_v31  ;;  %v16591_v31 = vld [vmem:[#allocation3 + $0x1430] sm:$0xf] }
 0x741   :  { %v21099_v32 = vadd.f32 %v9947_v13, %v21017_v17  ;;  %16959 = vmatmul.msk.bf16.vlgmr.msrb.gmra.mxu2 %vm1042_vm2, %v20974_v35  ;;  %v18740_v17 = vld [vmem:[#allocation3 + $0x17bc] sm:$0xf]  ;;  %v17193_v1 = vld [vmem:[#allocation3 + $0x18c8] sm:$0xf0] }
 0x742   :  { %10378 = vmatpush.bf16.msrb.mxu2 %v16936_v49  ;;  %v17100_v57 = vor.u32 %v18740_v17, %v17097_v45  ;;  %v17140_v49 = vor.u32 %v18751_v16, %v17137_v21  ;;  %v17129_v17 = vld [vmem:[#allocation3 + $0x1848] sm:$0xf0]  ;;  %v18742_v45 = vld [vmem:[#allocation3 + $0x17c4] sm:$0xf0] }
 0x743   :  { %17110 = vmatmul.msk.bf16.vlgmr.msrb.gmra.mxu1 %vm1042_vm2, %v21056_v53 }
 0x744   :  { %v9435_v0 = vpop.f32.mrf.mxu2  ;;  %11103 = vmatpush.bf16.msrb.mxu1 %v17188_v25 }
 0x745   :  { %v21106_v26 = vadd.f32 %v9435_v0, %v21024_v51  ;;  %v16951_v51 = vld [vmem:[#allocation3 + $0x16b8] sm:$0xf] }
 0x746   :  { %v8252_v10 = vpop.f32.mrf.mxu3  ;;  %10379 = vmatpush.bf16.msrb.mxu2 %v16872_v12  ;;  %v16952_v33 = vor.u32 %v18716_v47, %v16951_v51  ;;  %v16575_v12 = vld [vmem:[#allocation3 + $0x1420] sm:$0xf]  ;;  %v18726_v51 = vld [vmem:[#allocation3 + $0x1744] sm:$0xf0] }
 0x748   :  { %v9921_v46 = vpop.f32.mrf.mxu0  ;;  %v9949_v63 = vpop.f32.mrf.mxu1  ;;  %11104 = vmatpush.bf16.msrb.mxu1 %v17124_v38  ;;  %v18633_v38 = vld [vmem:[#allocation3 + $0x145c] sm:$0xf0] }
 0x749   :  { %v21109_v42 = vadd.f32 %v9921_v46, %v21027_v14  ;;  %v16576_v46 = vor.u32 %v18633_v38, %v16575_v12  ;;  %v17132_v63 = vor.u32 %v18750_v40, %v17129_v17  ;;  %v17233_v38 = vld [vmem:[#allocation3 + $0x18f0] sm:$0xf0] }
 0x74b   :  { %16537 = vmatmul.msk.bf16.vlgmr.msra.gmra.mxu3 %vm1042_vm2, %v20728_v41  ;;  %17108 = vmatmul.msk.bf16.vlgmr.msrb.gmra.mxu0 %vm1042_vm2, %v21056_v53 }
 0x74c   :  { %v9437_v24 = vpop.f32.mrf.mxu2  ;;  %9458 = vmatpush.bf16.msra.mxu3 %v16624_v43  ;;  %10864 = vmatpush.bf16.msrb.mxu0 %v17100_v57  ;;  %v18769_v43 = vld [vmem:[#allocation3 + $0x18a4] sm:$0xf] }
 0x74e   :  { %v8302_v14 = vpop.f32.mrf.mxu3 }
 0x74f   :  { %v21116_v34 = vadd.f32 %v8302_v14, %v21034_v22  ;;  %v17153_v14 = vld [vmem:[#allocation3 + $0x1860] sm:$0xf0] }
 0x750   :  { %v9923_v41 = vpop.f32.mrf.mxu0  ;;  %v9999_v6 = vpop.f32.mrf.mxu1  ;;  %9459 = vmatpush.bf16.msra.mxu3 %v16560_v18  ;;  %10865 = vmatpush.bf16.msrb.mxu0 %v17036_v61  ;;  %v17220_v18 = vor.u32 %v18769_v43, %v17217_v39  ;;  %v17156_v50 = vor.u32 %v18753_v20, %v17153_v14  ;;  %v18755_v39 = vld [vmem:[#allocation3 + $0x1834] sm:$0xf] }
 0x751   :  { %v21119_v27 = vadd.f32 %v9999_v6, %v21037_v60  ;;  %16963 = vmatmul.msk.bf16.vlgmr.msra.gmra.mxu2 %vm1042_vm2, %v20974_v35  ;;  %v18766_v60 = vld [vmem:[#allocation3 + $0x188c] sm:$0xf]  ;;  %v18651_v6 = vld [vmem:[#allocation3 + $0x14ec] sm:$0xf0] }
 0x752   :  { %10430 = vmatpush.bf16.msra.mxu2 %v16952_v33  ;;  %v17196_v0 = vor.u32 %v18766_v60, %v17193_v1  ;;  %v18635_v60 = vld [vmem:[#allocation3 + $0x146c] sm:$0xf0]  ;;  %v18752_v1 = vld [vmem:[#allocation3 + $0x181c] sm:$0xf] }
 0x753   :  { %17114 = vmatmul.msk.bf16.vlgmr.msra.gmra.mxu1 %vm1042_vm2, %v21056_v53 }
 0x754   :  { %v9487_v22 = vpop.f32.mrf.mxu2  ;;  %11155 = vmatpush.bf16.msra.mxu1 %v17204_v28  ;;  %v17209_v28 = vld [vmem:[#allocation3 + $0x18d8] sm:$0xf0] }
 0x755   :  { %v21126_v29 = vadd.f32 %v9487_v22, %v21044_v59  ;;  %v17047_v59 = vld [vmem:[#allocation3 + $0x1788] sm:$0xf]  ;;  %v16656_v22 = vor.u32 %v18651_v6, %v16655_v44  ;;  %v18661_v6 = vld [vmem:[#allocation3 + $0x153c] sm:$0xf0] }
 0x756   :  { %v8304_v13 = vpop.f32.mrf.mxu3  ;;  %10431 = vmatpush.bf16.msra.mxu2 %v16888_v11  ;;  %v17048_v5 = vor.u32 %v18742_v45, %v17047_v59  ;;  %v16999_v59 = vld [vmem:[#allocation3 + $0x1718] sm:$0xf] }
 0x757   :  { %v17145_v13 = vld [vmem:[#allocation3 + $0x1858] sm:$0xf0]  ;;  %v18728_v45 = vld [vmem:[#allocation3 + $0x1754] sm:$0xf0] }
 0x758   :  { %v9973_v25 = vpop.f32.mrf.mxu0  ;;  %v10001_v30 = vpop.f32.mrf.mxu1  ;;  %11156 = vmatpush.bf16.msra.mxu1 %v17140_v49  ;;  %v17148_v12 = vor.u32 %v18752_v1, %v17145_v13  ;;  %v17015_v13 = vld [vmem:[#allocation3 + $0x1728] sm:$0xf] }
 0x759   :  { %v21129_v7 = vadd.f32 %v9973_v25, %v21047_v8  ;;  %v10887_v8 = vld [vmem:[#allocation2 + $0xc0] sm:$0xff]  ;;  %v18744_v25 = vld [vmem:[#allocation3 + $0x17d4] sm:$0xf0] }
 0x75a   :  { %v21138_v61 = vpack.c.bf16 %v10887_v8, %v10887_v8  ;;  %v17169_v8 = vld [vmem:[#allocation3 + $0x1870] sm:$0xf0] }
 0x75b   :  { %16669 = vmatmul.msk.bf16.vlgmr.msrb.gmra.mxu3 %vm1042_vm2, %v20810_v52  ;;  %17112 = vmatmul.msk.bf16.vlgmr.msra.gmra.mxu0 %vm1042_vm2, %v21056_v53 }
 0x75c   :  { %v9489_v10 = vpop.f32.mrf.mxu2  ;;  %9510 = vmatpush.bf16.msrb.mxu3 %v16640_v4  ;;  %11129 = vmatpush.bf16.msra.mxu0 %v17196_v0  ;;  %v16592_v4 = vor.u32 %v18635_v60, %v16591_v31  ;;  %v18771_v0 = vld [vmem:[#allocation3 + $0x18b4] sm:$0xf]  ;;  %v18797_v31 = vld [vmem:[#allocation3 + $0x1984] sm:$0xf] }
 0x75e   :  { %v8567_v57 = vpop.f32.mrf.mxu3 }
 0x75f   :  { %v21136_v55 = vadd.f32 %v8567_v57, %v21054_v3  ;;  %v16984_v3 = vor.u32 %v18726_v51, %v16983_v58  ;;  %v17000_v57 = vor.u32 %v18728_v45, %v16999_v59  ;;  %v17172_v58 = vor.u32 %v18755_v39, %v17169_v8 }
 0x760   :  { %v9975_v47 = vpop.f32.mrf.mxu0  ;;  %v10264_v24 = vpop.f32.mrf.mxu1  ;;  %9511 = vmatpush.bf16.msrb.mxu3 %v16576_v46  ;;  %11130 = vmatpush.bf16.msra.mxu0 %v17132_v63  ;;  %v17236_v63 = vor.u32 %v18771_v0, %v17233_v38  ;;  %v18781_v0 = vld [vmem:[#allocation3 + $0x1904] sm:$0xf] }
 0x761   :  { %v21141_v19 = vadd.f32 %v10264_v24, %v21059_v15  ;;  %16967 = vmatmul.msk.bf16.vlgmr.msrb.gmra.mxu2 %vm1042_vm2, %v20974_v35  ;;  %v18768_v15 = vld [vmem:[#allocation3 + $0x189c] sm:$0xf]  ;;  %v18677_v47 = vld [vmem:[#allocation3 + $0x15bc] sm:$0xf0]  ;;  %v17225_v24 = vld [vmem:[#allocation3 + $0x18e8] sm:$0xf0] }
 0x762   :  { %10695 = vmatpush.bf16.msrb.mxu2 %v17048_v5  ;;  %v17212_v49 = vor.u32 %v18768_v15, %v17209_v28  ;;  %v16751_v5 = vld [vmem:[#allocation3 + $0x1580] sm:$0xf]  ;;  %v18754_v15 = vld [vmem:[#allocation3 + $0x182c] sm:$0xf]  ;;  %v17265_v38 = vld [vmem:[#allocation3 + $0x1940] sm:$0xf0] }
 0x763   :  { %17246 = vmatmul.msk.bf16.vlgmr.msrb.gmra.mxu1 %vm1042_vm2, %v21138_v61  ;;  %v17161_v28 = vld [vmem:[#allocation3 + $0x1868] sm:$0xf0]  ;;  %v17268_v59 = vor.u32 %v18781_v0, %v17265_v38 }
 0x764   :  { %v9539_v33 = vpop.f32.mrf.mxu2  ;;  %11207 = vmatpush.bf16.msrb.mxu1 %v17220_v18 }
 0x765   :  { %v21148_v41 = vadd.f32 %v9539_v33, %v21066_v2  ;;  %v17063_v2 = vld [vmem:[#allocation3 + $0x1798] sm:$0xf]  ;;  %v16687_v33 = vld [vmem:[#allocation3 + $0x1500] sm:$0xf] }
 0x766   :  { %v8569_v16 = vpop.f32.mrf.mxu3  ;;  %10696 = vmatpush.bf16.msrb.mxu2 %v16984_v3  ;;  %v17064_v40 = vor.u32 %v18744_v25, %v17063_v2  ;;  %v16752_v3 = vor.u32 %v18677_v47, %v16751_v5  ;;  %v18730_v2 = vld [vmem:[#allocation3 + $0x1764] sm:$0xf0]  ;;  %v18663_v47 = vld [vmem:[#allocation3 + $0x154c] sm:$0xf0] }
 0x767   :  { %v18746_v16 = vld [vmem:[#allocation3 + $0x17e4] sm:$0xf0] }
 0x768   :  { %v10025_v21 = vpop.f32.mrf.mxu0  ;;  %v10266_v11 = vpop.f32.mrf.mxu1  ;;  %11208 = vmatpush.bf16.msrb.mxu1 %v17156_v50 }
 0x769   :  { %v21151_v62 = vadd.f32 %v10025_v21, %v21069_v48  ;;  %v16688_v11 = vor.u32 %v18661_v6, %v16687_v33  ;;  %v18799_v33 = vld [vmem:[#allocation3 + $0x1994] sm:$0xf] }
 0x76b   :  { %16673 = vmatmul.msk.bf16.vlgmr.msra.gmra.mxu3 %vm1042_vm2, %v20810_v52  ;;  %17116 = vmatmul.msk.bf16.vlgmr.msrb.gmra.mxu0 %vm1042_vm2, %v21056_v53 }
 0x76c   :  { %v9541_v30 = vpop.f32.mrf.mxu2  ;;  %9562 = vmatpush.bf16.msra.mxu3 %v16656_v22  ;;  %11181 = vmatpush.bf16.msrb.mxu0 %v17212_v49  ;;  %v17164_v22 = vor.u32 %v18754_v15, %v17161_v28  ;;  %v17329_v49 = vld [vmem:[#allocation3 + $0x19c0] sm:$0xf0]  ;;  %v17031_v28 = vld [vmem:[#allocation3 + $0x1738] sm:$0xf] }
 0x76e   :  { %v8619_v48 = vpop.f32.mrf.mxu3 }
 0x76f   :  { %v21158_v17 = vadd.f32 %v8619_v48, %v21076_v56  ;;  %v17016_v48 = vor.u32 %v18730_v2, %v17015_v13  ;;  %v18681_v2 = vld [vmem:[#allocation3 + $0x15dc] sm:$0xf0] }
 0x770   :  { %v10027_v10 = vpop.f32.mrf.mxu0  ;;  %v10316_v46 = vpop.f32.mrf.mxu1  ;;  %9563 = vmatpush.bf16.msra.mxu3 %v16592_v4  ;;  %11182 = vmatpush.bf16.msrb.mxu0 %v17148_v12  ;;  %v17332_v4 = vor.u32 %v18797_v31, %v17329_v49  ;;  %v17281_v31 = vld [vmem:[#allocation3 + $0x1950] sm:$0xf0] }
 0x771   :  { %v21161_v43 = vadd.f32 %v10316_v46, %v21079_v37  ;;  %16971 = vmatmul.msk.bf16.vlgmr.msra.gmra.mxu2 %vm1042_vm2, %v20974_v35  ;;  %v18770_v37 = vld [vmem:[#allocation3 + $0x18ac] sm:$0xf]  ;;  %v18679_v10 = vld [vmem:[#allocation3 + $0x15cc] sm:$0xf0]  ;;  %v17241_v46 = vld [vmem:[#allocation3 + $0x18f8] sm:$0xf0] }
 0x772   :  { %10747 = vmatpush.bf16.msra.mxu2 %v17064_v40  ;;  %v17228_v44 = vor.u32 %v18770_v37, %v17225_v24  ;;  %v16767_v40 = vld [vmem:[#allocation3 + $0x1590] sm:$0xf]  ;;  %v18756_v37 = vld [vmem:[#allocation3 + $0x183c] sm:$0xf] }
 0x773   :  { %17250 = vmatmul.msk.bf16.vlgmr.msra.gmra.mxu1 %vm1042_vm2, %v21138_v61  ;;  %v17177_v24 = vld [vmem:[#allocation3 + $0x1878] sm:$0xf0] }
 0x774   :  { %v9591_v56 = vpop.f32.mrf.mxu2  ;;  %11259 = vmatpush.bf16.msra.mxu1 %v17236_v63 }
 0x775   :  { %v21168_v51 = vadd.f32 %v9591_v56, %v21086_v54  ;;  %v17079_v54 = vld [vmem:[#allocation3 + $0x17a8] sm:$0xf]  ;;  %v16703_v56 = vld [vmem:[#allocation3 + $0x1510] sm:$0xf] }
 0x776   :  { %v8621_v18 = vpop.f32.mrf.mxu3  ;;  %10748 = vmatpush.bf16.msra.mxu2 %v17000_v57  ;;  %v17080_v60 = vor.u32 %v18746_v16, %v17079_v54  ;;  %v16768_v57 = vor.u32 %v18679_v10, %v16767_v40  ;;  %v18732_v54 = vld [vmem:[#allocation3 + $0x1774] sm:$0xf0]  ;;  %v18782_v10 = vld [vmem:[#allocation3 + $0x190c] sm:$0xf] }
 0x777   :  { %v18748_v18 = vld [vmem:[#allocation3 + $0x17f4] sm:$0xf0]  ;;  %v17032_v49 = vor.u32 %v18732_v54, %v17031_v28  ;;  %v16799_v28 = vld [vmem:[#allocation3 + $0x15b0] sm:$0xf] }
 0x778   :  { %v10290_v20 = vpop.f32.mrf.mxu0  ;;  %v10318_v14 = vpop.f32.mrf.mxu1  ;;  %11260 = vmatpush.bf16.msra.mxu1 %v17172_v58 }
 0x779   :  { %v21171_v50 = vadd.f32 %v10290_v20, %v21089_v23  ;;  %v16704_v14 = vor.u32 %v18663_v47, %v16703_v56  ;;  %v17361_v56 = vld [vmem:[#allocation3 + $0x19e0] sm:$0xf0] }
 0x77b   :  { %16677 = vmatmul.msk.bf16.vlgmr.msrb.gmra.mxu3 %vm1042_vm2, %v20810_v52  ;;  %17248 = vmatmul.msk.bf16.vlgmr.msra.gmra.mxu0 %vm1042_vm2, %v21138_v61 }
 0x77c   :  { %v9593_v21 = vpop.f32.mrf.mxu2  ;;  %9827 = vmatpush.bf16.msrb.mxu3 %v16752_v3  ;;  %11233 = vmatpush.bf16.msra.mxu0 %v17228_v44  ;;  %v17180_v3 = vor.u32 %v18756_v37, %v17177_v24  ;;  %v17345_v44 = vld [vmem:[#allocation3 + $0x19d0] sm:$0xf0]  ;;  %v17127_v24 = vld [vmem:[#allocation3 + $0x1808] sm:$0xf] }
 0x77d   :  { %v17348_v21 = vor.u32 %v18799_v33, %v17345_v44  ;;  %v18785_v44 = vld [vmem:[#allocation3 + $0x1924] sm:$0xf] }
 0x77e   :  { %v8671_v23 = vpop.f32.mrf.mxu3 }
 0x77f   :  { %v21178_v1 = vadd.f32 %v8671_v23, %v21096_v9  ;;  %v16783_v23 = vld [vmem:[#allocation3 + $0x15a0] sm:$0xf] }
 0x780   :  { %v10292_v25 = vpop.f32.mrf.mxu0  ;;  %v10368_v30 = vpop.f32.mrf.mxu1  ;;  %9828 = vmatpush.bf16.msrb.mxu3 %v16688_v11  ;;  %11234 = vmatpush.bf16.msra.mxu0 %v17164_v22  ;;  %v18783_v22 = vld [vmem:[#allocation3 + $0x1914] sm:$0xf]  ;;  %v16784_v38 = vor.u32 %v18681_v2, %v16783_v23  ;;  %v16735_v23 = vld [vmem:[#allocation3 + $0x1530] sm:$0xf] }
 0x781   :  { %v21181_v12 = vadd.f32 %v10368_v30, %v21099_v32  ;;  %17103 = vmatmul.msk.bf16.vlgmr.msrb.gmra.mxu2 %vm1042_vm2, %v21056_v53  ;;  %v18772_v32 = vld [vmem:[#allocation3 + $0x18bc] sm:$0xf]  ;;  %v17337_v25 = vld [vmem:[#allocation3 + $0x19c8] sm:$0xf0] }
 0x782   :  { %10799 = vmatpush.bf16.msrb.mxu2 %v17080_v60  ;;  %v17244_v5 = vor.u32 %v18772_v32, %v17241_v46  ;;  %v17284_v60 = vor.u32 %v18783_v22, %v17281_v31  ;;  %v17273_v32 = vld [vmem:[#allocation3 + $0x1948] sm:$0xf0]  ;;  %v18774_v46 = vld [vmem:[#allocation3 + $0x18c4] sm:$0xf0] }
 0x783   :  { %17254 = vmatmul.msk.bf16.vlgmr.msrb.gmra.mxu1 %vm1042_vm2, %v21138_v61 }
 0x784   :  { %v9856_v9 = vpop.f32.mrf.mxu2  ;;  %11524 = vmatpush.bf16.msrb.mxu1 %v17332_v4 }
 0x785   :  { %v21188_v45 = vadd.f32 %v9856_v9, %v21106_v26  ;;  %v17095_v26 = vld [vmem:[#allocation3 + $0x17b8] sm:$0xf] }
 0x786   :  { %v8673_v63 = vpop.f32.mrf.mxu3  ;;  %10800 = vmatpush.bf16.msrb.mxu2 %v17016_v48  ;;  %v17096_v6 = vor.u32 %v18748_v18, %v17095_v26  ;;  %v16719_v48 = vld [vmem:[#allocation3 + $0x1520] sm:$0xf]  ;;  %v18758_v26 = vld [vmem:[#allocation3 + $0x1844] sm:$0xf0] }
 0x788   :  { %v10342_v39 = vpop.f32.mrf.mxu0  ;;  %v10370_v8 = vpop.f32.mrf.mxu1  ;;  %11525 = vmatpush.bf16.msrb.mxu1 %v17268_v59  ;;  %v18665_v59 = vld [vmem:[#allocation3 + $0x155c] sm:$0xf0] }
 0x789   :  { %v21191_v58 = vadd.f32 %v10342_v39, %v21109_v42  ;;  %v16720_v39 = vor.u32 %v18665_v59, %v16719_v48  ;;  %v17276_v8 = vor.u32 %v18782_v10, %v17273_v32  ;;  %v17377_v59 = vld [vmem:[#allocation3 + $0x19f0] sm:$0xf0] }
 0x78b   :  { %16681 = vmatmul.msk.bf16.vlgmr.msra.gmra.mxu3 %vm1042_vm2, %v20810_v52  ;;  %17252 = vmatmul.msk.bf16.vlgmr.msrb.gmra.mxu0 %vm1042_vm2, %v21138_v61 }
 0x78c   :  { %v9858_v20 = vpop.f32.mrf.mxu2  ;;  %9879 = vmatpush.bf16.msra.mxu3 %v16768_v57  ;;  %11285 = vmatpush.bf16.msrb.mxu0 %v17244_v5  ;;  %v18801_v57 = vld [vmem:[#allocation3 + $0x19a4] sm:$0xf] }
 0x78e   :  { %v8723_v42 = vpop.f32.mrf.mxu3 }
 0x78f   :  { %v21198_v15 = vadd.f32 %v8723_v42, %v21116_v34  ;;  %v17297_v42 = vld [vmem:[#allocation3 + $0x1960] sm:$0xf0] }
 0x790   :  { %v10344_v52 = vpop.f32.mrf.mxu0  ;;  %v10420_v16 = vpop.f32.mrf.mxu1  ;;  %9880 = vmatpush.bf16.msra.mxu3 %v16704_v14  ;;  %11286 = vmatpush.bf16.msrb.mxu0 %v17180_v3  ;;  %v17364_v14 = vor.u32 %v18801_v57, %v17361_v56  ;;  %v17300_v54 = vor.u32 %v18785_v44, %v17297_v42  ;;  %v18787_v56 = vld [vmem:[#allocation3 + $0x1934] sm:$0xf] }
 0x791   :  { %v21201_v11 = vadd.f32 %v10420_v16, %v21119_v27  ;;  %17107 = vmatmul.msk.bf16.vlgmr.msra.gmra.mxu2 %vm1042_vm2, %v21056_v53  ;;  %v18798_v27 = vld [vmem:[#allocation3 + $0x198c] sm:$0xf]  ;;  %v18683_v16 = vld [vmem:[#allocation3 + $0x15ec] sm:$0xf0] }
 0x792   :  { %10851 = vmatpush.bf16.msra.mxu2 %v17096_v6  ;;  %v17340_v9 = vor.u32 %v18798_v27, %v17337_v25  ;;  %v18667_v27 = vld [vmem:[#allocation3 + $0x156c] sm:$0xf0]  ;;  %v18784_v25 = vld [vmem:[#allocation3 + $0x191c] sm:$0xf] }
 0x793   :  { %17258 = vmatmul.msk.bf16.vlgmr.msra.gmra.mxu1 %vm1042_vm2, %v21138_v61 }
 0x794   :  { %v9908_v34 = vpop.f32.mrf.mxu2  ;;  %11576 = vmatpush.bf16.msra.mxu1 %v17348_v21  ;;  %v17353_v21 = vld [vmem:[#allocation3 + $0x19d8] sm:$0xf0] }
 0x795   :  { %v21208_v13 = vadd.f32 %v9908_v34, %v21126_v29  ;;  %v17191_v29 = vld [vmem:[#allocation3 + $0x1888] sm:$0xf]  ;;  %v16800_v34 = vor.u32 %v18683_v16, %v16799_v28  ;;  %v18693_v16 = vld [vmem:[#allocation3 + $0x163c] sm:$0xf0] }
 0x796   :  { %v8725_v30 = vpop.f32.mrf.mxu3  ;;  %10852 = vmatpush.bf16.msra.mxu2 %v17032_v49  ;;  %v17192_v47 = vor.u32 %v18774_v46, %v17191_v29  ;;  %v17143_v29 = vld [vmem:[#allocation3 + $0x1818] sm:$0xf] }
 0x797   :  { %v17289_v30 = vld [vmem:[#allocation3 + $0x1958] sm:$0xf0]  ;;  %v18760_v46 = vld [vmem:[#allocation3 + $0x1854] sm:$0xf0] }
 0x798   :  { %v10394_v4 = vpop.f32.mrf.mxu0  ;;  %v10422_v0 = vpop.f32.mrf.mxu1  ;;  %11577 = vmatpush.bf16.msra.mxu1 %v17284_v60  ;;  %v17292_v48 = vor.u32 %v18784_v25, %v17289_v30  ;;  %v17159_v30 = vld [vmem:[#allocation3 + $0x1828] sm:$0xf] }
 0x799   :  { %v21211_v40 = vadd.f32 %v10394_v4, %v21129_v7  ;;  %v11308_v7 = vld [vmem:[#allocation2 + $0xc8] sm:$0xff] }
 0x79a   :  { %v21220_v3 = vpack.c.bf16 %v11308_v7, %v11308_v7  ;;  %v18776_v4 = vld [vmem:[#allocation3 + $0x18d4] sm:$0xf0]  ;;  %v17313_v7 = vld [vmem:[#allocation3 + $0x1970] sm:$0xf0] }
 0x79b   :  { %16813 = vmatmul.msk.bf16.vlgmr.msrb.gmra.mxu3 %vm1042_vm2, %v20892_v36  ;;  %17256 = vmatmul.msk.bf16.vlgmr.msra.gmra.mxu0 %vm1042_vm2, %v21138_v61 }
 0x79c   :  { %v9910_v63 = vpop.f32.mrf.mxu2  ;;  %9931 = vmatpush.bf16.msrb.mxu3 %v16784_v38  ;;  %11550 = vmatpush.bf16.msra.mxu0 %v17340_v9  ;;  %v16736_v38 = vor.u32 %v18667_v27, %v16735_v23  ;;  %v18803_v9 = vld [vmem:[#allocation3 + $0x19b4] sm:$0xf]  ;;  %v18829_v23 = vld [vmem:[#allocation3 + $0x1a84] sm:$0xf] }
 0x79e   :  { %v8988_v5 = vpop.f32.mrf.mxu3 }
 0x79f   :  { %v21218_v37 = vadd.f32 %v8988_v5, %v21136_v55  ;;  %v17128_v55 = vor.u32 %v18758_v26, %v17127_v24  ;;  %v17144_v5 = vor.u32 %v18760_v46, %v17143_v29  ;;  %v17316_v24 = vor.u32 %v18787_v56, %v17313_v7 }
 0x7a0   :  { %v10396_v18 = vpop.f32.mrf.mxu0  ;;  %v10685_v20 = vpop.f32.mrf.mxu1  ;;  %9932 = vmatpush.bf16.msrb.mxu3 %v16720_v39  ;;  %11551 = vmatpush.bf16.msra.mxu0 %v17276_v8  ;;  %v17380_v8 = vor.u32 %v18803_v9, %v17377_v59  ;;  %v18813_v9 = vld [vmem:[#allocation3 + $0x1a04] sm:$0xf] }
 0x7a1   :  { %v21223_v33 = vadd.f32 %v10685_v20, %v21141_v19  ;;  %17111 = vmatmul.msk.bf16.vlgmr.msrb.gmra.mxu2 %vm1042_vm2, %v21056_v53  ;;  %v18800_v19 = vld [vmem:[#allocation3 + $0x199c] sm:$0xf]  ;;  %v18709_v18 = vld [vmem:[#allocation3 + $0x16bc] sm:$0xf0]  ;;  %v17369_v20 = vld [vmem:[#allocation3 + $0x19e8] sm:$0xf0] }
 0x7a2   :  { %11116 = vmatpush.bf16.msrb.mxu2 %v17192_v47  ;;  %v17356_v60 = vor.u32 %v18800_v19, %v17353_v21  ;;  %v16895_v47 = vld [vmem:[#allocation3 + $0x1680] sm:$0xf]  ;;  %v18786_v19 = vld [vmem:[#allocation3 + $0x192c] sm:$0xf]  ;;  %v17409_v59 = vld [vmem:[#allocation3 + $0x1a40] sm:$0xf0] }
 0x7a3   :  { %17390 = vmatmul.msk.bf16.vlgmr.msrb.gmra.mxu1 %vm1042_vm2, %v21220_v3  ;;  %v17305_v21 = vld [vmem:[#allocation3 + $0x1968] sm:$0xf0]  ;;  %v17412_v29 = vor.u32 %v18813_v9, %v17409_v59 }
 0x7a4   :  { %v9960_v6 = vpop.f32.mrf.mxu2  ;;  %11628 = vmatpush.bf16.msrb.mxu1 %v17364_v14 }
 0x7a5   :  { %v21230_v52 = vadd.f32 %v9960_v6, %v21148_v41  ;;  %v17207_v41 = vld [vmem:[#allocation3 + $0x1898] sm:$0xf]  ;;  %v16831_v6 = vld [vmem:[#allocation3 + $0x1600] sm:$0xf] }
 0x7a6   :  { %v8990_v22 = vpop.f32.mrf.mxu3  ;;  %11117 = vmatpush.bf16.msrb.mxu2 %v17128_v55  ;;  %v17208_v10 = vor.u32 %v18776_v4, %v17207_v41  ;;  %v16896_v55 = vor.u32 %v18709_v18, %v16895_v47  ;;  %v18762_v41 = vld [vmem:[#allocation3 + $0x1864] sm:$0xf0]  ;;  %v18695_v18 = vld [vmem:[#allocation3 + $0x164c] sm:$0xf0] }
 0x7a7   :  { %v18778_v22 = vld [vmem:[#allocation3 + $0x18e4] sm:$0xf0] }
 0x7a8   :  { %v10446_v31 = vpop.f32.mrf.mxu0  ;;  %v10687_v49 = vpop.f32.mrf.mxu1  ;;  %11629 = vmatpush.bf16.msrb.mxu1 %v17300_v54 }
 0x7a9   :  { %v21233_v2 = vadd.f32 %v10446_v31, %v21151_v62  ;;  %v16832_v49 = vor.u32 %v18693_v16, %v16831_v6  ;;  %v18831_v6 = vld [vmem:[#allocation3 + $0x1a94] sm:$0xf] }
 0x7ab   :  { %16817 = vmatmul.msk.bf16.vlgmr.msra.gmra.mxu3 %vm1042_vm2, %v20892_v36  ;;  %17260 = vmatmul.msk.bf16.vlgmr.msrb.gmra.mxu0 %vm1042_vm2, %v21138_v61 }
 0x7ac   :  { %v9962_v0 = vpop.f32.mrf.mxu2  ;;  %9983 = vmatpush.bf16.msra.mxu3 %v16800_v34  ;;  %11602 = vmatpush.bf16.msrb.mxu0 %v17356_v60  ;;  %v17308_v34 = vor.u32 %v18786_v19, %v17305_v21  ;;  %v17473_v60 = vld [vmem:[#allocation3 + $0x1ac0] sm:$0xf0]  ;;  %v17175_v21 = vld [vmem:[#allocation3 + $0x1838] sm:$0xf] }
 0x7ae   :  { %v9040_v62 = vpop.f32.mrf.mxu3 }
 0x7af   :  { %v21240_v32 = vadd.f32 %v9040_v62, %v21158_v17  ;;  %v17160_v62 = vor.u32 %v18762_v41, %v17159_v30  ;;  %v18713_v41 = vld [vmem:[#allocation3 + $0x16dc] sm:$0xf0] }
 0x7b0   :  { %v10448_v63 = vpop.f32.mrf.mxu0  ;;  %v10737_v39 = vpop.f32.mrf.mxu1  ;;  %9984 = vmatpush.bf16.msra.mxu3 %v16736_v38  ;;  %11603 = vmatpush.bf16.msrb.mxu0 %v17292_v48  ;;  %v17476_v38 = vor.u32 %v18829_v23, %v17473_v60  ;;  %v17425_v23 = vld [vmem:[#allocation3 + $0x1a50] sm:$0xf0] }
 0x7b1   :  { %v21243_v57 = vadd.f32 %v10737_v39, %v21161_v43  ;;  %17115 = vmatmul.msk.bf16.vlgmr.msra.gmra.mxu2 %vm1042_vm2, %v21056_v53  ;;  %v18802_v43 = vld [vmem:[#allocation3 + $0x19ac] sm:$0xf]  ;;  %v18711_v63 = vld [vmem:[#allocation3 + $0x16cc] sm:$0xf0]  ;;  %v17385_v39 = vld [vmem:[#allocation3 + $0x19f8] sm:$0xf0] }
 0x7b2   :  { %11168 = vmatpush.bf16.msra.mxu2 %v17208_v10  ;;  %v17372_v28 = vor.u32 %v18802_v43, %v17369_v20  ;;  %v16911_v10 = vld [vmem:[#allocation3 + $0x1690] sm:$0xf]  ;;  %v18788_v43 = vld [vmem:[#allocation3 + $0x193c] sm:$0xf] }
 0x7b3   :  { %17394 = vmatmul.msk.bf16.vlgmr.msra.gmra.mxu1 %vm1042_vm2, %v21220_v3  ;;  %v17321_v20 = vld [vmem:[#allocation3 + $0x1978] sm:$0xf0] }
 0x7b4   :  { %v10012_v17 = vpop.f32.mrf.mxu2  ;;  %11680 = vmatpush.bf16.msra.mxu1 %v17380_v8 }
 0x7b5   :  { %v21250_v26 = vadd.f32 %v10012_v17, %v21168_v51  ;;  %v17223_v51 = vld [vmem:[#allocation3 + $0x18a8] sm:$0xf]  ;;  %v16847_v17 = vld [vmem:[#allocation3 + $0x1610] sm:$0xf] }
 0x7b6   :  { %v9042_v14 = vpop.f32.mrf.mxu3  ;;  %11169 = vmatpush.bf16.msra.mxu2 %v17144_v5  ;;  %v17224_v27 = vor.u32 %v18778_v22, %v17223_v51  ;;  %v16912_v5 = vor.u32 %v18711_v63, %v16911_v10  ;;  %v18764_v51 = vld [vmem:[#allocation3 + $0x1874] sm:$0xf0]  ;;  %v18814_v63 = vld [vmem:[#allocation3 + $0x1a0c] sm:$0xf] }
 0x7b7   :  { %v18780_v14 = vld [vmem:[#allocation3 + $0x18f4] sm:$0xf0]  ;;  %v17176_v60 = vor.u32 %v18764_v51, %v17175_v21  ;;  %v16943_v21 = vld [vmem:[#allocation3 + $0x16b0] sm:$0xf] }
 0x7b8   :  { %v10711_v44 = vpop.f32.mrf.mxu0  ;;  %v10739_v42 = vpop.f32.mrf.mxu1  ;;  %11681 = vmatpush.bf16.msra.mxu1 %v17316_v24 }
 0x7b9   :  { %v21253_v54 = vadd.f32 %v10711_v44, %v21171_v50  ;;  %v16848_v42 = vor.u32 %v18695_v18, %v16847_v17  ;;  %v17505_v17 = vld [vmem:[#allocation3 + $0x1ae0] sm:$0xf0] }
 0x7bb   :  { %16821 = vmatmul.msk.bf16.vlgmr.msrb.gmra.mxu3 %vm1042_vm2, %v20892_v36  ;;  %17392 = vmatmul.msk.bf16.vlgmr.msra.gmra.mxu0 %vm1042_vm2, %v21220_v3 }
 0x7bc   :  { %v10014_v31 = vpop.f32.mrf.mxu2  ;;  %10248 = vmatpush.bf16.msrb.mxu3 %v16896_v55  ;;  %11654 = vmatpush.bf16.msra.mxu0 %v17372_v28  ;;  %v17324_v55 = vor.u32 %v18788_v43, %v17321_v20  ;;  %v17489_v28 = vld [vmem:[#allocation3 + $0x1ad0] sm:$0xf0]  ;;  %v17271_v20 = vld [vmem:[#allocation3 + $0x1908] sm:$0xf] }
 0x7bd   :  { %v17492_v31 = vor.u32 %v18831_v6, %v17489_v28  ;;  %v18817_v28 = vld [vmem:[#allocation3 + $0x1a24] sm:$0xf] }
 0x7be   :  { %v9092_v50 = vpop.f32.mrf.mxu3 }
 0x7bf   :  { %v21260_v25 = vadd.f32 %v9092_v50, %v21178_v1  ;;  %v16927_v50 = vld [vmem:[#allocation3 + $0x16a0] sm:$0xf] }
 0x7c0   :  { %v10713_v4 = vpop.f32.mrf.mxu0  ;;  %v10789_v0 = vpop.f32.mrf.mxu1  ;;  %10249 = vmatpush.bf16.msrb.mxu3 %v16832_v49  ;;  %11655 = vmatpush.bf16.msra.mxu0 %v17308_v34  ;;  %v18815_v34 = vld [vmem:[#allocation3 + $0x1a14] sm:$0xf]  ;;  %v16928_v59 = vor.u32 %v18713_v41, %v16927_v50  ;;  %v16879_v50 = vld [vmem:[#allocation3 + $0x1630] sm:$0xf] }
 0x7c1   :  { %v21263_v48 = vadd.f32 %v10789_v0, %v21181_v12  ;;  %17247 = vmatmul.msk.bf16.vlgmr.msrb.gmra.mxu2 %vm1042_vm2, %v21138_v61  ;;  %v18804_v12 = vld [vmem:[#allocation3 + $0x19bc] sm:$0xf]  ;;  %v17481_v4 = vld [vmem:[#allocation3 + $0x1ac8] sm:$0xf0] }
 0x7c2   :  { %11220 = vmatpush.bf16.msrb.mxu2 %v17224_v27  ;;  %v17388_v47 = vor.u32 %v18804_v12, %v17385_v39  ;;  %v17428_v27 = vor.u32 %v18815_v34, %v17425_v23  ;;  %v17417_v12 = vld [vmem:[#allocation3 + $0x1a48] sm:$0xf0]  ;;  %v18806_v39 = vld [vmem:[#allocation3 + $0x19c4] sm:$0xf0] }
 0x7c3   :  { %17398 = vmatmul.msk.bf16.vlgmr.msrb.gmra.mxu1 %vm1042_vm2, %v21220_v3 }
 0x7c4   :  { %v10277_v1 = vpop.f32.mrf.mxu2  ;;  %11945 = vmatpush.bf16.msrb.mxu1 %v17476_v38 }
 0x7c5   :  { %v21270_v46 = vadd.f32 %v10277_v1, %v21188_v45  ;;  %v17239_v45 = vld [vmem:[#allocation3 + $0x18b8] sm:$0xf] }
 0x7c6   :  { %v9094_v8 = vpop.f32.mrf.mxu3  ;;  %11221 = vmatpush.bf16.msrb.mxu2 %v17160_v62  ;;  %v17240_v16 = vor.u32 %v18780_v14, %v17239_v45  ;;  %v16863_v62 = vld [vmem:[#allocation3 + $0x1620] sm:$0xf]  ;;  %v18790_v45 = vld [vmem:[#allocation3 + $0x1944] sm:$0xf0] }
 0x7c8   :  { %v10763_v56 = vpop.f32.mrf.mxu0  ;;  %v10791_v7 = vpop.f32.mrf.mxu1  ;;  %11946 = vmatpush.bf16.msrb.mxu1 %v17412_v29  ;;  %v18697_v29 = vld [vmem:[#allocation3 + $0x165c] sm:$0xf0] }
 0x7c9   :  { %v21273_v24 = vadd.f32 %v10763_v56, %v21191_v58  ;;  %v16864_v56 = vor.u32 %v18697_v29, %v16863_v62  ;;  %v17420_v7 = vor.u32 %v18814_v63, %v17417_v12  ;;  %v17521_v29 = vld [vmem:[#allocation3 + $0x1af0] sm:$0xf0] }
 0x7cb   :  { %16825 = vmatmul.msk.bf16.vlgmr.msra.gmra.mxu3 %vm1042_vm2, %v20892_v36  ;;  %17396 = vmatmul.msk.bf16.vlgmr.msrb.gmra.mxu0 %vm1042_vm2, %v21220_v3 }
 0x7cc   :  { %v10279_v44 = vpop.f32.mrf.mxu2  ;;  %10300 = vmatpush.bf16.msra.mxu3 %v16912_v5  ;;  %11706 = vmatpush.bf16.msrb.mxu0 %v17388_v47  ;;  %v18833_v5 = vld [vmem:[#allocation3 + $0x1aa4] sm:$0xf] }
 0x7ce   :  { %v9144_v58 = vpop.f32.mrf.mxu3 }
 0x7cf   :  { %v21280_v19 = vadd.f32 %v9144_v58, %v21198_v15  ;;  %v17441_v58 = vld [vmem:[#allocation3 + $0x1a60] sm:$0xf0] }
 0x7d0   :  { %v10765_v36 = vpop.f32.mrf.mxu0  ;;  %v10841_v22 = vpop.f32.mrf.mxu1  ;;  %10301 = vmatpush.bf16.msra.mxu3 %v16848_v42  ;;  %11707 = vmatpush.bf16.msrb.mxu0 %v17324_v55  ;;  %v17508_v42 = vor.u32 %v18833_v5, %v17505_v17  ;;  %v17444_v51 = vor.u32 %v18817_v28, %v17441_v58  ;;  %v18819_v17 = vld [vmem:[#allocation3 + $0x1a34] sm:$0xf] }
 0x7d1   :  { %v21283_v49 = vadd.f32 %v10841_v22, %v21201_v11  ;;  %17251 = vmatmul.msk.bf16.vlgmr.msra.gmra.mxu2 %vm1042_vm2, %v21138_v61  ;;  %v18830_v11 = vld [vmem:[#allocation3 + $0x1a8c] sm:$0xf]  ;;  %v18715_v22 = vld [vmem:[#allocation3 + $0x16ec] sm:$0xf0] }
 0x7d2   :  { %11272 = vmatpush.bf16.msra.mxu2 %v17240_v16  ;;  %v17484_v1 = vor.u32 %v18830_v11, %v17481_v4  ;;  %v18699_v11 = vld [vmem:[#allocation3 + $0x166c] sm:$0xf0]  ;;  %v18816_v4 = vld [vmem:[#allocation3 + $0x1a1c] sm:$0xf] }
 0x7d3   :  { %17402 = vmatmul.msk.bf16.vlgmr.msra.gmra.mxu1 %vm1042_vm2, %v21220_v3 }
 0x7d4   :  { %v10329_v15 = vpop.f32.mrf.mxu2  ;;  %11997 = vmatpush.bf16.msra.mxu1 %v17492_v31  ;;  %v17497_v31 = vld [vmem:[#allocation3 + $0x1ad8] sm:$0xf0] }
 0x7d5   :  { %v21290_v30 = vadd.f32 %v10329_v15, %v21208_v13  ;;  %v17335_v13 = vld [vmem:[#allocation3 + $0x1988] sm:$0xf]  ;;  %v16944_v15 = vor.u32 %v18715_v22, %v16943_v21  ;;  %v18725_v22 = vld [vmem:[#allocation3 + $0x173c] sm:$0xf0] }
 0x7d6   :  { %v9146_v0 = vpop.f32.mrf.mxu3  ;;  %11273 = vmatpush.bf16.msra.mxu2 %v17176_v60  ;;  %v17336_v18 = vor.u32 %v18806_v39, %v17335_v13  ;;  %v17287_v13 = vld [vmem:[#allocation3 + $0x1918] sm:$0xf] }
 0x7d7   :  { %v17433_v0 = vld [vmem:[#allocation3 + $0x1a58] sm:$0xf0]  ;;  %v18792_v39 = vld [vmem:[#allocation3 + $0x1954] sm:$0xf0] }
 0x7d8   :  { %v10815_v38 = vpop.f32.mrf.mxu0  ;;  %v10843_v9 = vpop.f32.mrf.mxu1  ;;  %11998 = vmatpush.bf16.msra.mxu1 %v17428_v27  ;;  %v17436_v62 = vor.u32 %v18816_v4, %v17433_v0  ;;  %v17303_v0 = vld [vmem:[#allocation3 + $0x1928] sm:$0xf] }
 0x7d9   :  { %v21293_v10 = vadd.f32 %v10815_v38, %v21211_v40  ;;  %v11729_v40 = vld [vmem:[#allocation2 + $0xd0] sm:$0xff]  ;;  %v18808_v38 = vld [vmem:[#allocation3 + $0x19d4] sm:$0xf0] }
 0x7da   :  { %v21302_v55 = vpack.c.bf16 %v11729_v40, %v11729_v40  ;;  %v17457_v40 = vld [vmem:[#allocation3 + $0x1a70] sm:$0xf0] }
 0x7db   :  { %16957 = vmatmul.msk.bf16.vlgmr.msrb.gmra.mxu3 %vm1042_vm2, %v20974_v35  ;;  %17400 = vmatmul.msk.bf16.vlgmr.msra.gmra.mxu0 %vm1042_vm2, %v21220_v3 }
 0x7dc   :  { %v10331_v8 = vpop.f32.mrf.mxu2  ;;  %10352 = vmatpush.bf16.msrb.mxu3 %v16928_v59  ;;  %11971 = vmatpush.bf16.msra.mxu0 %v17484_v1  ;;  %v16880_v59 = vor.u32 %v18699_v11, %v16879_v50  ;;  %v18835_v1 = vld [vmem:[#allocation3 + $0x1ab4] sm:$0xf]  ;;  %v18861_v50 = vld [vmem:[#allocation3 + $0x1b84] sm:$0xf] }
 0x7de   :  { %v9409_v47 = vpop.f32.mrf.mxu3 }
 0x7df   :  { %v21300_v43 = vadd.f32 %v9409_v47, %v21218_v37  ;;  %v17272_v37 = vor.u32 %v18790_v45, %v17271_v20  ;;  %v17288_v47 = vor.u32 %v18792_v39, %v17287_v13  ;;  %v17460_v20 = vor.u32 %v18819_v17, %v17457_v40 }
 0x7e0   :  { %v10817_v14 = vpop.f32.mrf.mxu0  ;;  %v11106_v44 = vpop.f32.mrf.mxu1  ;;  %10353 = vmatpush.bf16.msrb.mxu3 %v16864_v56  ;;  %11972 = vmatpush.bf16.msra.mxu0 %v17420_v7  ;;  %v17524_v7 = vor.u32 %v18835_v1, %v17521_v29  ;;  %v18845_v1 = vld [vmem:[#allocation3 + $0x1b04] sm:$0xf] }
 0x7e1   :  { %v21305_v6 = vadd.f32 %v11106_v44, %v21223_v33  ;;  %17255 = vmatmul.msk.bf16.vlgmr.msrb.gmra.mxu2 %vm1042_vm2, %v21138_v61  ;;  %v18832_v33 = vld [vmem:[#allocation3 + $0x1a9c] sm:$0xf]  ;;  %v18741_v14 = vld [vmem:[#allocation3 + $0x17bc] sm:$0xf0]  ;;  %v17513_v44 = vld [vmem:[#allocation3 + $0x1ae8] sm:$0xf0] }
 0x7e2   :  { %11537 = vmatpush.bf16.msrb.mxu2 %v17336_v18  ;;  %v17500_v27 = vor.u32 %v18832_v33, %v17497_v31  ;;  %v17039_v18 = vld [vmem:[#allocation3 + $0x1780] sm:$0xf]  ;;  %v18818_v33 = vld [vmem:[#allocation3 + $0x1a2c] sm:$0xf]  ;;  %v17553_v29 = vld [vmem:[#allocation3 + $0x1b40] sm:$0xf0] }
 0x7e3   :  { %17534 = vmatmul.msk.bf16.vlgmr.msrb.gmra.mxu1 %vm1042_vm2, %v21302_v55  ;;  %v17449_v31 = vld [vmem:[#allocation3 + $0x1a68] sm:$0xf0]  ;;  %v17556_v13 = vor.u32 %v18845_v1, %v17553_v29 }
 0x7e4   :  { %v10381_v16 = vpop.f32.mrf.mxu2  ;;  %12049 = vmatpush.bf16.msrb.mxu1 %v17508_v42 }
 0x7e5   :  { %v21312_v36 = vadd.f32 %v10381_v16, %v21230_v52  ;;  %v17351_v52 = vld [vmem:[#allocation3 + $0x1998] sm:$0xf]  ;;  %v16975_v16 = vld [vmem:[#allocation3 + $0x1700] sm:$0xf] }
 0x7e6   :  { %v9411_v34 = vpop.f32.mrf.mxu3  ;;  %11538 = vmatpush.bf16.msrb.mxu2 %v17272_v37  ;;  %v17352_v63 = vor.u32 %v18808_v38, %v17351_v52  ;;  %v17040_v37 = vor.u32 %v18741_v14, %v17039_v18  ;;  %v18794_v52 = vld [vmem:[#allocation3 + $0x1964] sm:$0xf0]  ;;  %v18727_v14 = vld [vmem:[#allocation3 + $0x174c] sm:$0xf0] }
 0x7e7   :  { %v18810_v34 = vld [vmem:[#allocation3 + $0x19e4] sm:$0xf0] }
 0x7e8   :  { %v10867_v23 = vpop.f32.mrf.mxu0  ;;  %v11108_v60 = vpop.f32.mrf.mxu1  ;;  %12050 = vmatpush.bf16.msrb.mxu1 %v17444_v51 }
 0x7e9   :  { %v21315_v41 = vadd.f32 %v10867_v23, %v21233_v2  ;;  %v16976_v60 = vor.u32 %v18725_v22, %v16975_v16  ;;  %v18863_v16 = vld [vmem:[#allocation3 + $0x1b94] sm:$0xf] }
 0x7eb   :  { %16961 = vmatmul.msk.bf16.vlgmr.msra.gmra.mxu3 %vm1042_vm2, %v20974_v35  ;;  %17404 = vmatmul.msk.bf16.vlgmr.msrb.gmra.mxu0 %vm1042_vm2, %v21220_v3 }
 0x7ec   :  { %v10383_v9 = vpop.f32.mrf.mxu2  ;;  %10404 = vmatpush.bf16.msra.mxu3 %v16944_v15  ;;  %12023 = vmatpush.bf16.msrb.mxu0 %v17500_v27  ;;  %v17452_v15 = vor.u32 %v18818_v33, %v17449_v31  ;;  %v17617_v27 = vld [vmem:[#allocation3 + $0x1bc0] sm:$0xf0]  ;;  %v17319_v31 = vld [vmem:[#allocation3 + $0x1938] sm:$0xf] }
 0x7ee   :  { %v9461_v2 = vpop.f32.mrf.mxu3 }
 0x7ef   :  { %v21322_v12 = vadd.f32 %v9461_v2, %v21240_v32  ;;  %v17304_v2 = vor.u32 %v18794_v52, %v17303_v0  ;;  %v18745_v52 = vld [vmem:[#allocation3 + $0x17dc] sm:$0xf0] }
 0x7f0   :  { %v10869_v8 = vpop.f32.mrf.mxu0  ;;  %v11158_v56 = vpop.f32.mrf.mxu1  ;;  %10405 = vmatpush.bf16.msra.mxu3 %v16880_v59  ;;  %12024 = vmatpush.bf16.msrb.mxu0 %v17436_v62  ;;  %v17620_v59 = vor.u32 %v18861_v50, %v17617_v27  ;;  %v17569_v50 = vld [vmem:[#allocation3 + $0x1b50] sm:$0xf0] }
 0x7f1   :  { %v21325_v5 = vadd.f32 %v11158_v56, %v21243_v57  ;;  %17259 = vmatmul.msk.bf16.vlgmr.msra.gmra.mxu2 %vm1042_vm2, %v21138_v61  ;;  %v18834_v57 = vld [vmem:[#allocation3 + $0x1aac] sm:$0xf]  ;;  %v18743_v8 = vld [vmem:[#allocation3 + $0x17cc] sm:$0xf0]  ;;  %v17529_v56 = vld [vmem:[#allocation3 + $0x1af8] sm:$0xf0] }
 0x7f2   :  { %11589 = vmatpush.bf16.msra.mxu2 %v17352_v63  ;;  %v17516_v21 = vor.u32 %v18834_v57, %v17513_v44  ;;  %v17055_v63 = vld [vmem:[#allocation3 + $0x1790] sm:$0xf]  ;;  %v18820_v57 = vld [vmem:[#allocation3 + $0x1a3c] sm:$0xf] }
 0x7f3   :  { %17538 = vmatmul.msk.bf16.vlgmr.msra.gmra.mxu1 %vm1042_vm2, %v21302_v55  ;;  %v17465_v44 = vld [vmem:[#allocation3 + $0x1a78] sm:$0xf0] }
 0x7f4   :  { %v10433_v32 = vpop.f32.mrf.mxu2  ;;  %12101 = vmatpush.bf16.msra.mxu1 %v17524_v7 }
 0x7f5   :  { %v21332_v45 = vadd.f32 %v10433_v32, %v21250_v26  ;;  %v17367_v26 = vld [vmem:[#allocation3 + $0x19a8] sm:$0xf]  ;;  %v16991_v32 = vld [vmem:[#allocation3 + $0x1710] sm:$0xf] }
 0x7f6   :  { %v9463_v42 = vpop.f32.mrf.mxu3  ;;  %11590 = vmatpush.bf16.msra.mxu2 %v17288_v47  ;;  %v17368_v11 = vor.u32 %v18810_v34, %v17367_v26  ;;  %v17056_v47 = vor.u32 %v18743_v8, %v17055_v63  ;;  %v18796_v26 = vld [vmem:[#allocation3 + $0x1974] sm:$0xf0]  ;;  %v18846_v8 = vld [vmem:[#allocation3 + $0x1b0c] sm:$0xf] }
 0x7f7   :  { %v18812_v42 = vld [vmem:[#allocation3 + $0x19f4] sm:$0xf0]  ;;  %v17320_v27 = vor.u32 %v18796_v26, %v17319_v31  ;;  %v17087_v31 = vld [vmem:[#allocation3 + $0x17b0] sm:$0xf] }
 0x7f8   :  { %v11132_v28 = vpop.f32.mrf.mxu0  ;;  %v11160_v58 = vpop.f32.mrf.mxu1  ;;  %12102 = vmatpush.bf16.msra.mxu1 %v17460_v20 }
 0x7f9   :  { %v21335_v51 = vadd.f32 %v11132_v28, %v21253_v54  ;;  %v16992_v58 = vor.u32 %v18727_v14, %v16991_v32  ;;  %v17649_v32 = vld [vmem:[#allocation3 + $0x1be0] sm:$0xf0] }
 0x7fb   :  { %16965 = vmatmul.msk.bf16.vlgmr.msrb.gmra.mxu3 %vm1042_vm2, %v20974_v35  ;;  %17536 = vmatmul.msk.bf16.vlgmr.msra.gmra.mxu0 %vm1042_vm2, %v21302_v55 }
 0x7fc   :  { %v10435_v23 = vpop.f32.mrf.mxu2  ;;  %10669 = vmatpush.bf16.msrb.mxu3 %v17040_v37  ;;  %12075 = vmatpush.bf16.msra.mxu0 %v17516_v21  ;;  %v17468_v37 = vor.u32 %v18820_v57, %v17465_v44  ;;  %v17633_v21 = vld [vmem:[#allocation3 + $0x1bd0] sm:$0xf0]  ;;  %v17415_v44 = vld [vmem:[#allocation3 + $0x1a08] sm:$0xf] }
 0x7fd   :  { %v17636_v23 = vor.u32 %v18863_v16, %v17633_v21  ;;  %v18849_v21 = vld [vmem:[#allocation3 + $0x1b24] sm:$0xf] }
 0x7fe   :  { %v9513_v54 = vpop.f32.mrf.mxu3 }
 0x7ff   :  { %v21342_v4 = vadd.f32 %v9513_v54, %v21260_v25  ;;  %v17071_v54 = vld [vmem:[#allocation3 + $0x17a0] sm:$0xf] }
 0x800   :  { %v11134_v38 = vpop.f32.mrf.mxu0  ;;  %v11210_v9 = vpop.f32.mrf.mxu1  ;;  %10670 = vmatpush.bf16.msrb.mxu3 %v16976_v60  ;;  %12076 = vmatpush.bf16.msra.mxu0 %v17452_v15  ;;  %v18847_v15 = vld [vmem:[#allocation3 + $0x1b14] sm:$0xf]  ;;  %v17072_v29 = vor.u32 %v18745_v52, %v17071_v54  ;;  %v17023_v54 = vld [vmem:[#allocation3 + $0x1730] sm:$0xf] }
 0x801   :  { %v21345_v62 = vadd.f32 %v11210_v9, %v21263_v48  ;;  %17391 = vmatmul.msk.bf16.vlgmr.msrb.gmra.mxu2 %vm1042_vm2, %v21220_v3  ;;  %v18836_v48 = vld [vmem:[#allocation3 + $0x1abc] sm:$0xf]  ;;  %v17625_v38 = vld [vmem:[#allocation3 + $0x1bc8] sm:$0xf0] }
 0x802   :  { %11641 = vmatpush.bf16.msrb.mxu2 %v17368_v11  ;;  %v17532_v18 = vor.u32 %v18836_v48, %v17529_v56  ;;  %v17572_v11 = vor.u32 %v18847_v15, %v17569_v50  ;;  %v17561_v48 = vld [vmem:[#allocation3 + $0x1b48] sm:$0xf0]  ;;  %v18838_v56 = vld [vmem:[#allocation3 + $0x1ac4] sm:$0xf0] }
 0x803   :  { %17542 = vmatmul.msk.bf16.vlgmr.msrb.gmra.mxu1 %vm1042_vm2, %v21302_v55 }
 0x804   :  { %v10698_v25 = vpop.f32.mrf.mxu2  ;;  %12366 = vmatpush.bf16.msrb.mxu1 %v17620_v59 }
 0x805   :  { %v21352_v39 = vadd.f32 %v10698_v25, %v21270_v46  ;;  %v17383_v46 = vld [vmem:[#allocation3 + $0x19b8] sm:$0xf] }
 0x806   :  { %v9515_v7 = vpop.f32.mrf.mxu3  ;;  %11642 = vmatpush.bf16.msrb.mxu2 %v17304_v2  ;;  %v17384_v22 = vor.u32 %v18812_v42, %v17383_v46  ;;  %v17007_v2 = vld [vmem:[#allocation3 + $0x1720] sm:$0xf]  ;;  %v18822_v46 = vld [vmem:[#allocation3 + $0x1a44] sm:$0xf0] }
 0x808   :  { %v11184_v17 = vpop.f32.mrf.mxu0  ;;  %v11212_v40 = vpop.f32.mrf.mxu1  ;;  %12367 = vmatpush.bf16.msrb.mxu1 %v17556_v13  ;;  %v18729_v13 = vld [vmem:[#allocation3 + $0x175c] sm:$0xf0] }
 0x809   :  { %v21355_v20 = vadd.f32 %v11184_v17, %v21273_v24  ;;  %v17008_v17 = vor.u32 %v18729_v13, %v17007_v2  ;;  %v17564_v40 = vor.u32 %v18846_v8, %v17561_v48  ;;  %v17665_v13 = vld [vmem:[#allocation3 + $0x1bf0] sm:$0xf0] }
 0x80b   :  { %16969 = vmatmul.msk.bf16.vlgmr.msra.gmra.mxu3 %vm1042_vm2, %v20974_v35  ;;  %17540 = vmatmul.msk.bf16.vlgmr.msrb.gmra.mxu0 %vm1042_vm2, %v21302_v55 }
 0x80c   :  { %v10700_v28 = vpop.f32.mrf.mxu2  ;;  %10721 = vmatpush.bf16.msra.mxu3 %v17056_v47  ;;  %12127 = vmatpush.bf16.msrb.mxu0 %v17532_v18  ;;  %v18865_v47 = vld [vmem:[#allocation3 + $0x1ba4] sm:$0xf] }
 0x80e   :  { %v9565_v24 = vpop.f32.mrf.mxu3 }
 0x80f   :  { %v21362_v33 = vadd.f32 %v9565_v24, %v21280_v19  ;;  %v17585_v24 = vld [vmem:[#allocation3 + $0x1b60] sm:$0xf0] }
 0x810   :  { %v11186_v35 = vpop.f32.mrf.mxu0  ;;  %v11262_v34 = vpop.f32.mrf.mxu1  ;;  %10722 = vmatpush.bf16.msra.mxu3 %v16992_v58  ;;  %12128 = vmatpush.bf16.msrb.mxu0 %v17468_v37  ;;  %v17652_v58 = vor.u32 %v18865_v47, %v17649_v32  ;;  %v17588_v26 = vor.u32 %v18849_v21, %v17585_v24  ;;  %v18851_v32 = vld [vmem:[#allocation3 + $0x1b34] sm:$0xf] }
 0x811   :  { %v21365_v60 = vadd.f32 %v11262_v34, %v21283_v49  ;;  %17395 = vmatmul.msk.bf16.vlgmr.msra.gmra.mxu2 %vm1042_vm2, %v21220_v3  ;;  %v18862_v49 = vld [vmem:[#allocation3 + $0x1b8c] sm:$0xf]  ;;  %v18747_v34 = vld [vmem:[#allocation3 + $0x17ec] sm:$0xf0] }
 0x812   :  { %11693 = vmatpush.bf16.msra.mxu2 %v17384_v22  ;;  %v17628_v25 = vor.u32 %v18862_v49, %v17625_v38  ;;  %v18731_v49 = vld [vmem:[#allocation3 + $0x176c] sm:$0xf0]  ;;  %v18848_v38 = vld [vmem:[#allocation3 + $0x1b1c] sm:$0xf] }
 0x813   :  { %17546 = vmatmul.msk.bf16.vlgmr.msra.gmra.mxu1 %vm1042_vm2, %v21302_v55 }
 0x814   :  { %v10750_v19 = vpop.f32.mrf.mxu2  ;;  %12418 = vmatpush.bf16.msra.mxu1 %v17636_v23  ;;  %v17641_v23 = vld [vmem:[#allocation3 + $0x1bd8] sm:$0xf0] }
 0x815   :  { %v21372_v0 = vadd.f32 %v10750_v19, %v21290_v30  ;;  %v17479_v30 = vld [vmem:[#allocation3 + $0x1a88] sm:$0xf]  ;;  %v17088_v19 = vor.u32 %v18747_v34, %v17087_v31  ;;  %v18757_v34 = vld [vmem:[#allocation3 + $0x183c] sm:$0xf0] }
 0x816   :  { %v9567_v9 = vpop.f32.mrf.mxu3  ;;  %11694 = vmatpush.bf16.msra.mxu2 %v17320_v27  ;;  %v17480_v14 = vor.u32 %v18838_v56, %v17479_v30  ;;  %v17431_v30 = vld [vmem:[#allocation3 + $0x1a18] sm:$0xf] }
 0x817   :  { %v17577_v9 = vld [vmem:[#allocation3 + $0x1b58] sm:$0xf0]  ;;  %v18824_v56 = vld [vmem:[#allocation3 + $0x1a54] sm:$0xf0] }
 0x818   :  { %v11236_v59 = vpop.f32.mrf.mxu0  ;;  %v11264_v1 = vpop.f32.mrf.mxu1  ;;  %12419 = vmatpush.bf16.msra.mxu1 %v17572_v11  ;;  %v17580_v2 = vor.u32 %v18848_v38, %v17577_v9  ;;  %v17447_v9 = vld [vmem:[#allocation3 + $0x1a28] sm:$0xf] }
 0x819   :  { %v21375_v63 = vadd.f32 %v11236_v59, %v21293_v10  ;;  %v12150_v10 = vld [vmem:[#allocation2 + $0xd8] sm:$0xff]  ;;  %v18840_v59 = vld [vmem:[#allocation3 + $0x1ad4] sm:$0xf0] }
 0x81a   :  { %v21384_v37 = vpack.c.bf16 %v12150_v10, %v12150_v10  ;;  %v17601_v10 = vld [vmem:[#allocation3 + $0x1b70] sm:$0xf0] }
 0x81b   :  { %17101 = vmatmul.msk.bf16.vlgmr.msrb.gmra.mxu3 %vm1042_vm2, %v21056_v53  ;;  %17544 = vmatmul.msk.bf16.vlgmr.msra.gmra.mxu0 %vm1042_vm2, %v21302_v55 }
 0x81c   :  { %v10752_v7 = vpop.f32.mrf.mxu2  ;;  %10773 = vmatpush.bf16.msrb.mxu3 %v17072_v29  ;;  %12392 = vmatpush.bf16.msra.mxu0 %v17628_v25  ;;  %v17024_v29 = vor.u32 %v18731_v49, %v17023_v54  ;;  %v18867_v25 = vld [vmem:[#allocation3 + $0x1bb4] sm:$0xf]  ;;  %v18893_v54 = vld [vmem:[#allocation3 + $0x1c84] sm:$0xf] }
 0x81e   :  { %v9830_v18 = vpop.f32.mrf.mxu3 }
 0x81f   :  { %v21382_v57 = vadd.f32 %v9830_v18, %v21300_v43  ;;  %v17416_v43 = vor.u32 %v18822_v46, %v17415_v44  ;;  %v17432_v18 = vor.u32 %v18824_v56, %v17431_v30  ;;  %v17604_v44 = vor.u32 %v18851_v32, %v17601_v10 }
 0x820   :  { %v11238_v42 = vpop.f32.mrf.mxu0  ;;  %v11527_v28 = vpop.f32.mrf.mxu1  ;;  %10774 = vmatpush.bf16.msrb.mxu3 %v17008_v17  ;;  %12393 = vmatpush.bf16.msra.mxu0 %v17564_v40  ;;  %v17668_v40 = vor.u32 %v18867_v25, %v17665_v13  ;;  %v18877_v25 = vld [vmem:[#allocation3 + $0x1c04] sm:$0xf] }
 0x821   :  { %v21387_v16 = vadd.f32 %v11527_v28, %v21305_v6  ;;  %17399 = vmatmul.msk.bf16.vlgmr.msrb.gmra.mxu2 %vm1042_vm2, %v21220_v3  ;;  %v18864_v6 = vld [vmem:[#allocation3 + $0x1b9c] sm:$0xf]  ;;  %v18773_v42 = vld [vmem:[#allocation3 + $0x18bc] sm:$0xf0]  ;;  %v17657_v28 = vld [vmem:[#allocation3 + $0x1be8] sm:$0xf0] }
 0x822   :  { %11958 = vmatpush.bf16.msrb.mxu2 %v17480_v14  ;;  %v17644_v11 = vor.u32 %v18864_v6, %v17641_v23  ;;  %v17183_v14 = vld [vmem:[#allocation3 + $0x1880] sm:$0xf]  ;;  %v18850_v6 = vld [vmem:[#allocation3 + $0x1b2c] sm:$0xf]  ;;  %v17697_v13 = vld [vmem:[#allocation3 + $0x1c40] sm:$0xf0] }
 0x823   :  { %17678 = vmatmul.msk.bf16.vlgmr.msrb.gmra.mxu1 %vm1042_vm2, %v21384_v37  ;;  %v17593_v23 = vld [vmem:[#allocation3 + $0x1b68] sm:$0xf0]  ;;  %v17700_v30 = vor.u32 %v18877_v25, %v17697_v13 }
 0x824   :  { %v10802_v22 = vpop.f32.mrf.mxu2  ;;  %12470 = vmatpush.bf16.msrb.mxu1 %v17652_v58 }
 0x825   :  { %v21394_v35 = vadd.f32 %v10802_v22, %v21312_v36  ;;  %v17495_v36 = vld [vmem:[#allocation3 + $0x1a98] sm:$0xf]  ;;  %v17119_v22 = vld [vmem:[#allocation3 + $0x1800] sm:$0xf] }
 0x826   :  { %v9832_v15 = vpop.f32.mrf.mxu3  ;;  %11959 = vmatpush.bf16.msrb.mxu2 %v17416_v43  ;;  %v17496_v8 = vor.u32 %v18840_v59, %v17495_v36  ;;  %v17184_v43 = vor.u32 %v18773_v42, %v17183_v14  ;;  %v18826_v36 = vld [vmem:[#allocation3 + $0x1a64] sm:$0xf0]  ;;  %v18759_v42 = vld [vmem:[#allocation3 + $0x184c] sm:$0xf0] }
 0x827   :  { %v18842_v15 = vld [vmem:[#allocation3 + $0x1ae4] sm:$0xf0] }
 0x828   :  { %v11288_v50 = vpop.f32.mrf.mxu0  ;;  %v11529_v27 = vpop.f32.mrf.mxu1  ;;  %12471 = vmatpush.bf16.msrb.mxu1 %v17588_v26 }
 0x829   :  { %v21397_v52 = vadd.f32 %v11288_v50, %v21315_v41  ;;  %v17120_v27 = vor.u32 %v18757_v34, %v17119_v22  ;;  %v18895_v22 = vld [vmem:[#allocation3 + $0x1c94] sm:$0xf] }
 0x82b   :  { %17105 = vmatmul.msk.bf16.vlgmr.msra.gmra.mxu3 %vm1042_vm2, %v21056_v53  ;;  %17548 = vmatmul.msk.bf16.vlgmr.msrb.gmra.mxu0 %vm1042_vm2, %v21302_v55 }
 0x82c   :  { %v10804_v1 = vpop.f32.mrf.mxu2  ;;  %10825 = vmatpush.bf16.msra.mxu3 %v17088_v19  ;;  %12444 = vmatpush.bf16.msrb.mxu0 %v17644_v11  ;;  %v17596_v19 = vor.u32 %v18850_v6, %v17593_v23  ;;  %v17761_v11 = vld [vmem:[#allocation3 + $0x1cc0] sm:$0xf0]  ;;  %v17463_v23 = vld [vmem:[#allocation3 + $0x1a38] sm:$0xf] }
 0x82e   :  { %v9882_v41 = vpop.f32.mrf.mxu3 }
 0x82f   :  { %v21404_v48 = vadd.f32 %v9882_v41, %v21322_v12  ;;  %v17448_v41 = vor.u32 %v18826_v36, %v17447_v9  ;;  %v18777_v36 = vld [vmem:[#allocation3 + $0x18dc] sm:$0xf0] }
 0x830   :  { %v11290_v7 = vpop.f32.mrf.mxu0  ;;  %v11579_v17 = vpop.f32.mrf.mxu1  ;;  %10826 = vmatpush.bf16.msra.mxu3 %v17024_v29  ;;  %12445 = vmatpush.bf16.msrb.mxu0 %v17580_v2  ;;  %v17764_v29 = vor.u32 %v18893_v54, %v17761_v11  ;;  %v17713_v54 = vld [vmem:[#allocation3 + $0x1c50] sm:$0xf0] }
 0x831   :  { %v21407_v47 = vadd.f32 %v11579_v17, %v21325_v5  ;;  %17403 = vmatmul.msk.bf16.vlgmr.msra.gmra.mxu2 %vm1042_vm2, %v21220_v3  ;;  %v18866_v5 = vld [vmem:[#allocation3 + $0x1bac] sm:$0xf]  ;;  %v18775_v7 = vld [vmem:[#allocation3 + $0x18cc] sm:$0xf0]  ;;  %v17673_v17 = vld [vmem:[#allocation3 + $0x1bf8] sm:$0xf0] }
 0x832   :  { %12010 = vmatpush.bf16.msra.mxu2 %v17496_v8  ;;  %v17660_v31 = vor.u32 %v18866_v5, %v17657_v28  ;;  %v17199_v8 = vld [vmem:[#allocation3 + $0x1890] sm:$0xf]  ;;  %v18852_v5 = vld [vmem:[#allocation3 + $0x1b3c] sm:$0xf] }
 0x833   :  { %17682 = vmatmul.msk.bf16.vlgmr.msra.gmra.mxu1 %vm1042_vm2, %v21384_v37  ;;  %v17609_v28 = vld [vmem:[#allocation3 + $0x1b78] sm:$0xf0] }
 0x834   :  { %v10854_v12 = vpop.f32.mrf.mxu2  ;;  %12522 = vmatpush.bf16.msra.mxu1 %v17668_v40 }
 0x835   :  { %v21414_v46 = vadd.f32 %v10854_v12, %v21332_v45  ;;  %v17511_v45 = vld [vmem:[#allocation3 + $0x1aa8] sm:$0xf]  ;;  %v17135_v12 = vld [vmem:[#allocation3 + $0x1810] sm:$0xf] }
 0x836   :  { %v9884_v58 = vpop.f32.mrf.mxu3  ;;  %12011 = vmatpush.bf16.msra.mxu2 %v17432_v18  ;;  %v17512_v49 = vor.u32 %v18842_v15, %v17511_v45  ;;  %v17200_v18 = vor.u32 %v18775_v7, %v17199_v8  ;;  %v18828_v45 = vld [vmem:[#allocation3 + $0x1a74] sm:$0xf0]  ;;  %v18878_v7 = vld [vmem:[#allocation3 + $0x1c0c] sm:$0xf] }
 0x837   :  { %v18844_v58 = vld [vmem:[#allocation3 + $0x1af4] sm:$0xf0]  ;;  %v17464_v11 = vor.u32 %v18828_v45, %v17463_v23  ;;  %v17231_v23 = vld [vmem:[#allocation3 + $0x18b0] sm:$0xf] }
 0x838   :  { %v11553_v21 = vpop.f32.mrf.mxu0  ;;  %v11581_v24 = vpop.f32.mrf.mxu1  ;;  %12523 = vmatpush.bf16.msra.mxu1 %v17604_v44 }
 0x839   :  { %v21417_v26 = vadd.f32 %v11553_v21, %v21335_v51  ;;  %v17136_v24 = vor.u32 %v18759_v42, %v17135_v12  ;;  %v17793_v12 = vld [vmem:[#allocation3 + $0x1ce0] sm:$0xf0] }
 0x83b   :  { %17109 = vmatmul.msk.bf16.vlgmr.msrb.gmra.mxu3 %vm1042_vm2, %v21056_v53  ;;  %17680 = vmatmul.msk.bf16.vlgmr.msra.gmra.mxu0 %vm1042_vm2, %v21384_v37 }
 0x83c   :  { %v10856_v50 = vpop.f32.mrf.mxu2  ;;  %11090 = vmatpush.bf16.msrb.mxu3 %v17184_v43  ;;  %12496 = vmatpush.bf16.msra.mxu0 %v17660_v31  ;;  %v17612_v43 = vor.u32 %v18852_v5, %v17609_v28  ;;  %v17777_v31 = vld [vmem:[#allocation3 + $0x1cd0] sm:$0xf0]  ;;  %v17559_v28 = vld [vmem:[#allocation3 + $0x1b08] sm:$0xf] }
 0x83d   :  { %v17780_v50 = vor.u32 %v18895_v22, %v17777_v31  ;;  %v18881_v31 = vld [vmem:[#allocation3 + $0x1c24] sm:$0xf] }
 0x83e   :  { %v9934_v51 = vpop.f32.mrf.mxu3 }
 0x83f   :  { %v21424_v38 = vadd.f32 %v9934_v51, %v21342_v4  ;;  %v17215_v51 = vld [vmem:[#allocation3 + $0x18a0] sm:$0xf] }
 0x840   :  { %v11555_v59 = vpop.f32.mrf.mxu0  ;;  %v11631_v1 = vpop.f32.mrf.mxu1  ;;  %11091 = vmatpush.bf16.msrb.mxu3 %v17120_v27  ;;  %12497 = vmatpush.bf16.msra.mxu0 %v17596_v19  ;;  %v18879_v19 = vld [vmem:[#allocation3 + $0x1c14] sm:$0xf]  ;;  %v17216_v13 = vor.u32 %v18777_v36, %v17215_v51  ;;  %v17167_v51 = vld [vmem:[#allocation3 + $0x1830] sm:$0xf] }
 0x841   :  { %v21427_v2 = vadd.f32 %v11631_v1, %v21345_v62  ;;  %17535 = vmatmul.msk.bf16.vlgmr.msrb.gmra.mxu2 %vm1042_vm2, %v21302_v55  ;;  %v18868_v62 = vld [vmem:[#allocation3 + $0x1bbc] sm:$0xf]  ;;  %v17769_v59 = vld [vmem:[#allocation3 + $0x1cc8] sm:$0xf0] }
 0x842   :  { %12062 = vmatpush.bf16.msrb.mxu2 %v17512_v49  ;;  %v17676_v14 = vor.u32 %v18868_v62, %v17673_v17  ;;  %v17716_v49 = vor.u32 %v18879_v19, %v17713_v54  ;;  %v17705_v62 = vld [vmem:[#allocation3 + $0x1c48] sm:$0xf0]  ;;  %v18870_v17 = vld [vmem:[#allocation3 + $0x1bc4] sm:$0xf0] }
 0x843   :  { %17686 = vmatmul.msk.bf16.vlgmr.msrb.gmra.mxu1 %vm1042_vm2, %v21384_v37 }
 0x844   :  { %v11119_v4 = vpop.f32.mrf.mxu2  ;;  %12787 = vmatpush.bf16.msrb.mxu1 %v17764_v29 }
 0x845   :  { %v21434_v56 = vadd.f32 %v11119_v4, %v21352_v39  ;;  %v17527_v39 = vld [vmem:[#allocation3 + $0x1ab8] sm:$0xf] }
 0x846   :  { %v9936_v40 = vpop.f32.mrf.mxu3  ;;  %12063 = vmatpush.bf16.msrb.mxu2 %v17448_v41  ;;  %v17528_v34 = vor.u32 %v18844_v58, %v17527_v39  ;;  %v17151_v41 = vld [vmem:[#allocation3 + $0x1820] sm:$0xf]  ;;  %v18854_v39 = vld [vmem:[#allocation3 + $0x1b44] sm:$0xf0] }
 0x848   :  { %v11605_v32 = vpop.f32.mrf.mxu0  ;;  %v11633_v10 = vpop.f32.mrf.mxu1  ;;  %12788 = vmatpush.bf16.msrb.mxu1 %v17700_v30  ;;  %v18761_v30 = vld [vmem:[#allocation3 + $0x185c] sm:$0xf0] }
 0x849   :  { %v21437_v44 = vadd.f32 %v11605_v32, %v21355_v20  ;;  %v17152_v32 = vor.u32 %v18761_v30, %v17151_v41  ;;  %v17708_v10 = vor.u32 %v18878_v7, %v17705_v62  ;;  %v17809_v30 = vld [vmem:[#allocation3 + $0x1cf0] sm:$0xf0] }
 0x84b   :  { %17113 = vmatmul.msk.bf16.vlgmr.msra.gmra.mxu3 %vm1042_vm2, %v21056_v53  ;;  %17684 = vmatmul.msk.bf16.vlgmr.msrb.gmra.mxu0 %vm1042_vm2, %v21384_v37 }
 0x84c   :  { %v11121_v21 = vpop.f32.mrf.mxu2  ;;  %11142 = vmatpush.bf16.msra.mxu3 %v17200_v18  ;;  %12548 = vmatpush.bf16.msrb.mxu0 %v17676_v14  ;;  %v18897_v18 = vld [vmem:[#allocation3 + $0x1ca4] sm:$0xf] }
 0x84e   :  { %v9986_v20 = vpop.f32.mrf.mxu3 }
 0x84f   :  { %v21444_v6 = vadd.f32 %v9986_v20, %v21362_v33  ;;  %v17729_v20 = vld [vmem:[#allocation3 + $0x1c60] sm:$0xf0] }
 0x850   :  { %v11607_v53 = vpop.f32.mrf.mxu0  ;;  %v11683_v15 = vpop.f32.mrf.mxu1  ;;  %11143 = vmatpush.bf16.msra.mxu3 %v17136_v24  ;;  %12549 = vmatpush.bf16.msrb.mxu0 %v17612_v43  ;;  %v17796_v24 = vor.u32 %v18897_v18, %v17793_v12  ;;  %v17732_v45 = vor.u32 %v18881_v31, %v17729_v20  ;;  %v18883_v12 = vld [vmem:[#allocation3 + $0x1c34] sm:$0xf] }
 0x851   :  { %v21447_v27 = vadd.f32 %v11683_v15, %v21365_v60  ;;  %17539 = vmatmul.msk.bf16.vlgmr.msra.gmra.mxu2 %vm1042_vm2, %v21302_v55  ;;  %v18894_v60 = vld [vmem:[#allocation3 + $0x1c8c] sm:$0xf]  ;;  %v18779_v15 = vld [vmem:[#allocation3 + $0x18ec] sm:$0xf0] }
 0x852   :  { %12114 = vmatpush.bf16.msra.mxu2 %v17528_v34  ;;  %v17772_v4 = vor.u32 %v18894_v60, %v17769_v59  ;;  %v18763_v60 = vld [vmem:[#allocation3 + $0x186c] sm:$0xf0]  ;;  %v18880_v59 = vld [vmem:[#allocation3 + $0x1c1c] sm:$0xf] }
 0x853   :  { %17690 = vmatmul.msk.bf16.vlgmr.msra.gmra.mxu1 %vm1042_vm2, %v21384_v37 }
 0x854   :  { %v11171_v33 = vpop.f32.mrf.mxu2  ;;  %12839 = vmatpush.bf16.msra.mxu1 %v17780_v50  ;;  %v17785_v50 = vld [vmem:[#allocation3 + $0x1cd8] sm:$0xf0] }
 0x855   :  { %v21454_v9 = vadd.f32 %v11171_v33, %v21372_v0  ;;  %v17623_v0 = vld [vmem:[#allocation3 + $0x1b88] sm:$0xf]  ;;  %v17232_v33 = vor.u32 %v18779_v15, %v17231_v23  ;;  %v18789_v15 = vld [vmem:[#allocation3 + $0x193c] sm:$0xf0] }
 0x856   :  { %v9988_v1 = vpop.f32.mrf.mxu3  ;;  %12115 = vmatpush.bf16.msra.mxu2 %v17464_v11  ;;  %v17624_v42 = vor.u32 %v18870_v17, %v17623_v0  ;;  %v17575_v0 = vld [vmem:[#allocation3 + $0x1b18] sm:$0xf] }
 0x857   :  { %v17721_v1 = vld [vmem:[#allocation3 + $0x1c58] sm:$0xf0]  ;;  %v18856_v17 = vld [vmem:[#allocation3 + $0x1b54] sm:$0xf0] }
 0x858   :  { %v11657_v29 = vpop.f32.mrf.mxu0  ;;  %v11685_v25 = vpop.f32.mrf.mxu1  ;;  %12840 = vmatpush.bf16.msra.mxu1 %v17716_v49  ;;  %v17724_v41 = vor.u32 %v18880_v59, %v17721_v1  ;;  %v17591_v1 = vld [vmem:[#allocation3 + $0x1b28] sm:$0xf] }
 0x859   :  { %v21457_v8 = vadd.f32 %v11657_v29, %v21375_v63  ;;  %v12571_v63 = vld [vmem:[#allocation2 + $0xe0] sm:$0xff]  ;;  %v18872_v29 = vld [vmem:[#allocation3 + $0x1bd4] sm:$0xf0] }
 0x85a   :  { %v21466_v43 = vpack.c.bf16 %v12571_v63, %v12571_v63  ;;  %v17745_v63 = vld [vmem:[#allocation3 + $0x1c70] sm:$0xf0] }
 0x85b   :  { %17245 = vmatmul.msk.bf16.vlgmr.msrb.gmra.mxu3 %vm1042_vm2, %v21138_v61  ;;  %17688 = vmatmul.msk.bf16.vlgmr.msra.gmra.mxu0 %vm1042_vm2, %v21384_v37 }
 0x85c   :  { %v11173_v40 = vpop.f32.mrf.mxu2  ;;  %11194 = vmatpush.bf16.msrb.mxu3 %v17216_v13  ;;  %12813 = vmatpush.bf16.msra.mxu0 %v17772_v4  ;;  %v17168_v13 = vor.u32 %v18763_v60, %v17167_v51  ;;  %v18899_v4 = vld [vmem:[#allocation3 + $0x1cb4] sm:$0xf]  ;;  %v18925_v51 = vld [vmem:[#allocation3 + $0x1d84] sm:$0xf] }
 0x85e   :  { %v10251_v14 = vpop.f32.mrf.mxu3 }
 0x85f   :  { %v21464_v5 = vadd.f32 %v10251_v14, %v21382_v57  ;;  %v17560_v57 = vor.u32 %v18854_v39, %v17559_v28  ;;  %v17576_v14 = vor.u32 %v18856_v17, %v17575_v0  ;;  %v17748_v28 = vor.u32 %v18883_v12, %v17745_v63 }
 0x860   :  { %v11659_v58 = vpop.f32.mrf.mxu0  ;;  %v11948_v21 = vpop.f32.mrf.mxu1  ;;  %11195 = vmatpush.bf16.msrb.mxu3 %v17152_v32  ;;  %12814 = vmatpush.bf16.msra.mxu0 %v17708_v10  ;;  %v17812_v10 = vor.u32 %v18899_v4, %v17809_v30  ;;  %v18909_v4 = vld [vmem:[#allocation3 + $0x1d04] sm:$0xf] }
 0x861   :  { %v21469_v22 = vadd.f32 %v11948_v21, %v21387_v16  ;;  %17543 = vmatmul.msk.bf16.vlgmr.msrb.gmra.mxu2 %vm1042_vm2, %v21302_v55  ;;  %v18896_v16 = vld [vmem:[#allocation3 + $0x1c9c] sm:$0xf]  ;;  %v18805_v58 = vld [vmem:[#allocation3 + $0x19bc] sm:$0xf0]  ;;  %v17801_v21 = vld [vmem:[#allocation3 + $0x1ce8] sm:$0xf0] }
 0x862   :  { %12379 = vmatpush.bf16.msrb.mxu2 %v17624_v42  ;;  %v17788_v49 = vor.u32 %v18896_v16, %v17785_v50  ;;  %v17327_v42 = vld [vmem:[#allocation3 + $0x1980] sm:$0xf]  ;;  %v18882_v16 = vld [vmem:[#allocation3 + $0x1c2c] sm:$0xf]  ;;  %v17841_v30 = vld [vmem:[#allocation3 + $0x1d40] sm:$0xf0] }
 0x863   :  { %17822 = vmatmul.msk.bf16.vlgmr.msrb.gmra.mxu1 %vm1042_vm2, %v21466_v43  ;;  %v17737_v50 = vld [vmem:[#allocation3 + $0x1c68] sm:$0xf0]  ;;  %v17844_v0 = vor.u32 %v18909_v4, %v17841_v30 }
 0x864   :  { %v11223_v34 = vpop.f32.mrf.mxu2  ;;  %12891 = vmatpush.bf16.msrb.mxu1 %v17796_v24 }
 0x865   :  { %v21476_v53 = vadd.f32 %v11223_v34, %v21394_v35  ;;  %v17639_v35 = vld [vmem:[#allocation3 + $0x1b98] sm:$0xf]  ;;  %v17263_v34 = vld [vmem:[#allocation3 + $0x1900] sm:$0xf] }
 0x866   :  { %v10253_v19 = vpop.f32.mrf.mxu3  ;;  %12380 = vmatpush.bf16.msrb.mxu2 %v17560_v57  ;;  %v17640_v7 = vor.u32 %v18872_v29, %v17639_v35  ;;  %v17328_v57 = vor.u32 %v18805_v58, %v17327_v42  ;;  %v18858_v35 = vld [vmem:[#allocation3 + $0x1b64] sm:$0xf0]  ;;  %v18791_v58 = vld [vmem:[#allocation3 + $0x194c] sm:$0xf0] }
 0x867   :  { %v18874_v19 = vld [vmem:[#allocation3 + $0x1be4] sm:$0xf0] }
 0x868   :  { %v11709_v54 = vpop.f32.mrf.mxu0  ;;  %v11950_v11 = vpop.f32.mrf.mxu1  ;;  %12892 = vmatpush.bf16.msrb.mxu1 %v17732_v45 }
 0x869   :  { %v21479_v36 = vadd.f32 %v11709_v54, %v21397_v52  ;;  %v17264_v11 = vor.u32 %v18789_v15, %v17263_v34  ;;  %v18927_v34 = vld [vmem:[#allocation3 + $0x1d94] sm:$0xf] }
 0x86b   :  { %17249 = vmatmul.msk.bf16.vlgmr.msra.gmra.mxu3 %vm1042_vm2, %v21138_v61  ;;  %17692 = vmatmul.msk.bf16.vlgmr.msrb.gmra.mxu0 %vm1042_vm2, %v21384_v37 }
 0x86c   :  { %v11225_v25 = vpop.f32.mrf.mxu2  ;;  %11246 = vmatpush.bf16.msra.mxu3 %v17232_v33  ;;  %12865 = vmatpush.bf16.msrb.mxu0 %v17788_v49  ;;  %v17740_v33 = vor.u32 %v18882_v16, %v17737_v50  ;;  %v17905_v49 = vld [vmem:[#allocation3 + $0x1dc0] sm:$0xf0]  ;;  %v17607_v50 = vld [vmem:[#allocation3 + $0x1b38] sm:$0xf] }
 0x86e   :  { %v10303_v52 = vpop.f32.mrf.mxu3 }
 0x86f   :  { %v21486_v62 = vadd.f32 %v10303_v52, %v21404_v48  ;;  %v17592_v52 = vor.u32 %v18858_v35, %v17591_v1  ;;  %v18809_v35 = vld [vmem:[#allocation3 + $0x19dc] sm:$0xf0] }
 0x870   :  { %v11711_v40 = vpop.f32.mrf.mxu0  ;;  %v12000_v32 = vpop.f32.mrf.mxu1  ;;  %11247 = vmatpush.bf16.msra.mxu3 %v17168_v13  ;;  %12866 = vmatpush.bf16.msrb.mxu0 %v17724_v41  ;;  %v17908_v13 = vor.u32 %v18925_v51, %v17905_v49  ;;  %v17857_v51 = vld [vmem:[#allocation3 + $0x1d50] sm:$0xf0] }
 0x871   :  { %v21489_v18 = vadd.f32 %v12000_v32, %v21407_v47  ;;  %17547 = vmatmul.msk.bf16.vlgmr.msra.gmra.mxu2 %vm1042_vm2, %v21302_v55  ;;  %v18898_v47 = vld [vmem:[#allocation3 + $0x1cac] sm:$0xf]  ;;  %v18807_v40 = vld [vmem:[#allocation3 + $0x19cc] sm:$0xf0]  ;;  %v17817_v32 = vld [vmem:[#allocation3 + $0x1cf8] sm:$0xf0] }
 0x872   :  { %12431 = vmatpush.bf16.msra.mxu2 %v17640_v7  ;;  %v17804_v23 = vor.u32 %v18898_v47, %v17801_v21  ;;  %v17343_v7 = vld [vmem:[#allocation3 + $0x1990] sm:$0xf]  ;;  %v18884_v47 = vld [vmem:[#allocation3 + $0x1c3c] sm:$0xf] }
 0x873   :  { %17826 = vmatmul.msk.bf16.vlgmr.msra.gmra.mxu1 %vm1042_vm2, %v21466_v43  ;;  %v17753_v21 = vld [vmem:[#allocation3 + $0x1c78] sm:$0xf0] }
 0x874   :  { %v11275_v48 = vpop.f32.mrf.mxu2  ;;  %12943 = vmatpush.bf16.msra.mxu1 %v17812_v10 }
 0x875   :  { %v21496_v39 = vadd.f32 %v11275_v48, %v21414_v46  ;;  %v17655_v46 = vld [vmem:[#allocation3 + $0x1ba8] sm:$0xf]  ;;  %v17279_v48 = vld [vmem:[#allocation3 + $0x1910] sm:$0xf] }
 0x876   :  { %v10305_v24 = vpop.f32.mrf.mxu3  ;;  %12432 = vmatpush.bf16.msra.mxu2 %v17576_v14  ;;  %v17656_v60 = vor.u32 %v18874_v19, %v17655_v46  ;;  %v17344_v14 = vor.u32 %v18807_v40, %v17343_v7  ;;  %v18860_v46 = vld [vmem:[#allocation3 + $0x1b74] sm:$0xf0]  ;;  %v18910_v40 = vld [vmem:[#allocation3 + $0x1d0c] sm:$0xf] }
 0x877   :  { %v18876_v24 = vld [vmem:[#allocation3 + $0x1bf4] sm:$0xf0]  ;;  %v17608_v49 = vor.u32 %v18860_v46, %v17607_v50  ;;  %v17375_v50 = vld [vmem:[#allocation3 + $0x19b0] sm:$0xf] }
 0x878   :  { %v11974_v31 = vpop.f32.mrf.mxu0  ;;  %v12002_v20 = vpop.f32.mrf.mxu1  ;;  %12944 = vmatpush.bf16.msra.mxu1 %v17748_v28 }
 0x879   :  { %v21499_v45 = vadd.f32 %v11974_v31, %v21417_v26  ;;  %v17280_v20 = vor.u32 %v18791_v58, %v17279_v48  ;;  %v17937_v48 = vld [vmem:[#allocation3 + $0x1de0] sm:$0xf0] }
 0x87b   :  { %17253 = vmatmul.msk.bf16.vlgmr.msrb.gmra.mxu3 %vm1042_vm2, %v21138_v61  ;;  %17824 = vmatmul.msk.bf16.vlgmr.msra.gmra.mxu0 %vm1042_vm2, %v21466_v43 }
 0x87c   :  { %v11277_v54 = vpop.f32.mrf.mxu2  ;;  %11511 = vmatpush.bf16.msrb.mxu3 %v17328_v57  ;;  %12917 = vmatpush.bf16.msra.mxu0 %v17804_v23  ;;  %v17756_v57 = vor.u32 %v18884_v47, %v17753_v21  ;;  %v17921_v23 = vld [vmem:[#allocation3 + $0x1dd0] sm:$0xf0]  ;;  %v17703_v21 = vld [vmem:[#allocation3 + $0x1c08] sm:$0xf] }
 0x87d   :  { %v17924_v54 = vor.u32 %v18927_v34, %v17921_v23  ;;  %v18913_v23 = vld [vmem:[#allocation3 + $0x1d24] sm:$0xf] }
 0x87e   :  { %v10355_v26 = vpop.f32.mrf.mxu3 }
 0x87f   :  { %v21506_v59 = vadd.f32 %v10355_v26, %v21424_v38  ;;  %v17359_v26 = vld [vmem:[#allocation3 + $0x19a0] sm:$0xf] }
 0x880   :  { %v11976_v29 = vpop.f32.mrf.mxu0  ;;  %v12052_v25 = vpop.f32.mrf.mxu1  ;;  %11512 = vmatpush.bf16.msrb.mxu3 %v17264_v11  ;;  %12918 = vmatpush.bf16.msra.mxu0 %v17740_v33  ;;  %v18911_v33 = vld [vmem:[#allocation3 + $0x1d14] sm:$0xf]  ;;  %v17360_v30 = vor.u32 %v18809_v35, %v17359_v26  ;;  %v17311_v26 = vld [vmem:[#allocation3 + $0x1930] sm:$0xf] }
 0x881   :  { %v21509_v41 = vadd.f32 %v12052_v25, %v21427_v2  ;;  %17679 = vmatmul.msk.bf16.vlgmr.msrb.gmra.mxu2 %vm1042_vm2, %v21384_v37  ;;  %v18900_v2 = vld [vmem:[#allocation3 + $0x1cbc] sm:$0xf]  ;;  %v17913_v29 = vld [vmem:[#allocation3 + $0x1dc8] sm:$0xf0] }
 0x882   :  { %12483 = vmatpush.bf16.msrb.mxu2 %v17656_v60  ;;  %v17820_v42 = vor.u32 %v18900_v2, %v17817_v32  ;;  %v17860_v60 = vor.u32 %v18911_v33, %v17857_v51  ;;  %v17849_v2 = vld [vmem:[#allocation3 + $0x1d48] sm:$0xf0]  ;;  %v18902_v32 = vld [vmem:[#allocation3 + $0x1cc4] sm:$0xf0] }
 0x883   :  { %17830 = vmatmul.msk.bf16.vlgmr.msrb.gmra.mxu1 %vm1042_vm2, %v21466_v43 }
 0x884   :  { %v11540_v38 = vpop.f32.mrf.mxu2  ;;  %13208 = vmatpush.bf16.msrb.mxu1 %v17908_v13 }
 0x885   :  { %v21516_v17 = vadd.f32 %v11540_v38, %v21434_v56  ;;  %v17671_v56 = vld [vmem:[#allocation3 + $0x1bb8] sm:$0xf] }
 0x886   :  { %v10357_v10 = vpop.f32.mrf.mxu3  ;;  %12484 = vmatpush.bf16.msrb.mxu2 %v17592_v52  ;;  %v17672_v15 = vor.u32 %v18876_v24, %v17671_v56  ;;  %v17295_v52 = vld [vmem:[#allocation3 + $0x1920] sm:$0xf]  ;;  %v18886_v56 = vld [vmem:[#allocation3 + $0x1c44] sm:$0xf0] }
 0x888   :  { %v12026_v12 = vpop.f32.mrf.mxu0  ;;  %v12054_v63 = vpop.f32.mrf.mxu1  ;;  %13209 = vmatpush.bf16.msrb.mxu1 %v17844_v0  ;;  %v18793_v0 = vld [vmem:[#allocation3 + $0x195c] sm:$0xf0] }
 0x889   :  { %v21519_v28 = vadd.f32 %v12026_v12, %v21437_v44  ;;  %v17296_v12 = vor.u32 %v18793_v0, %v17295_v52  ;;  %v17852_v63 = vor.u32 %v18910_v40, %v17849_v2  ;;  %v17953_v0 = vld [vmem:[#allocation3 + $0x1df0] sm:$0xf0] }
 0x88b   :  { %17257 = vmatmul.msk.bf16.vlgmr.msra.gmra.mxu3 %vm1042_vm2, %v21138_v61  ;;  %17828 = vmatmul.msk.bf16.vlgmr.msrb.gmra.mxu0 %vm1042_vm2, %v21466_v43 }
 0x88c   :  { %v11542_v31 = vpop.f32.mrf.mxu2  ;;  %11563 = vmatpush.bf16.msra.mxu3 %v17344_v14  ;;  %12969 = vmatpush.bf16.msrb.mxu0 %v17820_v42  ;;  %v18929_v14 = vld [vmem:[#allocation3 + $0x1da4] sm:$0xf] }
 0x88e   :  { %v10407_v44 = vpop.f32.mrf.mxu3 }
 0x88f   :  { %v21526_v16 = vadd.f32 %v10407_v44, %v21444_v6  ;;  %v17873_v44 = vld [vmem:[#allocation3 + $0x1d60] sm:$0xf0] }
 0x890   :  { %v12028_v61 = vpop.f32.mrf.mxu0  ;;  %v12104_v19 = vpop.f32.mrf.mxu1  ;;  %11564 = vmatpush.bf16.msra.mxu3 %v17280_v20  ;;  %12970 = vmatpush.bf16.msrb.mxu0 %v17756_v57  ;;  %v17940_v20 = vor.u32 %v18929_v14, %v17937_v48  ;;  %v17876_v46 = vor.u32 %v18913_v23, %v17873_v44  ;;  %v18915_v48 = vld [vmem:[#allocation3 + $0x1d34] sm:$0xf] }
 0x891   :  { %v21529_v11 = vadd.f32 %v12104_v19, %v21447_v27  ;;  %17683 = vmatmul.msk.bf16.vlgmr.msra.gmra.mxu2 %vm1042_vm2, %v21384_v37  ;;  %v18926_v27 = vld [vmem:[#allocation3 + $0x1d8c] sm:$0xf]  ;;  %v18811_v19 = vld [vmem:[#allocation3 + $0x19ec] sm:$0xf0] }
 0x892   :  { %12535 = vmatpush.bf16.msra.mxu2 %v17672_v15  ;;  %v17916_v38 = vor.u32 %v18926_v27, %v17913_v29  ;;  %v18795_v27 = vld [vmem:[#allocation3 + $0x196c] sm:$0xf0]  ;;  %v18912_v29 = vld [vmem:[#allocation3 + $0x1d1c] sm:$0xf] }
 0x893   :  { %17834 = vmatmul.msk.bf16.vlgmr.msra.gmra.mxu1 %vm1042_vm2, %v21466_v43 }
 0x894   :  { %v11592_v6 = vpop.f32.mrf.mxu2  ;;  %13260 = vmatpush.bf16.msra.mxu1 %v17924_v54  ;;  %v17929_v54 = vld [vmem:[#allocation3 + $0x1dd8] sm:$0xf0] }
 0x895   :  { %v21536_v1 = vadd.f32 %v11592_v6, %v21454_v9  ;;  %v17767_v9 = vld [vmem:[#allocation3 + $0x1c88] sm:$0xf]  ;;  %v17376_v6 = vor.u32 %v18811_v19, %v17375_v50  ;;  %v18821_v19 = vld [vmem:[#allocation3 + $0x1a3c] sm:$0xf0] }
 0x896   :  { %v10409_v25 = vpop.f32.mrf.mxu3  ;;  %12536 = vmatpush.bf16.msra.mxu2 %v17608_v49  ;;  %v17768_v58 = vor.u32 %v18902_v32, %v17767_v9  ;;  %v17719_v9 = vld [vmem:[#allocation3 + $0x1c18] sm:$0xf] }
 0x897   :  { %v17865_v25 = vld [vmem:[#allocation3 + $0x1d58] sm:$0xf0]  ;;  %v18888_v32 = vld [vmem:[#allocation3 + $0x1c54] sm:$0xf0] }
 0x898   :  { %v12078_v13 = vpop.f32.mrf.mxu0  ;;  %v12106_v4 = vpop.f32.mrf.mxu1  ;;  %13261 = vmatpush.bf16.msra.mxu1 %v17860_v60  ;;  %v17868_v52 = vor.u32 %v18912_v29, %v17865_v25  ;;  %v18890_v29 = vld [vmem:[#allocation3 + $0x1c64] sm:$0xf0] }
 0x899   :  { %v21539_v7 = vadd.f32 %v12078_v13, %v21457_v8  ;;  %v12992_v8 = vld [vmem:[#allocation2 + $0xe8] sm:$0xff] }
 0x89a   :  { %v21548_v57 = vpack.c.bf16 %v12992_v8, %v12992_v8  ;;  %v18904_v13 = vld [vmem:[#allocation3 + $0x1cd4] sm:$0xf0]  ;;  %v17889_v8 = vld [vmem:[#allocation3 + $0x1d70] sm:$0xf0] }
 0x89b   :  { %17389 = vmatmul.msk.bf16.vlgmr.msrb.gmra.mxu3 %vm1042_vm2, %v21220_v3  ;;  %17832 = vmatmul.msk.bf16.vlgmr.msra.gmra.mxu0 %vm1042_vm2, %v21466_v43 }
 0x89c   :  { %v11594_v10 = vpop.f32.mrf.mxu2  ;;  %11615 = vmatpush.bf16.msrb.mxu3 %v17360_v30  ;;  %13234 = vmatpush.bf16.msra.mxu0 %v17916_v38  ;;  %v17312_v30 = vor.u32 %v18795_v27, %v17311_v26  ;;  %v18931_v38 = vld [vmem:[#allocation3 + $0x1db4] sm:$0xf]  ;;  %v17735_v27 = vld [vmem:[#allocation3 + $0x1c28] sm:$0xf] }
 0x89e   :  { %v10672_v42 = vpop.f32.mrf.mxu3 }
 0x89f   :  { %v21546_v47 = vadd.f32 %v10672_v42, %v21464_v5  ;;  %v17704_v5 = vor.u32 %v18886_v56, %v17703_v21  ;;  %v17720_v42 = vor.u32 %v18888_v32, %v17719_v9  ;;  %v17892_v21 = vor.u32 %v18915_v48, %v17889_v8  ;;  %v18823_v48 = vld [vmem:[#allocation3 + $0x1a4c] sm:$0xf0]  ;;  %v18916_v8 = vld [vmem:[#allocation3 + $0x1d3c] sm:$0xf] }
 0x8a0   :  { %v12080_v24 = vpop.f32.mrf.mxu0  ;;  %v12369_v31 = vpop.f32.mrf.mxu1  ;;  %11616 = vmatpush.bf16.msrb.mxu3 %v17296_v12  ;;  %13235 = vmatpush.bf16.msra.mxu0 %v17852_v63  ;;  %v17956_v63 = vor.u32 %v18931_v38, %v17953_v0  ;;  %v18839_v38 = vld [vmem:[#allocation3 + $0x1acc] sm:$0xf0]  ;;  %v18932_v0 = vld [vmem:[#allocation3 + $0x1dbc] sm:$0xf] }
 0x8a1   :  { %v21551_v34 = vadd.f32 %v12369_v31, %v21469_v22  ;;  %17687 = vmatmul.msk.bf16.vlgmr.msrb.gmra.mxu2 %vm1042_vm2, %v21384_v37  ;;  %v18928_v22 = vld [vmem:[#allocation3 + $0x1d9c] sm:$0xf]  ;;  %v18837_v24 = vld [vmem:[#allocation3 + $0x1abc] sm:$0xf0]  ;;  %v17945_v31 = vld [vmem:[#allocation3 + $0x1de8] sm:$0xf0] }
 0x8a2   :  { %12800 = vmatpush.bf16.msrb.mxu2 %v17768_v58  ;;  %v17932_v60 = vor.u32 %v18928_v22, %v17929_v54  ;;  %v17471_v58 = vld [vmem:[#allocation3 + $0x1a80] sm:$0xf]  ;;  %v18914_v22 = vld [vmem:[#allocation3 + $0x1d2c] sm:$0xf] }
 0x8a3   :  { %17966 = vmatmul.msk.bf16.vlgmr.msrb.gmra.mxu1 %vm1042_vm2, %v21548_v57  ;;  %v17881_v54 = vld [vmem:[#allocation3 + $0x1d68] sm:$0xf0] }
 0x8a4   :  { %v11644_v15 = vpop.f32.mrf.mxu2  ;;  %13312 = vmatpush.bf16.msrb.mxu1 %v17940_v20 }
 0x8a5   :  { %v21558_v61 = vadd.f32 %v11644_v15, %v21476_v53  ;;  %v17783_v53 = vld [vmem:[#allocation3 + $0x1c98] sm:$0xf]  ;;  %v17407_v15 = vld [vmem:[#allocation3 + $0x1a00] sm:$0xf] }
 0x8a6   :  { %v10674_v33 = vpop.f32.mrf.mxu3  ;;  %12801 = vmatpush.bf16.msrb.mxu2 %v17704_v5  ;;  %v17784_v40 = vor.u32 %v18904_v13, %v17783_v53  ;;  %v17472_v5 = vor.u32 %v18837_v24, %v17471_v58 }
 0x8a7   :  { %v18906_v33 = vld [vmem:[#allocation3 + $0x1ce4] sm:$0xf0] }
 0x8a8   :  { %v12130_v51 = vpop.f32.mrf.mxu0  ;;  %v12371_v49 = vpop.f32.mrf.mxu1  ;;  %13313 = vmatpush.bf16.msrb.mxu1 %v17876_v46 }
 0x8a9   :  { %v21561_v35 = vadd.f32 %v12130_v51, %v21479_v36  ;;  %v17408_v49 = vor.u32 %v18821_v19, %v17407_v15  ;;  %v17503_v19 = vld [vmem:[#allocation3 + $0x1aa0] sm:$0xf] }
 0x8ab   :  { %17393 = vmatmul.msk.bf16.vlgmr.msra.gmra.mxu3 %vm1042_vm2, %v21220_v3  ;;  %17836 = vmatmul.msk.bf16.vlgmr.msrb.gmra.mxu0 %vm1042_vm2, %v21466_v43 }
 0x8ac   :  { %v11646_v4 = vpop.f32.mrf.mxu2  ;;  %11667 = vmatpush.bf16.msra.mxu3 %v17376_v6  ;;  %13286 = vmatpush.bf16.msrb.mxu0 %v17932_v60  ;;  %v17884_v6 = vor.u32 %v18914_v22, %v17881_v54  ;;  %v18841_v22 = vld [vmem:[#allocation3 + $0x1adc] sm:$0xf0] }
 0x8ad   :  { %v17736_v4 = vor.u32 %v18890_v29, %v17735_v27 }
 0x8ae   :  { %v10724_v36 = vpop.f32.mrf.mxu3 }
 0x8af   :  { %v21568_v2 = vadd.f32 %v10724_v36, %v21486_v62  ;;  %v17961_v36 = vld [vmem:[#allocation3 + $0x1df8] sm:$0xf0] }
 0x8b0   :  { %v12132_v10 = vpop.f32.mrf.mxu0  ;;  %v12421_v12 = vpop.f32.mrf.mxu1  ;;  %11668 = vmatpush.bf16.msra.mxu3 %v17312_v30  ;;  %13287 = vmatpush.bf16.msrb.mxu0 %v17868_v52 }
 0x8b1   :  { %v21571_v14 = vadd.f32 %v12421_v12, %v21489_v18  ;;  %17691 = vmatmul.msk.bf16.vlgmr.msra.gmra.mxu2 %vm1042_vm2, %v21384_v37  ;;  %v18930_v18 = vld [vmem:[#allocation3 + $0x1dac] sm:$0xf]  ;;  %v17423_v10 = vld [vmem:[#allocation3 + $0x1a10] sm:$0xf]  ;;  %v17964_v12 = vor.u32 %v18932_v0, %v17961_v36 }
 0x8b2   :  { %12852 = vmatpush.bf16.msra.mxu2 %v17784_v40  ;;  %v17948_v50 = vor.u32 %v18930_v18, %v17945_v31 }
 0x8b3   :  { %17970 = vmatmul.msk.bf16.vlgmr.msra.gmra.mxu1 %vm1042_vm2, %v21548_v57 }
 0x8b4   :  { %v11696_v62 = vpop.f32.mrf.mxu2  ;;  %13364 = vmatpush.bf16.msra.mxu1 %v17956_v63 }
 0x8b5   :  { %v21578_v56 = vadd.f32 %v11696_v62, %v21496_v39  ;;  %v17799_v39 = vld [vmem:[#allocation3 + $0x1ca8] sm:$0xf]  ;;  %v18908_v62 = vld [vmem:[#allocation3 + $0x1cf4] sm:$0xf0] }
 0x8b6   :  { %v10726_v20 = vpop.f32.mrf.mxu3  ;;  %12853 = vmatpush.bf16.msra.mxu2 %v17720_v42  ;;  %v17800_v60 = vor.u32 %v18906_v33, %v17799_v39  ;;  %v17897_v42 = vld [vmem:[#allocation3 + $0x1d78] sm:$0xf0] }
 0x8b7   :  { %v17900_v24 = vor.u32 %v18916_v8, %v17897_v42  ;;  %v17751_v20 = vld [vmem:[#allocation3 + $0x1c38] sm:$0xf]  ;;  %v18827_v8 = vld [vmem:[#allocation3 + $0x1a6c] sm:$0xf0] }
 0x8b8   :  { %v12395_v23 = vpop.f32.mrf.mxu0  ;;  %v12423_v44 = vpop.f32.mrf.mxu1  ;;  %13365 = vmatpush.bf16.msra.mxu1 %v17892_v21  ;;  %v17424_v21 = vor.u32 %v18823_v48, %v17423_v10  ;;  %v18936_v42 = vld [vmem:[#allocation3 + $0x1dd4] sm:$0xf0] }
 0x8b9   :  { %v21581_v46 = vadd.f32 %v12395_v23, %v21499_v45  ;;  %v18892_v23 = vld [vmem:[#allocation3 + $0x1c74] sm:$0xf0] }
 0x8ba   :  { %v17752_v15 = vor.u32 %v18892_v23, %v17751_v20 }
 0x8bb   :  { %17397 = vmatmul.msk.bf16.vlgmr.msrb.gmra.mxu3 %vm1042_vm2, %v21220_v3  ;;  %17968 = vmatmul.msk.bf16.vlgmr.msra.gmra.mxu0 %vm1042_vm2, %v21548_v57 }
 0x8bc   :  { %v11698_v51 = vpop.f32.mrf.mxu2  ;;  %11932 = vmatpush.bf16.msrb.mxu3 %v17472_v5  ;;  %13338 = vmatpush.bf16.msra.mxu0 %v17948_v50 }
 0x8be   :  { %v10776_v26 = vpop.f32.mrf.mxu3 }
 0x8bf   :  { %v21588_v45 = vadd.f32 %v10776_v26, %v21506_v59  ;;  %v17487_v59 = vld [vmem:[#allocation3 + $0x1a90] sm:$0xf]  ;;  %v18934_v26 = vld [vmem:[#allocation3 + $0x1dc4] sm:$0xf0] }
 0x8c0   :  { %v12397_v25 = vpop.f32.mrf.mxu0  ;;  %v12473_v53 = vpop.f32.mrf.mxu1  ;;  %11933 = vmatpush.bf16.msrb.mxu3 %v17408_v49  ;;  %13339 = vmatpush.bf16.msra.mxu0 %v17884_v6  ;;  %v17488_v32 = vor.u32 %v18839_v38, %v17487_v59  ;;  %v17439_v49 = vld [vmem:[#allocation3 + $0x1a20] sm:$0xf] }
 0x8c1   :  { %v21591_v13 = vadd.f32 %v12473_v53, %v21509_v41  ;;  %17823 = vmatmul.msk.bf16.vlgmr.msrb.gmra.mxu2 %vm1042_vm2, %v21466_v43  ;;  %v18825_v6 = vld [vmem:[#allocation3 + $0x1a5c] sm:$0xf0] }
 0x8c2   :  { %12904 = vmatpush.bf16.msrb.mxu2 %v17800_v60  ;;  %v17440_v27 = vor.u32 %v18825_v6, %v17439_v49  ;;  %v17943_v49 = vld [vmem:[#allocation3 + $0x1da8] sm:$0xf] }
 0x8c3   :  { %17974 = vmatmul.msk.bf16.vlgmr.msrb.gmra.mxu1 %vm1042_vm2, %v21548_v57  ;;  %v18938_v6 = vld [vmem:[#allocation3 + $0x1de4] sm:$0xf0] }
 0x8c4   :  { %v11961_v30 = vpop.f32.mrf.mxu2 }
 0x8c5   :  { %v21598_v52 = vadd.f32 %v11961_v30, %v21516_v17  ;;  %v17815_v17 = vld [vmem:[#allocation3 + $0x1cb8] sm:$0xf] }
 0x8c6   :  { %v10778_v40 = vpop.f32.mrf.mxu3  ;;  %12905 = vmatpush.bf16.msrb.mxu2 %v17736_v4  ;;  %v17816_v31 = vor.u32 %v18908_v62, %v17815_v17  ;;  %v18918_v4 = vld [vmem:[#allocation3 + $0x1d44] sm:$0xf0] }
 0x8c8   :  { %v12447_v41 = vpop.f32.mrf.mxu0  ;;  %v12475_v9 = vpop.f32.mrf.mxu1 }
 0x8c9   :  { %v21601_v63 = vadd.f32 %v12447_v41, %v21519_v28  ;;  %v17519_v41 = vld [vmem:[#allocation3 + $0x1ab0] sm:$0xf] }
 0x8cb   :  { %17401 = vmatmul.msk.bf16.vlgmr.msra.gmra.mxu3 %vm1042_vm2, %v21220_v3  ;;  %17972 = vmatmul.msk.bf16.vlgmr.msrb.gmra.mxu0 %vm1042_vm2, %v21548_v57 }
 0x8cc   :  { %v11963_v58 = vpop.f32.mrf.mxu2  ;;  %11984 = vmatpush.bf16.msra.mxu3 %v17488_v32  ;;  %13390 = vmatpush.bf16.msrb.mxu0 %v17964_v12 }
 0x8ce   :  { %v10828_v18 = vpop.f32.mrf.mxu3 }
 0x8cf   :  { %v21608_v28 = vadd.f32 %v10828_v18, %v21526_v16  ;;  %v18920_v18 = vld [vmem:[#allocation3 + $0x1d54] sm:$0xf0] }
 0x8d0   :  { %v12449_v44 = vpop.f32.mrf.mxu0  ;;  %v12525_v5 = vpop.f32.mrf.mxu1  ;;  %11985 = vmatpush.bf16.msra.mxu3 %v17424_v21  ;;  %13391 = vmatpush.bf16.msrb.mxu0 %v17900_v24 }
 0x8d1   :  { %v21611_v3 = vadd.f32 %v12525_v5, %v21529_v11  ;;  %17827 = vmatmul.msk.bf16.vlgmr.msra.gmra.mxu2 %vm1042_vm2, %v21466_v43  ;;  %v17504_v11 = vor.u32 %v18841_v22, %v17503_v19 }
 0x8d2   :  { %12956 = vmatpush.bf16.msra.mxu2 %v17816_v31 }
 0x8d3   :  { %17978 = vmatmul.msk.bf16.vlgmr.msra.gmra.mxu1 %vm1042_vm2, %v21548_v57 }
 0x8d4   :  { %v12013_v50 = vpop.f32.mrf.mxu2 }
 0x8d5   :  { %v21618_v16 = vadd.f32 %v12013_v50, %v21536_v1  ;;  %v17911_v1 = vld [vmem:[#allocation3 + $0x1d88] sm:$0xf]  ;;  %v17615_v50 = vld [vmem:[#allocation3 + $0x1b80] sm:$0xf] }
 0x8d6   :  { %v10830_v54 = vpop.f32.mrf.mxu3  ;;  %12957 = vmatpush.bf16.msra.mxu2 %v17752_v15  ;;  %v17912_v25 = vor.u32 %v18934_v26, %v17911_v1 }
 0x8d8   :  { %v12499_v39 = vpop.f32.mrf.mxu0  ;;  %v12527_v33 = vpop.f32.mrf.mxu1 }
 0x8d9   :  { %v21621_v51 = vadd.f32 %v12499_v39, %v21539_v7  ;;  %v17847_v7 = vld [vmem:[#allocation3 + $0x1d08] sm:$0xf] }
 0x8da   :  { %v17848_v0 = vor.u32 %v18918_v4, %v17847_v7 }
 0x8db   :  { %17533 = vmatmul.msk.bf16.vlgmr.msrb.gmra.mxu3 %vm1042_vm2, %v21302_v55  ;;  %17976 = vmatmul.msk.bf16.vlgmr.msra.gmra.mxu0 %vm1042_vm2, %v21548_v57 }
 0x8dc   :  { %v12015_v60 = vpop.f32.mrf.mxu2  ;;  %12036 = vmatpush.bf16.msrb.mxu3 %v17504_v11  ;;  %v18853_v11 = vld [vmem:[#allocation3 + $0x1b3c] sm:$0xf0] }
 0x8dd   :  { %v17944_v60 = vor.u32 %v18938_v6, %v17943_v49 }
 0x8de   :  { %v11093_v29 = vpop.f32.mrf.mxu3 }
 0x8df   :  { %v21628_v53 = vadd.f32 %v11093_v29, %v21546_v47  ;;  %v18843_v47 = vld [vmem:[#allocation3 + $0x1aec] sm:$0xf0]  ;;  %v17879_v29 = vld [vmem:[#allocation3 + $0x1d28] sm:$0xf] }
 0x8e0   :  { %v12501_v30 = vpop.f32.mrf.mxu0  ;;  %v12790_v59 = vpop.f32.mrf.mxu1  ;;  %12037 = vmatpush.bf16.msrb.mxu3 %v17440_v27  ;;  %v17520_v12 = vor.u32 %v18843_v47, %v17519_v41 }
 0x8e1   :  { %v21631_v38 = vadd.f32 %v12790_v59, %v21551_v34  ;;  %17831 = vmatmul.msk.bf16.vlgmr.msrb.gmra.mxu2 %vm1042_vm2, %v21466_v43  ;;  %v17455_v34 = vld [vmem:[#allocation3 + $0x1a30] sm:$0xf] }
 0x8e2   :  { %13221 = vmatpush.bf16.msrb.mxu2 %v17912_v25  ;;  %v17456_v62 = vor.u32 %v18827_v8, %v17455_v34  ;;  %v18922_v25 = vld [vmem:[#allocation3 + $0x1d64] sm:$0xf0]  ;;  %v17959_v34 = vld [vmem:[#allocation3 + $0x1db8] sm:$0xf] }
 0x8e3   :  { %v17880_v30 = vor.u32 %v18922_v25, %v17879_v29  ;;  %v18940_v8 = vld [vmem:[#allocation3 + $0x1df4] sm:$0xf0] }
 0x8e4   :  { %v12065_v36 = vpop.f32.mrf.mxu2 }
 0x8e5   :  { %v21636_v40 = vadd.f32 %v12065_v36, %v21558_v61  ;;  %v17927_v61 = vld [vmem:[#allocation3 + $0x1d98] sm:$0xf]  ;;  %v17631_v36 = vld [vmem:[#allocation3 + $0x1b90] sm:$0xf] }
 0x8e6   :  { %v11095_v9 = vpop.f32.mrf.mxu3  ;;  %13222 = vmatpush.bf16.msrb.mxu2 %v17848_v0  ;;  %v17928_v21 = vor.u32 %v18936_v42, %v17927_v61 }
 0x8e8   :  { %v12551_v32 = vpop.f32.mrf.mxu0  ;;  %v12792_v10 = vpop.f32.mrf.mxu1 }
 0x8e9   :  { %v21639_v48 = vadd.f32 %v12551_v32, %v21561_v35  ;;  %v17863_v35 = vld [vmem:[#allocation3 + $0x1d18] sm:$0xf] }
 0x8ea   :  { %v17864_v44 = vor.u32 %v18920_v18, %v17863_v35 }
 0x8eb   :  { %17537 = vmatmul.msk.bf16.vlgmr.msra.gmra.mxu3 %vm1042_vm2, %v21302_v55  ;;  %17980 = vmatmul.msk.bf16.vlgmr.msrb.gmra.mxu0 %vm1042_vm2, %v21548_v57 }
 0x8ec   :  { %v12067_v17 = vpop.f32.mrf.mxu2  ;;  %12088 = vmatpush.bf16.msra.mxu3 %v17520_v12  ;;  %v18855_v12 = vld [vmem:[#allocation3 + $0x1b4c] sm:$0xf0] }
 0x8ed   :  { %v17960_v17 = vor.u32 %v18940_v8, %v17959_v34 }
 0x8ee   :  { %v11145_v58 = vpop.f32.mrf.mxu3 }
 0x8ef   :  { %v21646_v24 = vadd.f32 %v11145_v58, %v21568_v2  ;;  %v18869_v2 = vld [vmem:[#allocation3 + $0x1bbc] sm:$0xf0]  ;;  %v17895_v58 = vld [vmem:[#allocation3 + $0x1d38] sm:$0xf] }
 0x8f0   :  { %v12553_v31 = vpop.f32.mrf.mxu0  ;;  %v12842_v20 = vpop.f32.mrf.mxu1  ;;  %12089 = vmatpush.bf16.msra.mxu3 %v17456_v62  ;;  %v17616_v39 = vor.u32 %v18869_v2, %v17615_v50 }
 0x8f1   :  { %v21649_v23 = vadd.f32 %v12842_v20, %v21571_v14  ;;  %17835 = vmatmul.msk.bf16.vlgmr.msra.gmra.mxu2 %vm1042_vm2, %v21466_v43  ;;  %v17551_v14 = vld [vmem:[#allocation3 + $0x1b00] sm:$0xf] }
 0x8f2   :  { %13273 = vmatpush.bf16.msra.mxu2 %v17928_v21  ;;  %v18924_v21 = vld [vmem:[#allocation3 + $0x1d74] sm:$0xf0] }
 0x8f4   :  { %v12117_v5 = vpop.f32.mrf.mxu2 }
 0x8f5   :  { %v21654_v15 = vadd.f32 %v12117_v5, %v21578_v56  ;;  %v17552_v56 = vor.u32 %v18853_v11, %v17551_v14 }
 0x8f6   :  { %v11147_v19 = vpop.f32.mrf.mxu3  ;;  %13274 = vmatpush.bf16.msra.mxu2 %v17864_v44  ;;  %v17647_v44 = vld [vmem:[#allocation3 + $0x1ba0] sm:$0xf] }
 0x8f8   :  { %v12816_v22 = vpop.f32.mrf.mxu0  ;;  %v12844_v54 = vpop.f32.mrf.mxu1 }
 0x8f9   :  { %v21657_v33 = vadd.f32 %v12816_v22, %v21581_v46  ;;  %v18857_v54 = vld [vmem:[#allocation3 + $0x1b5c] sm:$0xf0] }
 0x8fb   :  { %17541 = vmatmul.msk.bf16.vlgmr.msrb.gmra.mxu3 %vm1042_vm2, %v21302_v55 }
 0x8fc   :  { %v12119_v1 = vpop.f32.mrf.mxu2  ;;  %12353 = vmatpush.bf16.msrb.mxu3 %v17616_v39 }
 0x8fe   :  { %v11197_v26 = vpop.f32.mrf.mxu3 }
 0x8ff   :  { %v21662_v27 = vadd.f32 %v11197_v26, %v21588_v45  ;;  %v18871_v45 = vld [vmem:[#allocation3 + $0x1bcc] sm:$0xf0] }
 0x900   :  { %v12818_v7 = vpop.f32.mrf.mxu0  ;;  %v12894_v46 = vpop.f32.mrf.mxu1  ;;  %12354 = vmatpush.bf16.msrb.mxu3 %v17552_v56  ;;  %v17632_v32 = vor.u32 %v18871_v45, %v17631_v36  ;;  %v17663_v26 = vld [vmem:[#allocation3 + $0x1bb0] sm:$0xf] }
 0x901   :  { %v21665_v4 = vadd.f32 %v12894_v46, %v21591_v13  ;;  %17967 = vmatmul.msk.bf16.vlgmr.msrb.gmra.mxu2 %vm1042_vm2, %v21548_v57  ;;  %v17567_v13 = vld [vmem:[#allocation3 + $0x1b10] sm:$0xf] }
 0x902   :  { %13325 = vmatpush.bf16.msrb.mxu2 %v17944_v60  ;;  %v18875_v60 = vld [vmem:[#allocation3 + $0x1bec] sm:$0xf0] }
 0x904   :  { %v12382_v59 = vpop.f32.mrf.mxu2 }
 0x905   :  { %v21670_v0 = vadd.f32 %v12382_v59, %v21598_v52  ;;  %v17568_v52 = vor.u32 %v18855_v12, %v17567_v13  ;;  %v18859_v59 = vld [vmem:[#allocation3 + $0x1b6c] sm:$0xf0]  ;;  %v17759_v13 = vld [vmem:[#allocation3 + $0x1c80] sm:$0xf] }
 0x906   :  { %v11199_v41 = vpop.f32.mrf.mxu3  ;;  %13326 = vmatpush.bf16.msrb.mxu2 %v17880_v30  ;;  %v17599_v30 = vld [vmem:[#allocation3 + $0x1b30] sm:$0xf]  ;;  %v18901_v12 = vld [vmem:[#allocation3 + $0x1cbc] sm:$0xf0] }
 0x907   :  { %v17600_v36 = vor.u32 %v18859_v59, %v17599_v30  ;;  %v18889_v30 = vld [vmem:[#allocation3 + $0x1c5c] sm:$0xf0] }
 0x908   :  { %v12868_v47 = vpop.f32.mrf.mxu0  ;;  %v12896_v9 = vpop.f32.mrf.mxu1 }
 0x909   :  { %v21673_v10 = vadd.f32 %v12868_v47, %v21601_v63 }
 0x90b   :  { %17545 = vmatmul.msk.bf16.vlgmr.msra.gmra.mxu3 %vm1042_vm2, %v21302_v55  ;;  %v17896_v55 = vor.u32 %v18924_v21, %v17895_v58 }
 0x90c   :  { %v12384_v61 = vpop.f32.mrf.mxu2  ;;  %12405 = vmatpush.bf16.msra.mxu3 %v17632_v32 }
 0x90e   :  { %v11249_v42 = vpop.f32.mrf.mxu3 }
 0x90f   :  { %v21678_v62 = vadd.f32 %v11249_v42, %v21608_v28  ;;  %v18873_v28 = vld [vmem:[#allocation3 + $0x1bdc] sm:$0xf0] }
 0x910   :  { %v12870_v35 = vpop.f32.mrf.mxu0  ;;  %v12946_v63 = vpop.f32.mrf.mxu1  ;;  %12406 = vmatpush.bf16.msra.mxu3 %v17568_v52  ;;  %v17648_v19 = vor.u32 %v18873_v28, %v17647_v44  ;;  %v17695_v42 = vld [vmem:[#allocation3 + $0x1c00] sm:$0xf]  ;;  %v17775_v44 = vld [vmem:[#allocation3 + $0x1c90] sm:$0xf] }
 0x911   :  { %v21681_v18 = vadd.f32 %v12946_v63, %v21611_v3  ;;  %17971 = vmatmul.msk.bf16.vlgmr.msra.gmra.mxu2 %vm1042_vm2, %v21548_v57  ;;  %v17583_v3 = vld [vmem:[#allocation3 + $0x1b20] sm:$0xf]  ;;  %v18903_v28 = vld [vmem:[#allocation3 + $0x1ccc] sm:$0xf0] }
 0x912   :  { %13377 = vmatpush.bf16.msra.mxu2 %v17960_v17  ;;  %v17584_v14 = vor.u32 %v18857_v54, %v17583_v3  ;;  %v18885_v17 = vld [vmem:[#allocation3 + $0x1c3c] sm:$0xf0]  ;;  %v18887_v54 = vld [vmem:[#allocation3 + $0x1c4c] sm:$0xf0] }
 0x913   :  { %v17696_v58 = vor.u32 %v18885_v17, %v17695_v42 }
 0x914   :  { %v12434_v31 = vpop.f32.mrf.mxu2 }
 0x915   :  { %v21686_v20 = vadd.f32 %v12434_v31, %v21618_v16 }
 0x916   :  { %v11251_v5 = vpop.f32.mrf.mxu3  ;;  %13378 = vmatpush.bf16.msra.mxu2 %v17896_v55 }
 0x918   :  { %v12920_v50 = vpop.f32.mrf.mxu0  ;;  %v12948_v2 = vpop.f32.mrf.mxu1 }
 0x919   :  { %v21689_v22 = vadd.f32 %v12920_v50, %v21621_v51 }
 0x91b   :  { %17677 = vmatmul.msk.bf16.vlgmr.msrb.gmra.mxu3 %vm1042_vm2, %v21384_v37 }
 0x91c   :  { %v12436_v39 = vpop.f32.mrf.mxu2  ;;  %12457 = vmatpush.bf16.msrb.mxu3 %v17648_v19  ;;  %v17776_v19 = vor.u32 %v18903_v28, %v17775_v44  ;;  %v18917_v44 = vld [vmem:[#allocation3 + $0x1d3c] sm:$0xf0] }
 0x91e   :  { %v11514_v16 = vpop.f32.mrf.mxu3 }
 0x91f   :  { %v21694_v11 = vadd.f32 %v11514_v16, %v21628_v53  ;;  %v17664_v53 = vor.u32 %v18875_v60, %v17663_v26  ;;  %v17791_v26 = vld [vmem:[#allocation3 + $0x1ca0] sm:$0xf] }
 0x920   :  { %v12922_v49 = vpop.f32.mrf.mxu0  ;;  %v13211_v6 = vpop.f32.mrf.mxu1  ;;  %12458 = vmatpush.bf16.msrb.mxu3 %v17584_v14  ;;  %v18905_v60 = vld [vmem:[#allocation3 + $0x1cdc] sm:$0xf0] }
 0x921   :  { %v21697_v1 = vadd.f32 %v13211_v6, %v21631_v38  ;;  %17975 = vmatmul.msk.bf16.vlgmr.msrb.gmra.mxu2 %vm1042_vm2, %v21548_v57 }
 0x924   :  { %v12486_v51 = vpop.f32.mrf.mxu2 }
 0x925   :  { %v21702_v56 = vadd.f32 %v12486_v51, %v21636_v40 }
 0x926   :  { %v11516_v29 = vpop.f32.mrf.mxu3 }
 0x928   :  { %v12972_v25 = vpop.f32.mrf.mxu0  ;;  %v13213_v7 = vpop.f32.mrf.mxu1 }
 0x929   :  { %v21705_v46 = vadd.f32 %v12972_v25, %v21639_v48  ;;  %v17792_v7 = vor.u32 %v18905_v60, %v17791_v26  ;;  %v17935_v60 = vld [vmem:[#allocation3 + $0x1da0] sm:$0xf] }
 0x92b   :  { %17681 = vmatmul.msk.bf16.vlgmr.msra.gmra.mxu3 %vm1042_vm2, %v21384_v37 }
 0x92c   :  { %v12488_v38 = vpop.f32.mrf.mxu2  ;;  %12509 = vmatpush.bf16.msra.mxu3 %v17664_v53 }
 0x92e   :  { %v11566_v45 = vpop.f32.mrf.mxu3 }
 0x92f   :  { %v21710_v40 = vadd.f32 %v11566_v45, %v21646_v24  ;;  %v17760_v24 = vor.u32 %v18901_v12, %v17759_v13 }
 0x930   :  { %v12974_v41 = vpop.f32.mrf.mxu0  ;;  %v13263_v47 = vpop.f32.mrf.mxu1  ;;  %12510 = vmatpush.bf16.msra.mxu3 %v17600_v36 }
 0x931   :  { %v21713_v9 = vadd.f32 %v13263_v47, %v21649_v23  ;;  %17979 = vmatmul.msk.bf16.vlgmr.msra.gmra.mxu2 %vm1042_vm2, %v21548_v57  ;;  %v18907_v47 = vld [vmem:[#allocation3 + $0x1cec] sm:$0xf0] }
 0x934   :  { %v12538_v48 = vpop.f32.mrf.mxu2 }
 0x935   :  { %v21718_v32 = vadd.f32 %v12538_v48, %v21654_v15 }
 0x936   :  { %v11568_v34 = vpop.f32.mrf.mxu3 }
 0x938   :  { %v13237_v8 = vpop.f32.mrf.mxu0  ;;  %v13265_v61 = vpop.f32.mrf.mxu1 }
 0x939   :  { %v21721_v52 = vadd.f32 %v13237_v8, %v21657_v33  ;;  %v17743_v8 = vld [vmem:[#allocation3 + $0x1c30] sm:$0xf] }
 0x93a   :  { %v18891_v61 = vld [vmem:[#allocation3 + $0x1c6c] sm:$0xf0] }
 0x93b   :  { %17685 = vmatmul.msk.bf16.vlgmr.msrb.gmra.mxu3 %vm1042_vm2, %v21384_v37 }
 0x93c   :  { %v12540_v23 = vpop.f32.mrf.mxu2  ;;  %12774 = vmatpush.bf16.msrb.mxu3 %v17760_v24  ;;  %v17744_v24 = vor.u32 %v18891_v61, %v17743_v8 }
 0x93e   :  { %v11618_v21 = vpop.f32.mrf.mxu3 }
 0x93f   :  { %v21726_v15 = vadd.f32 %v11618_v21, %v21662_v27  ;;  %v17711_v27 = vld [vmem:[#allocation3 + $0x1c10] sm:$0xf]  ;;  %v17903_v21 = vld [vmem:[#allocation3 + $0x1d80] sm:$0xf] }
 0x940   :  { %v13239_v35 = vpop.f32.mrf.mxu0  ;;  %v13315_v63 = vpop.f32.mrf.mxu1  ;;  %12775 = vmatpush.bf16.msrb.mxu3 %v17696_v58  ;;  %v17712_v39 = vor.u32 %v18887_v54, %v17711_v27  ;;  %v18935_v27 = vld [vmem:[#allocation3 + $0x1dcc] sm:$0xf0] }
 0x941   :  { %v21729_v55 = vadd.f32 %v13315_v63, %v21665_v4  ;;  %v18933_v35 = vld [vmem:[#allocation3 + $0x1dbc] sm:$0xf0] }
 0x942   :  { %v17904_v63 = vor.u32 %v18933_v35, %v17903_v21 }
 0x944   :  { %v12803_v33 = vpop.f32.mrf.mxu2 }
 0x945   :  { %v21732_v31 = vadd.f32 %v12803_v33, %v21670_v0  ;;  %v17839_v33 = vld [vmem:[#allocation3 + $0x1d00] sm:$0xf] }
 0x946   :  { %v11620_v5 = vpop.f32.mrf.mxu3 }
 0x947   :  { %v17840_v5 = vor.u32 %v18917_v44, %v17839_v33 }
 0x948   :  { %v13289_v50 = vpop.f32.mrf.mxu0  ;;  %v13317_v2 = vpop.f32.mrf.mxu1 }
 0x949   :  { %v21735_v3 = vadd.f32 %v13289_v50, %v21673_v10 }
 0x94b   :  { %17689 = vmatmul.msk.bf16.vlgmr.msra.gmra.mxu3 %vm1042_vm2, %v21384_v37 }
 0x94c   :  { %v12805_v4 = vpop.f32.mrf.mxu2  ;;  %12826 = vmatpush.bf16.msra.mxu3 %v17776_v19 }
 0x94e   :  { %v11670_v14 = vpop.f32.mrf.mxu3 }
 0x94f   :  { %v21740_v0 = vadd.f32 %v11670_v14, %v21678_v62  ;;  %v17727_v62 = vld [vmem:[#allocation3 + $0x1c20] sm:$0xf]  ;;  %v18919_v14 = vld [vmem:[#allocation3 + $0x1d4c] sm:$0xf0] }
 0x950   :  { %v13291_v16 = vpop.f32.mrf.mxu0  ;;  %v13367_v49 = vpop.f32.mrf.mxu1  ;;  %12827 = vmatpush.bf16.msra.mxu3 %v17712_v39  ;;  %v17728_v59 = vor.u32 %v18889_v30, %v17727_v62  ;;  %v17855_v39 = vld [vmem:[#allocation3 + $0x1d10] sm:$0xf]  ;;  %v18921_v62 = vld [vmem:[#allocation3 + $0x1d5c] sm:$0xf0] }
 0x951   :  { %v21743_v6 = vadd.f32 %v13367_v49, %v21681_v18  ;;  %v17856_v49 = vor.u32 %v18919_v14, %v17855_v39  ;;  %v13422_v39 = vld [vmem:[#allocation5 + $0x1] ss:$8 sm:$0xf0] }
 0x954   :  { %v12855_v10 = vpop.f32.mrf.mxu2 }
 0x955   :  { %v21746_v51 = vadd.f32 %v12855_v10, %v21686_v20 }
 0x956   :  { %v11672_v37 = vpop.f32.mrf.mxu3 }
 0x957   :  { %v18937_v37 = vld [vmem:[#allocation3 + $0x1ddc] sm:$0xf0] }
 0x958   :  { %v13341_v29 = vpop.f32.mrf.mxu0  ;;  %v13369_v25 = vpop.f32.mrf.mxu1 }
 0x959   :  { %v21749_v53 = vadd.f32 %v13341_v29, %v21689_v22  ;;  %v17807_v22 = vld [vmem:[#allocation3 + $0x1cb0] sm:$0xf]  ;;  %v17936_v25 = vor.u32 %v18937_v37, %v17935_v60 }
 0x95a   :  { %v17808_v12 = vor.u32 %v18907_v47, %v17807_v22  ;;  %v17887_v47 = vld [vmem:[#allocation3 + $0x1d30] sm:$0xf] }
 0x95b   :  { %17821 = vmatmul.msk.bf16.vlgmr.msrb.gmra.mxu3 %vm1042_vm2, %v21466_v43 }
 0x95c   :  { %v12857_v18 = vpop.f32.mrf.mxu2  ;;  %12878 = vmatpush.bf16.msrb.mxu3 %v17792_v7  ;;  %v17871_v7 = vld [vmem:[#allocation3 + $0x1d20] sm:$0xf] }
 0x95d   :  { %v17872_v30 = vor.u32 %v18921_v62, %v17871_v7 }
 0x95e   :  { %v11935_v38 = vpop.f32.mrf.mxu3 }
 0x95f   :  { %v21754_v20 = vadd.f32 %v11935_v38, %v21694_v11  ;;  %v17951_v38 = vld [vmem:[#allocation3 + $0x1db0] sm:$0xf] }
 0x960   :  { %v13343_v36 = vpop.f32.mrf.mxu0  ;;  %12879 = vmatpush.bf16.msrb.mxu3 %v17728_v59 }
 0x961   :  { %v18939_v36 = vld [vmem:[#allocation3 + $0x1dec] sm:$0xf0] }
 0x962   :  { %v17952_v22 = vor.u32 %v18939_v36, %v17951_v38 }
 0x964   :  { %v12907_v45 = vpop.f32.mrf.mxu2 }
 0x965   :  { %v21757_v41 = vadd.f32 %v12907_v45, %v21702_v56 }
 0x966   :  { %v11937_v48 = vpop.f32.mrf.mxu3 }
 0x967   :  { %v18923_v48 = vld [vmem:[#allocation3 + $0x1d6c] sm:$0xf0] }
 0x968   :  { %v13393_v13 = vpop.f32.mrf.mxu0 }
 0x969   :  { %v21760_v34 = vadd.f32 %v13393_v13, %v21705_v46 }
 0x96b   :  { %17825 = vmatmul.msk.bf16.vlgmr.msra.gmra.mxu3 %vm1042_vm2, %v21466_v43 }
 0x96c   :  { %v12909_v11 = vpop.f32.mrf.mxu2  ;;  %12930 = vmatpush.bf16.msra.mxu3 %v17808_v12  ;;  %v17888_v12 = vor.u32 %v18923_v48, %v17887_v47 }
 0x96e   :  { %v11987_v42 = vpop.f32.mrf.mxu3 }
 0x96f   :  { %v12138_v56 = vadd.f32 %v11987_v42, %v21710_v40 }
 0x970   :  { %v13395_v17 = vpop.f32.mrf.mxu0  ;;  %12931 = vmatpush.bf16.msra.mxu3 %v17744_v24 }
 0x974   :  { %v12959_v23 = vpop.f32.mrf.mxu2 }
 0x975   :  { %v12990_v58 = vadd.f32 %v12959_v23, %v21718_v32  ;;  %v17919_v32 = vld [vmem:[#allocation3 + $0x1d90] sm:$0xf] }
 0x976   :  { %v11989_v46 = vpop.f32.mrf.mxu3  ;;  %v17920_v4 = vor.u32 %v18935_v27, %v17919_v32  ;;  %v13414_v27 = vld [vmem:[#allocation5] ss:$8 sm:$0xf0] }
 0x97b   :  { %17829 = vmatmul.msk.bf16.vlgmr.msrb.gmra.mxu3 %vm1042_vm2, %v21466_v43 }
 0x97c   :  { %v12961_v28 = vpop.f32.mrf.mxu2  ;;  %13195 = vmatpush.bf16.msrb.mxu3 %v17904_v63 }
 0x97e   :  { %v12039_v50 = vpop.f32.mrf.mxu3 }
 0x97f   :  { %v12142_v40 = vadd.f32 %v12039_v50, %v21726_v15 }
 0x980   :  { %13196 = vmatpush.bf16.msrb.mxu3 %v17840_v5 }
 0x984   :  { %v13224_v2 = vpop.f32.mrf.mxu2 }
 0x985   :  { %v21770_v19 = vadd.f32 %v13224_v2, %v21732_v31 }
 0x986   :  { %v12041_v54 = vpop.f32.mrf.mxu3 }
 0x98b   :  { %17833 = vmatmul.msk.bf16.vlgmr.msra.gmra.mxu3 %vm1042_vm2, %v21466_v43 }
 0x98c   :  { %v13226_v16 = vpop.f32.mrf.mxu2  ;;  %13247 = vmatpush.bf16.msra.mxu3 %v17920_v4  ;;  %v13421_v4 = vld [vmem:[#allocation5 + $0x1] ss:$8 sm:$0xf] }
 0x98e   :  { %v12091_v10 = vpop.f32.mrf.mxu3 }
 0x98f   :  { %v12146_v15 = vadd.f32 %v12091_v10, %v21740_v0 }
 0x990   :  { %13248 = vmatpush.bf16.msra.mxu3 %v17856_v49  ;;  %v13423_v49 = vor.u32 %v13422_v39, %v13421_v4 }
 0x994   :  { %v13276_v26 = vpop.f32.mrf.mxu2 }
 0x995   :  { %v21776_v31 = vadd.f32 %v13276_v26, %v21746_v51 }
 0x996   :  { %v12093_v29 = vpop.f32.mrf.mxu3 }
 0x99b   :  { %17965 = vmatmul.msk.bf16.vlgmr.msrb.gmra.mxu3 %vm1042_vm2, %v21548_v57 }
 0x99c   :  { %v13278_v43 = vpop.f32.mrf.mxu2  ;;  %13299 = vmatpush.bf16.msrb.mxu3 %v17936_v25  ;;  %v13498_v25 = vperm.slane %v13423_v49, 1 }
 0x99e   :  { %v12356_v18 = vpop.f32.mrf.mxu3 }
 0x99f   :  { %v12555_v0 = vadd.f32 %v12356_v18, %v21754_v20 }
 0x9a0   :  { %13300 = vmatpush.bf16.msrb.mxu3 %v17872_v30  ;;  %v13497_v30 = vperm.slane %v13423_v49, 0 }
 0x9a4   :  { %v13328_v59 = vpop.f32.mrf.mxu2 }
 0x9a5   :  { %v21782_v51 = vadd.f32 %v13328_v59, %v21757_v41 }
 0x9a6   :  { %v12358_v45 = vpop.f32.mrf.mxu3 }
 0x9a7   :  { %v13500_v45 = vperm.slane %v13423_v49, 3 }
 0x9ab   :  { %17969 = vmatmul.msk.bf16.vlgmr.msra.gmra.mxu3 %vm1042_vm2, %v21548_v57 }
 0x9ac   :  { %v13330_v13 = vpop.f32.mrf.mxu2  ;;  %13351 = vmatpush.bf16.msra.mxu3 %v17952_v22 }
 0x9ae   :  { %v12408_v8 = vpop.f32.mrf.mxu3 }
 0x9af   :  { %v12559_v61 = vadd.f32 %v12408_v8, %v12138_v56 }
 0x9b0   :  { %13352 = vmatpush.bf16.msra.mxu3 %v17888_v12 }
 0x9b4   :  { %v13380_v20 = vpop.f32.mrf.mxu2 }
 0x9b5   :  { %v21786_v11 = vadd.f32 %v13380_v20, %v12990_v58 }
 0x9b6   :  { %v12410_v41 = vpop.f32.mrf.mxu3 }
 0x9bb   :  { %17973 = vmatmul.msk.bf16.vlgmr.msrb.gmra.mxu3 %vm1042_vm2, %v21548_v57 }
 0x9bc   :  { %v13382_v24 = vpop.f32.mrf.mxu2 }
 0x9be   :  { %v12460_v42 = vpop.f32.mrf.mxu3 }
 0x9bf   :  { %v12563_v17 = vadd.f32 %v12460_v42, %v12142_v40  ;;  %v13413_v40 = vld [vmem:[#allocation5] ss:$8 sm:$0xf] }
 0x9c0   :  { %v13415_v54 = vor.u32 %v13414_v27, %v13413_v40 }
 0x9c2   :  { %v13432_v14 = vperm.slane %v13415_v54, 1  ;;  %v13433_v16 = vperm.slane %v13415_v54, 2  ;;  %v13431_v26 = vperm.slane %v13415_v54, 0  ;;  %v13435_v20 = vperm.slane %v13415_v54, 4 }
 0x9c3   :  { %v13438_v24 = vperm.slane %v13415_v54, 7 }
 0x9c4   :  { %v13464_v10 = vadd.f32 %v13432_v14, %v21697_v1  ;;  %v13465_v37 = vadd.f32 %v13433_v16, %v21770_v19  ;;  %v13436_v19 = vperm.slane %v13415_v54, 5 }
 0x9c6   :  { %v12462_v23 = vpop.f32.mrf.mxu3  ;;  %v13480_v7 = vmax.f32 %v13464_v10, 0.0  ;;  %v13481_v18 = vmax.f32 %v13465_v37, 0.0 }
 0x9c8   :  { %v13530_v38 = vmul.f32 %v13498_v25, %v13480_v7 }
 0x9cb   :  { %17977 = vmatmul.msk.bf16.vlgmr.msra.gmra.mxu3 %vm1042_vm2, %v21548_v57 }
 0x9ce   :  { %v12512_v21 = vpop.f32.mrf.mxu3 }
 0x9cf   :  { %v21792_v35 = vadd.f32 %v12512_v21, %v12146_v15  ;;  %v13434_v15 = vperm.slane %v13415_v54, 3  ;;  %v13501_v21 = vperm.slane %v13423_v49, 4 }
 0x9d1   :  { %v13466_v62 = vadd.f32 %v13434_v15, %v21721_v52  ;;  %v13468_v52 = vadd.f32 %v13436_v19, %v21713_v9  ;;  %v13425_v15 = vld [vmem:[#allocation5 + $0x41] ss:$8 sm:$0xf] }
 0x9d3   :  { %v13482_v36 = vmax.f32 %v13466_v62, 0.0 }
 0x9d5   :  { %v13532_v13 = vmul.f32 %v13500_v45, %v13482_v36 }
 0x9d6   :  { %v12514_v46 = vpop.f32.mrf.mxu3 }
 0x9d7   :  { %v13417_v46 = vld [vmem:[#allocation5 + $0x40] ss:$8 sm:$0xf] }
 0x9de   :  { %v12777_v56 = vpop.f32.mrf.mxu3 }
 0x9df   :  { %v12976_v63 = vadd.f32 %v12777_v56, %v12555_v0  ;;  %v13499_v0 = vperm.slane %v13423_v49, 2  ;;  %v13484_v56 = vmax.f32 %v13468_v52, 0.0 }
 0x9e1   :  { %v13531_v47 = vmul.f32 %v13499_v0, %v13481_v18 }
 0x9e6   :  { %v12779_v33 = vpop.f32.mrf.mxu3 }
 0x9e7   :  { %v13418_v33 = vld [vmem:[#allocation5 + $0x40] ss:$8 sm:$0xf0] }
 0x9e8   :  { %v13419_v27 = vor.u32 %v13418_v33, %v13417_v46 }
 0x9ea   :  { %v13440_v14 = vperm.slane %v13419_v27, 1  ;;  %v13439_v37 = vperm.slane %v13419_v27, 0  ;;  %v13442_v62 = vperm.slane %v13419_v27, 3  ;;  %v13443_v52 = vperm.slane %v13419_v27, 4 }
 0x9ec   :  { %v13472_v7 = vadd.f32 %v13440_v14, %v21729_v55 }
 0x9ee   :  { %v12829_v58 = vpop.f32.mrf.mxu3  ;;  %v13488_v0 = vmax.f32 %v13472_v7, 0.0 }
 0x9ef   :  { %v12980_v44 = vadd.f32 %v12829_v58, %v12559_v61  ;;  %v13437_v61 = vperm.slane %v13415_v54, 6  ;;  %v13470_v58 = vadd.f32 %v13438_v24, %v21735_v3  ;;  %v13504_v54 = vperm.slane %v13423_v49, 7 }
 0x9f1   :  { %v13486_v9 = vmax.f32 %v13470_v58, 0.0 }
 0x9f3   :  { %v13536_v16 = vmul.f32 %v13504_v54, %v13486_v9 }
 0x9f6   :  { %v12831_v28 = vpop.f32.mrf.mxu3 }
 0x9fe   :  { %v12881_v5 = vpop.f32.mrf.mxu3 }
 0x9ff   :  { %v21794_v50 = vadd.f32 %v12881_v5, %v12563_v17  ;;  %v13469_v17 = vadd.f32 %v13437_v61, %v21776_v31 }
 0xa01   :  { %v13485_v5 = vmax.f32 %v13469_v17, 0.0  ;;  %v13446_v17 = vperm.slane %v13419_v27, 7 }
 0xa03   :  { %v13478_v58 = vadd.f32 %v13446_v17, %v21760_v34 }
 0xa06   :  { %v12883_v2 = vpop.f32.mrf.mxu3 }
 0xa07   :  { %v13503_v2 = vperm.slane %v13423_v49, 6 }
 0xa09   :  { %v13535_v39 = vmul.f32 %v13503_v2, %v13485_v5 }
 0xa0e   :  { %v21796_v32 = vpop.f32.mrf.mxu3 }
 0xa16   :  { %v12935_v57 = vpop.f32.mrf.mxu3 }
 0xa1e   :  { %v13198_v60 = vpop.f32.mrf.mxu3 }
 0xa1f   :  { %v13397_v29 = vadd.f32 %v13198_v60, %v12976_v63  ;;  %v13502_v63 = vperm.slane %v13423_v49, 5  ;;  %v13441_v60 = vperm.slane %v13419_v27, 2 }
 0xa21   :  { %v13463_v43 = vadd.f32 %v13431_v26, %v13397_v29  ;;  %v13534_v4 = vmul.f32 %v13502_v63, %v13484_v56  ;;  %v13426_v26 = vld [vmem:[#allocation5 + $0x41] ss:$8 sm:$0xf0]  ;;  %v13473_v49 = vadd.f32 %v13441_v60, %v21782_v51 }
 0xa22   :  { %v13427_v25 = vor.u32 %v13426_v26, %v13425_v15 }
 0xa23   :  { %v13479_v59 = vmax.f32 %v13463_v43, 0.0  ;;  %v13489_v45 = vmax.f32 %v13473_v49, 0.0 }
 0xa24   :  { %v13505_v18 = vperm.slane %v13427_v25, 0  ;;  %v13509_v56 = vperm.slane %v13427_v25, 4  ;;  %v13510_v33 = vperm.slane %v13427_v25, 5 }
 0xa25   :  { %v13529_v22 = vmul.f32 %v13497_v30, %v13479_v59  ;;  %v13506_v59 = vperm.slane %v13427_v25, 1 }
 0xa26   :  { %v13200_v1 = vpop.f32.mrf.mxu3 }
 0xa27   :  { %v13545_v48 = vadd.f32 %v13530_v38, %v13529_v22  ;;  %v13474_v38 = vadd.f32 %v13442_v62, %v21749_v53  ;;  %v13507_v22 = vperm.slane %v13427_v25, 2 }
 0xa29   :  { %v13546_v12 = vadd.f32 %v13545_v48, %v13531_v47  ;;  %v13538_v48 = vmul.f32 %v13506_v59, %v13488_v0  ;;  %v13539_v19 = vmul.f32 %v13507_v22, %v13489_v45 }
 0xa2b   :  { %v13547_v8 = vadd.f32 %v13546_v12, %v13532_v13  ;;  %v13490_v13 = vmax.f32 %v13474_v38, 0.0  ;;  %v13508_v12 = vperm.slane %v13427_v25, 3 }
 0xa2d   :  { %v13540_v61 = vmul.f32 %v13508_v12, %v13490_v13 }
 0xa2e   :  { %v13250_v41 = vpop.f32.mrf.mxu3 }
 0xa2f   :  { %v13401_v42 = vadd.f32 %v13250_v41, %v12980_v44  ;;  %v12988_v41 = vadd.f32 %v21796_v32, %v21792_v35 }
 0xa31   :  { %v13467_v23 = vadd.f32 %v13435_v20, %v13401_v42  ;;  %v13445_v20 = vperm.slane %v13419_v27, 6 }
 0xa33   :  { %v13483_v28 = vmax.f32 %v13467_v23, 0.0 }
 0xa35   :  { %v13533_v40 = vmul.f32 %v13501_v21, %v13483_v28  ;;  %v13477_v21 = vadd.f32 %v13445_v20, %v21786_v11 }
 0xa36   :  { %v13252_v57 = vpop.f32.mrf.mxu3 }
 0xa37   :  { %v13548_v44 = vadd.f32 %v13547_v8, %v13533_v40  ;;  %v13493_v5 = vmax.f32 %v13477_v21, 0.0  ;;  %v13511_v40 = vperm.slane %v13427_v25, 6  ;;  %v13494_v57 = vmax.f32 %v13478_v58, 0.0 }
 0xa39   :  { %v13549_v31 = vadd.f32 %v13548_v44, %v13534_v4  ;;  %v13512_v4 = vperm.slane %v13427_v25, 7 }
 0xa3b   :  { %v13550_v10 = vadd.f32 %v13549_v31, %v13535_v39  ;;  %v13544_v54 = vmul.f32 %v13512_v4, %v13494_v57  ;;  %v13428_v39 = vld [vmem:[#allocation5 + $0x2] ss:$0 sm:$0xff] }
 0xa3d   :  { %v13551_v3 = vadd.f32 %v13550_v10, %v13536_v16 }
 0xa3e   :  { %v13302_v29 = vpop.f32.mrf.mxu3 }
 0xa3f   :  { %v13405_v43 = vadd.f32 %v13302_v29, %v21794_v50  ;;  %v13444_v50 = vperm.slane %v13419_v27, 5 }
 0xa41   :  { %v13471_v30 = vadd.f32 %v13439_v37, %v13405_v43  ;;  %v13476_v42 = vadd.f32 %v13444_v50, %v21743_v6  ;;  %v13543_v6 = vmul.f32 %v13511_v40, %v13493_v5 }
 0xa43   :  { %v13487_v36 = vmax.f32 %v13471_v30, 0.0  ;;  %v13492_v63 = vmax.f32 %v13476_v42, 0.0 }
 0xa45   :  { %v13537_v1 = vmul.f32 %v13505_v18, %v13487_v36  ;;  %v13542_v32 = vmul.f32 %v13510_v33, %v13492_v63 }
 0xa46   :  { %v13304_v47 = vpop.f32.mrf.mxu3 }
 0xa47   :  { %v13552_v55 = vadd.f32 %v13551_v3, %v13537_v1 }
 0xa49   :  { %v13553_v8 = vadd.f32 %v13552_v55, %v13538_v48 }
 0xa4b   :  { %v13554_v51 = vadd.f32 %v13553_v8, %v13539_v19 }
 0xa4d   :  { %v13555_v53 = vadd.f32 %v13554_v51, %v13540_v61 }
 0xa4e   :  { %v13354_v24 = vpop.f32.mrf.mxu3 }
 0xa4f   :  { %v13409_v23 = vadd.f32 %v13354_v24, %v12988_v41 }
 0xa51   :  { %v13475_v46 = vadd.f32 %v13443_v52, %v13409_v23 }
 0xa53   :  { %v13491_v28 = vmax.f32 %v13475_v46, 0.0 }
 0xa55   :  { %v13541_v2 = vmul.f32 %v13509_v56, %v13491_v28 }
 0xa56   :  { %v13356_v35 = vpop.f32.mrf.mxu3 }
 0xa57   :  { %v13556_v9 = vadd.f32 %v13555_v53, %v13541_v2 }
 0xa59   :  { %v13557_v27 = vadd.f32 %v13556_v9, %v13542_v32 }
 0xa5b   :  { %v13558_v44 = vadd.f32 %v13557_v27, %v13543_v6 }
 0xa5d   :  { %v13559_v11 = vadd.f32 %v13558_v44, %v13544_v54 }
 0xa5f   :  { %13560 = vadd.xlane.f32.xlu0 %v13559_v11 }
 0xad2   :  { %v13561_v31 = vpop.xlane.xlu0 %13560 }
 0xad3   :  { %v13562_v14 = vadd.f32 %v13561_v31, %v13428_v39 }
 0xad5   :  { %13564 = vst.msk [vmem:[%s21820_s4] sm:$0x3] %vm13563_vm3, %v13562_v14 }
 0xad6   :  { %13569 = vsyncpa [#allocation4], 1 }
 0xad7   :  { %13570 = vsyncpa [#allocation6], 1 }

</bundles_post_ra>
